<compile_context>
chip_gen: v7x
topology: tpu7x:2x2x1
jax: 0.10.0
libtpu: 0.0.40
codegen_flags: <defaults>
</compile_context>

<pallas_src>
import jax
import jax.numpy as jnp
from jax.experimental import pallas as pl
from jax.experimental.pallas import tpu as pltpu

# Module hyper-parameters (SinkhornNet(N=8), matches the test setup below).
N = 8          # permutation size
N_ITERS = 20   # sinkhorn iterations
TAU = 0.1

F_TXT = 300
F_VIS = 2048
F_POS = 4
F_POS_PAD = 128                  # lane-aligned pad of the positional branch
F_TOT = F_TXT + F_VIS + F_POS    # 2352

H_TXT = 128
H_VIS1 = 512
H_VIS2 = 128
H_FC = 256


def sinkhorn_net_kernel(txt_ref, vis_ref, pos_ref,
                        w1t_ref, b1t_ref,
                        w1v_ref, b1v_ref,
                        w2v_ref, b2v_ref,
                        wfp_t_ref, wfp_v_ref, wfp_p_ref, bfp_ref,
                        wfc_ref, bfc_ref,
                        out_ref):
    bt, s, _ = txt_ref.shape          # (block_b, S, ...)
    m = bt * s                        # matmul M dimension

    # Leading-dim collapse (layout no-op: S is a multiple of the sublane tile).
    x_txt = txt_ref[...].reshape(m, F_TXT)
    x_vis = vis_ref[...].reshape(m, F_VIS)
    x_pos = pos_ref[...].reshape(m, F_POS_PAD)

    # W1_txt: 300 -> 128, relu
    h_txt = jnp.maximum(
        jnp.dot(x_txt, w1t_ref[...], preferred_element_type=jnp.float32)
        + b1t_ref[...], 0.0)
    # W1_vis: 2048 -> 512, relu
    h_vis = jnp.maximum(
        jnp.dot(x_vis, w1v_ref[...], preferred_element_type=jnp.float32)
        + b1v_ref[...], 0.0)
    # W2_vis: 512 -> 128, relu
    h_vis = jnp.maximum(
        jnp.dot(h_vis, w2v_ref[...], preferred_element_type=jnp.float32)
        + b2v_ref[...], 0.0)

    # W_fc_pos: 260 -> 256, relu.  Instead of concat([h_txt, h_vis, x_pos])
    # (260-wide, lane-misaligned), the weight is split into row blocks and the
    # three aligned matmuls are summed in f32.  wfp_p is zero-padded to 128
    # rows to match the padded positional input (exact, zero contribution).
    h = (jnp.dot(h_txt, wfp_t_ref[...], preferred_element_type=jnp.float32)
         + jnp.dot(h_vis, wfp_v_ref[...], preferred_element_type=jnp.float32)
         + jnp.dot(x_pos, wfp_p_ref[...], preferred_element_type=jnp.float32)
         + bfp_ref[...])
    h = jnp.maximum(h, 0.0)

    # W_fc: 256 -> N, tanh
    logits = jnp.tanh(
        jnp.dot(h, wfc_ref[...], preferred_element_type=jnp.float32)
        + bfc_ref[...])                                        # (m, N)

    # Sinkhorn normalization on the whole (bt, S, N) slab, fully unrolled.
    p = jnp.exp(logits * (1.0 / TAU)).reshape(bt, s, N)
    for _ in range(N_ITERS):
        p = p / (1e-07 + jnp.sum(p, axis=1, keepdims=True))    # column norm
        p = p / (1e-07 + jnp.sum(p, axis=2, keepdims=True))    # row norm

    out_ref[...] = p


def sinkhorn_net(seq, params, *, block_b=None):
    (w1t, b1t, w1v, b1v, w2v, b2v,
     wfp_t, wfp_v, wfp_p, bfp, wfc, bfc) = params
    B, S, F = seq.shape
    assert F == F_TOT

    # Pre-split the feature axis in the wrapper so each kernel operand is
    # delivered lane-aligned (no slice at column 300 / 2348 inside the kernel).
    seq_txt = seq[:, :, :F_TXT]
    seq_vis = seq[:, :, F_TXT:F_TXT + F_VIS]
    seq_pos = seq[:, :, F_TXT + F_VIS:]

    # Pad the 4-wide positional branch (and its weight rows) to 128 so the
    # kernel only ever sees aligned matmul operands.  Zero rows contribute 0.
    seq_pos = jnp.pad(seq_pos, ((0, 0), (0, 0), (0, F_POS_PAD - F_POS)))
    wfp_p_pad = jnp.pad(wfp_p, ((0, F_POS_PAD - wfp_p.shape[0]), (0, 0)))

    # Batch tile: target ~256 matmul rows per grid step, but keep >= 2 grid
    # steps when B >= 2 so both v7x TensorCores get work.
    if block_b is None:
        block_b = max(1, 256 // S)
    block_b = min(block_b, max(1, pl.cdiv(B, 2)))
    block_b = max(1, min(block_b, B))
    grid_b = pl.cdiv(B, block_b)
    B_pad = grid_b * block_b
    if B_pad != B:
        pad = ((0, B_pad - B), (0, 0), (0, 0))
        seq_txt = jnp.pad(seq_txt, pad)
        seq_vis = jnp.pad(seq_vis, pad)
        seq_pos = jnp.pad(seq_pos, pad)

    weights = (w1t, b1t, w1v, b1v, w2v, b2v,
               wfp_t, wfp_v, wfp_p_pad, bfp, wfc, bfc)

    def full_spec(arr):
        zeros = (0,) * arr.ndim
        return pl.BlockSpec(arr.shape, lambda b: zeros)   # VMEM-resident weight

    out = pl.pallas_call(
        sinkhorn_net_kernel,
        out_shape=jax.ShapeDtypeStruct((B_pad, S, N), jnp.float32),
        grid_spec=pltpu.PrefetchScalarGridSpec(
            num_scalar_prefetch=0,
            grid=(grid_b,),
            in_specs=[
                pl.BlockSpec((block_b, S, F_TXT), lambda b: (b, 0, 0)),
                pl.BlockSpec((block_b, S, F_VIS), lambda b: (b, 0, 0)),
                pl.BlockSpec((block_b, S, F_POS_PAD), lambda b: (b, 0, 0)),
            ] + [full_spec(w) for w in weights],
            out_specs=pl.BlockSpec((block_b, S, N), lambda b: (b, 0, 0)),
        ),
        compiler_params=pltpu.CompilerParams(
            dimension_semantics=("parallel",),
            vmem_limit_bytes=32 << 20),
    )(seq_txt, seq_vis, seq_pos, *weights)
    return out[:B]


def init_params(key):
    """Xavier-normal weights stored transposed as (in, out); zero biases.

    W_fc_pos is generated as a single (260, 256) matrix and split into
    (128, 128, 4) row blocks matching [h_txt | h_vis | x_pos]."""
    def xavier(k, fan_in, fan_out):
        std = (2.0 / (fan_in + fan_out)) ** 0.5
        return (std * jax.random.normal(k, (fan_in, fan_out))).astype(jnp.float32)

    ks = jax.random.split(key, 5)
    w1t = xavier(ks[0], F_TXT, H_TXT)
    b1t = jnp.zeros((1, H_TXT), jnp.float32)
    w1v = xavier(ks[1], F_VIS, H_VIS1)
    b1v = jnp.zeros((1, H_VIS1), jnp.float32)
    w2v = xavier(ks[2], H_VIS1, H_VIS2)
    b2v = jnp.zeros((1, H_VIS2), jnp.float32)
    wfp = xavier(ks[3], H_TXT + H_VIS2 + F_POS, H_FC)          # (260, 256)
    wfp_t = wfp[:H_TXT]                                         # (128, 256)
    wfp_v = wfp[H_TXT:H_TXT + H_VIS2]                           # (128, 256)
    wfp_p = wfp[H_TXT + H_VIS2:]                                # (4, 256)
    bfp = jnp.zeros((1, H_FC), jnp.float32)
    wfc = xavier(ks[4], H_FC, N)
    bfc = jnp.zeros((1, N), jnp.float32)
    return (w1t, b1t, w1v, b1v, w2v, b2v,
            wfp_t, wfp_v, wfp_p, bfp, wfc, bfc)


def sinkhorn_net_ref(seq, params):
    """Pure-JAX reference mirroring the PyTorch forward."""
    (w1t, b1t, w1v, b1v, w2v, b2v, wfp_t, wfp_v, wfp_p, bfp, wfc, bfc) = params
    x_txt = seq[:, :, :F_TXT]
    x_vis = seq[:, :, F_TXT:F_TXT + F_VIS]
    x_pos = seq[:, :, F_TXT + F_VIS:]
    h_txt = jax.nn.relu(x_txt @ w1t + b1t)
    h_vis = jax.nn.relu(x_vis @ w1v + b1v)
    h_vis = jax.nn.relu(h_vis @ w2v + b2v)
    x = jnp.concatenate([h_txt, h_vis, x_pos], axis=-1)
    wfp = jnp.concatenate([wfp_t, wfp_v, wfp_p], axis=0)
    x = jax.nn.relu(x @ wfp + bfp)
    x = jnp.tanh(x @ wfc + bfc)
    p = jnp.exp(x / TAU)
    for _ in range(N_ITERS):
        p = p / (1e-07 + jnp.sum(p, -2, keepdims=True))
        p = p / (1e-07 + jnp.sum(p, -1, keepdims=True))
    return p


if __name__ == "__main__":
    key = jax.random.PRNGKey(0)
    k_params, k_x = jax.random.split(key)

    params = init_params(k_params)

    B, S = 4, N   # small test: batch=4, seq length = N so Sinkhorn is 8x8
    seq = jax.random.normal(k_x, (B, S, F_TOT), jnp.float32)

    out = jax.block_until_ready(sinkhorn_net(seq, params))
    assert out.shape == (B, S, N)
    assert bool(jnp.all(jnp.isfinite(out)))

    # Structural check: last Sinkhorn step row-normalizes, so row sums ~ 1
    # independently of matmul rounding.
    row_sums = jnp.sum(out, axis=-1)
    assert bool(jnp.allclose(row_sums, 1.0, atol=1e-3))

    ref = sinkhorn_net_ref(seq, params)
    max_err = float(jnp.max(jnp.abs(out - ref)))
    # Loose tolerance: tau=0.1 amplifies matmul-rounding differences (different
    # MXU pass counts between XLA and Mosaic) by 10x before the exp.
    assert bool(jnp.allclose(out, ref, rtol=1e-1, atol=5e-2)), (
        "kernel/reference mismatch: max abs diff = " + str(max_err))

    print("KERNEL_OK")
</pallas_src>

<mosaic_0001>
module attributes {stable_mosaic.version = 11 : i64} {
  func.func @sinkhorn_net_kernel(%arg0: i32, %arg1: memref<2x8x300xf32, #tpu.memory_space<vmem>>, %arg2: memref<2x8x2048xf32, #tpu.memory_space<vmem>>, %arg3: memref<2x8x128xf32, #tpu.memory_space<vmem>>, %arg4: memref<300x128xf32, #tpu.memory_space<vmem>>, %arg5: memref<1x128xf32, #tpu.memory_space<vmem>>, %arg6: memref<2048x512xf32, #tpu.memory_space<vmem>>, %arg7: memref<1x512xf32, #tpu.memory_space<vmem>>, %arg8: memref<512x128xf32, #tpu.memory_space<vmem>>, %arg9: memref<1x128xf32, #tpu.memory_space<vmem>>, %arg10: memref<128x256xf32, #tpu.memory_space<vmem>>, %arg11: memref<128x256xf32, #tpu.memory_space<vmem>>, %arg12: memref<128x256xf32, #tpu.memory_space<vmem>>, %arg13: memref<1x256xf32, #tpu.memory_space<vmem>>, %arg14: memref<256x8xf32, #tpu.memory_space<vmem>>, %arg15: memref<1x8xf32, #tpu.memory_space<vmem>>, %arg16: memref<2x8x8xf32, #tpu.memory_space<vmem>>) attributes {dimension_semantics = [#tpu.dimension_semantics<parallel>], iteration_bounds = array<i64: 2>, scalar_prefetch = 0 : i64, scratch_operands = 0 : i64, tpu.core_type = #tpu.core_type<tc>, window_params = [{transform_indices = @transform_0, window_bounds = array<i64: 2, 8, 300>}, {transform_indices = @transform_1, window_bounds = array<i64: 2, 8, 2048>}, {transform_indices = @transform_2, window_bounds = array<i64: 2, 8, 128>}, {pipeline_mode = #tpu.pipeline_mode<synchronous>, transform_indices = @transform_3, window_bounds = array<i64: 300, 128>}, {pipeline_mode = #tpu.pipeline_mode<synchronous>, transform_indices = @transform_4, window_bounds = array<i64: 1, 128>}, {pipeline_mode = #tpu.pipeline_mode<synchronous>, transform_indices = @transform_5, window_bounds = array<i64: 2048, 512>}, {pipeline_mode = #tpu.pipeline_mode<synchronous>, transform_indices = @transform_6, window_bounds = array<i64: 1, 512>}, {pipeline_mode = #tpu.pipeline_mode<synchronous>, transform_indices = @transform_7, window_bounds = array<i64: 512, 128>}, {pipeline_mode = #tpu.pipeline_mode<synchronous>, transform_indices = @transform_8, window_bounds = array<i64: 1, 128>}, {pipeline_mode = #tpu.pipeline_mode<synchronous>, transform_indices = @transform_9, window_bounds = array<i64: 128, 256>}, {pipeline_mode = #tpu.pipeline_mode<synchronous>, transform_indices = @transform_10, window_bounds = array<i64: 128, 256>}, {pipeline_mode = #tpu.pipeline_mode<synchronous>, transform_indices = @transform_11, window_bounds = array<i64: 128, 256>}, {pipeline_mode = #tpu.pipeline_mode<synchronous>, transform_indices = @transform_12, window_bounds = array<i64: 1, 256>}, {pipeline_mode = #tpu.pipeline_mode<synchronous>, transform_indices = @transform_13, window_bounds = array<i64: 256, 8>}, {pipeline_mode = #tpu.pipeline_mode<synchronous>, transform_indices = @transform_14, window_bounds = array<i64: 1, 8>}, {transform_indices = @transform_15, window_bounds = array<i64: 2, 8, 8>}]} {
    %c0 = arith.constant 0 : index
    %c0_0 = arith.constant 0 : index
    %c0_1 = arith.constant 0 : index
    %0 = vector.load %arg1[%c0, %c0_0, %c0_1] : memref<2x8x300xf32, #tpu.memory_space<vmem>>, vector<2x8x300xf32>
    %1 = vector.shape_cast %0 : vector<2x8x300xf32> to vector<16x300xf32>
    %c0_2 = arith.constant 0 : index
    %c0_3 = arith.constant 0 : index
    %c0_4 = arith.constant 0 : index
    %2 = vector.load %arg2[%c0_2, %c0_3, %c0_4] : memref<2x8x2048xf32, #tpu.memory_space<vmem>>, vector<2x8x2048xf32>
    %3 = vector.shape_cast %2 : vector<2x8x2048xf32> to vector<16x2048xf32>
    %c0_5 = arith.constant 0 : index
    %c0_6 = arith.constant 0 : index
    %c0_7 = arith.constant 0 : index
    %4 = vector.load %arg3[%c0_5, %c0_6, %c0_7] : memref<2x8x128xf32, #tpu.memory_space<vmem>>, vector<2x8x128xf32>
    %5 = vector.shape_cast %4 : vector<2x8x128xf32> to vector<16x128xf32>
    %c0_8 = arith.constant 0 : index
    %c0_9 = arith.constant 0 : index
    %6 = vector.load %arg4[%c0_8, %c0_9] : memref<300x128xf32, #tpu.memory_space<vmem>>, vector<300x128xf32>
    %cst = arith.constant dense<0.000000e+00> : vector<16x128xf32>
    %7 = tpu.matmul %1, %6, %cst {dimension_numbers = #tpu.dot_dimension_numbers<[1], [0], [0], [1], [0, 0, 1, 1], [], []>} : vector<16x300xf32>, vector<300x128xf32>, vector<16x128xf32> -> vector<16x128xf32>
    %c0_10 = arith.constant 0 : index
    %c0_11 = arith.constant 0 : index
    %8 = vector.load %arg5[%c0_10, %c0_11] : memref<1x128xf32, #tpu.memory_space<vmem>>, vector<1x128xf32>
    %9 = vector.broadcast %8 : vector<1x128xf32> to vector<16x128xf32>
    %10 = arith.addf %7, %9 : vector<16x128xf32>
    %cst_12 = arith.constant 0.000000e+00 : f32
    %11 = vector.broadcast %cst_12 : f32 to vector<16x128xf32>
    %12 = arith.maximumf %10, %11 : vector<16x128xf32>
    %c0_13 = arith.constant 0 : index
    %c0_14 = arith.constant 0 : index
    %13 = vector.load %arg6[%c0_13, %c0_14] : memref<2048x512xf32, #tpu.memory_space<vmem>>, vector<2048x512xf32>
    %cst_15 = arith.constant dense<0.000000e+00> : vector<16x512xf32>
    %14 = tpu.matmul %3, %13, %cst_15 {dimension_numbers = #tpu.dot_dimension_numbers<[1], [0], [0], [1], [0, 0, 1, 1], [], []>} : vector<16x2048xf32>, vector<2048x512xf32>, vector<16x512xf32> -> vector<16x512xf32>
    %c0_16 = arith.constant 0 : index
    %c0_17 = arith.constant 0 : index
    %15 = vector.load %arg7[%c0_16, %c0_17] : memref<1x512xf32, #tpu.memory_space<vmem>>, vector<1x512xf32>
    %16 = vector.broadcast %15 : vector<1x512xf32> to vector<16x512xf32>
    %17 = arith.addf %14, %16 : vector<16x512xf32>
    %cst_18 = arith.constant 0.000000e+00 : f32
    %18 = vector.broadcast %cst_18 : f32 to vector<16x512xf32>
    %19 = arith.maximumf %17, %18 : vector<16x512xf32>
    %c0_19 = arith.constant 0 : index
    %c0_20 = arith.constant 0 : index
    %20 = vector.load %arg8[%c0_19, %c0_20] : memref<512x128xf32, #tpu.memory_space<vmem>>, vector<512x128xf32>
    %cst_21 = arith.constant dense<0.000000e+00> : vector<16x128xf32>
    %21 = tpu.matmul %19, %20, %cst_21 {dimension_numbers = #tpu.dot_dimension_numbers<[1], [0], [0], [1], [0, 0, 1, 1], [], []>} : vector<16x512xf32>, vector<512x128xf32>, vector<16x128xf32> -> vector<16x128xf32>
    %c0_22 = arith.constant 0 : index
    %c0_23 = arith.constant 0 : index
    %22 = vector.load %arg9[%c0_22, %c0_23] : memref<1x128xf32, #tpu.memory_space<vmem>>, vector<1x128xf32>
    %23 = vector.broadcast %22 : vector<1x128xf32> to vector<16x128xf32>
    %24 = arith.addf %21, %23 : vector<16x128xf32>
    %cst_24 = arith.constant 0.000000e+00 : f32
    %25 = vector.broadcast %cst_24 : f32 to vector<16x128xf32>
    %26 = arith.maximumf %24, %25 : vector<16x128xf32>
    %c0_25 = arith.constant 0 : index
    %c0_26 = arith.constant 0 : index
    %27 = vector.load %arg10[%c0_25, %c0_26] : memref<128x256xf32, #tpu.memory_space<vmem>>, vector<128x256xf32>
    %cst_27 = arith.constant dense<0.000000e+00> : vector<16x256xf32>
    %28 = tpu.matmul %12, %27, %cst_27 {dimension_numbers = #tpu.dot_dimension_numbers<[1], [0], [0], [1], [0, 0, 1, 1], [], []>} : vector<16x128xf32>, vector<128x256xf32>, vector<16x256xf32> -> vector<16x256xf32>
    %c0_28 = arith.constant 0 : index
    %c0_29 = arith.constant 0 : index
    %29 = vector.load %arg11[%c0_28, %c0_29] : memref<128x256xf32, #tpu.memory_space<vmem>>, vector<128x256xf32>
    %cst_30 = arith.constant dense<0.000000e+00> : vector<16x256xf32>
    %30 = tpu.matmul %26, %29, %cst_30 {dimension_numbers = #tpu.dot_dimension_numbers<[1], [0], [0], [1], [0, 0, 1, 1], [], []>} : vector<16x128xf32>, vector<128x256xf32>, vector<16x256xf32> -> vector<16x256xf32>
    %31 = arith.addf %28, %30 : vector<16x256xf32>
    %c0_31 = arith.constant 0 : index
    %c0_32 = arith.constant 0 : index
    %32 = vector.load %arg12[%c0_31, %c0_32] : memref<128x256xf32, #tpu.memory_space<vmem>>, vector<128x256xf32>
    %cst_33 = arith.constant dense<0.000000e+00> : vector<16x256xf32>
    %33 = tpu.matmul %5, %32, %cst_33 {dimension_numbers = #tpu.dot_dimension_numbers<[1], [0], [0], [1], [0, 0, 1, 1], [], []>} : vector<16x128xf32>, vector<128x256xf32>, vector<16x256xf32> -> vector<16x256xf32>
    %34 = arith.addf %31, %33 : vector<16x256xf32>
    %c0_34 = arith.constant 0 : index
    %c0_35 = arith.constant 0 : index
    %35 = vector.load %arg13[%c0_34, %c0_35] : memref<1x256xf32, #tpu.memory_space<vmem>>, vector<1x256xf32>
    %36 = vector.broadcast %35 : vector<1x256xf32> to vector<16x256xf32>
    %37 = arith.addf %34, %36 : vector<16x256xf32>
    %cst_36 = arith.constant 0.000000e+00 : f32
    %38 = vector.broadcast %cst_36 : f32 to vector<16x256xf32>
    %39 = arith.maximumf %37, %38 : vector<16x256xf32>
    %c0_37 = arith.constant 0 : index
    %c0_38 = arith.constant 0 : index
    %40 = vector.load %arg14[%c0_37, %c0_38] : memref<256x8xf32, #tpu.memory_space<vmem>>, vector<256x8xf32>
    %cst_39 = arith.constant dense<0.000000e+00> : vector<16x8xf32>
    %41 = tpu.matmul %39, %40, %cst_39 {dimension_numbers = #tpu.dot_dimension_numbers<[1], [0], [0], [1], [0, 0, 1, 1], [], []>} : vector<16x256xf32>, vector<256x8xf32>, vector<16x8xf32> -> vector<16x8xf32>
    %c0_40 = arith.constant 0 : index
    %c0_41 = arith.constant 0 : index
    %42 = vector.load %arg15[%c0_40, %c0_41] : memref<1x8xf32, #tpu.memory_space<vmem>>, vector<1x8xf32>
    %43 = vector.broadcast %42 : vector<1x8xf32> to vector<16x8xf32>
    %44 = arith.addf %41, %43 : vector<16x8xf32>
    %45 = math.tanh %44 : vector<16x8xf32>
    %cst_42 = arith.constant 1.000000e+01 : f32
    %46 = vector.broadcast %cst_42 : f32 to vector<16x8xf32>
    %47 = arith.mulf %45, %46 : vector<16x8xf32>
    %48 = math.exp %47 : vector<16x8xf32>
    %49 = vector.shape_cast %48 : vector<16x8xf32> to vector<2x8x8xf32>
    %cst_43 = arith.constant dense<0.000000e+00> : vector<2x8xf32>
    %50 = vector.multi_reduction <add>, %49, %cst_43 [1] : vector<2x8x8xf32> to vector<2x8xf32>
    %51 = vector.shape_cast %50 : vector<2x8xf32> to vector<2x1x8xf32>
    %cst_44 = arith.constant 1.000000e-07 : f32
    %52 = vector.broadcast %cst_44 : f32 to vector<2x1x8xf32>
    %53 = arith.addf %52, %51 : vector<2x1x8xf32>
    %54 = vector.broadcast %53 : vector<2x1x8xf32> to vector<2x8x8xf32>
    %55 = arith.divf %49, %54 : vector<2x8x8xf32>
    %cst_45 = arith.constant dense<0.000000e+00> : vector<2x8xf32>
    %56 = vector.multi_reduction <add>, %55, %cst_45 [2] : vector<2x8x8xf32> to vector<2x8xf32>
    %57 = vector.shape_cast %56 : vector<2x8xf32> to vector<2x8x1xf32>
    %cst_46 = arith.constant 1.000000e-07 : f32
    %58 = vector.broadcast %cst_46 : f32 to vector<2x8x1xf32>
    %59 = arith.addf %58, %57 : vector<2x8x1xf32>
    %60 = vector.broadcast %59 : vector<2x8x1xf32> to vector<2x8x8xf32>
    %61 = arith.divf %55, %60 : vector<2x8x8xf32>
    %cst_47 = arith.constant dense<0.000000e+00> : vector<2x8xf32>
    %62 = vector.multi_reduction <add>, %61, %cst_47 [1] : vector<2x8x8xf32> to vector<2x8xf32>
    %63 = vector.shape_cast %62 : vector<2x8xf32> to vector<2x1x8xf32>
    %cst_48 = arith.constant 1.000000e-07 : f32
    %64 = vector.broadcast %cst_48 : f32 to vector<2x1x8xf32>
    %65 = arith.addf %64, %63 : vector<2x1x8xf32>
    %66 = vector.broadcast %65 : vector<2x1x8xf32> to vector<2x8x8xf32>
    %67 = arith.divf %61, %66 : vector<2x8x8xf32>
    %cst_49 = arith.constant dense<0.000000e+00> : vector<2x8xf32>
    %68 = vector.multi_reduction <add>, %67, %cst_49 [2] : vector<2x8x8xf32> to vector<2x8xf32>
    %69 = vector.shape_cast %68 : vector<2x8xf32> to vector<2x8x1xf32>
    %cst_50 = arith.constant 1.000000e-07 : f32
    %70 = vector.broadcast %cst_50 : f32 to vector<2x8x1xf32>
    %71 = arith.addf %70, %69 : vector<2x8x1xf32>
    %72 = vector.broadcast %71 : vector<2x8x1xf32> to vector<2x8x8xf32>
    %73 = arith.divf %67, %72 : vector<2x8x8xf32>
    %cst_51 = arith.constant dense<0.000000e+00> : vector<2x8xf32>
    %74 = vector.multi_reduction <add>, %73, %cst_51 [1] : vector<2x8x8xf32> to vector<2x8xf32>
    %75 = vector.shape_cast %74 : vector<2x8xf32> to vector<2x1x8xf32>
    %cst_52 = arith.constant 1.000000e-07 : f32
    %76 = vector.broadcast %cst_52 : f32 to vector<2x1x8xf32>
    %77 = arith.addf %76, %75 : vector<2x1x8xf32>
    %78 = vector.broadcast %77 : vector<2x1x8xf32> to vector<2x8x8xf32>
    %79 = arith.divf %73, %78 : vector<2x8x8xf32>
    %cst_53 = arith.constant dense<0.000000e+00> : vector<2x8xf32>
    %80 = vector.multi_reduction <add>, %79, %cst_53 [2] : vector<2x8x8xf32> to vector<2x8xf32>
    %81 = vector.shape_cast %80 : vector<2x8xf32> to vector<2x8x1xf32>
    %cst_54 = arith.constant 1.000000e-07 : f32
    %82 = vector.broadcast %cst_54 : f32 to vector<2x8x1xf32>
    %83 = arith.addf %82, %81 : vector<2x8x1xf32>
    %84 = vector.broadcast %83 : vector<2x8x1xf32> to vector<2x8x8xf32>
    %85 = arith.divf %79, %84 : vector<2x8x8xf32>
    %cst_55 = arith.constant dense<0.000000e+00> : vector<2x8xf32>
    %86 = vector.multi_reduction <add>, %85, %cst_55 [1] : vector<2x8x8xf32> to vector<2x8xf32>
    %87 = vector.shape_cast %86 : vector<2x8xf32> to vector<2x1x8xf32>
    %cst_56 = arith.constant 1.000000e-07 : f32
    %88 = vector.broadcast %cst_56 : f32 to vector<2x1x8xf32>
    %89 = arith.addf %88, %87 : vector<2x1x8xf32>
    %90 = vector.broadcast %89 : vector<2x1x8xf32> to vector<2x8x8xf32>
    %91 = arith.divf %85, %90 : vector<2x8x8xf32>
    %cst_57 = arith.constant dense<0.000000e+00> : vector<2x8xf32>
    %92 = vector.multi_reduction <add>, %91, %cst_57 [2] : vector<2x8x8xf32> to vector<2x8xf32>
    %93 = vector.shape_cast %92 : vector<2x8xf32> to vector<2x8x1xf32>
    %cst_58 = arith.constant 1.000000e-07 : f32
    %94 = vector.broadcast %cst_58 : f32 to vector<2x8x1xf32>
    %95 = arith.addf %94, %93 : vector<2x8x1xf32>
    %96 = vector.broadcast %95 : vector<2x8x1xf32> to vector<2x8x8xf32>
    %97 = arith.divf %91, %96 : vector<2x8x8xf32>
    %cst_59 = arith.constant dense<0.000000e+00> : vector<2x8xf32>
    %98 = vector.multi_reduction <add>, %97, %cst_59 [1] : vector<2x8x8xf32> to vector<2x8xf32>
    %99 = vector.shape_cast %98 : vector<2x8xf32> to vector<2x1x8xf32>
    %cst_60 = arith.constant 1.000000e-07 : f32
    %100 = vector.broadcast %cst_60 : f32 to vector<2x1x8xf32>
    %101 = arith.addf %100, %99 : vector<2x1x8xf32>
    %102 = vector.broadcast %101 : vector<2x1x8xf32> to vector<2x8x8xf32>
    %103 = arith.divf %97, %102 : vector<2x8x8xf32>
    %cst_61 = arith.constant dense<0.000000e+00> : vector<2x8xf32>
    %104 = vector.multi_reduction <add>, %103, %cst_61 [2] : vector<2x8x8xf32> to vector<2x8xf32>
    %105 = vector.shape_cast %104 : vector<2x8xf32> to vector<2x8x1xf32>
    %cst_62 = arith.constant 1.000000e-07 : f32
    %106 = vector.broadcast %cst_62 : f32 to vector<2x8x1xf32>
    %107 = arith.addf %106, %105 : vector<2x8x1xf32>
    %108 = vector.broadcast %107 : vector<2x8x1xf32> to vector<2x8x8xf32>
    %109 = arith.divf %103, %108 : vector<2x8x8xf32>
    %cst_63 = arith.constant dense<0.000000e+00> : vector<2x8xf32>
    %110 = vector.multi_reduction <add>, %109, %cst_63 [1] : vector<2x8x8xf32> to vector<2x8xf32>
    %111 = vector.shape_cast %110 : vector<2x8xf32> to vector<2x1x8xf32>
    %cst_64 = arith.constant 1.000000e-07 : f32
    %112 = vector.broadcast %cst_64 : f32 to vector<2x1x8xf32>
    %113 = arith.addf %112, %111 : vector<2x1x8xf32>
    %114 = vector.broadcast %113 : vector<2x1x8xf32> to vector<2x8x8xf32>
    %115 = arith.divf %109, %114 : vector<2x8x8xf32>
    %cst_65 = arith.constant dense<0.000000e+00> : vector<2x8xf32>
    %116 = vector.multi_reduction <add>, %115, %cst_65 [2] : vector<2x8x8xf32> to vector<2x8xf32>
    %117 = vector.shape_cast %116 : vector<2x8xf32> to vector<2x8x1xf32>
    %cst_66 = arith.constant 1.000000e-07 : f32
    %118 = vector.broadcast %cst_66 : f32 to vector<2x8x1xf32>
    %119 = arith.addf %118, %117 : vector<2x8x1xf32>
    %120 = vector.broadcast %119 : vector<2x8x1xf32> to vector<2x8x8xf32>
    %121 = arith.divf %115, %120 : vector<2x8x8xf32>
    %cst_67 = arith.constant dense<0.000000e+00> : vector<2x8xf32>
    %122 = vector.multi_reduction <add>, %121, %cst_67 [1] : vector<2x8x8xf32> to vector<2x8xf32>
    %123 = vector.shape_cast %122 : vector<2x8xf32> to vector<2x1x8xf32>
    %cst_68 = arith.constant 1.000000e-07 : f32
    %124 = vector.broadcast %cst_68 : f32 to vector<2x1x8xf32>
    %125 = arith.addf %124, %123 : vector<2x1x8xf32>
    %126 = vector.broadcast %125 : vector<2x1x8xf32> to vector<2x8x8xf32>
    %127 = arith.divf %121, %126 : vector<2x8x8xf32>
    %cst_69 = arith.constant dense<0.000000e+00> : vector<2x8xf32>
    %128 = vector.multi_reduction <add>, %127, %cst_69 [2] : vector<2x8x8xf32> to vector<2x8xf32>
    %129 = vector.shape_cast %128 : vector<2x8xf32> to vector<2x8x1xf32>
    %cst_70 = arith.constant 1.000000e-07 : f32
    %130 = vector.broadcast %cst_70 : f32 to vector<2x8x1xf32>
    %131 = arith.addf %130, %129 : vector<2x8x1xf32>
    %132 = vector.broadcast %131 : vector<2x8x1xf32> to vector<2x8x8xf32>
    %133 = arith.divf %127, %132 : vector<2x8x8xf32>
    %cst_71 = arith.constant dense<0.000000e+00> : vector<2x8xf32>
    %134 = vector.multi_reduction <add>, %133, %cst_71 [1] : vector<2x8x8xf32> to vector<2x8xf32>
    %135 = vector.shape_cast %134 : vector<2x8xf32> to vector<2x1x8xf32>
    %cst_72 = arith.constant 1.000000e-07 : f32
    %136 = vector.broadcast %cst_72 : f32 to vector<2x1x8xf32>
    %137 = arith.addf %136, %135 : vector<2x1x8xf32>
    %138 = vector.broadcast %137 : vector<2x1x8xf32> to vector<2x8x8xf32>
    %139 = arith.divf %133, %138 : vector<2x8x8xf32>
    %cst_73 = arith.constant dense<0.000000e+00> : vector<2x8xf32>
    %140 = vector.multi_reduction <add>, %139, %cst_73 [2] : vector<2x8x8xf32> to vector<2x8xf32>
    %141 = vector.shape_cast %140 : vector<2x8xf32> to vector<2x8x1xf32>
    %cst_74 = arith.constant 1.000000e-07 : f32
    %142 = vector.broadcast %cst_74 : f32 to vector<2x8x1xf32>
    %143 = arith.addf %142, %141 : vector<2x8x1xf32>
    %144 = vector.broadcast %143 : vector<2x8x1xf32> to vector<2x8x8xf32>
    %145 = arith.divf %139, %144 : vector<2x8x8xf32>
    %cst_75 = arith.constant dense<0.000000e+00> : vector<2x8xf32>
    %146 = vector.multi_reduction <add>, %145, %cst_75 [1] : vector<2x8x8xf32> to vector<2x8xf32>
    %147 = vector.shape_cast %146 : vector<2x8xf32> to vector<2x1x8xf32>
    %cst_76 = arith.constant 1.000000e-07 : f32
    %148 = vector.broadcast %cst_76 : f32 to vector<2x1x8xf32>
    %149 = arith.addf %148, %147 : vector<2x1x8xf32>
    %150 = vector.broadcast %149 : vector<2x1x8xf32> to vector<2x8x8xf32>
    %151 = arith.divf %145, %150 : vector<2x8x8xf32>
    %cst_77 = arith.constant dense<0.000000e+00> : vector<2x8xf32>
    %152 = vector.multi_reduction <add>, %151, %cst_77 [2] : vector<2x8x8xf32> to vector<2x8xf32>
    %153 = vector.shape_cast %152 : vector<2x8xf32> to vector<2x8x1xf32>
    %cst_78 = arith.constant 1.000000e-07 : f32
    %154 = vector.broadcast %cst_78 : f32 to vector<2x8x1xf32>
    %155 = arith.addf %154, %153 : vector<2x8x1xf32>
    %156 = vector.broadcast %155 : vector<2x8x1xf32> to vector<2x8x8xf32>
    %157 = arith.divf %151, %156 : vector<2x8x8xf32>
    %cst_79 = arith.constant dense<0.000000e+00> : vector<2x8xf32>
    %158 = vector.multi_reduction <add>, %157, %cst_79 [1] : vector<2x8x8xf32> to vector<2x8xf32>
    %159 = vector.shape_cast %158 : vector<2x8xf32> to vector<2x1x8xf32>
    %cst_80 = arith.constant 1.000000e-07 : f32
    %160 = vector.broadcast %cst_80 : f32 to vector<2x1x8xf32>
    %161 = arith.addf %160, %159 : vector<2x1x8xf32>
    %162 = vector.broadcast %161 : vector<2x1x8xf32> to vector<2x8x8xf32>
    %163 = arith.divf %157, %162 : vector<2x8x8xf32>
    %cst_81 = arith.constant dense<0.000000e+00> : vector<2x8xf32>
    %164 = vector.multi_reduction <add>, %163, %cst_81 [2] : vector<2x8x8xf32> to vector<2x8xf32>
    %165 = vector.shape_cast %164 : vector<2x8xf32> to vector<2x8x1xf32>
    %cst_82 = arith.constant 1.000000e-07 : f32
    %166 = vector.broadcast %cst_82 : f32 to vector<2x8x1xf32>
    %167 = arith.addf %166, %165 : vector<2x8x1xf32>
    %168 = vector.broadcast %167 : vector<2x8x1xf32> to vector<2x8x8xf32>
    %169 = arith.divf %163, %168 : vector<2x8x8xf32>
    %cst_83 = arith.constant dense<0.000000e+00> : vector<2x8xf32>
    %170 = vector.multi_reduction <add>, %169, %cst_83 [1] : vector<2x8x8xf32> to vector<2x8xf32>
    %171 = vector.shape_cast %170 : vector<2x8xf32> to vector<2x1x8xf32>
    %cst_84 = arith.constant 1.000000e-07 : f32
    %172 = vector.broadcast %cst_84 : f32 to vector<2x1x8xf32>
    %173 = arith.addf %172, %171 : vector<2x1x8xf32>
    %174 = vector.broadcast %173 : vector<2x1x8xf32> to vector<2x8x8xf32>
    %175 = arith.divf %169, %174 : vector<2x8x8xf32>
    %cst_85 = arith.constant dense<0.000000e+00> : vector<2x8xf32>
    %176 = vector.multi_reduction <add>, %175, %cst_85 [2] : vector<2x8x8xf32> to vector<2x8xf32>
    %177 = vector.shape_cast %176 : vector<2x8xf32> to vector<2x8x1xf32>
    %cst_86 = arith.constant 1.000000e-07 : f32
    %178 = vector.broadcast %cst_86 : f32 to vector<2x8x1xf32>
    %179 = arith.addf %178, %177 : vector<2x8x1xf32>
    %180 = vector.broadcast %179 : vector<2x8x1xf32> to vector<2x8x8xf32>
    %181 = arith.divf %175, %180 : vector<2x8x8xf32>
    %cst_87 = arith.constant dense<0.000000e+00> : vector<2x8xf32>
    %182 = vector.multi_reduction <add>, %181, %cst_87 [1] : vector<2x8x8xf32> to vector<2x8xf32>
    %183 = vector.shape_cast %182 : vector<2x8xf32> to vector<2x1x8xf32>
    %cst_88 = arith.constant 1.000000e-07 : f32
    %184 = vector.broadcast %cst_88 : f32 to vector<2x1x8xf32>
    %185 = arith.addf %184, %183 : vector<2x1x8xf32>
    %186 = vector.broadcast %185 : vector<2x1x8xf32> to vector<2x8x8xf32>
    %187 = arith.divf %181, %186 : vector<2x8x8xf32>
    %cst_89 = arith.constant dense<0.000000e+00> : vector<2x8xf32>
    %188 = vector.multi_reduction <add>, %187, %cst_89 [2] : vector<2x8x8xf32> to vector<2x8xf32>
    %189 = vector.shape_cast %188 : vector<2x8xf32> to vector<2x8x1xf32>
    %cst_90 = arith.constant 1.000000e-07 : f32
    %190 = vector.broadcast %cst_90 : f32 to vector<2x8x1xf32>
    %191 = arith.addf %190, %189 : vector<2x8x1xf32>
    %192 = vector.broadcast %191 : vector<2x8x1xf32> to vector<2x8x8xf32>
    %193 = arith.divf %187, %192 : vector<2x8x8xf32>
    %cst_91 = arith.constant dense<0.000000e+00> : vector<2x8xf32>
    %194 = vector.multi_reduction <add>, %193, %cst_91 [1] : vector<2x8x8xf32> to vector<2x8xf32>
    %195 = vector.shape_cast %194 : vector<2x8xf32> to vector<2x1x8xf32>
    %cst_92 = arith.constant 1.000000e-07 : f32
    %196 = vector.broadcast %cst_92 : f32 to vector<2x1x8xf32>
    %197 = arith.addf %196, %195 : vector<2x1x8xf32>
    %198 = vector.broadcast %197 : vector<2x1x8xf32> to vector<2x8x8xf32>
    %199 = arith.divf %193, %198 : vector<2x8x8xf32>
    %cst_93 = arith.constant dense<0.000000e+00> : vector<2x8xf32>
    %200 = vector.multi_reduction <add>, %199, %cst_93 [2] : vector<2x8x8xf32> to vector<2x8xf32>
    %201 = vector.shape_cast %200 : vector<2x8xf32> to vector<2x8x1xf32>
    %cst_94 = arith.constant 1.000000e-07 : f32
    %202 = vector.broadcast %cst_94 : f32 to vector<2x8x1xf32>
    %203 = arith.addf %202, %201 : vector<2x8x1xf32>
    %204 = vector.broadcast %203 : vector<2x8x1xf32> to vector<2x8x8xf32>
    %205 = arith.divf %199, %204 : vector<2x8x8xf32>
    %cst_95 = arith.constant dense<0.000000e+00> : vector<2x8xf32>
    %206 = vector.multi_reduction <add>, %205, %cst_95 [1] : vector<2x8x8xf32> to vector<2x8xf32>
    %207 = vector.shape_cast %206 : vector<2x8xf32> to vector<2x1x8xf32>
    %cst_96 = arith.constant 1.000000e-07 : f32
    %208 = vector.broadcast %cst_96 : f32 to vector<2x1x8xf32>
    %209 = arith.addf %208, %207 : vector<2x1x8xf32>
    %210 = vector.broadcast %209 : vector<2x1x8xf32> to vector<2x8x8xf32>
    %211 = arith.divf %205, %210 : vector<2x8x8xf32>
    %cst_97 = arith.constant dense<0.000000e+00> : vector<2x8xf32>
    %212 = vector.multi_reduction <add>, %211, %cst_97 [2] : vector<2x8x8xf32> to vector<2x8xf32>
    %213 = vector.shape_cast %212 : vector<2x8xf32> to vector<2x8x1xf32>
    %cst_98 = arith.constant 1.000000e-07 : f32
    %214 = vector.broadcast %cst_98 : f32 to vector<2x8x1xf32>
    %215 = arith.addf %214, %213 : vector<2x8x1xf32>
    %216 = vector.broadcast %215 : vector<2x8x1xf32> to vector<2x8x8xf32>
    %217 = arith.divf %211, %216 : vector<2x8x8xf32>
    %cst_99 = arith.constant dense<0.000000e+00> : vector<2x8xf32>
    %218 = vector.multi_reduction <add>, %217, %cst_99 [1] : vector<2x8x8xf32> to vector<2x8xf32>
    %219 = vector.shape_cast %218 : vector<2x8xf32> to vector<2x1x8xf32>
    %cst_100 = arith.constant 1.000000e-07 : f32
    %220 = vector.broadcast %cst_100 : f32 to vector<2x1x8xf32>
    %221 = arith.addf %220, %219 : vector<2x1x8xf32>
    %222 = vector.broadcast %221 : vector<2x1x8xf32> to vector<2x8x8xf32>
    %223 = arith.divf %217, %222 : vector<2x8x8xf32>
    %cst_101 = arith.constant dense<0.000000e+00> : vector<2x8xf32>
    %224 = vector.multi_reduction <add>, %223, %cst_101 [2] : vector<2x8x8xf32> to vector<2x8xf32>
    %225 = vector.shape_cast %224 : vector<2x8xf32> to vector<2x8x1xf32>
    %cst_102 = arith.constant 1.000000e-07 : f32
    %226 = vector.broadcast %cst_102 : f32 to vector<2x8x1xf32>
    %227 = arith.addf %226, %225 : vector<2x8x1xf32>
    %228 = vector.broadcast %227 : vector<2x8x1xf32> to vector<2x8x8xf32>
    %229 = arith.divf %223, %228 : vector<2x8x8xf32>
    %cst_103 = arith.constant dense<0.000000e+00> : vector<2x8xf32>
    %230 = vector.multi_reduction <add>, %229, %cst_103 [1] : vector<2x8x8xf32> to vector<2x8xf32>
    %231 = vector.shape_cast %230 : vector<2x8xf32> to vector<2x1x8xf32>
    %cst_104 = arith.constant 1.000000e-07 : f32
    %232 = vector.broadcast %cst_104 : f32 to vector<2x1x8xf32>
    %233 = arith.addf %232, %231 : vector<2x1x8xf32>
    %234 = vector.broadcast %233 : vector<2x1x8xf32> to vector<2x8x8xf32>
    %235 = arith.divf %229, %234 : vector<2x8x8xf32>
    %cst_105 = arith.constant dense<0.000000e+00> : vector<2x8xf32>
    %236 = vector.multi_reduction <add>, %235, %cst_105 [2] : vector<2x8x8xf32> to vector<2x8xf32>
    %237 = vector.shape_cast %236 : vector<2x8xf32> to vector<2x8x1xf32>
    %cst_106 = arith.constant 1.000000e-07 : f32
    %238 = vector.broadcast %cst_106 : f32 to vector<2x8x1xf32>
    %239 = arith.addf %238, %237 : vector<2x8x1xf32>
    %240 = vector.broadcast %239 : vector<2x8x1xf32> to vector<2x8x8xf32>
    %241 = arith.divf %235, %240 : vector<2x8x8xf32>
    %cst_107 = arith.constant dense<0.000000e+00> : vector<2x8xf32>
    %242 = vector.multi_reduction <add>, %241, %cst_107 [1] : vector<2x8x8xf32> to vector<2x8xf32>
    %243 = vector.shape_cast %242 : vector<2x8xf32> to vector<2x1x8xf32>
    %cst_108 = arith.constant 1.000000e-07 : f32
    %244 = vector.broadcast %cst_108 : f32 to vector<2x1x8xf32>
    %245 = arith.addf %244, %243 : vector<2x1x8xf32>
    %246 = vector.broadcast %245 : vector<2x1x8xf32> to vector<2x8x8xf32>
    %247 = arith.divf %241, %246 : vector<2x8x8xf32>
    %cst_109 = arith.constant dense<0.000000e+00> : vector<2x8xf32>
    %248 = vector.multi_reduction <add>, %247, %cst_109 [2] : vector<2x8x8xf32> to vector<2x8xf32>
    %249 = vector.shape_cast %248 : vector<2x8xf32> to vector<2x8x1xf32>
    %cst_110 = arith.constant 1.000000e-07 : f32
    %250 = vector.broadcast %cst_110 : f32 to vector<2x8x1xf32>
    %251 = arith.addf %250, %249 : vector<2x8x1xf32>
    %252 = vector.broadcast %251 : vector<2x8x1xf32> to vector<2x8x8xf32>
    %253 = arith.divf %247, %252 : vector<2x8x8xf32>
    %cst_111 = arith.constant dense<0.000000e+00> : vector<2x8xf32>
    %254 = vector.multi_reduction <add>, %253, %cst_111 [1] : vector<2x8x8xf32> to vector<2x8xf32>
    %255 = vector.shape_cast %254 : vector<2x8xf32> to vector<2x1x8xf32>
    %cst_112 = arith.constant 1.000000e-07 : f32
    %256 = vector.broadcast %cst_112 : f32 to vector<2x1x8xf32>
    %257 = arith.addf %256, %255 : vector<2x1x8xf32>
    %258 = vector.broadcast %257 : vector<2x1x8xf32> to vector<2x8x8xf32>
    %259 = arith.divf %253, %258 : vector<2x8x8xf32>
    %cst_113 = arith.constant dense<0.000000e+00> : vector<2x8xf32>
    %260 = vector.multi_reduction <add>, %259, %cst_113 [2] : vector<2x8x8xf32> to vector<2x8xf32>
    %261 = vector.shape_cast %260 : vector<2x8xf32> to vector<2x8x1xf32>
    %cst_114 = arith.constant 1.000000e-07 : f32
    %262 = vector.broadcast %cst_114 : f32 to vector<2x8x1xf32>
    %263 = arith.addf %262, %261 : vector<2x8x1xf32>
    %264 = vector.broadcast %263 : vector<2x8x1xf32> to vector<2x8x8xf32>
    %265 = arith.divf %259, %264 : vector<2x8x8xf32>
    %cst_115 = arith.constant dense<0.000000e+00> : vector<2x8xf32>
    %266 = vector.multi_reduction <add>, %265, %cst_115 [1] : vector<2x8x8xf32> to vector<2x8xf32>
    %267 = vector.shape_cast %266 : vector<2x8xf32> to vector<2x1x8xf32>
    %cst_116 = arith.constant 1.000000e-07 : f32
    %268 = vector.broadcast %cst_116 : f32 to vector<2x1x8xf32>
    %269 = arith.addf %268, %267 : vector<2x1x8xf32>
    %270 = vector.broadcast %269 : vector<2x1x8xf32> to vector<2x8x8xf32>
    %271 = arith.divf %265, %270 : vector<2x8x8xf32>
    %cst_117 = arith.constant dense<0.000000e+00> : vector<2x8xf32>
    %272 = vector.multi_reduction <add>, %271, %cst_117 [2] : vector<2x8x8xf32> to vector<2x8xf32>
    %273 = vector.shape_cast %272 : vector<2x8xf32> to vector<2x8x1xf32>
    %cst_118 = arith.constant 1.000000e-07 : f32
    %274 = vector.broadcast %cst_118 : f32 to vector<2x8x1xf32>
    %275 = arith.addf %274, %273 : vector<2x8x1xf32>
    %276 = vector.broadcast %275 : vector<2x8x1xf32> to vector<2x8x8xf32>
    %277 = arith.divf %271, %276 : vector<2x8x8xf32>
    %cst_119 = arith.constant dense<0.000000e+00> : vector<2x8xf32>
    %278 = vector.multi_reduction <add>, %277, %cst_119 [1] : vector<2x8x8xf32> to vector<2x8xf32>
    %279 = vector.shape_cast %278 : vector<2x8xf32> to vector<2x1x8xf32>
    %cst_120 = arith.constant 1.000000e-07 : f32
    %280 = vector.broadcast %cst_120 : f32 to vector<2x1x8xf32>
    %281 = arith.addf %280, %279 : vector<2x1x8xf32>
    %282 = vector.broadcast %281 : vector<2x1x8xf32> to vector<2x8x8xf32>
    %283 = arith.divf %277, %282 : vector<2x8x8xf32>
    %cst_121 = arith.constant dense<0.000000e+00> : vector<2x8xf32>
    %284 = vector.multi_reduction <add>, %283, %cst_121 [2] : vector<2x8x8xf32> to vector<2x8xf32>
    %285 = vector.shape_cast %284 : vector<2x8xf32> to vector<2x8x1xf32>
    %cst_122 = arith.constant 1.000000e-07 : f32
    %286 = vector.broadcast %cst_122 : f32 to vector<2x8x1xf32>
    %287 = arith.addf %286, %285 : vector<2x8x1xf32>
    %288 = vector.broadcast %287 : vector<2x8x1xf32> to vector<2x8x8xf32>
    %289 = arith.divf %283, %288 : vector<2x8x8xf32>
    %c0_123 = arith.constant 0 : index
    %c0_124 = arith.constant 0 : index
    %c0_125 = arith.constant 0 : index
    %290 = vector.load %arg16[%c0_123, %c0_124, %c0_125] : memref<2x8x8xf32, #tpu.memory_space<vmem>>, vector<2x8x8xf32>
    tpu.vector_store %arg16[%c0_123, %c0_124, %c0_125], %289 {strides = array<i32>} : memref<2x8x8xf32, #tpu.memory_space<vmem>>, vector<2x8x8xf32>,
    return
  }
  func.func @transform_0(%arg0: i32) -> (i32, i32, i32) {
    %c0_i32 = arith.constant 0 : i32
    %c0_i32_0 = arith.constant 0 : i32
    %c0_i32_1 = arith.constant 0 : i32
    return %arg0, %c0_i32, %c0_i32_0 : i32, i32, i32
  }
  func.func @transform_1(%arg0: i32) -> (i32, i32, i32) {
    %c0_i32 = arith.constant 0 : i32
    %c0_i32_0 = arith.constant 0 : i32
    %c0_i32_1 = arith.constant 0 : i32
    return %arg0, %c0_i32, %c0_i32_0 : i32, i32, i32
  }
  func.func @transform_2(%arg0: i32) -> (i32, i32, i32) {
    %c0_i32 = arith.constant 0 : i32
    %c0_i32_0 = arith.constant 0 : i32
    %c0_i32_1 = arith.constant 0 : i32
    return %arg0, %c0_i32, %c0_i32_0 : i32, i32, i32
  }
  func.func @transform_3(%arg0: i32) -> (i32, i32) {
    %c0_i32 = arith.constant 0 : i32
    %c0_i32_0 = arith.constant 0 : i32
    %c0_i32_1 = arith.constant 0 : i32
    return %c0_i32, %c0_i32_0 : i32, i32
  }
  func.func @transform_4(%arg0: i32) -> (i32, i32) {
    %c0_i32 = arith.constant 0 : i32
    %c0_i32_0 = arith.constant 0 : i32
    %c0_i32_1 = arith.constant 0 : i32
    return %c0_i32, %c0_i32_0 : i32, i32
  }
  func.func @transform_5(%arg0: i32) -> (i32, i32) {
    %c0_i32 = arith.constant 0 : i32
    %c0_i32_0 = arith.constant 0 : i32
    %c0_i32_1 = arith.constant 0 : i32
    return %c0_i32, %c0_i32_0 : i32, i32
  }
  func.func @transform_6(%arg0: i32) -> (i32, i32) {
    %c0_i32 = arith.constant 0 : i32
    %c0_i32_0 = arith.constant 0 : i32
    %c0_i32_1 = arith.constant 0 : i32
    return %c0_i32, %c0_i32_0 : i32, i32
  }
  func.func @transform_7(%arg0: i32) -> (i32, i32) {
    %c0_i32 = arith.constant 0 : i32
    %c0_i32_0 = arith.constant 0 : i32
    %c0_i32_1 = arith.constant 0 : i32
    return %c0_i32, %c0_i32_0 : i32, i32
  }
  func.func @transform_8(%arg0: i32) -> (i32, i32) {
    %c0_i32 = arith.constant 0 : i32
    %c0_i32_0 = arith.constant 0 : i32
    %c0_i32_1 = arith.constant 0 : i32
    return %c0_i32, %c0_i32_0 : i32, i32
  }
  func.func @transform_9(%arg0: i32) -> (i32, i32) {
    %c0_i32 = arith.constant 0 : i32
    %c0_i32_0 = arith.constant 0 : i32
    %c0_i32_1 = arith.constant 0 : i32
    return %c0_i32, %c0_i32_0 : i32, i32
  }
  func.func @transform_10(%arg0: i32) -> (i32, i32) {
    %c0_i32 = arith.constant 0 : i32
    %c0_i32_0 = arith.constant 0 : i32
    %c0_i32_1 = arith.constant 0 : i32
    return %c0_i32, %c0_i32_0 : i32, i32
  }
  func.func @transform_11(%arg0: i32) -> (i32, i32) {
    %c0_i32 = arith.constant 0 : i32
    %c0_i32_0 = arith.constant 0 : i32
    %c0_i32_1 = arith.constant 0 : i32
    return %c0_i32, %c0_i32_0 : i32, i32
  }
  func.func @transform_12(%arg0: i32) -> (i32, i32) {
    %c0_i32 = arith.constant 0 : i32
    %c0_i32_0 = arith.constant 0 : i32
    %c0_i32_1 = arith.constant 0 : i32
    return %c0_i32, %c0_i32_0 : i32, i32
  }
  func.func @transform_13(%arg0: i32) -> (i32, i32) {
    %c0_i32 = arith.constant 0 : i32
    %c0_i32_0 = arith.constant 0 : i32
    %c0_i32_1 = arith.constant 0 : i32
    return %c0_i32, %c0_i32_0 : i32, i32
  }
  func.func @transform_14(%arg0: i32) -> (i32, i32) {
    %c0_i32 = arith.constant 0 : i32
    %c0_i32_0 = arith.constant 0 : i32
    %c0_i32_1 = arith.constant 0 : i32
    return %c0_i32, %c0_i32_0 : i32, i32
  }
  func.func @transform_15(%arg0: i32) -> (i32, i32, i32) {
    %c0_i32 = arith.constant 0 : i32
    %c0_i32_0 = arith.constant 0 : i32
    %c0_i32_1 = arith.constant 0 : i32
    return %arg0, %c0_i32, %c0_i32_0 : i32, i32, i32
  }
}

</mosaic_0001>

<bundles_post_ra>
// kernel: tpu_custom_call.1
= control target key start
LH: loop header
LB: loop body
LE: loop exit
PB: predicated region body
PF: predicated region fallthrough
CT: control target
= control target key end

     0   :  { %s8295_s0 = inlined_call_operand.hbm [shape: f32[4,8,300], index: 0, kind: input, shape index: {}]   ;;  %s8296_s1 = inlined_call_operand.hbm [shape: f32[4,8,2048], index: 1, kind: input, shape index: {}]   ;;  %s8297_s2 = inlined_call_operand.hbm [shape: f32[4,8,128], index: 2, kind: input, shape index: {}]   ;;  %s8298_s3 = inlined_call_operand.hbm [shape: f32[300,128], index: 3, kind: input, shape index: {}]   ;;  %s8299_s4 = inlined_call_operand.hbm [shape: f32[1,128], index: 4, kind: input, shape index: {}]   ;;  %s8300_s5 = inlined_call_operand.hbm [shape: f32[2048,512], index: 5, kind: input, shape index: {}]   ;;  %s8301_s6 = inlined_call_operand.hbm [shape: f32[1,512], index: 6, kind: input, shape index: {}]   ;;  %s8302_s7 = inlined_call_operand.hbm [shape: f32[512,128], index: 7, kind: input, shape index: {}]   ;;  %s8303_s8 = inlined_call_operand.hbm [shape: f32[1,128], index: 8, kind: input, shape index: {}]   ;;  %s8304_s9 = inlined_call_operand.hbm [shape: f32[128,256], index: 9, kind: input, shape index: {}]   ;;  %s8305_s10 = inlined_call_operand.hbm [shape: f32[128,256], index: 10, kind: input, shape index: {}]   ;;  %s8306_s11 = inlined_call_operand.hbm [shape: f32[128,256], index: 11, kind: input, shape index: {}]   ;;  %s8307_s12 = inlined_call_operand.hbm [shape: f32[1,256], index: 12, kind: input, shape index: {}]   ;;  %s8308_s13 = inlined_call_operand.vmem [shape: f32[256,8], index: 13, kind: input, shape index: {}]   ;;  %s8309_s14 = inlined_call_operand.hbm [shape: f32[1,8], index: 14, kind: input, shape index: {}]   ;;  %s8310_s15 = inlined_call_operand.hbm [shape: f32[4,8,8], index: 15, kind: output, shape index: {}]  }
   0x1   :  { %8338 = sst [smem:[#allocation39_spill]] %s8295_s0 }
   0x2   :  { %8339 = sst [smem:[#allocation40_spill]] %s8296_s1 }
   0x3   :  { %8340 = sst [smem:[#allocation41_spill]] %s8297_s2 }
   0x4   :  { %8341 = sst [smem:[#allocation42_spill]] %s8298_s3 }
   0x5   :  { %8342 = sst [smem:[#allocation43_spill]] %s8299_s4 }
   0x6   :  { %8343 = sst [smem:[#allocation44_spill]] %s8300_s5 }
   0x7   :  { %8344 = sst [smem:[#allocation45_spill]] %s8301_s6 }
   0x8   :  { %8345 = sst [smem:[#allocation46_spill]] %s8302_s7 }
   0x9   :  { %8346 = sst [smem:[#allocation47_spill]] %s8304_s9 }
   0xa   :  { %8347 = sst [smem:[#allocation48_spill]] %s8306_s11 }
   0xb   :  { %8348 = sst [smem:[#allocation49_spill]] %s8307_s12 }
   0xc   :  { %8349 = sst [smem:[#allocation50_spill]] %s8308_s13 }
   0xd   :  { %8350 = sst [smem:[#allocation51_spill]] %s8309_s14 }
   0xe   :  { %8351 = sst [smem:[#allocation52_spill]] %s8310_s15 }
   0xf   :  { %20 = vsyncpa [#allocation3], 0 }
  0x10   :  { %22 = vsyncpa [#allocation3 + $0x1], 0 }
  0x11   :  { %23 = vsyncpa [#allocation6], 0 }
  0x12   :  { %25 = vsyncpa [#allocation6 + $0x1], 0 }
  0x13   :  { %26 = vsyncpa [#allocation9], 0 }
  0x14   :  { %27 = vsyncpa [#allocation12], 0 }
  0x15   :  { %28 = vsyncpa [#allocation15], 0 }
  0x16   :  { %29 = vsyncpa [#allocation18], 0 }
  0x17   :  { %30 = vsyncpa [#allocation21], 0 }
  0x18   :  { %31 = vsyncpa [#allocation24], 0 }
  0x19   :  { %32 = vsyncpa [#allocation4], 0 }
  0x1a   :  { %34 = vsyncpa [#allocation4 + $0x1], 0  ;;  %s7370_s18 = smov 0   ;;  %s7372_s19 = smov 0  }
  0x1b   :  { %s7374_s20 = smov 0   ;;  %s7376_s21 = smov 0  }
  0x1c LB: > { %8352 = sst [smem:[#allocation35_spill]] %s7256_s20  ;;  %s7262_s22 = smov [#allocation8]   ;;  %s7260_s21 = sphi %s7376_s21, %s8407_s21   ;;  %s7256_s20 = sphi %s7374_s20, %s8409_s20   ;;  %s7252_s19 = sphi %s7372_s19, %s8411_s19   ;;  %s7248_s18 = sphi %s7370_s18, %s8410_s18  }
  0x1d   : > { %s413_s23 = sshll.u32 %s7262_s22, 4  ;;  %s7391_s24 = sadd.s32 4294967295, %s7260_s21   ;;  %s7396_s23 = int_to_ptr.vmem [resolvable:$true] %s413_s23 }
  0x1e   : > { %p4855_p0 = scmp.ge.s32.totalorder %s7260_s21, 1  ;;  %p8320_p1 = scmp.eq.s32.totalorder %s7391_s24, 0 }
  0x1f   : > { %p401_p2 = scmp.lt.s32.totalorder %s7260_s21, 3  ;;  %s7263_s26 = smov [#allocation11]  }
  0x20   : > { %s437_s27 = sshll.u32 %s7263_s26, 4  ;;  %s7264_s29 = smov [#allocation14]   ;;  %s7411_s27 = int_to_ptr.vmem [resolvable:$true] %s437_s27 }
  0x21   : > { %p7398_p3 = pnand %p4855_p0, %p401_p2  ;;  %s7413_s30 = sshll.u32 %s7264_s29, 4  ;;  %s462_s30 = int_to_ptr.vmem [resolvable:$true] %s7413_s30 }
  0x22   : > { %s8356_s3 = sld [smem:[#allocation42_spill]] }
  0x23   : > { %s8353_s25 = scalar_select %p7398_p3, 1, 0 }
  0x24   : > { %p6472_p5 = pneg %p7398_p3 }
  0x25   : > { %8354 = sst [smem:[#allocation36_spill]] %s8353_s25 }
  0x26   : > { %p7407_p6 = pnand %p6472_p5, %p8320_p1 }
  0x28   : > { %s8355_s28 = scalar_select %p7407_p6, 1, 0 }
  0x29   : > { %s6768_s22 = scalar_lea.hbm %s8356_s3, 4864  ;;  %p7423_p8 = pneg %p7407_p6 }
  0x2a   : > { %p6769_p7 = scmp.ne.s32.totalorder %s8356_s3, %s6768_s22  ;;  %p6775_p11 = scmp.lt.u32.totalorder %s6768_s22, %s8356_s3 }
  0x2b   : > { %s8357_s26 = scalar_select %p7423_p8, 1, 0 }
  0x2c   : > { %p6771_p9 = pnand %p7423_p8, %p6769_p7 }
  0x2e   : > { %p6772_p10 = pneg %p6771_p9 }
  0x30   : > { %p6777_p12 = pnand %p6775_p11, %p6772_p10 }
  0x32   : > { %6780 = shalt.err (!%p6777_p12)
}
  0x33   : > { %s6781_s13 = scalar_lea.vmem %s7396_s23, 4864  ;;  %p6789_p5 = scmp.lt.s32.totalorder %s7396_s23, %s7396_s23 }
  0x34   : > { %p6782_p13 = scmp.ne.s32.totalorder %s7396_s23, %s6781_s13  ;;  %p6790_p4 = scmp.lt.s32.totalorder %s6781_s13, %s6781_s13 }
  0x36   : > { %p6784_p0 = pnand %p6782_p13, %p7423_p8  ;;  %p6791_p7 = por %p6790_p4, %p6789_p5 }
  0x38   : > { %p6785_p2 = pneg %p6784_p0 }
  0x3a   : > { %p6792_p9 = pnand %p6791_p7, %p6785_p2 }
  0x3c   : > { %6795 = shalt.err (!%p6792_p9)
}
  0x3d   : > { %s8318_s15 = smov 128   ;;  %s8322_s25 = smov 8  }
  0x3e   : > { %6475 = dma.hbm_to_vmem [thread:$0]  (!%p7407_p6), %s8356_s3, 4864, %s7396_s23, [#allocation9], %s8318_s15, %s8318_s15, %s8322_s25  }
  0x3f   : > { %s8358_s5 = sld [smem:[#allocation44_spill]] }
  0x45   : > { %s6796_s13 = scalar_lea.hbm %s8358_s5, 131072 }
  0x46   : > { %p6797_p4 = scmp.ne.s32.totalorder %s8358_s5, %s6796_s13  ;;  %p6803_p12 = scmp.lt.u32.totalorder %s6796_s13, %s8358_s5 }
  0x48   : > { %p6799_p10 = pnand %p6797_p4, %p7423_p8 }
  0x4a   : > { %p6800_p11 = pneg %p6799_p10 }
  0x4c   : > { %p6805_p13 = pnand %p6803_p12, %p6800_p11 }
  0x4e   : > { %6808 = shalt.err (!%p6805_p13)
}
  0x4f   : > { %s6809_s23 = scalar_lea.vmem %s7411_s27, 131072  ;;  %p6817_p7 = scmp.lt.s32.totalorder %s7411_s27, %s7411_s27 }
  0x50   : > { %p6810_p0 = scmp.ne.s32.totalorder %s7411_s27, %s6809_s23  ;;  %p6818_p9 = scmp.lt.s32.totalorder %s6809_s23, %s6809_s23 }
  0x52   : > { %p6812_p2 = pnand %p6810_p0, %p7423_p8  ;;  %p6819_p4 = por %p6818_p9, %p6817_p7 }
  0x54   : > { %p6813_p5 = pneg %p6812_p2 }
  0x56   : > { %p6820_p10 = pnand %p6819_p4, %p6813_p5 }
  0x58   : > { %6823 = shalt.err (!%p6820_p10)
}
  0x59   : > { %s7267_s0 = smov 512   ;;  %s7268_s2 = smov 32  }
  0x5a   : > { %6481 = dma.hbm_to_vmem [thread:$0]  (!%p7407_p6), %s8358_s5, 131072, %s7411_s27, [#allocation12], %s7267_s0, %s7267_s0, %s7268_s2  }
  0x5b   : > { %s8359_s7 = sld [smem:[#allocation46_spill]] }
  0x61   : > { %s6824_s22 = scalar_lea.hbm %s8359_s7, 8192 }
  0x62   : > { %p6825_p11 = scmp.ne.s32.totalorder %s8359_s7, %s6824_s22  ;;  %p6831_p0 = scmp.lt.u32.totalorder %s6824_s22, %s8359_s7 }
  0x64   : > { %p6827_p12 = pnand %p6825_p11, %p7423_p8 }
  0x66   : > { %p6828_p13 = pneg %p6827_p12 }
  0x68   : > { %p6833_p2 = pnand %p6831_p0, %p6828_p13 }
  0x6a   : > { %6836 = shalt.err (!%p6833_p2)
}
  0x6b   : > { %s6837_s12 = scalar_lea.vmem %s462_s30, 8192  ;;  %p6845_p4 = scmp.lt.s32.totalorder %s462_s30, %s462_s30 }
  0x6c   : > { %p6838_p5 = scmp.ne.s32.totalorder %s462_s30, %s6837_s12  ;;  %p6846_p10 = scmp.lt.s32.totalorder %s6837_s12, %s6837_s12 }
  0x6e   : > { %p6840_p7 = pnand %p6838_p5, %p7423_p8  ;;  %p6847_p1 = por %p6846_p10, %p6845_p4 }
  0x70   : > { %p6841_p9 = pneg %p6840_p7 }
  0x72   : > { %p6848_p3 = pnand %p6847_p1, %p6841_p9 }
  0x74   : > { %6851 = shalt.err (!%p6848_p3)
}
  0x75   : > { %s8360_s27 = smov 128   ;;  %s7269_s2 = smov [#allocation17]  }
  0x76   : > { %6487 = dma.hbm_to_vmem [thread:$0]  (!%p7407_p6), %s8359_s7, 8192, %s462_s30, [#allocation15], %s8360_s27, %s8360_s27, %s8322_s25  }
  0x77   : > { %s485_s14 = sshll.u32 %s7269_s2, 4  ;;  %s8361_s9 = sld [smem:[#allocation47_spill]]  ;;  %s486_s14 = int_to_ptr.vmem [resolvable:$true] %s485_s14 }
  0x7d   : > { %s6852_s22 = scalar_lea.hbm %s8361_s9, 4096 }
  0x7e   : > { %p6853_p1 = scmp.ne.s32.totalorder %s8361_s9, %s6852_s22  ;;  %p6859_p12 = scmp.lt.u32.totalorder %s6852_s22, %s8361_s9 }
  0x80   : > { %p6855_p3 = pnand %p6853_p1, %p7423_p8 }
  0x82   : > { %p6856_p11 = pneg %p6855_p3 }
  0x84   : > { %p6861_p13 = pnand %p6859_p12, %p6856_p11 }
  0x86   : > { %6864 = shalt.err (!%p6861_p13)
}
  0x87   : > { %s6865_s30 = scalar_lea.vmem %s486_s14, 4096  ;;  %p6873_p7 = scmp.lt.s32.totalorder %s486_s14, %s486_s14 }
  0x88   : > { %p6866_p0 = scmp.ne.s32.totalorder %s486_s14, %s6865_s30  ;;  %p6874_p9 = scmp.lt.s32.totalorder %s6865_s30, %s6865_s30 }
  0x8a   : > { %p6868_p2 = pnand %p6866_p0, %p7423_p8  ;;  %p6875_p4 = por %p6874_p9, %p6873_p7 }
  0x8c   : > { %p6869_p5 = pneg %p6868_p2 }
  0x8e   : > { %p6876_p10 = pnand %p6875_p4, %p6869_p5 }
  0x90   : > { %6879 = shalt.err (!%p6876_p10)
}
  0x91   : > { %s8323_s15 = smov 256   ;;  %s8324_s0 = smov 16  }
  0x92   : > { %6493 = dma.hbm_to_vmem [thread:$0]  (!%p7407_p6), %s8361_s9, 4096, %s486_s14, [#allocation18], %s8323_s15, %s8323_s15, %s8324_s0  }
  0x93   : > { %s7272_s17 = smov [#allocation20]   ;;  %s8362_s11 = sld [smem:[#allocation48_spill]] }
  0x94   : > { %s511_s22 = sshll.u32 %s7272_s17, 4  ;;  %s512_s22 = int_to_ptr.vmem [resolvable:$true] %s511_s22 }
  0x99   : > { %s6880_s23 = scalar_lea.hbm %s8362_s11, 4096 }
  0x9a   : > { %p6881_p1 = scmp.ne.s32.totalorder %s8362_s11, %s6880_s23  ;;  %p6887_p12 = scmp.lt.u32.totalorder %s6880_s23, %s8362_s11 }
  0x9c   : > { %p6883_p3 = pnand %p6881_p1, %p7423_p8 }
  0x9e   : > { %p6884_p11 = pneg %p6883_p3 }
  0xa0   : > { %p6889_p13 = pnand %p6887_p12, %p6884_p11 }
  0xa2   : > { %6892 = shalt.err (!%p6889_p13)
}
  0xa3   : > { %s6893_s14 = scalar_lea.vmem %s512_s22, 4096  ;;  %p6901_p7 = scmp.lt.s32.totalorder %s512_s22, %s512_s22 }
  0xa4   : > { %p6894_p0 = scmp.ne.s32.totalorder %s512_s22, %s6893_s14  ;;  %p6902_p9 = scmp.lt.s32.totalorder %s6893_s14, %s6893_s14 }
  0xa6   : > { %p6896_p2 = pnand %p6894_p0, %p7423_p8  ;;  %p6903_p4 = por %p6902_p9, %p6901_p7 }
  0xa8   : > { %p6897_p5 = pneg %p6896_p2 }
  0xaa   : > { %p6904_p10 = pnand %p6903_p4, %p6897_p5 }
  0xac   : > { %6907 = shalt.err (!%p6904_p10)
}
  0xad   : > { %6499 = dma.hbm_to_vmem [thread:$0]  (!%p7407_p6), %s8362_s11, 4096, %s512_s22, [#allocation21], %s8323_s15, %s8323_s15, %s8324_s0  }
  0xae   : > { %s4854_s2 = sadd.s32 4294967294, %s7260_s21   ;;  %s7536_s16 = sadd.s32 1, %s7260_s21  }
  0xaf   : > { %8363 = sst [smem:[#allocation37_spill]] %s7536_s16  ;;  %s47_s17 = sadd.s32 1, %s7256_s20 }
  0xb0   : > { %s44_s29 = ssub.s32 %s7260_s21, %s7536_s16  ;;  %p54_p1 = scmp.ne.s32.totalorder %s7256_s20, %s7252_s19 }
  0xb1   : > { %p45_p3 = scmp.eq.s32.totalorder %s44_s29, 0  ;;  %p55_p11 = scmp.eq.s32.totalorder %s7260_s21, 0 }
  0xb2   : > { %p60_p12 = scmp.ne.s32.totalorder %s7252_s19, %s7248_s18  ;;  %p388_p13 = scmp.eq.s32.totalorder %s7391_s24, 1 }
  0xb3   : > { %s7548_s13 = scalar_select %p45_p3, %s7256_s20, %s47_s17  }
  0xb4   : > { %p56_p0 = por %p55_p11, %p54_p1  ;;  %p8365_p2 = scmp.eq.s32.totalorder %s7391_s24, 0 }
  0xb5   : > { %8364 = sst [smem:[#allocation38_spill]] %s7548_s13  ;;  %p7556_p7 = por %p388_p13, %p54_p1 }
  0xb6   : > { %p7552_p5 = por %p8365_p2, %p60_p12  ;;  %p394_p9 = scmp.eq.s32.totalorder %s4854_s2, 1 }
  0xb7   : > { %s8367_s23 = scalar_select %p7556_p7, 1, 0 }
  0xb8   : > { %s8366_s22 = scalar_select %p7552_p5, 1, 0 }
  0xb9   : > { %p6531_p4 = scmp.lt.s32.totalorder %s7260_s21, 2  ;;  %s7562_s12 = sand.u32 1, %s7256_s20  }
  0xba   : > { %p7564_p10 = por %p394_p9, %p60_p12  ;;  %s572_s14 = sand.u32 1, %s7260_s21  }
  0xbb   : > { %p7569_p3 = pnand %p6531_p4, %p56_p0  ;;  %s4871_s25 = sshll.u32 %s7562_s12, 8 }
  0xbc   : > { %s8368_s30 = scalar_select %p7564_p10, 1, 0 }
  0xbd   : > { %s8369_s3 = scalar_select %p7569_p3, 1, 0 }
  0xbe   : > { %s4905_s17 = sshll.u32 %s7260_s21, 12  ;;  %s8370_s1 = sld [smem:[#allocation40_spill]] }
  0xbf   : > { %s576_s0 = scalar_lea.vmem [#allocation5], %s4871_s25  ;;  %s7582_s7 = scalar_lea.sflag [#allocation6], %s572_s14 }
  0xc0   : > { %s584_s5 = sshll.u32 %s576_s0, 4  ;;  %p7588_p11 = pneg %p7569_p3  ;;  %s7580_s5 = int_to_ptr.vmem [resolvable:$true] %s584_s5 }
  0xc2   : > { %s8371_s11 = scalar_select %p7588_p11, 1, 0 }
  0xc4   : > { %s7578_s2 = scalar_lea.hbm %s8370_s1, %s4905_s17  ;;  %s6913_s25 = scalar_lea.hbm %s8370_s1, 8192 }
  0xc5   : > { %s6908_s9 = scalar_lea.hbm %s7578_s2, 4096  ;;  %p6914_p0 = scmp.lt.u32.totalorder %s7578_s2, %s8370_s1 }
  0xc6   : > { %p6909_p1 = scmp.ne.s32.totalorder %s7578_s2, %s6908_s9  ;;  %p6915_p2 = scmp.lt.u32.totalorder %s6913_s25, %s6908_s9 }
  0xc7   : > { %p6917_p4 = scmp.lt.u32.totalorder %s6908_s9, %s7578_s2 }
  0xc8   : > { %p6911_p12 = pnand %p7588_p11, %p6909_p1  ;;  %p6916_p9 = por %p6915_p2, %p6914_p0 }
  0xca   : > { %p6912_p13 = pneg %p6911_p12  ;;  %p6918_p10 = por %p6917_p4, %p6916_p9 }
  0xcc   : > { %p6919_p7 = pnand %p6918_p10, %p6912_p13 }
  0xce   : > { %6922 = shalt.err (!%p6919_p7)
}
  0xcf   : > { %s6923_s14 = scalar_lea.vmem %s7580_s5, 4096  ;;  %s7273_s15 = smov [#allocation5]  }
  0xd0   : > { %p6924_p1 = scmp.ne.s32.totalorder %s7580_s5, %s6923_s14  ;;  %s6928_s17 = sshll.u32 %s7273_s15, 4  ;;  %s6929_s17 = int_to_ptr.vmem [resolvable:$false] %s6928_s17 }
  0xd1   : > { %s6930_s0 = scalar_lea.vmem %s6929_s17, 8192  ;;  %p6931_p6 = scmp.lt.s32.totalorder %s7580_s5, %s6929_s17 }
  0xd2   : > { %p6926_p12 = pnand %p6924_p1, %p7588_p11  ;;  %p6932_p8 = scmp.lt.s32.totalorder %s6930_s0, %s6923_s14 }
  0xd4   : > { %p6927_p5 = pneg %p6926_p12  ;;  %p6933_p0 = por %p6932_p8, %p6931_p6 }
  0xd6   : > { %p6934_p2 = pnand %p6933_p0, %p6927_p5 }
  0xd8   : > { %6937 = shalt.err (!%p6934_p2)
}
  0xd9   : > { %s7274_s9 = smov 2048   ;;  %s7275_s25 = smov [#allocation10]  }
  0xda   : > { %6512 = dma.hbm_to_vmem [thread:$0]  (!%p7569_p3), %s7578_s2, 4096, %s7580_s5, %s7582_s7, %s7274_s9, %s7274_s9, %s8360_s27  }
  0xdb   : > { %s427_s29 = sshll.u32 %s7275_s25, 4  ;;  %s7276_s1 = smov [#allocation13]   ;;  %s428_s29 = int_to_ptr.vmem [resolvable:$true] %s427_s29 }
  0xdc   : > { %s451_s15 = sshll.u32 %s7276_s1, 4  ;;  %s8372_s4 = sld [smem:[#allocation43_spill]]  ;;  %s7613_s15 = int_to_ptr.vmem [resolvable:$true] %s451_s15 }
  0xdd   : > { %p8373_p8 = scmp.ne.s32.totalorder %s8357_s26, 0 }
  0xe2   : > { %s6938_s0 = scalar_lea.hbm %s8372_s4, 16 }
  0xe3   : > { %p6939_p6 = scmp.ne.s32.totalorder %s8372_s4, %s6938_s0  ;;  %p6945_p10 = scmp.lt.u32.totalorder %s6938_s0, %s8372_s4 }
  0xe5   : > { %p6941_p5 = pnand %p6939_p6, %p8373_p8 }
  0xe7   : > { %p6942_p7 = pneg %p6941_p5 }
  0xe9   : > { %p6947_p13 = pnand %p6945_p10, %p6942_p7 }
  0xeb   : > { %6950 = shalt.err (!%p6947_p13)
}
  0xec   : > { %s6951_s1 = scalar_lea.vmem %s428_s29, 16  ;;  %s6958_s2 = scalar_lea.vmem %s428_s29, 32 }
  0xed   : > { %p6952_p9 = scmp.ne.s32.totalorder %s428_s29, %s6951_s1  ;;  %p6959_p12 = scmp.lt.s32.totalorder %s428_s29, %s428_s29 }
  0xee   : > { %p6960_p0 = scmp.lt.s32.totalorder %s6958_s2, %s6951_s1 }
  0xef   : > { %p6954_p4 = pnand %p6952_p9, %p8373_p8 }
  0xf0   : > { %p6961_p2 = por %p6960_p0, %p6959_p12 }
  0xf1   : > { %p6955_p1 = pneg %p6954_p4 }
  0xf3   : > { %p6962_p3 = pnand %p6961_p2, %p6955_p1 }
  0xf5   : > { %6965 = shalt.err (!%p6962_p3)
}
  0xf6   : > { %p8374_p6 = scmp.ne.s32.totalorder %s8355_s28, 0  ;;  %s8375_s6 = sld [smem:[#allocation45_spill]] }
  0xf8   : > { %6478 = dma.hbm_to_vmem [thread:$0]  (!%p8374_p6), %s8372_s4, 16, %s428_s29, [#allocation9]  }
  0xfc   : > { %s6966_s25 = scalar_lea.hbm %s8375_s6, 64 }
  0xfd   : > { %p6967_p5 = scmp.ne.s32.totalorder %s8375_s6, %s6966_s25  ;;  %p6973_p3 = scmp.lt.u32.totalorder %s6966_s25, %s8375_s6 }
  0xff   : > { %p6969_p7 = pnand %p6967_p5, %p8373_p8 }
 0x101   : > { %p6970_p10 = pneg %p6969_p7 }
 0x103   : > { %p6975_p13 = pnand %p6973_p3, %p6970_p10 }
 0x105   : > { %6978 = shalt.err (!%p6975_p13)
}
 0x106   : > { %s6979_s29 = scalar_lea.vmem %s7613_s15, 64  ;;  %p6987_p12 = scmp.lt.s32.totalorder %s7613_s15, %s7613_s15 }
 0x107   : > { %p6980_p9 = scmp.ne.s32.totalorder %s7613_s15, %s6979_s29  ;;  %p6988_p0 = scmp.lt.s32.totalorder %s6979_s29, %s6979_s29 }
 0x109   : > { %p6982_p4 = pnand %p6980_p9, %p8373_p8  ;;  %p6989_p2 = por %p6988_p0, %p6987_p12 }
 0x10b   : > { %p6983_p1 = pneg %p6982_p4 }
 0x10d   : > { %p6990_p5 = pnand %p6989_p2, %p6983_p1 }
 0x10f   : > { %6993 = shalt.err (!%p6990_p5)
}
 0x110   : > { %6484 = dma.hbm_to_vmem [thread:$0]  (!%p8374_p6), %s8375_s6, 64, %s7613_s15, [#allocation12]  }
 0x111   : > { %s7277_s20 = smov [#allocation16]   ;;  %s7278_s16 = smov [#allocation19]  }
 0x112   : > { %s475_s13 = sshll.u32 %s7277_s20, 4  ;;  %s498_s9 = sshll.u32 %s7278_s16, 4  ;;  %s476_s13 = int_to_ptr.vmem [resolvable:$true] %s475_s13  ;;  %s7656_s9 = int_to_ptr.vmem [resolvable:$true] %s498_s9 }
 0x113   : > { %s6994_s17 = scalar_lea.hbm %s8303_s8, 16 }
 0x114   : > { %p6995_p7 = scmp.ne.s32.totalorder %s8303_s8, %s6994_s17  ;;  %p7001_p13 = scmp.lt.u32.totalorder %s6994_s17, %s8303_s8 }
 0x116   : > { %p6997_p10 = pnand %p6995_p7, %p8373_p8 }
 0x118   : > { %p6998_p3 = pneg %p6997_p10 }
 0x11a   : > { %p7003_p9 = pnand %p7001_p13, %p6998_p3 }
 0x11c   : > { %7006 = shalt.err (!%p7003_p9)
}
 0x11d   : > { %s7007_s1 = scalar_lea.vmem %s476_s13, 16  ;;  %s7014_s2 = scalar_lea.vmem %s476_s13, 32 }
 0x11e   : > { %p7008_p4 = scmp.ne.s32.totalorder %s476_s13, %s7007_s1  ;;  %p7015_p0 = scmp.lt.s32.totalorder %s476_s13, %s476_s13 }
 0x11f   : > { %p7016_p2 = scmp.lt.s32.totalorder %s7014_s2, %s7007_s1 }
 0x120   : > { %p7010_p1 = pnand %p7008_p4, %p8373_p8 }
 0x121   : > { %p7017_p5 = por %p7016_p2, %p7015_p0 }
 0x122   : > { %p7011_p12 = pneg %p7010_p1 }
 0x124   : > { %p7018_p11 = pnand %p7017_p5, %p7011_p12 }
 0x126   : > { %7021 = shalt.err (!%p7018_p11)
}
 0x127   : > { %6490 = dma.hbm_to_vmem [thread:$0]  (!%p8374_p6), %s8303_s8, 16, %s476_s13, [#allocation15]  }
 0x128   : > { %s7022_s17 = scalar_lea.hbm %s8305_s10, 4096 }
 0x129   : > { %p7023_p7 = scmp.ne.s32.totalorder %s8305_s10, %s7022_s17  ;;  %p7029_p11 = scmp.lt.u32.totalorder %s7022_s17, %s8305_s10 }
 0x12b   : > { %p7025_p10 = pnand %p7023_p7, %p8373_p8 }
 0x12d   : > { %p7026_p3 = pneg %p7025_p10 }
 0x12f   : > { %p7031_p13 = pnand %p7029_p11, %p7026_p3 }
 0x131   : > { %7034 = shalt.err (!%p7031_p13)
}
 0x132   : > { %s7035_s13 = scalar_lea.vmem %s7656_s9, 4096  ;;  %p7043_p12 = scmp.lt.s32.totalorder %s7656_s9, %s7656_s9 }
 0x133   : > { %p7036_p9 = scmp.ne.s32.totalorder %s7656_s9, %s7035_s13  ;;  %p7044_p0 = scmp.lt.s32.totalorder %s7035_s13, %s7035_s13 }
 0x135   : > { %p7038_p4 = pnand %p7036_p9, %p8373_p8  ;;  %p7045_p2 = por %p7044_p0, %p7043_p12 }
 0x137   : > { %p7039_p1 = pneg %p7038_p4 }
 0x139   : > { %p7046_p5 = pnand %p7045_p2, %p7039_p1 }
 0x13b   : > { %7049 = shalt.err (!%p7046_p5)
}
 0x13c   : > { %s8376_s1 = smov 16   ;;  %s8377_s2 = smov 256  }
 0x13d   : > { %6496 = dma.hbm_to_vmem [thread:$0]  (!%p8374_p6), %s8305_s10, 4096, %s7656_s9, [#allocation18], %s8377_s2, %s8377_s2, %s8376_s1  }
 0x13e   : > { %s7279_s25 = smov [#allocation22]   ;;  %s7280_s17 = smov [#allocation23]  }
 0x13f   : > { %s525_s14 = sshll.u32 %s7279_s25, 4  ;;  %s539_s0 = sshll.u32 %s7280_s17, 4  ;;  %s526_s14 = int_to_ptr.vmem [resolvable:$true] %s525_s14  ;;  %s7702_s0 = int_to_ptr.vmem [resolvable:$true] %s539_s0 }
 0x140   : > { %s8378_s15 = sld [smem:[#allocation49_spill]] }
 0x146   : > { %s7050_s13 = scalar_lea.hbm %s8378_s15, 32 }
 0x147   : > { %p7051_p7 = scmp.ne.s32.totalorder %s8378_s15, %s7050_s13  ;;  %p7057_p11 = scmp.lt.u32.totalorder %s7050_s13, %s8378_s15 }
 0x149   : > { %p7053_p10 = pnand %p7051_p7, %p8373_p8 }
 0x14b   : > { %p7054_p3 = pneg %p7053_p10 }
 0x14d   : > { %p7059_p13 = pnand %p7057_p11, %p7054_p3 }
 0x14f   : > { %7062 = shalt.err (!%p7059_p13)
}
 0x150   : > { %s7063_s1 = scalar_lea.vmem %s526_s14, 32  ;;  %p7071_p12 = scmp.lt.s32.totalorder %s526_s14, %s526_s14 }
 0x151   : > { %p7064_p9 = scmp.ne.s32.totalorder %s526_s14, %s7063_s1  ;;  %p7072_p0 = scmp.lt.s32.totalorder %s7063_s1, %s7063_s1 }
 0x153   : > { %p7066_p4 = pnand %p7064_p9, %p8373_p8  ;;  %p7073_p2 = por %p7072_p0, %p7071_p12 }
 0x155   : > { %p7067_p1 = pneg %p7066_p4 }
 0x157   : > { %p7074_p5 = pnand %p7073_p2, %p7067_p1 }
 0x159   : > { %7077 = shalt.err (!%p7074_p5)
}
 0x15a   : > { %6502 = dma.hbm_to_vmem [thread:$0]  (!%p8374_p6), %s8378_s15, 32, %s526_s14, [#allocation21]  }
 0x15b   : > { %s8379_s25 = sld [smem:[#allocation51_spill]] }
 0x161   : > { %s7078_s17 = scalar_lea.hbm %s8379_s25, 16 }
 0x162   : > { %p7079_p7 = scmp.ne.s32.totalorder %s8379_s25, %s7078_s17  ;;  %p7085_p11 = scmp.lt.u32.totalorder %s7078_s17, %s8379_s25 }
 0x164   : > { %p7081_p10 = pnand %p7079_p7, %p8373_p8 }
 0x166   : > { %p7082_p3 = pneg %p7081_p10 }
 0x168   : > { %p7087_p13 = pnand %p7085_p11, %p7082_p3 }
 0x16a   : > { %7090 = shalt.err (!%p7087_p13)
}
 0x16b   : > { %s7091_s14 = scalar_lea.vmem %s7702_s0, 16  ;;  %s7098_s9 = scalar_lea.vmem %s7702_s0, 32 }
 0x16c   : > { %p7092_p9 = scmp.ne.s32.totalorder %s7702_s0, %s7091_s14  ;;  %p7099_p12 = scmp.lt.s32.totalorder %s7702_s0, %s7702_s0 }
 0x16d   : > { %p7100_p0 = scmp.lt.s32.totalorder %s7098_s9, %s7091_s14 }
 0x16e   : > { %p7094_p4 = pnand %p7092_p9, %p8373_p8 }
 0x16f   : > { %p7101_p2 = por %p7100_p0, %p7099_p12 }
 0x170   : > { %p7095_p1 = pneg %p7094_p4 }
 0x172   : > { %p7102_p5 = pnand %p7101_p2, %p7095_p1 }
 0x174   : > { %7105 = shalt.err (!%p7102_p5)
}
 0x175   : > { %6505 = dma.hbm_to_vmem [thread:$0]  (!%p8374_p6), %s8379_s25, 16, %s7702_s0, [#allocation24]  }
 0x176   : > { %s6417_s26 = smul.u32 48, %s7562_s12  ;;  %s8380_s17 = sld [smem:[#allocation39_spill]] }
 0x177   : > { %s6418_s6 = smul.u32 768, %s7260_s21  ;;  %s4875_s13 = sshll.u32 %s7562_s12, 4 }
 0x178   : > { %s554_s28 = scalar_lea.vmem [#allocation2], %s6417_s26  ;;  %s551_s20 = scalar_lea.sflag [#allocation3], %s7562_s12 }
 0x179   : > { %s562_s29 = sshll.u32 %s554_s28, 4  ;;  %p8381_p6 = scmp.ne.s32.totalorder %s8371_s11, 0  ;;  %s7753_s29 = int_to_ptr.vmem [resolvable:$true] %s562_s29 }
 0x17c   : > { %s7751_s5 = scalar_lea.hbm %s8380_s17, %s6418_s6  ;;  %s7111_s1 = scalar_lea.hbm %s8380_s17, 1536 }
 0x17d   : > { %s7106_s14 = scalar_lea.hbm %s7751_s5, 768  ;;  %p7112_p3 = scmp.lt.u32.totalorder %s7751_s5, %s8380_s17 }
 0x17e   : > { %p7107_p8 = scmp.ne.s32.totalorder %s7751_s5, %s7106_s14  ;;  %p7113_p11 = scmp.lt.u32.totalorder %s7111_s1, %s7106_s14 }
 0x17f   : > { %p7115_p9 = scmp.lt.u32.totalorder %s7106_s14, %s7751_s5 }
 0x180   : > { %p7109_p7 = pnand %p7107_p8, %p8381_p6  ;;  %p7114_p13 = por %p7113_p11, %p7112_p3 }
 0x182   : > { %p7110_p10 = pneg %p7109_p7  ;;  %p7116_p4 = por %p7115_p9, %p7114_p13 }
 0x184   : > { %p7117_p1 = pnand %p7116_p4, %p7110_p10 }
 0x186   : > { %7120 = shalt.err (!%p7117_p1)
}
 0x187   : > { %s7121_s26 = scalar_lea.vmem %s7753_s29, 768  ;;  %s7281_s2 = smov [#allocation2]  }
 0x188   : > { %p7122_p12 = scmp.ne.s32.totalorder %s7753_s29, %s7121_s26  ;;  %s7126_s16 = sshll.u32 %s7281_s2, 4  ;;  %s7127_s16 = int_to_ptr.vmem [resolvable:$false] %s7126_s16 }
 0x189   : > { %s7128_s28 = scalar_lea.vmem %s7127_s16, 1536  ;;  %p7129_p5 = scmp.lt.s32.totalorder %s7753_s29, %s7127_s16 }
 0x18a   : > { %p7124_p0 = pnand %p7122_p12, %p8381_p6  ;;  %p7130_p8 = scmp.lt.s32.totalorder %s7128_s28, %s7121_s26 }
 0x18c   : > { %p7125_p2 = pneg %p7124_p0  ;;  %p7131_p7 = por %p7130_p8, %p7129_p5 }
 0x18e   : > { %p7132_p3 = pnand %p7131_p7, %p7125_p2 }
 0x190   : > { %7135 = shalt.err (!%p7132_p3)
}
 0x191   : > { %s7282_s14 = smov 384   ;;  %s7283_s0 = smov 24  }
 0x192   : > { %p8382_p10 = scmp.ne.s32.totalorder %s8369_s3, 0  ;;  %s4906_s9 = sshll.u32 %s7260_s21, 8 }
 0x193   : > { %s8383_s6 = sld [smem:[#allocation41_spill]]  ;;  %s598_s2 = scalar_lea.vmem [#allocation7], %s4875_s13 }
 0x194   : > { %6509 = dma.hbm_to_vmem [thread:$0]  (!%p8382_p10), %s7751_s5, 768, %s7753_s29, %s551_s20, %s7282_s14, %s7282_s14, %s7283_s0  }
 0x195   : > { %s605_s16 = sshll.u32 %s598_s2, 4  ;;  %s7788_s16 = int_to_ptr.vmem [resolvable:$true] %s605_s16 }
 0x199   : > { %s7784_s26 = scalar_lea.hbm %s8383_s6, %s4906_s9  ;;  %s7141_s20 = scalar_lea.hbm %s8383_s6, 512 }
 0x19a   : > { %s7136_s28 = scalar_lea.hbm %s7784_s26, 256  ;;  %p7142_p4 = scmp.lt.u32.totalorder %s7784_s26, %s8383_s6 }
 0x19b   : > { %p7137_p11 = scmp.ne.s32.totalorder %s7784_s26, %s7136_s28  ;;  %p7143_p1 = scmp.lt.u32.totalorder %s7141_s20, %s7136_s28 }
 0x19c   : > { %p7145_p0 = scmp.lt.u32.totalorder %s7136_s28, %s7784_s26 }
 0x19d   : > { %p7139_p13 = pnand %p7137_p11, %p8381_p6  ;;  %p7144_p12 = por %p7143_p1, %p7142_p4 }
 0x19f   : > { %p7140_p9 = pneg %p7139_p13  ;;  %p7146_p2 = por %p7145_p0, %p7144_p12 }
 0x1a1   : > { %p7147_p5 = pnand %p7146_p2, %p7140_p9 }
 0x1a3   : > { %7150 = shalt.err (!%p7147_p5)
}
 0x1a4   : > { %s7151_s12 = scalar_lea.vmem %s7788_s16, 256  ;;  %s7284_s13 = smov [#allocation7]  }
 0x1a5   : > { %p7152_p8 = scmp.ne.s32.totalorder %s7788_s16, %s7151_s12  ;;  %s7156_s9 = sshll.u32 %s7284_s13, 4  ;;  %s7157_s9 = int_to_ptr.vmem [resolvable:$false] %s7156_s9 }
 0x1a6   : > { %s7158_s1 = scalar_lea.vmem %s7157_s9, 512  ;;  %p7159_p11 = scmp.lt.s32.totalorder %s7788_s16, %s7157_s9 }
 0x1a7   : > { %p7154_p7 = pnand %p7152_p8, %p8381_p6  ;;  %p7160_p13 = scmp.lt.s32.totalorder %s7158_s1, %s7151_s12 }
 0x1a9   : > { %p7155_p3 = pneg %p7154_p7  ;;  %p7161_p4 = por %p7160_p13, %p7159_p11 }
 0x1ab   : > { %p7162_p1 = pnand %p7161_p4, %p7155_p3 }
 0x1ad   : > { %7165 = shalt.err (!%p7162_p1)
}
 0x1ae   : > { %s8384_s4 = smov 8   ;;  %s8385_s11 = sld [smem:[#allocation36_spill]] }
 0x1af   : > { %6515 = dma.hbm_to_vmem [thread:$0]  (!%p8382_p10), %s7784_s26, 256, %s7788_s16, %s7582_s7, %s8360_s27, %s8360_s27, %s8384_s4  }
 0x1b4   : > { %p8386_p6 = scmp.ne.s32.totalorder %s8385_s11, 0 }
 0x1b5   : > { %s7818_s2 = sand.u32 (!%p8386_p6), 1, %s7252_s19   ;;  %p8387_p9 = scmp.ne.s32.totalorder (!%p8386_p6), %s8366_s22, 0 }
 0x1b6   : > { %617 = sbr.rel (%p8386_p6) target bundleno = 5729 (0x1661), region = 80  ;;  %s620_s5 = scalar_lea.sflag (!%p8386_p6), [#allocation3], %s7818_s2 }
 0x1b7   : > { %s6419_s28 = smul.u32 (!%p8386_p6), 48, %s7818_s2 }
 0x1b9   : > { %s7822_s29 = scalar_lea.vmem (!%p8386_p6), [#allocation2], %s6419_s28 }
 0x1bd   : > { %7211 = dma.done.wait (%p8387_p9), %s620_s5, 768  }
 0x1be   : > { %7213 = vsyncadd (%p8387_p9), %s620_s5, 4294966528  ;;  %s628_s7 = sand.u32 1, %s7391_s24   ;;  %s4879_s27 = sshll.u32 %s7818_s2, 8 }
 0x1bf   : > { %s629_s3 = scalar_lea.sflag [#allocation6], %s628_s7  ;;  %s7830_s26 = scalar_lea.vmem [#allocation5], %s4879_s27 }
 0x1c0   : > { %7215 = dma.done.wait (%p8387_p9), %s629_s3, 4352  }
 0x1c1   : > { %7217 = vsyncadd (%p8387_p9), %s629_s3, 4294962944  ;;  %s4880_s16 = sshll.u32 %s7818_s2, 4  ;;  %p8388_p10 = scmp.eq.s32.totalorder %s7391_s24, 0 }
 0x1c2   : > { %s7839_s20 = scalar_lea.vmem [#allocation7], %s4880_s16 }
 0x1c3   : > { %7219 = dma.done.wait (%p8388_p10), [#allocation9], 4880   ;;  %p8389_p12 = pmov %p8388_p10 }
 0x1c4   : > { %p8390_p0 = pmov %p8388_p10 }
 0x1c5   : > { %7221 = vsyncadd (%p8389_p12), [#allocation9], 4294962416 }
 0x1c6   : > { %7223 = dma.done.wait (%p8390_p0), [#allocation12], 131136   ;;  %p8391_p2 = pmov %p8390_p0 }
 0x1c7   : > { %p8392_p5 = pmov %p8390_p0 }
 0x1c8   : > { %7225 = vsyncadd (%p8391_p2), [#allocation12], 4294836160 }
 0x1c9   : > { %7227 = dma.done.wait (%p8392_p5), [#allocation15], 8208   ;;  %p8393_p8 = pmov %p8390_p0 }
 0x1ca   : > { %p8394_p7 = pmov %p8390_p0 }
 0x1cb   : > { %7229 = vsyncadd (%p8393_p8), [#allocation15], 4294959088 }
 0x1cc   : > { %7231 = dma.done.wait (%p8394_p7), [#allocation18], 8192   ;;  %p8395_p3 = pmov %p8390_p0 }
 0x1cd   : > { %p8396_p11 = pmov %p8390_p0 }
 0x1ce   : > { %7233 = vsyncadd (%p8395_p3), [#allocation18], 4294959104 }
 0x1cf   : > { %7235 = dma.done.wait (%p8396_p11), [#allocation21], 4128   ;;  %p8397_p13 = pmov %p8390_p0 }
 0x1d0   : > { %p8398_p4 = pmov %p8390_p0 }
 0x1d1   : > { %7237 = vsyncadd (%p8397_p13), [#allocation21], 4294963168 }
 0x1d2   : > { %7239 = dma.done.wait (%p8398_p4), [#allocation24], 16   ;;  %p8399_p1 = pmov %p8390_p0 }
 0x1d3   : > { %v802_v0 = vld [vmem:[#allocation8 + $0x80] sm:$0xff]  ;;  %v803_v1 = vld [vmem:[#allocation8 + $0x88] sm:$0xff]  ;;  %v994_v9 = vld [vmem:[#allocation11] sm:$0xff]  ;;  %vm838_vm0 = vcmask 1043456   ;;  %vm7285_vm1 = vmmov 1   ;;  %vm831_vm3 = vcmask 359424  }
 0x1d4   : > { %7241 = vsyncadd (%p8399_p1), [#allocation24], 4294967280  ;;  %v995_v2 = vld [vmem:[#allocation11 + $0x8] sm:$0xff]  ;;  %v5083_v3 = vpack.c.bf16 %v803_v1, %v802_v0  ;;  %v787_v6 = vld [vmem:[#allocation8 + $0x8] sm:$0xff]  ;;  %s8402_s0 = sld [smem:[#allocation50_spill]]  ;;  %vm3976_vm4 = vcmask 64512  }
 0x1d5   : > { %v999_v4 = vld [vmem:[#allocation11 + $0x28] sm:$0xff]  ;;  %v998_v10 = vld [vmem:[#allocation11 + $0x20] sm:$0xff]  ;;  %v807_v24 = vld [vmem:[#allocation8 + $0xa8] sm:$0xff]  ;;  %s4907_s13 = sshll.u32 %s7391_s24, 8  ;;  %s741_s9 = scalar_lea.vmem [#allocation25], %s4880_s16 }
 0x1d6   : > { %v786_v5 = vld [vmem:[#allocation8] sm:$0xff]  ;;  %v5129_v7 = vpack.c.bf16 %v999_v4, %v995_v2  ;;  %v804_v11 = vld [vmem:[#allocation8 + $0x90] sm:$0xff]  ;;  %5084 = vmatprep.subr.bf16.mxu0 %v5083_v3  ;;  %v5131_v12 = vpack.c.bf16 %v998_v10, %v994_v9  ;;  %v805_v13 = vld [vmem:[#allocation8 + $0x98] sm:$0xff]  ;;  %s4633_s1 = sshll.u32 %s741_s9, 4  ;;  %s8403_s28 = sld [smem:[#allocation52_spill]]  ;;  %s8250_s1 = int_to_ptr.vmem [resolvable:$true] %s4633_s1 }
 0x1d7   : > { %v5085_v8 = vpack.c.bf16 %v787_v6, %v786_v5  ;;  %v1003_v14 = vld [vmem:[#allocation11 + $0x48] sm:$0xff]  ;;  %v5087_v16 = vpack.c.bf16 %v805_v13, %v804_v11  ;;  %v788_v18 = vld [vmem:[#allocation8 + $0x10] sm:$0xff]  ;;  %v791_v31 = vld [vmem:[#allocation8 + $0x28] sm:$0xff]  ;;  %s4620_s24 = scalar_lea.sflag [#allocation4], %s7818_s2  ;;  %p8404_p9 = scmp.ne.s32.totalorder %s8367_s23, 0 }
 0x1d8   : > { %v1007_v15 = vld [vmem:[#allocation11 + $0x68] sm:$0xff]  ;;  %5130 = vmatprep.subr.bf16.mxu1 %v5129_v7  ;;  %v1002_v20 = vld [vmem:[#allocation11 + $0x40] sm:$0xff]  ;;  %v811_v47 = vld [vmem:[#allocation8 + $0xc8] sm:$0xff]  ;;  %s7287_s16 = smov [#allocation25]  }
 0x1d9   : > { %5086 = vmatpush3.bf16.msra.mxu0 %v5085_v8  ;;  %v5133_v17 = vpack.c.bf16 %v1007_v15, %v1003_v14  ;;  %v789_v19 = vld [vmem:[#allocation8 + $0x18] sm:$0xff]  ;;  %5132 = vmatpush1.bf16.msra.mxu1 %v5131_v12  ;;  %v806_v23 = vld [vmem:[#allocation8 + $0xa0] sm:$0xff]  ;;  %v808_v35 = vld [vmem:[#allocation8 + $0xb0] sm:$0xff]  ;;  %s7170_s7 = sshll.u32 %s7287_s16, 4  ;;  %s7171_s7 = int_to_ptr.vmem [resolvable:$false] %s7170_s7 }
 0x1da   : > { %v5089_v21 = vpack.c.bf16 %v789_v19, %v788_v18  ;;  %v1006_v22 = vld [vmem:[#allocation11 + $0x60] sm:$0xff]  ;;  %5088 = vmatprep.subr.bf16.mxu0 %v5087_v16  ;;  %v5091_v26 = vpack.c.bf16 %v807_v24, %v806_v23  ;;  %v1011_v27 = vld [vmem:[#allocation11 + $0x88] sm:$0xff]  ;;  %v795_v54 = vld [vmem:[#allocation8 + $0x48] sm:$0xff]  ;;  %s7172_s27 = scalar_lea.vmem %s7171_s7, 512  ;;  %p7173_p0 = scmp.lt.s32.totalorder %s8250_s1, %s7171_s7 }
 0x1db   : > { %5134 = vmatprep.subr.bf16.mxu1 %v5133_v17  ;;  %v5135_v25 = vpack.c.bf16 %v1006_v22, %v1002_v20  ;;  %v1015_v28 = vld [vmem:[#allocation11 + $0xa8] sm:$0xff]  ;;  %v1010_v32 = vld [vmem:[#allocation11 + $0x80] sm:$0xff]  ;;  %v815_v7 = vld [vmem:[#allocation8 + $0xe8] sm:$0xff] }
 0x1dc   : > { %v790_v29 = vld [vmem:[#allocation8 + $0x20] sm:$0xff]  ;;  %v5137_v30 = vpack.c.bf16 %v1015_v28, %v1011_v27  ;;  %v1014_v33 = vld [vmem:[#allocation11 + $0xa0] sm:$0xff]  ;;  %v799_v14 = vld [vmem:[#allocation8 + $0x68] sm:$0xff]  ;;  %s8248_s5 = scalar_lea.hbm %s8403_s28, %s4907_s13 }
 0x1dd   : > { %5090 = vmatpush3.bf16.msra.mxu0 %v5089_v21  ;;  %v5093_v34 = vpack.c.bf16 %v791_v31, %v790_v29  ;;  %v809_v36 = vld [vmem:[#allocation8 + $0xb8] sm:$0xff]  ;;  %5136 = vmatpush1.bf16.msra.mxu1 %v5135_v25  ;;  %v5139_v38 = vpack.c.bf16 %v1014_v33, %v1010_v32  ;;  %v792_v41 = vld [vmem:[#allocation8 + $0x30] sm:$0xff]  ;;  %v810_v46 = vld [vmem:[#allocation8 + $0xc0] sm:$0xff] }
 0x1de   : > { %v1019_v37 = vld [vmem:[#allocation11 + $0xc8] sm:$0xff]  ;;  %5092 = vmatprep.subr.bf16.mxu0 %v5091_v26  ;;  %v5095_v39 = vpack.c.bf16 %v809_v36, %v808_v35  ;;  %5138 = vmatprep.subr.bf16.mxu1 %v5137_v30  ;;  %v1018_v44 = vld [vmem:[#allocation11 + $0xc0] sm:$0xff]  ;;  %v5099_v52 = vpack.c.bf16 %v811_v47, %v810_v46  ;;  %v819_v32 = vld [vmem:[#allocation8 + $0x108] sm:$0xff] }
 0x1df   : > { %v1023_v40 = vld [vmem:[#allocation11 + $0xe8] sm:$0xff]  ;;  %v1022_v45 = vld [vmem:[#allocation11 + $0xe0] sm:$0xff]  ;;  %vm7869_vm2 = vmpackc.low %vm838_vm0, %vm7285_vm1 }
 0x1e0   : > { %v793_v42 = vld [vmem:[#allocation8 + $0x38] sm:$0xff]  ;;  %v5141_v43 = vpack.c.bf16 %v1023_v40, %v1019_v37  ;;  %v5143_v51 = vpack.c.bf16 %v1022_v45, %v1018_v44  ;;  %v794_v53 = vld [vmem:[#allocation8 + $0x40] sm:$0xff]  ;;  %v812_v58 = vld [vmem:[#allocation8 + $0xd0] sm:$0xff] }
 0x1e1   : > { %v1027_v48 = vld [vmem:[#allocation11 + $0x108] sm:$0xff]  ;;  %5094 = vmatpush3.bf16.msra.mxu0 %v5093_v34  ;;  %v5097_v50 = vpack.c.bf16 %v793_v42, %v792_v41  ;;  %5140 = vmatpush1.bf16.msra.mxu1 %v5139_v38  ;;  %v1026_v55 = vld [vmem:[#allocation11 + $0x100] sm:$0xff]  ;;  %v5101_v62 = vpack.c.bf16 %v795_v54, %v794_v53  ;;  %v823_v53 = vld [vmem:[#allocation8 + $0x128] sm:$0xf] }
 0x1e2   : > { %v1031_v49 = vld [vmem:[#allocation11 + $0x128] sm:$0xff]  ;;  %5096 = vmatprep.subr.bf16.mxu0 %v5095_v39  ;;  %5142 = vmatprep.subr.bf16.mxu1 %v5141_v43  ;;  %v1030_v57 = vld [vmem:[#allocation11 + $0x120] sm:$0xff] }
 0x1e3   : > { %v5145_v56 = vpack.c.bf16 %v1031_v49, %v1027_v48  ;;  %v813_v59 = vld [vmem:[#allocation8 + $0xd8] sm:$0xff]  ;;  %v5147_v63 = vpack.c.bf16 %v1030_v57, %v1026_v55  ;;  %v796_v1 = vld [vmem:[#allocation8 + $0x50] sm:$0xff]  ;;  %v814_v6 = vld [vmem:[#allocation8 + $0xe0] sm:$0xff] }
 0x1e4   : > { %v1035_v60 = vld [vmem:[#allocation11 + $0x148] sm:$0xff]  ;;  %v5103_v0 = vpack.c.bf16 %v813_v59, %v812_v58  ;;  %v1034_v3 = vld [vmem:[#allocation11 + $0x140] sm:$0xff]  ;;  %v5107_v13 = vpack.c.bf16 %v815_v7, %v814_v6 }
 0x1e5   : > { %v1039_v61 = vld [vmem:[#allocation11 + $0x168] sm:$0xff]  ;;  %5098 = vmatpush3.bf16.msra.mxu0 %v5097_v50  ;;  %5144 = vmatpush1.bf16.msra.mxu1 %v5143_v51  ;;  %v1038_v5 = vld [vmem:[#allocation11 + $0x160] sm:$0xff] }
 0x1e6   : > { %5100 = vmatprep.subr.bf16.mxu0 %v5099_v52  ;;  %v797_v2 = vld [vmem:[#allocation8 + $0x58] sm:$0xff]  ;;  %5146 = vmatprep.subr.bf16.mxu1 %v5145_v56  ;;  %v5149_v4 = vpack.c.bf16 %v1039_v61, %v1035_v60  ;;  %v798_v11 = vld [vmem:[#allocation8 + $0x60] sm:$0xff]  ;;  %v5151_v12 = vpack.c.bf16 %v1038_v5, %v1034_v3  ;;  %v816_v19 = vld [vmem:[#allocation8 + $0xf0] sm:$0xff] }
 0x1e7   : > { %v1043_v8 = vld [vmem:[#allocation11 + $0x188] sm:$0xff]  ;;  %v5105_v10 = vpack.c.bf16 %v797_v2, %v796_v1  ;;  %v1042_v15 = vld [vmem:[#allocation11 + $0x180] sm:$0xff]  ;;  %v5109_v23 = vpack.c.bf16 %v799_v14, %v798_v11  ;;  %v1001_v1 = vld [vmem:[#allocation11 + $0x38] sm:$0xff] }
 0x1e8   : > { %v1047_v9 = vld [vmem:[#allocation11 + $0x1a8] sm:$0xff]  ;;  %v1046_v18 = vld [vmem:[#allocation11 + $0x1a0] sm:$0xff]  ;;  %v1005_v11 = vld [vmem:[#allocation11 + $0x58] sm:$0xff] }
 0x1e9   : > { %5102 = vmatpush3.bf16.msra.mxu0 %v5101_v62  ;;  %5148 = vmatpush1.bf16.msra.mxu1 %v5147_v63  ;;  %v747_v16 = vld [vmem:[%s7822_s29 + $0x8] sm:$0xff]  ;;  %v5153_v17 = vpack.c.bf16 %v1047_v9, %v1043_v8  ;;  %v5155_v24 = vpack.c.bf16 %v1046_v18, %v1042_v15  ;;  %v800_v26 = vld [vmem:[#allocation8 + $0x70] sm:$0xff]  ;;  %v818_v31 = vld [vmem:[#allocation8 + $0x100] sm:$0xff] }
 0x1ea   : > { %5104 = vmatprep.subr.bf16.mxu0 %v5103_v0  ;;  %5150 = vmatprep.subr.bf16.mxu1 %v5149_v4  ;;  %v817_v20 = vld [vmem:[#allocation8 + $0xf8] sm:$0xff]  ;;  %v5115_v37 = vpack.c.bf16 %v819_v32, %v818_v31  ;;  %v820_v41 = vld [vmem:[#allocation8 + $0x110] sm:$0xff]  ;;  %v822_v52 = vld [vmem:[#allocation8 + $0x120] sm:$0xff] }
 0x1eb   : > { %906 = vmatprep.mubr.f32.mxu0 %v747_v16  ;;  %v1051_v21 = vld [vmem:[#allocation11 + $0x1c8] sm:$0xff]  ;;  %v5111_v25 = vpack.c.bf16 %v817_v20, %v816_v19  ;;  %v1050_v28 = vld [vmem:[#allocation11 + $0x1c0] sm:$0xff]  ;;  %v5123_v58 = vpack.c.bf16 %v823_v53, %v822_v52  ;;  %v997_v0 = vld [vmem:[#allocation11 + $0x18] sm:$0xff] }
 0x1ec   : > { %v1055_v22 = vld [vmem:[#allocation11 + $0x1e8] sm:$0xff]  ;;  %v1054_v30 = vld [vmem:[#allocation11 + $0x1e0] sm:$0xff]  ;;  %v5641_v6 = vpack.c.bf16 %v1001_v1, %v997_v0  ;;  %v996_v8 = vld [vmem:[#allocation11 + $0x10] sm:$0xff] }
 0x1ed   : > { %5106 = vmatpush3.bf16.msra.mxu0 %v5105_v10  ;;  %5152 = vmatpush1.bf16.msra.mxu1 %v5151_v12  ;;  %v801_v27 = vld [vmem:[#allocation8 + $0x78] sm:$0xff]  ;;  %v5157_v29 = vpack.c.bf16 %v1055_v22, %v1051_v21  ;;  %v5159_v36 = vpack.c.bf16 %v1054_v30, %v1050_v28  ;;  %v746_v45 = vld [vmem:[%s7822_s29] sm:$0xff]  ;;  %v748_v61 = vld [vmem:[%s7822_s29 + $0x10] sm:$0xff] }
 0x1ee   : > { %5108 = vmatprep.subr.bf16.mxu0 %v5107_v13  ;;  %5154 = vmatprep.subr.bf16.mxu1 %v5153_v17  ;;  %v1059_v33 = vld [vmem:[#allocation11 + $0x208] sm:$0xff]  ;;  %v5113_v35 = vpack.c.bf16 %v801_v27, %v800_v26  ;;  %v1058_v38 = vld [vmem:[#allocation11 + $0x200] sm:$0xff]  ;;  %v1000_v9 = vld [vmem:[#allocation11 + $0x30] sm:$0xff] }
 0x1ef   : > { %v1063_v34 = vld [vmem:[#allocation11 + $0x228] sm:$0xff]  ;;  %v1062_v40 = vld [vmem:[#allocation11 + $0x220] sm:$0xff]  ;;  %v1009_v12 = vld [vmem:[#allocation11 + $0x78] sm:$0xff]  ;;  %v5643_v17 = vpack.c.bf16 %v1000_v9, %v996_v8 }
 0x1f0   : > { %v5161_v39 = vpack.c.bf16 %v1063_v34, %v1059_v33  ;;  %v821_v42 = vld [vmem:[#allocation8 + $0x118] sm:$0xff]  ;;  %v5163_v46 = vpack.c.bf16 %v1062_v40, %v1058_v38  ;;  %v750_v49 = vld [vmem:[%s7822_s29 + $0x20] sm:$0xff]  ;;  %v753_v13 = vld [vmem:[%s7830_s26 + $0x8] sm:$0xff]  ;;  %v5645_v19 = vpack.c.bf16 %v1009_v12, %v1005_v11 }
 0x1f1   : > { %5110 = vmatpush3.bf16.msra.mxu0 %v5109_v23  ;;  %5156 = vmatpush1.bf16.msra.mxu1 %v5155_v24  ;;  %v1067_v43 = vld [vmem:[#allocation11 + $0x248] sm:$0xff]  ;;  %v5119_v47 = vpack.c.bf16 %v821_v42, %v820_v41  ;;  %v1066_v48 = vld [vmem:[#allocation11 + $0x240] sm:$0xff]  ;;  %v1004_v21 = vld [vmem:[#allocation11 + $0x50] sm:$0xff] }
 0x1f2   : > { %5112 = vmatprep.subr.bf16.mxu0 %v5111_v25  ;;  %5158 = vmatprep.subr.bf16.mxu1 %v5157_v29  ;;  %v1071_v44 = vld [vmem:[#allocation11 + $0x268] sm:$0xff]  ;;  %v1070_v51 = vld [vmem:[#allocation11 + $0x260] sm:$0xff]  ;;  %v1008_v22 = vld [vmem:[#allocation11 + $0x70] sm:$0xff] }
 0x1f3   : > { %v5165_v50 = vpack.c.bf16 %v1071_v44, %v1067_v43  ;;  %v1075_v54 = vld [vmem:[#allocation11 + $0x288] sm:$0xff]  ;;  %v5167_v57 = vpack.c.bf16 %v1070_v51, %v1066_v48  ;;  %v1074_v60 = vld [vmem:[#allocation11 + $0x280] sm:$0xff]  ;;  %2104 = vmatprep.mubr.f32.mxu1 %v753_v13  ;;  %v1013_v25 = vld [vmem:[#allocation11 + $0x98] sm:$0xff]  ;;  %v5647_v29 = vpack.c.bf16 %v1008_v22, %v1004_v21 }
 0x1f4   : > { %v1079_v55 = vld [vmem:[#allocation11 + $0x2a8] sm:$0xff]  ;;  %v1078_v63 = vld [vmem:[#allocation11 + $0x2a0] sm:$0xff]  ;;  %v1017_v26 = vld [vmem:[#allocation11 + $0xb8] sm:$0xff] }
 0x1f5   : > { %5114 = vmatpush3.bf16.msra.mxu0 %v5113_v35  ;;  %5160 = vmatpush1.bf16.msra.mxu1 %v5159_v36  ;;  %v749_v56 = vld [vmem:[%s7822_s29 + $0x18] sm:$0xff]  ;;  %v5169_v62 = vpack.c.bf16 %v1079_v55, %v1075_v54  ;;  %v5171_v5 = vpack.c.bf16 %v1078_v63, %v1074_v60  ;;  %v751_v16 = vld [vmem:[%s7822_s29 + $0x28] sm:$0xff]  ;;  %v5649_v31 = vpack.c.bf16 %v1017_v26, %v1013_v25  ;;  %s7166_s29 = scalar_lea.vmem %s8250_s1, 256 }
 0x1f6   : > { %5116 = vmatprep.subr.bf16.mxu0 %v5115_v37  ;;  %5162 = vmatprep.subr.bf16.mxu1 %v5161_v39  ;;  %v1083_v2 = vld [vmem:[#allocation11 + $0x2c8] sm:$0xff]  ;;  %v1082_v4 = vld [vmem:[#allocation11 + $0x2c0] sm:$0xff]  ;;  %v1012_v33 = vld [vmem:[#allocation11 + $0x90] sm:$0xff]  ;;  %p7167_p6 = scmp.ne.s32.totalorder %s8250_s1, %s7166_s29  ;;  %p7174_p2 = scmp.lt.s32.totalorder %s7172_s27, %s7166_s29 }
 0x1f7   : > { %v1087_v3 = vld [vmem:[#allocation11 + $0x2e8] sm:$0xff]  ;;  %v1086_v7 = vld [vmem:[#allocation11 + $0x2e0] sm:$0xff]  ;;  %v1016_v34 = vld [vmem:[#allocation11 + $0xb0] sm:$0xff] }
 0x1f8   : > { %907 = vmatmul.mubr.f32.vlgmr.msra.gmra.mrb[0].mxu0 %v746_v45  ;;  %v5173_v10 = vpack.c.bf16 %v1087_v3, %v1083_v2  ;;  %v1091_v14 = vld [vmem:[#allocation11 + $0x308] sm:$0xff]  ;;  %v5175_v18 = vpack.c.bf16 %v1086_v7, %v1082_v4  ;;  %v1090_v20 = vld [vmem:[#allocation11 + $0x300] sm:$0xff]  ;;  %v1025_v38 = vld [vmem:[#allocation11 + $0xf8] sm:$0xff]  ;;  %v5651_v41 = vpack.c.bf16 %v1016_v34, %v1012_v33  ;;  %p7168_p10 = pnand %p7167_p6, %p8404_p9  ;;  %p7175_p5 = por %p7174_p2, %p7173_p0 }
 0x1f9   : > { %5118 = vmatpush3.bf16.msra.mxu0 %v5115_v37  ;;  %911 = vmatprep.mubr.f32.mxu0 %v750_v49  ;;  %v1095_v15 = vld [vmem:[#allocation11 + $0x328] sm:$0xff]  ;;  %v1094_v24 = vld [vmem:[#allocation11 + $0x320] sm:$0xff]  ;;  %v1021_v37 = vld [vmem:[#allocation11 + $0xd8] sm:$0xff] }
 0x1fa   : > { %5164 = vmatpush1.bf16.msra.mxu1 %v5163_v46  ;;  %5120 = vmatprep.subr.bf16.mxu0 %v5119_v47  ;;  %v5177_v23 = vpack.c.bf16 %v1095_v15, %v1091_v14  ;;  %v1099_v27 = vld [vmem:[#allocation11 + $0x348] sm:$0xff]  ;;  %v5179_v30 = vpack.c.bf16 %v1094_v24, %v1090_v20  ;;  %v1098_v32 = vld [vmem:[#allocation11 + $0x340] sm:$0xff]  ;;  %v5653_v43 = vpack.c.bf16 %v1025_v38, %v1021_v37  ;;  %v1020_v45 = vld [vmem:[#allocation11 + $0xd0] sm:$0xff]  ;;  %p7169_p12 = pneg %p7168_p10 }
 0x1fb   : > { %5166 = vmatprep.subr.bf16.mxu1 %v5165_v50  ;;  %v1103_v28 = vld [vmem:[#allocation11 + $0x368] sm:$0xff]  ;;  %v1102_v36 = vld [vmem:[#allocation11 + $0x360] sm:$0xff]  ;;  %v1024_v46 = vld [vmem:[#allocation11 + $0xf0] sm:$0xff] }
 0x1fc   : > { %912 = vmatmul.mubr.f32.gmra.mrb[2].mxu0 %v749_v56  ;;  %v5181_v35 = vpack.c.bf16 %v1103_v28, %v1099_v27  ;;  %v1107_v39 = vld [vmem:[#allocation11 + $0x388] sm:$0xff]  ;;  %v5183_v42 = vpack.c.bf16 %v1102_v36, %v1098_v32  ;;  %v1106_v44 = vld [vmem:[#allocation11 + $0x380] sm:$0xff]  ;;  %v1029_v49 = vld [vmem:[#allocation11 + $0x118] sm:$0xff]  ;;  %v5655_v53 = vpack.c.bf16 %v1024_v46, %v1020_v45  ;;  %p7176_p8 = pnand %p7175_p5, %p7169_p12 }
 0x1fd   : > { %5122 = vmatpush3.bf16.msra.mxu0 %v5119_v47  ;;  %5080 = vmatprep.mubr.msk.f32.mxu0 %vm831_vm3, %v748_v61  ;;  %v1111_v40 = vld [vmem:[#allocation11 + $0x3a8] sm:$0xff]  ;;  %v1110_v48 = vld [vmem:[#allocation11 + $0x3a0] sm:$0xff]  ;;  %v1033_v50 = vld [vmem:[#allocation11 + $0x138] sm:$0xff] }
 0x1fe   : > { %5168 = vmatpush1.bf16.msra.mxu1 %v5167_v57  ;;  %5125 = vmatprep.subr.msk.bf16.mxu0 %vm7869_vm2, %v5123_v58  ;;  %v5185_v47 = vpack.c.bf16 %v1111_v40, %v1107_v39  ;;  %v1115_v51 = vld [vmem:[#allocation11 + $0x3c8] sm:$0xff]  ;;  %v5187_v54 = vpack.c.bf16 %v1110_v48, %v1106_v44  ;;  %v5657_v55 = vpack.c.bf16 %v1033_v50, %v1029_v49  ;;  %v1114_v56 = vld [vmem:[#allocation11 + $0x3c0] sm:$0xff]  ;;  %v1028_v57 = vld [vmem:[#allocation11 + $0x110] sm:$0xff] }
 0x1ff   : > { %5170 = vmatprep.subr.bf16.mxu1 %v5169_v62  ;;  %v1119_v52 = vld [vmem:[#allocation11 + $0x3e8] sm:$0xff]  ;;  %v1118_v60 = vld [vmem:[#allocation11 + $0x3e0] sm:$0xff]  ;;  %v1037_v61 = vld [vmem:[#allocation11 + $0x158] sm:$0xff] }
 0x200   : > { %v5189_v59 = vpack.c.bf16 %v1119_v52, %v1115_v51  ;;  %v1041_v62 = vld [vmem:[#allocation11 + $0x178] sm:$0xff]  ;;  %v1123_v63 = vld [vmem:[#allocation11 + $0x408] sm:$0xff]  ;;  %v5191_v2 = vpack.c.bf16 %v1118_v60, %v1114_v56  ;;  %v1122_v4 = vld [vmem:[#allocation11 + $0x400] sm:$0xff] }
 0x201   : > { %5128 = vmatpush3.bf16.msk.msra.mxu0 %vm7869_vm2, %v5123_v58  ;;  %v1032_v58 = vld [vmem:[#allocation11 + $0x130] sm:$0xff]  ;;  %v1127_v0 = vld [vmem:[#allocation11 + $0x428] sm:$0xff]  ;;  %v5661_v3 = vpack.c.bf16 %v1041_v62, %v1037_v61  ;;  %v1126_v8 = vld [vmem:[#allocation11 + $0x420] sm:$0xff] }
 0x202   : > { %5172 = vmatpush1.bf16.msra.mxu1 %v5171_v5  ;;  %5642 = vmatprep.subr.bf16.mxu0 %v5641_v6  ;;  %v5659_v1 = vpack.c.bf16 %v1032_v58, %v1028_v57  ;;  %v1036_v5 = vld [vmem:[#allocation11 + $0x150] sm:$0xff]  ;;  %v5193_v7 = vpack.c.bf16 %v1127_v0, %v1123_v63  ;;  %v1045_v9 = vld [vmem:[#allocation11 + $0x198] sm:$0xff]  ;;  %v1131_v11 = vld [vmem:[#allocation11 + $0x448] sm:$0xff]  ;;  %v5195_v15 = vpack.c.bf16 %v1126_v8, %v1122_v4 }
 0x203   : > { %5174 = vmatprep.subr.bf16.mxu1 %v5173_v10  ;;  %v1040_v6 = vld [vmem:[#allocation11 + $0x170] sm:$0xff]  ;;  %v1049_v10 = vld [vmem:[#allocation11 + $0x1b8] sm:$0xff]  ;;  %v1135_v12 = vld [vmem:[#allocation11 + $0x468] sm:$0xff] }
 0x204   : > { %5081 = vmatmul.mubr.msk.f32.vlgmr.msra.gmra.mrb[4].mxu0 %vm831_vm3, %v751_v16  ;;  %v5663_v14 = vpack.c.bf16 %v1040_v6, %v1036_v5  ;;  %v5665_v16 = vpack.c.bf16 %v1049_v10, %v1045_v9  ;;  %v5197_v20 = vpack.c.bf16 %v1135_v12, %v1131_v11  ;;  %v1134_v21 = vld [vmem:[#allocation11 + $0x460] sm:$0xff]  ;;  %v1053_v22 = vld [vmem:[#allocation11 + $0x1d8] sm:$0xff]  ;;  %v1139_v24 = vld [vmem:[#allocation11 + $0x488] sm:$0xff] }
 0x205   : > { %5644 = vmatpush1.bf16.msra.mxu0 %v5643_v17  ;;  %2720 = vmatprep.mubr.f32.mxu0 %v753_v13  ;;  %v7883_v13 = vld [vmem:[%s7830_s26] sm:$0xff]  ;;  %v1130_v17 = vld [vmem:[#allocation11 + $0x440] sm:$0xff]  ;;  %v1061_v34 = vld [vmem:[#allocation11 + $0x218] sm:$0xff] }
 0x206   : > { %5176 = vmatpush1.bf16.msra.mxu1 %v5175_v18  ;;  %5646 = vmatprep.subr.bf16.mxu0 %v5645_v19  ;;  %v1044_v18 = vld [vmem:[#allocation11 + $0x190] sm:$0xff]  ;;  %v1143_v25 = vld [vmem:[#allocation11 + $0x4a8] sm:$0xff]  ;;  %v5199_v27 = vpack.c.bf16 %v1134_v21, %v1130_v17  ;;  %v1142_v33 = vld [vmem:[#allocation11 + $0x4a0] sm:$0xff] }
 0x207   : > { %5178 = vmatprep.subr.bf16.mxu1 %v5177_v23  ;;  %v1048_v19 = vld [vmem:[#allocation11 + $0x1b0] sm:$0xff]  ;;  %v1057_v23 = vld [vmem:[#allocation11 + $0x1f8] sm:$0xff]  ;;  %v5201_v32 = vpack.c.bf16 %v1143_v25, %v1139_v24  ;;  %v1147_v36 = vld [vmem:[#allocation11 + $0x4c8] sm:$0xff] }
 0x208   : > { %v5667_v26 = vpack.c.bf16 %v1048_v19, %v1044_v18  ;;  %v5669_v28 = vpack.c.bf16 %v1057_v23, %v1053_v22  ;;  %v1151_v37 = vld [vmem:[#allocation11 + $0x4e8] sm:$0xff]  ;;  %v1150_v45 = vld [vmem:[#allocation11 + $0x4e0] sm:$0xff]  ;;  %v1069_v46 = vld [vmem:[#allocation11 + $0x258] sm:$0xff] }
 0x209   : > { %5648 = vmatpush1.bf16.msra.mxu0 %v5647_v29  ;;  %v1138_v29 = vld [vmem:[#allocation11 + $0x480] sm:$0xff]  ;;  %v5205_v44 = vpack.c.bf16 %v1151_v37, %v1147_v36  ;;  %v1155_v48 = vld [vmem:[#allocation11 + $0x508] sm:$0xff]  ;;  %v1077_v58 = vld [vmem:[#allocation11 + $0x298] sm:$0xff] }
 0x20a   : > { %5180 = vmatpush1.bf16.msra.mxu1 %v5179_v30  ;;  %5650 = vmatprep.subr.bf16.mxu0 %v5649_v31  ;;  %v1052_v30 = vld [vmem:[#allocation11 + $0x1d0] sm:$0xff]  ;;  %v5203_v39 = vpack.c.bf16 %v1142_v33, %v1138_v29  ;;  %v1159_v49 = vld [vmem:[#allocation11 + $0x528] sm:$0xff]  ;;  %v1158_v57 = vld [vmem:[#allocation11 + $0x520] sm:$0xff] }
 0x20b   : > { %5182 = vmatprep.subr.bf16.mxu1 %v5181_v35  ;;  %v1056_v31 = vld [vmem:[#allocation11 + $0x1f0] sm:$0xff]  ;;  %v1065_v35 = vld [vmem:[#allocation11 + $0x238] sm:$0xff]  ;;  %v5209_v56 = vpack.c.bf16 %v1159_v49, %v1155_v48  ;;  %v1163_v60 = vld [vmem:[#allocation11 + $0x548] sm:$0xff] }
 0x20c   : > { %v5671_v38 = vpack.c.bf16 %v1056_v31, %v1052_v30  ;;  %v5673_v40 = vpack.c.bf16 %v1065_v35, %v1061_v34  ;;  %v1167_v61 = vld [vmem:[#allocation11 + $0x568] sm:$0xff]  ;;  %v1166_v5 = vld [vmem:[#allocation11 + $0x560] sm:$0xff]  ;;  %v1085_v6 = vld [vmem:[#allocation11 + $0x2d8] sm:$0xff] }
 0x20d   : > { %5652 = vmatpush1.bf16.msra.mxu0 %v5651_v41  ;;  %v1146_v41 = vld [vmem:[#allocation11 + $0x4c0] sm:$0xff]  ;;  %v5213_v4 = vpack.c.bf16 %v1167_v61, %v1163_v60  ;;  %v1171_v8 = vld [vmem:[#allocation11 + $0x588] sm:$0xff]  ;;  %v7887_v10 = vld [vmem:[%s7830_s26 + $0x88] sm:$0xff] }
 0x20e   : > { %5184 = vmatpush1.bf16.msra.mxu1 %v5183_v42  ;;  %5654 = vmatprep.subr.bf16.mxu0 %v5653_v43  ;;  %v1060_v42 = vld [vmem:[#allocation11 + $0x210] sm:$0xff]  ;;  %v5207_v51 = vpack.c.bf16 %v1150_v45, %v1146_v41  ;;  %v1175_v9 = vld [vmem:[#allocation11 + $0x5a8] sm:$0xff]  ;;  %v1170_v12 = vld [vmem:[#allocation11 + $0x580] sm:$0xff] }
 0x20f   : > { %5186 = vmatprep.subr.bf16.mxu1 %v5185_v47  ;;  %v1064_v43 = vld [vmem:[#allocation11 + $0x230] sm:$0xff]  ;;  %v1073_v47 = vld [vmem:[#allocation11 + $0x278] sm:$0xff]  ;;  %v7895_v23 = vld [vmem:[%s7830_s26 + $0x18] sm:$0xff] }
 0x210   : > { %v5675_v50 = vpack.c.bf16 %v1064_v43, %v1060_v42  ;;  %v5677_v52 = vpack.c.bf16 %v1073_v47, %v1069_v46  ;;  %v1084_v17 = vld [vmem:[#allocation11 + $0x2d0] sm:$0xff]  ;;  %v1093_v21 = vld [vmem:[#allocation11 + $0x318] sm:$0xff]  ;;  %v1179_v24 = vld [vmem:[#allocation11 + $0x5c8] sm:$0xff] }
 0x211   : > { %5656 = vmatpush1.bf16.msra.mxu0 %v5655_v53  ;;  %v1154_v53 = vld [vmem:[#allocation11 + $0x500] sm:$0xff]  ;;  %v1088_v18 = vld [vmem:[#allocation11 + $0x2f0] sm:$0xff]  ;;  %v1097_v22 = vld [vmem:[#allocation11 + $0x338] sm:$0xff] }
 0x212   : > { %5188 = vmatpush1.bf16.msra.mxu1 %v5187_v54  ;;  %5658 = vmatprep.subr.bf16.mxu0 %v5657_v55  ;;  %v1068_v54 = vld [vmem:[#allocation11 + $0x250] sm:$0xff]  ;;  %v5211_v63 = vpack.c.bf16 %v1158_v57, %v1154_v53  ;;  %v1183_v25 = vld [vmem:[#allocation11 + $0x5e8] sm:$0xff]  ;;  %v1178_v29 = vld [vmem:[#allocation11 + $0x5c0] sm:$0xff] }
 0x213   : > { %5190 = vmatprep.subr.bf16.mxu1 %v5189_v59  ;;  %v1072_v55 = vld [vmem:[#allocation11 + $0x270] sm:$0xff]  ;;  %v1081_v59 = vld [vmem:[#allocation11 + $0x2b8] sm:$0xff]  ;;  %v1182_v33 = vld [vmem:[#allocation11 + $0x5e0] sm:$0xff] }
 0x214   : > { %v5679_v62 = vpack.c.bf16 %v1072_v55, %v1068_v54  ;;  %v5681_v0 = vpack.c.bf16 %v1081_v59, %v1077_v58  ;;  %v7891_v19 = vld [vmem:[%s7830_s26 + $0x80] sm:$0xff]  ;;  %v1101_v34 = vld [vmem:[#allocation11 + $0x358] sm:$0xff]  ;;  %v1186_v41 = vld [vmem:[#allocation11 + $0x600] sm:$0xff] }
 0x215   : > { %5660 = vmatpush1.bf16.msra.mxu0 %v5659_v1  ;;  %v1162_v1 = vld [vmem:[#allocation11 + $0x540] sm:$0xff]  ;;  %v1092_v30 = vld [vmem:[#allocation11 + $0x310] sm:$0xff]  ;;  %v1105_v35 = vld [vmem:[#allocation11 + $0x378] sm:$0xff] }
 0x216   : > { %5192 = vmatpush1.bf16.msra.mxu1 %v5191_v2  ;;  %5662 = vmatprep.subr.bf16.mxu0 %v5661_v3  ;;  %v1076_v2 = vld [vmem:[#allocation11 + $0x290] sm:$0xff]  ;;  %v1187_v36 = vld [vmem:[#allocation11 + $0x608] sm:$0xff]  ;;  %v1190_v45 = vld [vmem:[#allocation11 + $0x620] sm:$0xff] }
 0x217   : > { %5194 = vmatprep.subr.bf16.mxu1 %v5193_v7  ;;  %v1080_v3 = vld [vmem:[#allocation11 + $0x2b0] sm:$0xff]  ;;  %v1089_v7 = vld [vmem:[#allocation11 + $0x2f8] sm:$0xff]  ;;  %v1191_v37 = vld [vmem:[#allocation11 + $0x628] sm:$0xff] }
 0x218   : > { %v5683_v11 = vpack.c.bf16 %v1080_v3, %v1076_v2  ;;  %v1096_v31 = vld [vmem:[#allocation11 + $0x330] sm:$0xff]  ;;  %v1109_v46 = vld [vmem:[#allocation11 + $0x398] sm:$0xff]  ;;  %v1195_v48 = vld [vmem:[#allocation11 + $0x648] sm:$0xff] }
 0x219   : > { %2105 = vmatmul.mubr.f32.vlgmr.msra.gmra.mrb[0].mxu1 %v7883_v13  ;;  %5664 = vmatpush1.bf16.msra.mxu0 %v5663_v14  ;;  %v1174_v14 = vld [vmem:[#allocation11 + $0x5a0] sm:$0xff]  ;;  %v1100_v42 = vld [vmem:[#allocation11 + $0x350] sm:$0xff]  ;;  %v1113_v47 = vld [vmem:[#allocation11 + $0x3b8] sm:$0xff] }
 0x21a   : > { %5196 = vmatpush1.bf16.msra.mxu1 %v5195_v15  ;;  %5666 = vmatprep.subr.bf16.mxu0 %v5665_v16  ;;  %v5215_v15 = vpack.c.bf16 %v1166_v5, %v1162_v1  ;;  %v5685_v16 = vpack.c.bf16 %v1089_v7, %v1085_v6  ;;  %v1104_v43 = vld [vmem:[#allocation11 + $0x370] sm:$0xff]  ;;  %v1199_v49 = vld [vmem:[#allocation11 + $0x668] sm:$0xff]  ;;  %v1194_v53 = vld [vmem:[#allocation11 + $0x640] sm:$0xff] }
 0x21b   : > { %5198 = vmatprep.subr.bf16.mxu1 %v5197_v20  ;;  %2110 = vmatprep.mubr.f32.mxu1 %v7887_v10  ;;  %v5217_v20 = vpack.c.bf16 %v1175_v9, %v1171_v8  ;;  %v1108_v54 = vld [vmem:[#allocation11 + $0x390] sm:$0xff]  ;;  %v1198_v57 = vld [vmem:[#allocation11 + $0x660] sm:$0xff]  ;;  %v1117_v58 = vld [vmem:[#allocation11 + $0x3d8] sm:$0xff] }
 0x21c   : > { %v1112_v55 = vld [vmem:[#allocation11 + $0x3b0] sm:$0xff]  ;;  %v1121_v59 = vld [vmem:[#allocation11 + $0x3f8] sm:$0xff]  ;;  %v1203_v60 = vld [vmem:[#allocation11 + $0x688] sm:$0xff] }
 0x21d   : > { %5668 = vmatpush1.bf16.msra.mxu0 %v5667_v26  ;;  %2111 = vmatmul.mubr.f32.gmra.mrb[2].mxu1 %v7891_v19  ;;  %v5687_v26 = vpack.c.bf16 %v1088_v18, %v1084_v17  ;;  %v1207_v61 = vld [vmem:[#allocation11 + $0x6a8] sm:$0xff]  ;;  %v1202_v1 = vld [vmem:[#allocation11 + $0x680] sm:$0xff]  ;;  %v1116_v2 = vld [vmem:[#allocation11 + $0x3d0] sm:$0xff] }
 0x21e   : > { %5200 = vmatpush1.bf16.msra.mxu1 %v5199_v27  ;;  %5670 = vmatprep.subr.bf16.mxu0 %v5669_v28  ;;  %v5219_v27 = vpack.c.bf16 %v1174_v14, %v1170_v12  ;;  %v5689_v28 = vpack.c.bf16 %v1097_v22, %v1093_v21  ;;  %v1120_v3 = vld [vmem:[#allocation11 + $0x3f0] sm:$0xff]  ;;  %v1206_v5 = vld [vmem:[#allocation11 + $0x6a0] sm:$0xff]  ;;  %v1125_v6 = vld [vmem:[#allocation11 + $0x418] sm:$0xff] }
 0x21f   : > { %5202 = vmatprep.subr.bf16.mxu1 %v5201_v32  ;;  %2181 = vmatprep.mubr.f32.mxu1 %v7895_v23  ;;  %v5221_v32 = vpack.c.bf16 %v1183_v25, %v1179_v24  ;;  %v1129_v7 = vld [vmem:[#allocation11 + $0x438] sm:$0xff]  ;;  %v1211_v8 = vld [vmem:[#allocation11 + $0x6c8] sm:$0xff]  ;;  %v5235_v12 = vpack.c.bf16 %v1206_v5, %v1202_v1  ;;  %v1128_v17 = vld [vmem:[#allocation11 + $0x430] sm:$0xff] }
 0x220   : > { %v1215_v9 = vld [vmem:[#allocation11 + $0x6e8] sm:$0xff]  ;;  %v5705_v14 = vpack.c.bf16 %v1129_v7, %v1125_v6  ;;  %v1133_v21 = vld [vmem:[#allocation11 + $0x458] sm:$0xff]  ;;  %v1246_v1 = vld [vmem:[#allocation11 + $0x7e0] sm:$0xff] }
 0x221   : > { %5672 = vmatpush1.bf16.msra.mxu0 %v5671_v38  ;;  %v5691_v38 = vpack.c.bf16 %v1096_v31, %v1092_v30  ;;  %v5237_v18 = vpack.c.bf16 %v1215_v9, %v1211_v8  ;;  %v1137_v22 = vld [vmem:[#allocation11 + $0x478] sm:$0xff]  ;;  %v1219_v24 = vld [vmem:[#allocation11 + $0x708] sm:$0xff]  ;;  %v1132_v30 = vld [vmem:[#allocation11 + $0x450] sm:$0xff] }
 0x222   : > { %5204 = vmatpush1.bf16.msra.mxu1 %v5203_v39  ;;  %5674 = vmatprep.subr.bf16.mxu0 %v5673_v40  ;;  %v5223_v39 = vpack.c.bf16 %v1182_v33, %v1178_v29  ;;  %v5693_v40 = vpack.c.bf16 %v1105_v35, %v1101_v34  ;;  %v1223_v25 = vld [vmem:[#allocation11 + $0x728] sm:$0xff]  ;;  %v1218_v29 = vld [vmem:[#allocation11 + $0x700] sm:$0xff]  ;;  %v1136_v31 = vld [vmem:[#allocation11 + $0x470] sm:$0xff] }
 0x223   : > { %5206 = vmatprep.subr.bf16.mxu1 %v5205_v44  ;;  %v5225_v44 = vpack.c.bf16 %v1191_v37, %v1187_v36  ;;  %v1222_v33 = vld [vmem:[#allocation11 + $0x720] sm:$0xff]  ;;  %v1141_v34 = vld [vmem:[#allocation11 + $0x498] sm:$0xff]  ;;  %v1227_v36 = vld [vmem:[#allocation11 + $0x748] sm:$0xff] }
 0x224   : > { %v1145_v35 = vld [vmem:[#allocation11 + $0x4b8] sm:$0xff]  ;;  %v1231_v37 = vld [vmem:[#allocation11 + $0x768] sm:$0xff]  ;;  %v1250_v9 = vld [vmem:[#allocation11 + $0x800] sm:$0xff] }
 0x225   : > { %5676 = vmatpush1.bf16.msra.mxu0 %v5675_v50  ;;  %v5695_v50 = vpack.c.bf16 %v1104_v43, %v1100_v42  ;;  %v1140_v42 = vld [vmem:[#allocation11 + $0x490] sm:$0xff]  ;;  %v1255_v5 = vld [vmem:[#allocation11 + $0x828] sm:$0xff] }
 0x226   : > { %5208 = vmatpush1.bf16.msra.mxu1 %v5207_v51  ;;  %5678 = vmatprep.subr.bf16.mxu0 %v5677_v52  ;;  %v5227_v51 = vpack.c.bf16 %v1190_v45, %v1186_v41  ;;  %v5697_v52 = vpack.c.bf16 %v1113_v47, %v1109_v46  ;;  %v1226_v41 = vld [vmem:[#allocation11 + $0x740] sm:$0xff]  ;;  %v1144_v43 = vld [vmem:[#allocation11 + $0x4b0] sm:$0xff]  ;;  %v1149_v46 = vld [vmem:[#allocation11 + $0x4d8] sm:$0xff] }
 0x227   : > { %5210 = vmatprep.subr.bf16.mxu1 %v5209_v56  ;;  %v5229_v56 = vpack.c.bf16 %v1199_v49, %v1195_v48  ;;  %v1230_v45 = vld [vmem:[#allocation11 + $0x760] sm:$0xff]  ;;  %v1153_v47 = vld [vmem:[#allocation11 + $0x4f8] sm:$0xff]  ;;  %v1235_v48 = vld [vmem:[#allocation11 + $0x788] sm:$0xff]  ;;  %v5715_v49 = vpack.c.bf16 %v1144_v43, %v1140_v42 }
 0x228   : > { %v7910_v42 = vld [vmem:[%s7830_s26 + $0x90] sm:$0xff] }
 0x229   : > { %5680 = vmatpush1.bf16.msra.mxu0 %v5679_v62  ;;  %v5699_v62 = vpack.c.bf16 %v1112_v55, %v1108_v54  ;;  %v1238_v55 = vld [vmem:[#allocation11 + $0x7a0] sm:$0xff] }
 0x22a   : > { %5212 = vmatpush1.bf16.msra.mxu1 %v5211_v63  ;;  %5682 = vmatprep.subr.bf16.mxu0 %v5681_v0  ;;  %v5231_v63 = vpack.c.bf16 %v1198_v57, %v1194_v53  ;;  %v5701_v0 = vpack.c.bf16 %v1121_v59, %v1117_v58  ;;  %v1152_v53 = vld [vmem:[#allocation11 + $0x4f0] sm:$0xff]  ;;  %v1161_v57 = vld [vmem:[#allocation11 + $0x538] sm:$0xff]  ;;  %v1243_v58 = vld [vmem:[#allocation11 + $0x7c8] sm:$0xff] }
 0x22b   : > { %5214 = vmatprep.subr.bf16.mxu1 %v5213_v4  ;;  %v5233_v4 = vpack.c.bf16 %v1207_v61, %v1203_v60  ;;  %v1247_v59 = vld [vmem:[#allocation11 + $0x7e8] sm:$0xff]  ;;  %v1242_v61 = vld [vmem:[#allocation11 + $0x7c0] sm:$0xff] }
 0x22c   : > { %v5255_v7 = vpack.c.bf16 %v1246_v1, %v1242_v61  ;;  %v1282_v61 = vld [vmem:[#allocation11 + $0x900] sm:$0xff] }
 0x22d   : > { %5684 = vmatpush1.bf16.msra.mxu0 %v5683_v11  ;;  %v5703_v11 = vpack.c.bf16 %v1120_v3, %v1116_v2  ;;  %v1165_v2 = vld [vmem:[#allocation11 + $0x558] sm:$0xff]  ;;  %v1286_v1 = vld [vmem:[#allocation11 + $0x920] sm:$0xff] }
 0x22e   : > { %5216 = vmatpush1.bf16.msra.mxu1 %v5215_v15  ;;  %5686 = vmatprep.subr.bf16.mxu0 %v5685_v16  ;;  %v1210_v15 = vld [vmem:[#allocation11 + $0x6c0] sm:$0xff]  ;;  %v1124_v16 = vld [vmem:[#allocation11 + $0x410] sm:$0xff]  ;;  %v1169_v3 = vld [vmem:[#allocation11 + $0x578] sm:$0xff] }
 0x22f   : > { %5218 = vmatprep.subr.bf16.mxu1 %v5217_v20  ;;  %v1214_v20 = vld [vmem:[#allocation11 + $0x6e0] sm:$0xff]  ;;  %v5725_v8 = vpack.c.bf16 %v1169_v3, %v1165_v2  ;;  %v1205_v2 = vld [vmem:[#allocation11 + $0x698] sm:$0xff] }
 0x230   : > { %v1209_v3 = vld [vmem:[#allocation11 + $0x6b8] sm:$0xff] }
 0x231   : > { %5688 = vmatpush1.bf16.msra.mxu0 %v5687_v26  ;;  %v5707_v26 = vpack.c.bf16 %v1128_v17, %v1124_v16  ;;  %v1173_v16 = vld [vmem:[#allocation11 + $0x598] sm:$0xff] }
 0x232   : > { %5220 = vmatpush1.bf16.msra.mxu1 %v5219_v27  ;;  %5690 = vmatprep.subr.bf16.mxu0 %v5689_v28  ;;  %v5239_v27 = vpack.c.bf16 %v1214_v20, %v1210_v15  ;;  %v5709_v28 = vpack.c.bf16 %v1137_v22, %v1133_v21  ;;  %v1254_v15 = vld [vmem:[#allocation11 + $0x820] sm:$0xff]  ;;  %v1177_v17 = vld [vmem:[#allocation11 + $0x5b8] sm:$0xff]  ;;  %v1263_v20 = vld [vmem:[#allocation11 + $0x868] sm:$0xff] }
 0x233   : > { %5222 = vmatprep.subr.bf16.mxu1 %v5221_v32  ;;  %v5241_v32 = vpack.c.bf16 %v1223_v25, %v1219_v24  ;;  %v7903_v21 = vld [vmem:[%s7830_s26 + $0x10] sm:$0xff]  ;;  %v5259_v24 = vpack.c.bf16 %v1254_v15, %v1250_v9  ;;  %v5729_v25 = vpack.c.bf16 %v1177_v17, %v1173_v16 }
 0x234   : > { %v1290_v9 = vld [vmem:[#allocation11 + $0x940] sm:$0xff]  ;;  %v1213_v16 = vld [vmem:[#allocation11 + $0x6d8] sm:$0xff] }
 0x235   : > { %5692 = vmatpush1.bf16.msra.mxu0 %v5691_v38  ;;  %v5711_v38 = vpack.c.bf16 %v1136_v31, %v1132_v30  ;;  %v1262_v30 = vld [vmem:[#allocation11 + $0x860] sm:$0xff]  ;;  %v1181_v31 = vld [vmem:[#allocation11 + $0x5d8] sm:$0xff] }
 0x236   : > { %5224 = vmatpush1.bf16.msra.mxu1 %v5223_v39  ;;  %5694 = vmatprep.subr.bf16.mxu0 %v5693_v40  ;;  %v5243_v39 = vpack.c.bf16 %v1222_v33, %v1218_v29  ;;  %v5713_v40 = vpack.c.bf16 %v1145_v35, %v1141_v34  ;;  %v1267_v33 = vld [vmem:[#allocation11 + $0x888] sm:$0xff]  ;;  %v1294_v15 = vld [vmem:[#allocation11 + $0x960] sm:$0xff]  ;;  %v1217_v17 = vld [vmem:[#allocation11 + $0x6f8] sm:$0xff] }
 0x237   : > { %5226 = vmatprep.subr.bf16.mxu1 %v5225_v44  ;;  %v5245_v44 = vpack.c.bf16 %v1231_v37, %v1227_v36  ;;  %v1271_v34 = vld [vmem:[#allocation11 + $0x8a8] sm:$0xff]  ;;  %v1266_v37 = vld [vmem:[#allocation11 + $0x880] sm:$0xff] }
 0x238   : > { %v7906_v35 = vld [vmem:[%s7830_s26 + $0x98] sm:$0xff]  ;;  %v5265_v43 = vpack.c.bf16 %v1271_v34, %v1267_v33 }
 0x239   : > { %5696 = vmatpush1.bf16.msra.mxu0 %v5695_v50  ;;  %v5717_v50 = vpack.c.bf16 %v1153_v47, %v1149_v46  ;;  %v1193_v46 = vld [vmem:[#allocation11 + $0x638] sm:$0xff]  ;;  %v1275_v47 = vld [vmem:[#allocation11 + $0x8c8] sm:$0xff] }
 0x23a   : > { %5228 = vmatpush1.bf16.msra.mxu1 %v5227_v51  ;;  %5698 = vmatprep.subr.bf16.mxu0 %v5697_v52  ;;  %v1234_v51 = vld [vmem:[#allocation11 + $0x780] sm:$0xff]  ;;  %v1148_v52 = vld [vmem:[#allocation11 + $0x4d0] sm:$0xff]  ;;  %v1307_v33 = vld [vmem:[#allocation11 + $0x9c8] sm:$0xff] }
 0x23b   : > { %5230 = vmatprep.subr.bf16.mxu1 %v5229_v56  ;;  %v1157_v56 = vld [vmem:[#allocation11 + $0x518] sm:$0xff]  ;;  %v5251_v60 = vpack.c.bf16 %v1238_v55, %v1234_v51  ;;  %v1274_v51 = vld [vmem:[#allocation11 + $0x8c0] sm:$0xff]  ;;  %v1311_v34 = vld [vmem:[#allocation11 + $0x9e8] sm:$0xff] }
 0x23c   : > { %v1278_v55 = vld [vmem:[#allocation11 + $0x8e0] sm:$0xff] }
 0x23d   : > { %5700 = vmatpush1.bf16.msra.mxu0 %v5699_v62  ;;  %v1156_v62 = vld [vmem:[#allocation11 + $0x510] sm:$0xff] }
 0x23e   : > { %5232 = vmatpush1.bf16.msra.mxu1 %v5231_v63  ;;  %5702 = vmatprep.subr.bf16.mxu0 %v5701_v0  ;;  %v1160_v63 = vld [vmem:[#allocation11 + $0x530] sm:$0xff]  ;;  %v5253_v0 = vpack.c.bf16 %v1247_v59, %v1243_v58  ;;  %v1283_v58 = vld [vmem:[#allocation11 + $0x908] sm:$0xff] }
 0x23f   : > { %5234 = vmatprep.subr.bf16.mxu1 %v5233_v4  ;;  %v1251_v4 = vld [vmem:[#allocation11 + $0x808] sm:$0xff]  ;;  %v5723_v6 = vpack.c.bf16 %v1160_v63, %v1156_v62  ;;  %v1196_v62 = vld [vmem:[#allocation11 + $0x650] sm:$0xff] }
 0x240   : > { %v1287_v59 = vld [vmem:[#allocation11 + $0x928] sm:$0xff]  ;;  %v1200_v63 = vld [vmem:[#allocation11 + $0x670] sm:$0xff] }
 0x241   : > { %5704 = vmatpush1.bf16.msra.mxu0 %v5703_v11  ;;  %v1164_v11 = vld [vmem:[#allocation11 + $0x550] sm:$0xff] }
 0x242   : > { %5236 = vmatpush1.bf16.msra.mxu1 %v5235_v12  ;;  %5706 = vmatprep.subr.bf16.mxu0 %v5705_v14  ;;  %v1168_v12 = vld [vmem:[#allocation11 + $0x570] sm:$0xff]  ;;  %v5257_v14 = vpack.c.bf16 %v1255_v5, %v1251_v4  ;;  %v1291_v4 = vld [vmem:[#allocation11 + $0x948] sm:$0xff] }
 0x243   : > { %5238 = vmatprep.subr.bf16.mxu1 %v5237_v18  ;;  %v1259_v18 = vld [vmem:[#allocation11 + $0x848] sm:$0xff]  ;;  %v5727_v22 = vpack.c.bf16 %v1168_v12, %v1164_v11  ;;  %v1204_v11 = vld [vmem:[#allocation11 + $0x690] sm:$0xff] }
 0x244   : > { %2721 = vmatmul.mubr.f32.vlgmr.msra.gmra.mrb[6].mxu0 %v7883_v13  ;;  %v1239_v13 = vld [vmem:[#allocation11 + $0x7a8] sm:$0xff]  ;;  %v5261_v29 = vpack.c.bf16 %v1263_v20, %v1259_v18  ;;  %v1208_v12 = vld [vmem:[#allocation11 + $0x6b0] sm:$0xff] }
 0x245   : > { %5708 = vmatpush1.bf16.msra.mxu0 %v5707_v26  ;;  %2726 = vmatprep.mubr.f32.mxu0 %v7887_v10  ;;  %v5247_v10 = vpack.c.bf16 %v1230_v45, %v1226_v41  ;;  %v5249_v54 = vpack.c.bf16 %v1239_v13, %v1235_v48  ;;  %v1258_v26 = vld [vmem:[#allocation11 + $0x840] sm:$0xff]  ;;  %v1184_v41 = vld [vmem:[#allocation11 + $0x5f0] sm:$0xff]  ;;  %v1189_v45 = vld [vmem:[#allocation11 + $0x618] sm:$0xff] }
 0x246   : > { %5240 = vmatpush1.bf16.msra.mxu1 %v5239_v27  ;;  %5710 = vmatprep.subr.bf16.mxu0 %v5709_v28  ;;  %v1172_v27 = vld [vmem:[#allocation11 + $0x590] sm:$0xff]  ;;  %v1279_v48 = vld [vmem:[#allocation11 + $0x8e8] sm:$0xff] }
 0x247   : > { %5242 = vmatprep.subr.bf16.mxu1 %v5241_v32  ;;  %v1176_v28 = vld [vmem:[#allocation11 + $0x5b0] sm:$0xff]  ;;  %v1185_v32 = vld [vmem:[#allocation11 + $0x5f8] sm:$0xff]  ;;  %v1295_v5 = vld [vmem:[#allocation11 + $0x968] sm:$0xff] }
 0x248   : > { %2727 = vmatmul.mubr.f32.gmra.mrb[8].mxu0 %v7891_v19  ;;  %v5719_v19 = vpack.c.bf16 %v1152_v53, %v1148_v52  ;;  %v5731_v36 = vpack.c.bf16 %v1176_v28, %v1172_v27  ;;  %v7914_v13 = vld [vmem:[%s7830_s26 + $0x28] sm:$0xff]  ;;  %v1299_v18 = vld [vmem:[#allocation11 + $0x988] sm:$0xff] }
 0x249   : > { %5712 = vmatpush1.bf16.msra.mxu0 %v5711_v38  ;;  %2797 = vmatprep.mubr.f32.mxu0 %v7895_v23  ;;  %v5721_v23 = vpack.c.bf16 %v1161_v57, %v1157_v56  ;;  %v5263_v38 = vpack.c.bf16 %v1262_v30, %v1258_v26  ;;  %v1188_v52 = vld [vmem:[#allocation11 + $0x610] sm:$0xff]  ;;  %v1197_v56 = vld [vmem:[#allocation11 + $0x658] sm:$0xff]  ;;  %v1303_v20 = vld [vmem:[#allocation11 + $0x9a8] sm:$0xff] }
 0x24a   : > { %5244 = vmatpush1.bf16.msra.mxu1 %v5243_v39  ;;  %5714 = vmatprep.subr.bf16.mxu0 %v5713_v40  ;;  %v5733_v39 = vpack.c.bf16 %v1185_v32, %v1181_v31  ;;  %v1180_v40 = vld [vmem:[#allocation11 + $0x5d0] sm:$0xff]  ;;  %v1201_v57 = vld [vmem:[#allocation11 + $0x678] sm:$0xff]  ;;  %v1298_v26 = vld [vmem:[#allocation11 + $0x980] sm:$0xff] }
 0x24b   : > { %5246 = vmatprep.subr.bf16.mxu1 %v5245_v44  ;;  %v1270_v44 = vld [vmem:[#allocation11 + $0x8a0] sm:$0xff]  ;;  %v1192_v53 = vld [vmem:[#allocation11 + $0x630] sm:$0xff]  ;;  %v1221_v31 = vld [vmem:[#allocation11 + $0x718] sm:$0xff] }
 0x24c   : > { %v1212_v27 = vld [vmem:[#allocation11 + $0x6d0] sm:$0xff]  ;;  %v1302_v30 = vld [vmem:[#allocation11 + $0x9a0] sm:$0xff]  ;;  %v1225_v32 = vld [vmem:[#allocation11 + $0x738] sm:$0xff] }
 0x24d   : > { %5716 = vmatpush1.bf16.msra.mxu0 %v5715_v49  ;;  %v5735_v49 = vpack.c.bf16 %v1184_v41, %v1180_v40  ;;  %v1216_v28 = vld [vmem:[#allocation11 + $0x6f0] sm:$0xff] }
 0x24e   : > { %5248 = vmatpush1.bf16.msra.mxu1 %v5247_v10  ;;  %5718 = vmatprep.subr.bf16.mxu0 %v5717_v50  ;;  %v5267_v10 = vpack.c.bf16 %v1270_v44, %v1266_v37  ;;  %v5737_v50 = vpack.c.bf16 %v1193_v46, %v1189_v45  ;;  %v5283_v37 = vpack.c.bf16 %v1302_v30, %v1298_v26  ;;  %v1220_v40 = vld [vmem:[#allocation11 + $0x710] sm:$0xff]  ;;  %v1310_v44 = vld [vmem:[#allocation11 + $0x9e0] sm:$0xff]  ;;  %v1229_v45 = vld [vmem:[#allocation11 + $0x758] sm:$0xff] }
 0x24f   : > { %5250 = vmatprep.subr.bf16.mxu1 %v5249_v54  ;;  %v5269_v54 = vpack.c.bf16 %v1279_v48, %v1275_v47  ;;  %v1224_v41 = vld [vmem:[#allocation11 + $0x730] sm:$0xff]  ;;  %v1233_v46 = vld [vmem:[#allocation11 + $0x778] sm:$0xff]  ;;  %v1315_v47 = vld [vmem:[#allocation11 + $0xa08] sm:$0xff] }
 0x250   : > { %v1319_v48 = vld [vmem:[#allocation11 + $0xa28] sm:$0xff]  ;;  %v1338_v26 = vld [vmem:[#allocation11 + $0xac0] sm:$0xff] }
 0x251   : > { %5720 = vmatpush1.bf16.msra.mxu0 %v5719_v19  ;;  %v5739_v19 = vpack.c.bf16 %v1192_v53, %v1188_v52  ;;  %v1228_v52 = vld [vmem:[#allocation11 + $0x750] sm:$0xff]  ;;  %v1342_v30 = vld [vmem:[#allocation11 + $0xae0] sm:$0xff] }
 0x252   : > { %5252 = vmatpush1.bf16.msra.mxu1 %v5251_v60  ;;  %5722 = vmatprep.subr.bf16.mxu0 %v5721_v23  ;;  %v5271_v60 = vpack.c.bf16 %v1278_v55, %v1274_v51  ;;  %v5741_v23 = vpack.c.bf16 %v1201_v57, %v1197_v56  ;;  %v1314_v51 = vld [vmem:[#allocation11 + $0xa00] sm:$0xff]  ;;  %v1232_v53 = vld [vmem:[#allocation11 + $0x770] sm:$0xff]  ;;  %v1237_v56 = vld [vmem:[#allocation11 + $0x798] sm:$0xff] }
 0x253   : > { %5254 = vmatprep.subr.bf16.mxu1 %v5253_v0  ;;  %v5273_v0 = vpack.c.bf16 %v1287_v59, %v1283_v58  ;;  %v1318_v55 = vld [vmem:[#allocation11 + $0xa20] sm:$0xff]  ;;  %v1241_v57 = vld [vmem:[#allocation11 + $0x7b8] sm:$0xff]  ;;  %v1323_v58 = vld [vmem:[#allocation11 + $0xa48] sm:$0xff] }
 0x254   : > { %v1327_v59 = vld [vmem:[#allocation11 + $0xa68] sm:$0xff] }
 0x255   : > { %5724 = vmatpush1.bf16.msra.mxu0 %v5723_v6  ;;  %v5743_v6 = vpack.c.bf16 %v1200_v63, %v1196_v62  ;;  %v1236_v62 = vld [vmem:[#allocation11 + $0x790] sm:$0xff] }
 0x256   : > { %5256 = vmatpush1.bf16.msra.mxu1 %v5255_v7  ;;  %5726 = vmatprep.subr.bf16.mxu0 %v5725_v8  ;;  %v5275_v7 = vpack.c.bf16 %v1286_v1, %v1282_v61  ;;  %v5745_v8 = vpack.c.bf16 %v1209_v3, %v1205_v2  ;;  %v1322_v61 = vld [vmem:[#allocation11 + $0xa40] sm:$0xff]  ;;  %v1240_v63 = vld [vmem:[#allocation11 + $0x7b0] sm:$0xff]  ;;  %v1245_v2 = vld [vmem:[#allocation11 + $0x7d8] sm:$0xff] }
 0x257   : > { %5258 = vmatprep.subr.bf16.mxu1 %v5257_v14  ;;  %v5277_v14 = vpack.c.bf16 %v1295_v5, %v1291_v4  ;;  %v1326_v1 = vld [vmem:[#allocation11 + $0xa60] sm:$0xff]  ;;  %v1249_v3 = vld [vmem:[#allocation11 + $0x7f8] sm:$0xff]  ;;  %v1331_v4 = vld [vmem:[#allocation11 + $0xa88] sm:$0xff] }
 0x258   : > { %v1335_v5 = vld [vmem:[#allocation11 + $0xaa8] sm:$0xff] }
 0x259   : > { %2182 = vmatmul.mubr.f32.vlgmr.msra.gmra.mrb[0].mxu1 %v7903_v21  ;;  %5728 = vmatpush1.bf16.msra.mxu0 %v5727_v22  ;;  %v5747_v22 = vpack.c.bf16 %v1208_v12, %v1204_v11  ;;  %v1244_v11 = vld [vmem:[#allocation11 + $0x7d0] sm:$0xff] }
 0x25a   : > { %5260 = vmatpush1.bf16.msra.mxu1 %v5259_v24  ;;  %5730 = vmatprep.subr.bf16.mxu0 %v5729_v25  ;;  %v5279_v24 = vpack.c.bf16 %v1294_v15, %v1290_v9  ;;  %v5749_v25 = vpack.c.bf16 %v1217_v17, %v1213_v16  ;;  %v1330_v9 = vld [vmem:[#allocation11 + $0xa80] sm:$0xff]  ;;  %v1248_v12 = vld [vmem:[#allocation11 + $0x7f0] sm:$0xff]  ;;  %v1253_v16 = vld [vmem:[#allocation11 + $0x818] sm:$0xff] }
 0x25b   : > { %5262 = vmatprep.subr.bf16.mxu1 %v5261_v29  ;;  %2187 = vmatprep.mubr.f32.mxu1 %v7906_v35  ;;  %v5281_v29 = vpack.c.bf16 %v1303_v20, %v1299_v18  ;;  %v1334_v15 = vld [vmem:[#allocation11 + $0xaa0] sm:$0xff]  ;;  %v1257_v17 = vld [vmem:[#allocation11 + $0x838] sm:$0xff]  ;;  %v1339_v18 = vld [vmem:[#allocation11 + $0xac8] sm:$0xff] }
 0x25c   : > { %v1343_v20 = vld [vmem:[#allocation11 + $0xae8] sm:$0xff] }
 0x25d   : > { %5732 = vmatpush1.bf16.msra.mxu0 %v5731_v36  ;;  %2188 = vmatmul.mubr.f32.gmra.mrb[2].mxu1 %v7910_v42  ;;  %v5751_v36 = vpack.c.bf16 %v1216_v28, %v1212_v27  ;;  %v1252_v27 = vld [vmem:[#allocation11 + $0x810] sm:$0xff] }
 0x25e   : > { %5264 = vmatpush1.bf16.msra.mxu1 %v5263_v38  ;;  %5734 = vmatprep.subr.bf16.mxu0 %v5733_v39  ;;  %v5753_v38 = vpack.c.bf16 %v1225_v32, %v1221_v31  ;;  %v1306_v39 = vld [vmem:[#allocation11 + $0x9c0] sm:$0xff]  ;;  %v1256_v28 = vld [vmem:[#allocation11 + $0x830] sm:$0xff]  ;;  %v1261_v31 = vld [vmem:[#allocation11 + $0x858] sm:$0xff] }
 0x25f   : > { %5266 = vmatprep.subr.bf16.mxu1 %v5265_v43  ;;  %2258 = vmatprep.mubr.f32.mxu1 %v7914_v13  ;;  %v5285_v43 = vpack.c.bf16 %v1311_v34, %v1307_v33  ;;  %v1265_v32 = vld [vmem:[#allocation11 + $0x878] sm:$0xff]  ;;  %v1347_v33 = vld [vmem:[#allocation11 + $0xb08] sm:$0xff] }
 0x260   : > { %v1351_v34 = vld [vmem:[#allocation11 + $0xb28] sm:$0xff] }
 0x261   : > { %5736 = vmatpush1.bf16.msra.mxu0 %v5735_v49  ;;  %v5755_v49 = vpack.c.bf16 %v1224_v41, %v1220_v40  ;;  %v1260_v40 = vld [vmem:[#allocation11 + $0x850] sm:$0xff] }
 0x262   : > { %5268 = vmatpush1.bf16.msra.mxu1 %v5267_v10  ;;  %5738 = vmatprep.subr.bf16.mxu0 %v5737_v50  ;;  %v5287_v10 = vpack.c.bf16 %v1310_v44, %v1306_v39  ;;  %v5757_v50 = vpack.c.bf16 %v1233_v46, %v1229_v45  ;;  %v1346_v39 = vld [vmem:[#allocation11 + $0xb00] sm:$0xff]  ;;  %v1264_v41 = vld [vmem:[#allocation11 + $0x870] sm:$0xff]  ;;  %v1269_v45 = vld [vmem:[#allocation11 + $0x898] sm:$0xff] }
 0x263   : > { %5270 = vmatprep.subr.bf16.mxu1 %v5269_v54  ;;  %v5289_v54 = vpack.c.bf16 %v1319_v48, %v1315_v47  ;;  %v1350_v44 = vld [vmem:[#allocation11 + $0xb20] sm:$0xff]  ;;  %v1273_v46 = vld [vmem:[#allocation11 + $0x8b8] sm:$0xff]  ;;  %v1355_v47 = vld [vmem:[#allocation11 + $0xb48] sm:$0xff] }
 0x264   : > { %v1359_v48 = vld [vmem:[#allocation11 + $0xb68] sm:$0xff] }
 0x265   : > { %5740 = vmatpush1.bf16.msra.mxu0 %v5739_v19  ;;  %v5759_v19 = vpack.c.bf16 %v1232_v53, %v1228_v52  ;;  %v1268_v52 = vld [vmem:[#allocation11 + $0x890] sm:$0xff] }
 0x266   : > { %5272 = vmatpush1.bf16.msra.mxu1 %v5271_v60  ;;  %5742 = vmatprep.subr.bf16.mxu0 %v5741_v23  ;;  %v5291_v60 = vpack.c.bf16 %v1318_v55, %v1314_v51  ;;  %v5761_v23 = vpack.c.bf16 %v1241_v57, %v1237_v56  ;;  %v1354_v51 = vld [vmem:[#allocation11 + $0xb40] sm:$0xff]  ;;  %v1272_v53 = vld [vmem:[#allocation11 + $0x8b0] sm:$0xff]  ;;  %v1277_v56 = vld [vmem:[#allocation11 + $0x8d8] sm:$0xff] }
 0x267   : > { %5274 = vmatprep.subr.bf16.mxu1 %v5273_v0  ;;  %v5293_v0 = vpack.c.bf16 %v1327_v59, %v1323_v58  ;;  %v1358_v55 = vld [vmem:[#allocation11 + $0xb60] sm:$0xff]  ;;  %v1281_v57 = vld [vmem:[#allocation11 + $0x8f8] sm:$0xff]  ;;  %v1363_v58 = vld [vmem:[#allocation11 + $0xb88] sm:$0xff]  ;;  %v5779_v59 = vpack.c.bf16 %v1272_v53, %v1268_v52 }
 0x268   : > { %v7930_v52 = vld [vmem:[%s7830_s26 + $0xa0] sm:$0xff] }
 0x269   : > { %5744 = vmatpush1.bf16.msra.mxu0 %v5743_v6  ;;  %v5763_v6 = vpack.c.bf16 %v1240_v63, %v1236_v62  ;;  %v1366_v63 = vld [vmem:[#allocation11 + $0xba0] sm:$0xff] }
 0x26a   : > { %5276 = vmatpush1.bf16.msra.mxu1 %v5275_v7  ;;  %5746 = vmatprep.subr.bf16.mxu0 %v5745_v8  ;;  %v5295_v7 = vpack.c.bf16 %v1326_v1, %v1322_v61  ;;  %v5765_v8 = vpack.c.bf16 %v1249_v3, %v1245_v2  ;;  %v1280_v61 = vld [vmem:[#allocation11 + $0x8f0] sm:$0xff]  ;;  %v1289_v1 = vld [vmem:[#allocation11 + $0x938] sm:$0xff]  ;;  %v1371_v2 = vld [vmem:[#allocation11 + $0xbc8] sm:$0xff] }
 0x26b   : > { %5278 = vmatprep.subr.bf16.mxu1 %v5277_v14  ;;  %v5297_v14 = vpack.c.bf16 %v1335_v5, %v1331_v4  ;;  %v1375_v3 = vld [vmem:[#allocation11 + $0xbe8] sm:$0xff]  ;;  %v1370_v5 = vld [vmem:[#allocation11 + $0xbc0] sm:$0xff] }
 0x26d   : > { %5748 = vmatpush1.bf16.msra.mxu0 %v5747_v22  ;;  %v5767_v22 = vpack.c.bf16 %v1248_v12, %v1244_v11  ;;  %v1293_v11 = vld [vmem:[#allocation11 + $0x958] sm:$0xff] }
 0x26e   : > { %5280 = vmatpush1.bf16.msra.mxu1 %v5279_v24  ;;  %5750 = vmatprep.subr.bf16.mxu0 %v5749_v25  ;;  %v5299_v24 = vpack.c.bf16 %v1334_v15, %v1330_v9  ;;  %v5769_v25 = vpack.c.bf16 %v1257_v17, %v1253_v16  ;;  %v1374_v9 = vld [vmem:[#allocation11 + $0xbe0] sm:$0xff]  ;;  %v1297_v12 = vld [vmem:[#allocation11 + $0x978] sm:$0xff]  ;;  %v1383_v15 = vld [vmem:[#allocation11 + $0xc28] sm:$0xff] }
 0x26f   : > { %5282 = vmatprep.subr.bf16.mxu1 %v5281_v29  ;;  %v5301_v29 = vpack.c.bf16 %v1343_v20, %v1339_v18  ;;  %v5319_v17 = vpack.c.bf16 %v1374_v9, %v1370_v5  ;;  %v5789_v18 = vpack.c.bf16 %v1297_v12, %v1293_v11  ;;  %v1378_v20 = vld [vmem:[#allocation11 + $0xc00] sm:$0xff]  ;;  %v1333_v11 = vld [vmem:[#allocation11 + $0xa98] sm:$0xff] }
 0x270   : > { %v1410_v5 = vld [vmem:[#allocation11 + $0xd00] sm:$0xff]  ;;  %v1337_v12 = vld [vmem:[#allocation11 + $0xab8] sm:$0xff] }
 0x271   : > { %5752 = vmatpush1.bf16.msra.mxu0 %v5751_v36  ;;  %v5771_v36 = vpack.c.bf16 %v1256_v28, %v1252_v27  ;;  %v1301_v27 = vld [vmem:[#allocation11 + $0x998] sm:$0xff]  ;;  %v1414_v9 = vld [vmem:[#allocation11 + $0xd20] sm:$0xff] }
 0x272   : > { %5284 = vmatpush1.bf16.msra.mxu1 %v5283_v37  ;;  %5754 = vmatprep.subr.bf16.mxu0 %v5753_v38  ;;  %v5303_v37 = vpack.c.bf16 %v1342_v30, %v1338_v26  ;;  %v5773_v38 = vpack.c.bf16 %v1265_v32, %v1261_v31  ;;  %v1382_v26 = vld [vmem:[#allocation11 + $0xc20] sm:$0xff]  ;;  %v1305_v28 = vld [vmem:[#allocation11 + $0x9b8] sm:$0xff]  ;;  %v1391_v30 = vld [vmem:[#allocation11 + $0xc68] sm:$0xff] }
 0x273   : > { %5286 = vmatprep.subr.bf16.mxu1 %v5285_v43  ;;  %v5305_v43 = vpack.c.bf16 %v1351_v34, %v1347_v33  ;;  %v7923_v31 = vld [vmem:[%s7830_s26 + $0x20] sm:$0xff]  ;;  %v5323_v33 = vpack.c.bf16 %v1382_v26, %v1378_v20  ;;  %v5793_v34 = vpack.c.bf16 %v1305_v28, %v1301_v27  ;;  %v1418_v20 = vld [vmem:[#allocation11 + $0xd40] sm:$0xff]  ;;  %v1341_v27 = vld [vmem:[#allocation11 + $0xad8] sm:$0xff] }
 0x274   : > { %v1422_v26 = vld [vmem:[#allocation11 + $0xd60] sm:$0xff]  ;;  %v1345_v28 = vld [vmem:[#allocation11 + $0xaf8] sm:$0xff] }
 0x275   : > { %5756 = vmatpush1.bf16.msra.mxu0 %v5755_v49  ;;  %v5775_v49 = vpack.c.bf16 %v1264_v41, %v1260_v40  ;;  %v1390_v40 = vld [vmem:[#allocation11 + $0xc60] sm:$0xff]  ;;  %v1309_v41 = vld [vmem:[#allocation11 + $0x9d8] sm:$0xff] }
 0x276   : > { %5288 = vmatpush1.bf16.msra.mxu1 %v5287_v10  ;;  %5758 = vmatprep.subr.bf16.mxu0 %v5757_v50  ;;  %v5307_v10 = vpack.c.bf16 %v1350_v44, %v1346_v39  ;;  %v5777_v50 = vpack.c.bf16 %v1273_v46, %v1269_v45  ;;  %v1395_v44 = vld [vmem:[#allocation11 + $0xc88] sm:$0xff]  ;;  %v7926_v46 = vld [vmem:[%s7830_s26 + $0xa8] sm:$0xff] }
 0x277   : > { %5290 = vmatprep.subr.bf16.mxu1 %v5289_v54  ;;  %v5309_v54 = vpack.c.bf16 %v1359_v48, %v1355_v47  ;;  %v1399_v45 = vld [vmem:[#allocation11 + $0xca8] sm:$0xff]  ;;  %v1394_v48 = vld [vmem:[#allocation11 + $0xc80] sm:$0xff] }
 0x278   : > { %v5329_v53 = vpack.c.bf16 %v1399_v45, %v1395_v44  ;;  %v1435_v44 = vld [vmem:[#allocation11 + $0xdc8] sm:$0xff] }
 0x279   : > { %5760 = vmatpush1.bf16.msra.mxu0 %v5759_v19  ;;  %v5781_v19 = vpack.c.bf16 %v1281_v57, %v1277_v56  ;;  %v1321_v56 = vld [vmem:[#allocation11 + $0xa38] sm:$0xff]  ;;  %v1403_v57 = vld [vmem:[#allocation11 + $0xcc8] sm:$0xff] }
 0x27a   : > { %5292 = vmatpush1.bf16.msra.mxu1 %v5291_v60  ;;  %5762 = vmatprep.subr.bf16.mxu0 %v5761_v23  ;;  %v1362_v60 = vld [vmem:[#allocation11 + $0xb80] sm:$0xff]  ;;  %v1276_v23 = vld [vmem:[#allocation11 + $0x8d0] sm:$0xff]  ;;  %v1439_v45 = vld [vmem:[#allocation11 + $0xde8] sm:$0xff] }
 0x27b   : > { %5294 = vmatprep.subr.bf16.mxu1 %v5293_v0  ;;  %v1285_v0 = vld [vmem:[#allocation11 + $0x918] sm:$0xff]  ;;  %v5315_v4 = vpack.c.bf16 %v1366_v63, %v1362_v60  ;;  %v1402_v60 = vld [vmem:[#allocation11 + $0xcc0] sm:$0xff] }
 0x27c   : > { %v1406_v63 = vld [vmem:[#allocation11 + $0xce0] sm:$0xff] }
 0x27d   : > { %5764 = vmatpush1.bf16.msra.mxu0 %v5763_v6  ;;  %v1284_v6 = vld [vmem:[#allocation11 + $0x910] sm:$0xff] }
 0x27e   : > { %5296 = vmatpush1.bf16.msra.mxu1 %v5295_v7  ;;  %5766 = vmatprep.subr.bf16.mxu0 %v5765_v8  ;;  %v1288_v7 = vld [vmem:[#allocation11 + $0x930] sm:$0xff]  ;;  %v5317_v8 = vpack.c.bf16 %v1375_v3, %v1371_v2  ;;  %v1411_v2 = vld [vmem:[#allocation11 + $0xd08] sm:$0xff] }
 0x27f   : > { %5298 = vmatprep.subr.bf16.mxu1 %v5297_v14  ;;  %v1379_v14 = vld [vmem:[#allocation11 + $0xc08] sm:$0xff]  ;;  %v5787_v16 = vpack.c.bf16 %v1288_v7, %v1284_v6  ;;  %v1324_v6 = vld [vmem:[#allocation11 + $0xa50] sm:$0xff] }
 0x280   : > { %v1415_v3 = vld [vmem:[#allocation11 + $0xd28] sm:$0xff]  ;;  %v1328_v7 = vld [vmem:[#allocation11 + $0xa70] sm:$0xff] }
 0x281   : > { %5768 = vmatpush1.bf16.msra.mxu0 %v5767_v22  ;;  %v1292_v22 = vld [vmem:[#allocation11 + $0x950] sm:$0xff] }
 0x282   : > { %5300 = vmatpush1.bf16.msra.mxu1 %v5299_v24  ;;  %5770 = vmatprep.subr.bf16.mxu0 %v5769_v25  ;;  %v1296_v24 = vld [vmem:[#allocation11 + $0x970] sm:$0xff]  ;;  %v5321_v25 = vpack.c.bf16 %v1383_v15, %v1379_v14  ;;  %v1419_v14 = vld [vmem:[#allocation11 + $0xd48] sm:$0xff] }
 0x283   : > { %5302 = vmatprep.subr.bf16.mxu1 %v5301_v29  ;;  %v1387_v29 = vld [vmem:[#allocation11 + $0xc48] sm:$0xff]  ;;  %v5791_v32 = vpack.c.bf16 %v1296_v24, %v1292_v22  ;;  %v1332_v22 = vld [vmem:[#allocation11 + $0xa90] sm:$0xff] }
 0x284   : > { %2798 = vmatmul.mubr.f32.vlgmr.msra.gmra.mrb[6].mxu0 %v7903_v21  ;;  %v1367_v21 = vld [vmem:[#allocation11 + $0xba8] sm:$0xff]  ;;  %v5325_v39 = vpack.c.bf16 %v1391_v30, %v1387_v29  ;;  %v1336_v24 = vld [vmem:[#allocation11 + $0xab0] sm:$0xff] }
 0x285   : > { %5772 = vmatpush1.bf16.msra.mxu0 %v5771_v36  ;;  %2803 = vmatprep.mubr.f32.mxu0 %v7906_v35  ;;  %v5311_v35 = vpack.c.bf16 %v1358_v55, %v1354_v51  ;;  %v5313_v62 = vpack.c.bf16 %v1367_v21, %v1363_v58  ;;  %v1386_v36 = vld [vmem:[#allocation11 + $0xc40] sm:$0xff]  ;;  %v1312_v51 = vld [vmem:[#allocation11 + $0x9f0] sm:$0xff]  ;;  %v1317_v55 = vld [vmem:[#allocation11 + $0xa18] sm:$0xff] }
 0x286   : > { %5304 = vmatpush1.bf16.msra.mxu1 %v5303_v37  ;;  %5774 = vmatprep.subr.bf16.mxu0 %v5773_v38  ;;  %v1300_v37 = vld [vmem:[#allocation11 + $0x990] sm:$0xff]  ;;  %v1407_v58 = vld [vmem:[#allocation11 + $0xce8] sm:$0xff] }
 0x287   : > { %5306 = vmatprep.subr.bf16.mxu1 %v5305_v43  ;;  %v1304_v38 = vld [vmem:[#allocation11 + $0x9b0] sm:$0xff]  ;;  %v1313_v43 = vld [vmem:[#allocation11 + $0x9f8] sm:$0xff]  ;;  %v7934_v21 = vld [vmem:[%s7830_s26 + $0x38] sm:$0xff] }
 0x288   : > { %2804 = vmatmul.mubr.f32.gmra.mrb[8].mxu0 %v7910_v42  ;;  %v5783_v42 = vpack.c.bf16 %v1280_v61, %v1276_v23  ;;  %v5795_v47 = vpack.c.bf16 %v1304_v38, %v1300_v37  ;;  %v1316_v23 = vld [vmem:[#allocation11 + $0xa10] sm:$0xff]  ;;  %v1423_v15 = vld [vmem:[#allocation11 + $0xd68] sm:$0xff] }
 0x289   : > { %5776 = vmatpush1.bf16.msra.mxu0 %v5775_v49  ;;  %2874 = vmatprep.mubr.f32.mxu0 %v7914_v13  ;;  %v5785_v13 = vpack.c.bf16 %v1289_v1, %v1285_v0  ;;  %v5327_v49 = vpack.c.bf16 %v1390_v40, %v1386_v36  ;;  %v1320_v61 = vld [vmem:[#allocation11 + $0xa30] sm:$0xff]  ;;  %v1325_v0 = vld [vmem:[#allocation11 + $0xa58] sm:$0xff]  ;;  %v1427_v29 = vld [vmem:[#allocation11 + $0xd88] sm:$0xff] }
 0x28a   : > { %5308 = vmatpush1.bf16.msra.mxu1 %v5307_v10  ;;  %5778 = vmatprep.subr.bf16.mxu0 %v5777_v50  ;;  %v5797_v10 = vpack.c.bf16 %v1313_v43, %v1309_v41  ;;  %v1308_v50 = vld [vmem:[#allocation11 + $0x9d0] sm:$0xff]  ;;  %v1329_v1 = vld [vmem:[#allocation11 + $0xa78] sm:$0xff]  ;;  %v1431_v30 = vld [vmem:[#allocation11 + $0xda8] sm:$0xff] }
 0x28b   : > { %5310 = vmatprep.subr.bf16.mxu1 %v5309_v54  ;;  %v1398_v54 = vld [vmem:[#allocation11 + $0xca0] sm:$0xff]  ;;  %v1340_v37 = vld [vmem:[#allocation11 + $0xad0] sm:$0xff]  ;;  %v1349_v41 = vld [vmem:[#allocation11 + $0xb18] sm:$0xff] }
 0x28c   : > { %v1426_v36 = vld [vmem:[#allocation11 + $0xd80] sm:$0xff]  ;;  %v1344_v38 = vld [vmem:[#allocation11 + $0xaf0] sm:$0xff]  ;;  %v1353_v43 = vld [vmem:[#allocation11 + $0xb38] sm:$0xff] }
 0x28d   : > { %5780 = vmatpush1.bf16.msra.mxu0 %v5779_v59  ;;  %v5799_v59 = vpack.c.bf16 %v1312_v51, %v1308_v50  ;;  %v1430_v40 = vld [vmem:[#allocation11 + $0xda0] sm:$0xff]  ;;  %v1348_v50 = vld [vmem:[#allocation11 + $0xb10] sm:$0xff] }
 0x28e   : > { %5312 = vmatpush1.bf16.msra.mxu1 %v5311_v35  ;;  %5782 = vmatprep.subr.bf16.mxu0 %v5781_v19  ;;  %v5331_v35 = vpack.c.bf16 %v1398_v54, %v1394_v48  ;;  %v5801_v19 = vpack.c.bf16 %v1321_v56, %v1317_v55  ;;  %v5347_v48 = vpack.c.bf16 %v1430_v40, %v1426_v36  ;;  %v1352_v51 = vld [vmem:[#allocation11 + $0xb30] sm:$0xff]  ;;  %v1438_v54 = vld [vmem:[#allocation11 + $0xde0] sm:$0xff]  ;;  %v1357_v55 = vld [vmem:[#allocation11 + $0xb58] sm:$0xff] }
 0x28f   : > { %5314 = vmatprep.subr.bf16.mxu1 %v5313_v62  ;;  %v5333_v62 = vpack.c.bf16 %v1407_v58, %v1403_v57  ;;  %v1361_v56 = vld [vmem:[#allocation11 + $0xb78] sm:$0xff]  ;;  %v1443_v57 = vld [vmem:[#allocation11 + $0xe08] sm:$0xff]  ;;  %v1466_v36 = vld [vmem:[#allocation11 + $0xec0] sm:$0xff] }
 0x290   : > { %v1447_v58 = vld [vmem:[#allocation11 + $0xe28] sm:$0xff]  ;;  %v1470_v40 = vld [vmem:[#allocation11 + $0xee0] sm:$0xff] }
 0x291   : > { %5784 = vmatpush1.bf16.msra.mxu0 %v5783_v42  ;;  %v5803_v42 = vpack.c.bf16 %v1320_v61, %v1316_v23  ;;  %v1356_v23 = vld [vmem:[#allocation11 + $0xb50] sm:$0xff] }
 0x292   : > { %5316 = vmatpush1.bf16.msra.mxu1 %v5315_v4  ;;  %5786 = vmatprep.subr.bf16.mxu0 %v5785_v13  ;;  %v5335_v4 = vpack.c.bf16 %v1406_v63, %v1402_v60  ;;  %v5805_v13 = vpack.c.bf16 %v1329_v1, %v1325_v0  ;;  %v1442_v60 = vld [vmem:[#allocation11 + $0xe00] sm:$0xff]  ;;  %v1360_v61 = vld [vmem:[#allocation11 + $0xb70] sm:$0xff]  ;;  %v1365_v0 = vld [vmem:[#allocation11 + $0xb98] sm:$0xff] }
 0x293   : > { %5318 = vmatprep.subr.bf16.mxu1 %v5317_v8  ;;  %v5337_v8 = vpack.c.bf16 %v1415_v3, %v1411_v2  ;;  %v1446_v63 = vld [vmem:[#allocation11 + $0xe20] sm:$0xff]  ;;  %v1369_v1 = vld [vmem:[#allocation11 + $0xbb8] sm:$0xff]  ;;  %v1451_v2 = vld [vmem:[#allocation11 + $0xe48] sm:$0xff] }
 0x294   : > { %v1455_v3 = vld [vmem:[#allocation11 + $0xe68] sm:$0xff] }
 0x295   : > { %5788 = vmatpush1.bf16.msra.mxu0 %v5787_v16  ;;  %v5807_v16 = vpack.c.bf16 %v1328_v7, %v1324_v6  ;;  %v1364_v6 = vld [vmem:[#allocation11 + $0xb90] sm:$0xff] }
 0x296   : > { %5320 = vmatpush1.bf16.msra.mxu1 %v5319_v17  ;;  %5790 = vmatprep.subr.bf16.mxu0 %v5789_v18  ;;  %v5339_v17 = vpack.c.bf16 %v1414_v9, %v1410_v5  ;;  %v5809_v18 = vpack.c.bf16 %v1337_v12, %v1333_v11  ;;  %v1450_v5 = vld [vmem:[#allocation11 + $0xe40] sm:$0xff]  ;;  %v1368_v7 = vld [vmem:[#allocation11 + $0xbb0] sm:$0xff]  ;;  %v1373_v11 = vld [vmem:[#allocation11 + $0xbd8] sm:$0xff] }
 0x297   : > { %5322 = vmatprep.subr.bf16.mxu1 %v5321_v25  ;;  %v5341_v25 = vpack.c.bf16 %v1423_v15, %v1419_v14  ;;  %v1454_v9 = vld [vmem:[#allocation11 + $0xe60] sm:$0xff]  ;;  %v1377_v12 = vld [vmem:[#allocation11 + $0xbf8] sm:$0xff]  ;;  %v1459_v14 = vld [vmem:[#allocation11 + $0xe88] sm:$0xff] }
 0x298   : > { %v1463_v15 = vld [vmem:[#allocation11 + $0xea8] sm:$0xff] }
 0x299   : > { %2259 = vmatmul.mubr.f32.vlgmr.msra.gmra.mrb[0].mxu1 %v7923_v31  ;;  %5792 = vmatpush1.bf16.msra.mxu0 %v5791_v32  ;;  %v5811_v32 = vpack.c.bf16 %v1336_v24, %v1332_v22  ;;  %v1372_v22 = vld [vmem:[#allocation11 + $0xbd0] sm:$0xff] }
 0x29a   : > { %5324 = vmatpush1.bf16.msra.mxu1 %v5323_v33  ;;  %5794 = vmatprep.subr.bf16.mxu0 %v5793_v34  ;;  %v5343_v33 = vpack.c.bf16 %v1422_v26, %v1418_v20  ;;  %v5813_v34 = vpack.c.bf16 %v1345_v28, %v1341_v27  ;;  %v1458_v20 = vld [vmem:[#allocation11 + $0xe80] sm:$0xff]  ;;  %v1376_v24 = vld [vmem:[#allocation11 + $0xbf0] sm:$0xff]  ;;  %v1381_v27 = vld [vmem:[#allocation11 + $0xc18] sm:$0xff] }
 0x29b   : > { %5326 = vmatprep.subr.bf16.mxu1 %v5325_v39  ;;  %2264 = vmatprep.mubr.f32.mxu1 %v7926_v46  ;;  %v5345_v39 = vpack.c.bf16 %v1431_v30, %v1427_v29  ;;  %v1462_v26 = vld [vmem:[#allocation11 + $0xea0] sm:$0xff]  ;;  %v1385_v28 = vld [vmem:[#allocation11 + $0xc38] sm:$0xff]  ;;  %v1467_v29 = vld [vmem:[#allocation11 + $0xec8] sm:$0xff] }
 0x29c   : > { %v1471_v30 = vld [vmem:[#allocation11 + $0xee8] sm:$0xff] }
 0x29d   : > { %5796 = vmatpush1.bf16.msra.mxu0 %v5795_v47  ;;  %2265 = vmatmul.mubr.f32.gmra.mrb[2].mxu1 %v7930_v52  ;;  %v5815_v47 = vpack.c.bf16 %v1344_v38, %v1340_v37  ;;  %v1380_v37 = vld [vmem:[#allocation11 + $0xc10] sm:$0xff] }
 0x29e   : > { %5328 = vmatpush1.bf16.msra.mxu1 %v5327_v49  ;;  %5798 = vmatprep.subr.bf16.mxu0 %v5797_v10  ;;  %v5817_v49 = vpack.c.bf16 %v1353_v43, %v1349_v41  ;;  %v1434_v10 = vld [vmem:[#allocation11 + $0xdc0] sm:$0xff]  ;;  %v1384_v38 = vld [vmem:[#allocation11 + $0xc30] sm:$0xff]  ;;  %v1389_v41 = vld [vmem:[#allocation11 + $0xc58] sm:$0xff] }
 0x29f   : > { %5330 = vmatprep.subr.bf16.mxu1 %v5329_v53  ;;  %2335 = vmatprep.mubr.f32.mxu1 %v7934_v21  ;;  %v5349_v53 = vpack.c.bf16 %v1439_v45, %v1435_v44  ;;  %v1393_v43 = vld [vmem:[#allocation11 + $0xc78] sm:$0xff]  ;;  %v1475_v44 = vld [vmem:[#allocation11 + $0xf08] sm:$0xff] }
 0x2a0   : > { %v1479_v45 = vld [vmem:[#allocation11 + $0xf28] sm:$0xff] }
 0x2a1   : > { %5800 = vmatpush1.bf16.msra.mxu0 %v5799_v59  ;;  %v5819_v59 = vpack.c.bf16 %v1352_v51, %v1348_v50  ;;  %v1388_v50 = vld [vmem:[#allocation11 + $0xc50] sm:$0xff] }
 0x2a2   : > { %5332 = vmatpush1.bf16.msra.mxu1 %v5331_v35  ;;  %5802 = vmatprep.subr.bf16.mxu0 %v5801_v19  ;;  %v5351_v35 = vpack.c.bf16 %v1438_v54, %v1434_v10  ;;  %v5821_v19 = vpack.c.bf16 %v1361_v56, %v1357_v55  ;;  %v1474_v10 = vld [vmem:[#allocation11 + $0xf00] sm:$0xff]  ;;  %v1392_v51 = vld [vmem:[#allocation11 + $0xc70] sm:$0xff]  ;;  %v1397_v55 = vld [vmem:[#allocation11 + $0xc98] sm:$0xff] }
 0x2a3   : > { %5334 = vmatprep.subr.bf16.mxu1 %v5333_v62  ;;  %v5353_v62 = vpack.c.bf16 %v1447_v58, %v1443_v57  ;;  %v1478_v54 = vld [vmem:[#allocation11 + $0xf20] sm:$0xff]  ;;  %v1401_v56 = vld [vmem:[#allocation11 + $0xcb8] sm:$0xff]  ;;  %v1483_v57 = vld [vmem:[#allocation11 + $0xf48] sm:$0xff] }
 0x2a4   : > { %v1487_v58 = vld [vmem:[#allocation11 + $0xf68] sm:$0xff] }
 0x2a5   : > { %5804 = vmatpush1.bf16.msra.mxu0 %v5803_v42  ;;  %v5823_v42 = vpack.c.bf16 %v1360_v61, %v1356_v23  ;;  %v1396_v23 = vld [vmem:[#allocation11 + $0xc90] sm:$0xff] }
 0x2a6   : > { %5336 = vmatpush1.bf16.msra.mxu1 %v5335_v4  ;;  %5806 = vmatprep.subr.bf16.mxu0 %v5805_v13  ;;  %v5355_v4 = vpack.c.bf16 %v1446_v63, %v1442_v60  ;;  %v5825_v13 = vpack.c.bf16 %v1369_v1, %v1365_v0  ;;  %v1482_v60 = vld [vmem:[#allocation11 + $0xf40] sm:$0xff]  ;;  %v1400_v61 = vld [vmem:[#allocation11 + $0xcb0] sm:$0xff]  ;;  %v1405_v0 = vld [vmem:[#allocation11 + $0xcd8] sm:$0xff] }
 0x2a7   : > { %5338 = vmatprep.subr.bf16.mxu1 %v5337_v8  ;;  %v5357_v8 = vpack.c.bf16 %v1455_v3, %v1451_v2  ;;  %v1486_v63 = vld [vmem:[#allocation11 + $0xf60] sm:$0xff]  ;;  %v1409_v1 = vld [vmem:[#allocation11 + $0xcf8] sm:$0xff]  ;;  %v1491_v2 = vld [vmem:[#allocation11 + $0xf88] sm:$0xff]  ;;  %v5843_v3 = vpack.c.bf16 %v1400_v61, %v1396_v23 }
 0x2a8   : > { %v1441_v23 = vld [vmem:[#allocation11 + $0xdf8] sm:$0xff] }
 0x2a9   : > { %5808 = vmatpush1.bf16.msra.mxu0 %v5807_v16  ;;  %v5827_v16 = vpack.c.bf16 %v1368_v7, %v1364_v6 }
 0x2aa   : > { %5340 = vmatpush1.bf16.msra.mxu1 %v5339_v17  ;;  %5810 = vmatprep.subr.bf16.mxu0 %v5809_v18  ;;  %v5359_v17 = vpack.c.bf16 %v1454_v9, %v1450_v5  ;;  %v5829_v18 = vpack.c.bf16 %v1377_v12, %v1373_v11  ;;  %v1408_v5 = vld [vmem:[#allocation11 + $0xcf0] sm:$0xff]  ;;  %v1413_v9 = vld [vmem:[#allocation11 + $0xd18] sm:$0xff] }
 0x2ab   : > { %5342 = vmatprep.subr.bf16.mxu1 %v5341_v25  ;;  %v5361_v25 = vpack.c.bf16 %v1463_v15, %v1459_v14  ;;  %v1417_v11 = vld [vmem:[#allocation11 + $0xd38] sm:$0xff]  ;;  %v1499_v14 = vld [vmem:[#allocation11 + $0xfc8] sm:$0xff] }
 0x2ad   : > { %5812 = vmatpush1.bf16.msra.mxu0 %v5811_v32  ;;  %v5831_v32 = vpack.c.bf16 %v1376_v24, %v1372_v22  ;;  %v1416_v22 = vld [vmem:[#allocation11 + $0xd30] sm:$0xff] }
 0x2ae   : > { %5344 = vmatpush1.bf16.msra.mxu1 %v5343_v33  ;;  %5814 = vmatprep.subr.bf16.mxu0 %v5813_v34  ;;  %v5363_v33 = vpack.c.bf16 %v1462_v26, %v1458_v20  ;;  %v5833_v34 = vpack.c.bf16 %v1385_v28, %v1381_v27  ;;  %v1412_v20 = vld [vmem:[#allocation11 + $0xd10] sm:$0xff]  ;;  %v1502_v26 = vld [vmem:[#allocation11 + $0xfe0] sm:$0xff]  ;;  %v1421_v27 = vld [vmem:[#allocation11 + $0xd58] sm:$0xff] }
 0x2af   : > { %5346 = vmatprep.subr.bf16.mxu1 %v5345_v39  ;;  %v5365_v39 = vpack.c.bf16 %v1471_v30, %v1467_v29  ;;  %v1425_v28 = vld [vmem:[#allocation11 + $0xd78] sm:$0xff]  ;;  %v1507_v30 = vld [vmem:[#allocation11 + $0x1008] sm:$0xff] }
 0x2b1   : > { %5816 = vmatpush1.bf16.msra.mxu0 %v5815_v47  ;;  %v5835_v47 = vpack.c.bf16 %v1384_v38, %v1380_v37  ;;  %v5853_v38 = vpack.c.bf16 %v1425_v28, %v1421_v27  ;;  %v1543_v27 = vld [vmem:[#allocation11 + $0x1128] sm:$0xff] }
 0x2b2   : > { %5348 = vmatpush1.bf16.msra.mxu1 %v5347_v48  ;;  %5818 = vmatprep.subr.bf16.mxu0 %v5817_v49  ;;  %v5367_v48 = vpack.c.bf16 %v1470_v40, %v1466_v36  ;;  %v5837_v49 = vpack.c.bf16 %v1393_v43, %v1389_v41  ;;  %v4893_v36 = vld [vmem:[#allocation10] ss:$0 sm:$0xff]  ;;  %v1420_v40 = vld [vmem:[#allocation11 + $0xd50] sm:$0xff] }
 0x2b3   : > { %5350 = vmatprep.subr.bf16.mxu1 %v5349_v53  ;;  %v5369_v53 = vpack.c.bf16 %v1479_v45, %v1475_v44  ;;  %v1424_v41 = vld [vmem:[#allocation11 + $0xd70] sm:$0xff]  ;;  %v1510_v44 = vld [vmem:[#allocation11 + $0x1020] sm:$0xff]  ;;  %v1429_v45 = vld [vmem:[#allocation11 + $0xd98] sm:$0xff] }
 0x2b5   : > { %5820 = vmatpush1.bf16.msra.mxu0 %v5819_v59  ;;  %v5839_v59 = vpack.c.bf16 %v1392_v51, %v1388_v50  ;;  %v7943_v50 = vld [vmem:[%s7830_s26 + $0x30] sm:$0xff]  ;;  %v5855_v51 = vpack.c.bf16 %v1424_v41, %v1420_v40  ;;  %v1547_v40 = vld [vmem:[#allocation11 + $0x1148] sm:$0xff] }
 0x2b6   : > { %5352 = vmatpush1.bf16.msra.mxu1 %v5351_v35  ;;  %5822 = vmatprep.subr.bf16.mxu0 %v5821_v19  ;;  %v5371_v35 = vpack.c.bf16 %v1478_v54, %v1474_v10  ;;  %v5841_v19 = vpack.c.bf16 %v1401_v56, %v1397_v55  ;;  %v1519_v10 = vld [vmem:[#allocation11 + $0x1068] sm:$0xff]  ;;  %v1514_v55 = vld [vmem:[#allocation11 + $0x1040] sm:$0xff]  ;;  %v1428_v56 = vld [vmem:[#allocation11 + $0xd90] sm:$0xff] }
 0x2b7   : > { %5354 = vmatprep.subr.bf16.mxu1 %v5353_v62  ;;  %v5373_v62 = vpack.c.bf16 %v1487_v58, %v1483_v57  ;;  %v1432_v57 = vld [vmem:[#allocation11 + $0xdb0] sm:$0xff]  ;;  %v1551_v41 = vld [vmem:[#allocation11 + $0x1168] sm:$0xff] }
 0x2b9   : > { %5824 = vmatpush1.bf16.msra.mxu0 %v5823_v42  ;;  %v5845_v42 = vpack.c.bf16 %v1409_v1, %v1405_v0  ;;  %v1527_v0 = vld [vmem:[#allocation11 + $0x10a8] sm:$0xff] }
 0x2ba   : > { %5356 = vmatpush1.bf16.msra.mxu1 %v5355_v4  ;;  %5826 = vmatprep.subr.bf16.mxu0 %v5825_v13  ;;  %v1490_v4 = vld [vmem:[#allocation11 + $0xf80] sm:$0xff]  ;;  %v1404_v13 = vld [vmem:[#allocation11 + $0xcd0] sm:$0xff] }
 0x2bb   : > { %5358 = vmatprep.subr.bf16.mxu1 %v5357_v8  ;;  %v1494_v8 = vld [vmem:[#allocation11 + $0xfa0] sm:$0xff] }
 0x2bc   : > { %v7948_v1 = vld [vmem:[%s7830_s26 + $0xb8] sm:$0xff] }
 0x2bd   : > { %5828 = vmatpush1.bf16.msra.mxu0 %v5827_v16  ;;  %v5847_v16 = vpack.c.bf16 %v1408_v5, %v1404_v13  ;;  %v1440_v13 = vld [vmem:[#allocation11 + $0xdf0] sm:$0xff]  ;;  %v7954_v5 = vld [vmem:[%s7830_s26 + $0xb0] sm:$0xff] }
 0x2be   : > { %5360 = vmatpush1.bf16.msra.mxu1 %v5359_v17  ;;  %5830 = vmatprep.subr.bf16.mxu0 %v5829_v18  ;;  %v5849_v17 = vpack.c.bf16 %v1417_v11, %v1413_v9  ;;  %v1498_v18 = vld [vmem:[#allocation11 + $0xfc0] sm:$0xff]  ;;  %v1449_v9 = vld [vmem:[#allocation11 + $0xe38] sm:$0xff]  ;;  %v1531_v11 = vld [vmem:[#allocation11 + $0x10c8] sm:$0xff] }
 0x2bf   : > { %5362 = vmatprep.subr.bf16.mxu1 %v5361_v25  ;;  %v5383_v37 = vpack.c.bf16 %v1502_v26, %v1498_v18  ;;  %v1448_v18 = vld [vmem:[#allocation11 + $0xe30] sm:$0xff]  ;;  %v1539_v26 = vld [vmem:[#allocation11 + $0x1108] sm:$0xff] }
 0x2c1   : > { %5832 = vmatpush1.bf16.msra.mxu0 %v5831_v32  ;;  %v1511_v32 = vld [vmem:[#allocation11 + $0x1028] sm:$0xff] }
 0x2c2   : > { %5364 = vmatpush1.bf16.msra.mxu1 %v5363_v33  ;;  %5834 = vmatprep.subr.bf16.mxu0 %v5833_v34  ;;  %v5851_v34 = vpack.c.bf16 %v1416_v22, %v1412_v20  ;;  %v5385_v43 = vpack.c.bf16 %v1511_v32, %v1507_v30  ;;  %v1534_v22 = vld [vmem:[#allocation11 + $0x10e0] sm:$0xff] }
 0x2c3   : > { %5366 = vmatprep.subr.bf16.mxu1 %v5365_v39  ;;  %v1506_v39 = vld [vmem:[#allocation11 + $0x1000] sm:$0xff] }
 0x2c4   : > { %2875 = vmatmul.mubr.f32.vlgmr.msra.gmra.mrb[6].mxu0 %v7923_v31  ;;  %v1495_v31 = vld [vmem:[#allocation11 + $0xfa8] sm:$0xff]  ;;  %v1538_v32 = vld [vmem:[#allocation11 + $0x1100] sm:$0xff] }
 0x2c5   : > { %5836 = vmatpush1.bf16.msra.mxu0 %v5835_v47  ;;  %2880 = vmatprep.mubr.f32.mxu0 %v7926_v46  ;;  %v5375_v46 = vpack.c.bf16 %v1486_v63, %v1482_v60  ;;  %v5377_v7 = vpack.c.bf16 %v1495_v31, %v1491_v2  ;;  %v1433_v47 = vld [vmem:[#allocation11 + $0xdb8] sm:$0xff]  ;;  %v1523_v63 = vld [vmem:[#allocation11 + $0x1088] sm:$0xff]  ;;  %v5859_v31 = vpack.c.bf16 %v1432_v57, %v1428_v56 }
 0x2c6   : > { %5368 = vmatpush1.bf16.msra.mxu1 %v5367_v48  ;;  %5838 = vmatprep.subr.bf16.mxu0 %v5837_v49  ;;  %v1515_v49 = vld [vmem:[#allocation11 + $0x1048] sm:$0xff]  ;;  %v5857_v54 = vpack.c.bf16 %v1433_v47, %v1429_v45  ;;  %v1437_v60 = vld [vmem:[#allocation11 + $0xdd8] sm:$0xff]  ;;  %v1546_v47 = vld [vmem:[#allocation11 + $0x1140] sm:$0xff] }
 0x2c7   : > { %5370 = vmatprep.subr.bf16.mxu1 %v5369_v53  ;;  %v5387_v53 = vpack.c.bf16 %v1510_v44, %v1506_v39  ;;  %v1465_v39 = vld [vmem:[#allocation11 + $0xeb8] sm:$0xff]  ;;  %v1559_v56 = vld [vmem:[#allocation11 + $0x11a8] sm:$0xff] }
 0x2c8   : > { %2881 = vmatmul.mubr.f32.gmra.mrb[8].mxu0 %v7930_v52  ;;  %v1503_v52 = vld [vmem:[#allocation11 + $0xfe8] sm:$0xff] }
 0x2c9   : > { %5840 = vmatpush1.bf16.msra.mxu0 %v5839_v59  ;;  %2951 = vmatprep.mubr.f32.mxu0 %v7934_v21  ;;  %v5379_v21 = vpack.c.bf16 %v1494_v8, %v1490_v4  ;;  %v5381_v25 = vpack.c.bf16 %v1503_v52, %v1499_v14  ;;  %v1436_v4 = vld [vmem:[#allocation11 + $0xdd0] sm:$0xff]  ;;  %v1445_v8 = vld [vmem:[#allocation11 + $0xe18] sm:$0xff] }
 0x2ca   : > { %5372 = vmatpush1.bf16.msra.mxu1 %v5371_v35  ;;  %5842 = vmatprep.subr.bf16.mxu0 %v5841_v19  ;;  %v5389_v35 = vpack.c.bf16 %v1519_v10, %v1515_v49  ;;  %v1518_v19 = vld [vmem:[#allocation11 + $0x1060] sm:$0xff]  ;;  %v7958_v14 = vld [vmem:[%s7830_s26 + $0x48] sm:$0xff]  ;;  %v5863_v52 = vpack.c.bf16 %v1440_v13, %v1436_v4  ;;  %v5405_v10 = vpack.c.bf16 %v1551_v41, %v1547_v40 }
 0x2cb   : > { %v4940_v6 = vpop.f32.mrb[0].mxu0  ;;  %5374 = vmatprep.subr.bf16.mxu1 %v5373_v62  ;;  %v1464_v49 = vld [vmem:[#allocation11 + $0xeb0] sm:$0xff]  ;;  %v1562_v13 = vld [vmem:[#allocation11 + $0x11c0] sm:$0xff]  ;;  %v1501_v40 = vld [vmem:[#allocation11 + $0xfd8] sm:$0xff] }
 0x2cc   : > { %v4941_v12 = vpop.f32.mrb[1].mxu0  ;;  %v1505_v41 = vld [vmem:[#allocation11 + $0xff8] sm:$0xff] }
 0x2cd   : > { %v4942_v15 = vadd.f32 %v4941_v12, %v4940_v6  ;;  %5844 = vmatpush1.bf16.msra.mxu0 %v5843_v3  ;;  %v1522_v3 = vld [vmem:[#allocation11 + $0x1080] sm:$0xff]  ;;  %v5393_v6 = vpack.c.bf16 %v1527_v0, %v1523_v63  ;;  %v1535_v12 = vld [vmem:[#allocation11 + $0x10e8] sm:$0xff]  ;;  %v1477_v63 = vld [vmem:[#allocation11 + $0xf18] sm:$0xff] }
 0x2ce   : > { %5376 = vmatpush1.bf16.msra.mxu1 %v5375_v46  ;;  %5846 = vmatprep.subr.bf16.mxu0 %v5845_v42  ;;  %v5391_v46 = vpack.c.bf16 %v1518_v19, %v1514_v55  ;;  %v5861_v42 = vpack.c.bf16 %v1441_v23, %v1437_v60  ;;  %v5397_v20 = vpack.c.bf16 %v1535_v12, %v1531_v11  ;;  %v1555_v55 = vld [vmem:[#allocation11 + $0x1188] sm:$0xff]  ;;  %v1468_v19 = vld [vmem:[#allocation11 + $0xed0] sm:$0xff]  ;;  %v1481_v0 = vld [vmem:[#allocation11 + $0xf38] sm:$0xff] }
 0x2cf   : > { %5378 = vmatprep.subr.bf16.mxu1 %v5377_v7  ;;  %v4943_v24 = vpop.f32.mrb[2].mxu0  ;;  %v909_v59 = vadd.f32 %v4942_v15, %v4893_v36  ;;  %v1526_v7 = vld [vmem:[#allocation11 + $0x10a0] sm:$0xff]  ;;  %v1472_v60 = vld [vmem:[#allocation11 + $0xef0] sm:$0xff]  ;;  %v5409_v23 = vpack.c.bf16 %v1559_v56, %v1555_v55  ;;  %v5881_v4 = vpack.c.bf16 %v1481_v0, %v1477_v63  ;;  %v1485_v11 = vld [vmem:[#allocation11 + $0xf58] sm:$0xff] }
 0x2d0   : > { %v4944_v29 = vpop.f32.mrb[3].mxu0  ;;  %v5395_v15 = vpack.c.bf16 %v1526_v7, %v1522_v3  ;;  %v1567_v3 = vld [vmem:[#allocation11 + $0x11e8] sm:$0xff]  ;;  %v1480_v7 = vld [vmem:[#allocation11 + $0xf30] sm:$0xff]  ;;  %v1489_v12 = vld [vmem:[#allocation11 + $0xf78] sm:$0xff] }
 0x2d1   : > { %5848 = vmatpush1.bf16.msra.mxu0 %v5847_v16  ;;  %v4945_v33 = vadd.f32 %v4944_v29, %v4943_v24  ;;  %v5865_v16 = vpack.c.bf16 %v1449_v9, %v1445_v8  ;;  %v1453_v24 = vld [vmem:[#allocation11 + $0xe58] sm:$0xff]  ;;  %v1566_v9 = vld [vmem:[#allocation11 + $0x11e0] sm:$0xff] }
 0x2d2   : > { %5380 = vmatpush1.bf16.msra.mxu1 %v5379_v21  ;;  %5850 = vmatprep.subr.bf16.mxu0 %v5849_v17  ;;  %v1530_v21 = vld [vmem:[#allocation11 + $0x10c0] sm:$0xff]  ;;  %v1444_v17 = vld [vmem:[#allocation11 + $0xe10] sm:$0xff]  ;;  %v1509_v55 = vld [vmem:[#allocation11 + $0x1018] sm:$0xff] }
 0x2d3   : > { %5382 = vmatprep.subr.bf16.mxu1 %v5381_v25  ;;  %v914_v48 = vadd.f32 %v4945_v33, %v4893_v36  ;;  %v1457_v25 = vld [vmem:[#allocation11 + $0xe78] sm:$0xff]  ;;  %v5867_v28 = vpack.c.bf16 %v1448_v18, %v1444_v17  ;;  %v5399_v29 = vpack.c.bf16 %v1534_v22, %v1530_v21  ;;  %v1452_v33 = vld [vmem:[#allocation11 + $0xe50] sm:$0xff]  ;;  %v5401_v36 = vpack.c.bf16 %v1543_v27, %v1539_v26  ;;  %v1570_v18 = vld [vmem:[#allocation11 + $0x1200] sm:$0xff] }
 0x2d4   : > { %v5869_v30 = vpack.c.bf16 %v1457_v25, %v1453_v24  ;;  %v5415_v21 = vpack.c.bf16 %v1566_v9, %v1562_v13  ;;  %v5885_v17 = vpack.c.bf16 %v1489_v12, %v1485_v11  ;;  %v1488_v22 = vld [vmem:[#allocation11 + $0xf70] sm:$0xff]  ;;  %v1574_v25 = vld [vmem:[#allocation11 + $0x1220] sm:$0xff]  ;;  %v1493_v26 = vld [vmem:[#allocation11 + $0xf98] sm:$0xff] }
 0x2d5   : > { %5852 = vmatpush1.bf16.msra.mxu0 %v5851_v34  ;;  %v1456_v34 = vld [vmem:[#allocation11 + $0xe70] sm:$0xff]  ;;  %v1497_v27 = vld [vmem:[#allocation11 + $0xfb8] sm:$0xff]  ;;  %v1598_v0 = vld [vmem:[#allocation11 + $0x12e0] sm:$0xff] }
 0x2d6   : > { %5384 = vmatpush1.bf16.msra.mxu1 %v5383_v37  ;;  %5854 = vmatprep.subr.bf16.mxu0 %v5853_v38  ;;  %v1542_v37 = vld [vmem:[#allocation11 + $0x1120] sm:$0xff]  ;;  %v1461_v38 = vld [vmem:[#allocation11 + $0xe98] sm:$0xff]  ;;  %v1520_v9 = vld [vmem:[#allocation11 + $0x1070] sm:$0xff] }
 0x2d7   : > { %v5082_v58 = vpop.f32.mrb[4].mxu0  ;;  %5386 = vmatprep.subr.bf16.mxu1 %v5385_v43  ;;  %v5871_v43 = vpack.c.bf16 %v1456_v34, %v1452_v33  ;;  %v5403_v44 = vpack.c.bf16 %v1542_v37, %v1538_v32  ;;  %v5873_v45 = vpack.c.bf16 %v1465_v39, %v1461_v38  ;;  %v5419_v32 = vpack.c.bf16 %v1574_v25, %v1570_v18  ;;  %v1578_v34 = vld [vmem:[#allocation11 + $0x1240] sm:$0xff]  ;;  %v1496_v37 = vld [vmem:[#allocation11 + $0xfb0] sm:$0xff]  ;;  %v1513_v56 = vld [vmem:[#allocation11 + $0x1038] sm:$0xff] }
 0x2d8   : > { %v7945_v61 = vadd.f32 %v5082_v58, %v914_v48  ;;  %v983_v62 = vpop.f32.mrb[5].mxu0  ;;  %v1460_v48 = vld [vmem:[#allocation11 + $0xe90] sm:$0xff]  ;;  %v5889_v33 = vpack.c.bf16 %v1497_v27, %v1493_v26  ;;  %v1582_v39 = vld [vmem:[#allocation11 + $0x1260] sm:$0xff] }
 0x2d9   : > { %v7950_v2 = vadd.f32 %v983_v62, %v909_v59  ;;  %2336 = vmatmul.mubr.f32.vlgmr.msra.gmra.mrb[0].mxu1 %v7943_v50  ;;  %5856 = vmatpush1.bf16.msra.mxu0 %v5855_v51  ;;  %v1550_v51 = vld [vmem:[#allocation11 + $0x1160] sm:$0xff]  ;;  %v5875_v57 = vpack.c.bf16 %v1464_v49, %v1460_v48  ;;  %v5893_v48 = vpack.c.bf16 %v1505_v41, %v1501_v40  ;;  %v1528_v25 = vld [vmem:[#allocation11 + $0x10b0] sm:$0xff]  ;;  %v1541_v40 = vld [vmem:[#allocation11 + $0x1118] sm:$0xff] }
 0x2da   : > { %5388 = vmatpush1.bf16.msra.mxu1 %v5387_v53  ;;  %5858 = vmatprep.subr.bf16.mxu0 %v5857_v54  ;;  %v1469_v53 = vld [vmem:[#allocation11 + $0xed8] sm:$0xff]  ;;  %v5407_v58 = vpack.c.bf16 %v1550_v51, %v1546_v47  ;;  %v1558_v62 = vld [vmem:[#allocation11 + $0x11a0] sm:$0xff]  ;;  %v5423_v47 = vpack.c.bf16 %v1582_v39, %v1578_v34  ;;  %v1504_v51 = vld [vmem:[#allocation11 + $0xff0] sm:$0xff] }
 0x2db   : > { %5390 = vmatprep.subr.bf16.mxu1 %v5389_v35  ;;  %2341 = vmatprep.mubr.f32.mxu1 %v7948_v1  ;;  %v1473_v54 = vld [vmem:[#allocation11 + $0xef8] sm:$0xff]  ;;  %v1554_v35 = vld [vmem:[#allocation11 + $0x1180] sm:$0xff] }
 0x2dc   : > { %v5877_v59 = vpack.c.bf16 %v1473_v54, %v1469_v53  ;;  %v1586_v49 = vld [vmem:[#allocation11 + $0x1280] sm:$0xff]  ;;  %v1545_v41 = vld [vmem:[#allocation11 + $0x1138] sm:$0xff] }
 0x2dd   : > { %5860 = vmatpush1.bf16.msra.mxu0 %v5859_v31  ;;  %2342 = vmatmul.mubr.f32.gmra.mrb[2].mxu1 %v7954_v5  ;;  %v1563_v31 = vld [vmem:[#allocation11 + $0x11c8] sm:$0xff]  ;;  %v1590_v54 = vld [vmem:[#allocation11 + $0x12a0] sm:$0xff] }
 0x2de   : > { %5392 = vmatpush1.bf16.msra.mxu1 %v5391_v46  ;;  %5862 = vmatprep.subr.bf16.mxu0 %v5861_v42  ;;  %v5879_v46 = vpack.c.bf16 %v1472_v60, %v1468_v19  ;;  %v5411_v42 = vpack.c.bf16 %v1558_v62, %v1554_v35  ;;  %v5413_v8 = vpack.c.bf16 %v1567_v3, %v1563_v31  ;;  %v1594_v60 = vld [vmem:[#allocation11 + $0x12c0] sm:$0xff]  ;;  %v1512_v62 = vld [vmem:[#allocation11 + $0x1030] sm:$0xff]  ;;  %v1517_v31 = vld [vmem:[#allocation11 + $0x1058] sm:$0xff] }
 0x2df   : > { %5394 = vmatprep.subr.bf16.mxu1 %v5393_v6  ;;  %2412 = vmatprep.mubr.f32.mxu1 %v7958_v14  ;;  %v1476_v6 = vld [vmem:[#allocation11 + $0xf10] sm:$0xff]  ;;  %v5427_v35 = vpack.c.bf16 %v1590_v54, %v1586_v49  ;;  %v5897_v19 = vpack.c.bf16 %v1513_v56, %v1509_v55  ;;  %v1521_v3 = vld [vmem:[#allocation11 + $0x1078] sm:$0xff]  ;;  %v5431_v13 = vpack.c.bf16 %v1598_v0, %v1594_v60  ;;  %v1606_v12 = vld [vmem:[#allocation11 + $0x1320] sm:$0xff] }
 0x2e0   : > { %v1614_v27 = vld [vmem:[#allocation11 + $0x1360] sm:$0xff]  ;;  %v1544_v49 = vld [vmem:[#allocation11 + $0x1130] sm:$0xff]  ;;  %v1553_v54 = vld [vmem:[#allocation11 + $0x1178] sm:$0xff] }
 0x2e1   : > { %5864 = vmatpush1.bf16.msra.mxu0 %v5863_v52  ;;  %v1571_v52 = vld [vmem:[#allocation11 + $0x1208] sm:$0xff]  ;;  %v1618_v34 = vld [vmem:[#allocation11 + $0x1380] sm:$0xff]  ;;  %v1552_v60 = vld [vmem:[#allocation11 + $0x1170] sm:$0xff] }
 0x2e2   : > { %5396 = vmatpush1.bf16.msra.mxu1 %v5395_v15  ;;  %5866 = vmatprep.subr.bf16.mxu0 %v5865_v16  ;;  %v1575_v15 = vld [vmem:[#allocation11 + $0x1228] sm:$0xff]  ;;  %v5883_v16 = vpack.c.bf16 %v1480_v7, %v1476_v6  ;;  %v5901_v6 = vpack.c.bf16 %v1521_v3, %v1517_v31  ;;  %v1602_v7 = vld [vmem:[#allocation11 + $0x1300] sm:$0xff]  ;;  %v1561_v0 = vld [vmem:[#allocation11 + $0x11b8] sm:$0xff] }
 0x2e3   : > { %5398 = vmatprep.subr.bf16.mxu1 %v5397_v20  ;;  %v1484_v20 = vld [vmem:[#allocation11 + $0xf50] sm:$0xff]  ;;  %v5417_v24 = vpack.c.bf16 %v1575_v15, %v1571_v52  ;;  %v1525_v52 = vld [vmem:[#allocation11 + $0x1098] sm:$0xff]  ;;  %v5435_v18 = vpack.c.bf16 %v1606_v12, %v1602_v7  ;;  %v1622_v39 = vld [vmem:[#allocation11 + $0x13a0] sm:$0xff] }
 0x2e4   : > { %v1529_v15 = vld [vmem:[#allocation11 + $0x10b8] sm:$0xff]  ;;  %v1635_v55 = vld [vmem:[#allocation11 + $0x1408] sm:$0xff]  ;;  %v1556_v7 = vld [vmem:[#allocation11 + $0x1190] sm:$0xff] }
 0x2e5   : > { %5868 = vmatpush1.bf16.msra.mxu0 %v5867_v28  ;;  %v1579_v28 = vld [vmem:[#allocation11 + $0x1248] sm:$0xff]  ;;  %v1565_v12 = vld [vmem:[#allocation11 + $0x11d8] sm:$0xff] }
 0x2e6   : > { %5400 = vmatpush1.bf16.msra.mxu1 %v5399_v29  ;;  %5870 = vmatprep.subr.bf16.mxu0 %v5869_v30  ;;  %v1583_v29 = vld [vmem:[#allocation11 + $0x1268] sm:$0xff]  ;;  %v5887_v30 = vpack.c.bf16 %v1488_v22, %v1484_v20  ;;  %v5905_v20 = vpack.c.bf16 %v1529_v15, %v1525_v52  ;;  %v1610_v22 = vld [vmem:[#allocation11 + $0x1340] sm:$0xff]  ;;  %v1569_v52 = vld [vmem:[#allocation11 + $0x11f8] sm:$0xff] }
 0x2e7   : > { %5402 = vmatprep.subr.bf16.mxu1 %v5401_v36  ;;  %v1492_v36 = vld [vmem:[#allocation11 + $0xf90] sm:$0xff]  ;;  %v5421_v38 = vpack.c.bf16 %v1583_v29, %v1579_v28  ;;  %v1533_v28 = vld [vmem:[#allocation11 + $0x10d8] sm:$0xff]  ;;  %v1639_v56 = vld [vmem:[#allocation11 + $0x1428] sm:$0xff] }
 0x2e8   : > { %v1537_v29 = vld [vmem:[#allocation11 + $0x10f8] sm:$0xff]  ;;  %v1643_v31 = vld [vmem:[#allocation11 + $0x1448] sm:$0xff] }
 0x2e9   : > { %5872 = vmatpush1.bf16.msra.mxu0 %v5871_v43  ;;  %v1587_v43 = vld [vmem:[#allocation11 + $0x1288] sm:$0xff] }
 0x2ea   : > { %5404 = vmatpush1.bf16.msra.mxu1 %v5403_v44  ;;  %5874 = vmatprep.subr.bf16.mxu0 %v5873_v45  ;;  %v1591_v44 = vld [vmem:[#allocation11 + $0x12a8] sm:$0xff]  ;;  %v5891_v45 = vpack.c.bf16 %v1496_v37, %v1492_v36  ;;  %v1532_v36 = vld [vmem:[#allocation11 + $0x10d0] sm:$0xff] }
 0x2eb   : > { %5406 = vmatprep.subr.bf16.mxu1 %v5405_v10  ;;  %v1500_v10 = vld [vmem:[#allocation11 + $0xfd0] sm:$0xff]  ;;  %v5425_v53 = vpack.c.bf16 %v1591_v44, %v1587_v43  ;;  %v1627_v43 = vld [vmem:[#allocation11 + $0x13c8] sm:$0xff] }
 0x2ec   : > { %v1536_v37 = vld [vmem:[#allocation11 + $0x10f0] sm:$0xff]  ;;  %v1631_v44 = vld [vmem:[#allocation11 + $0x13e8] sm:$0xff] }
 0x2ed   : > { %5876 = vmatpush1.bf16.msra.mxu0 %v5875_v57  ;;  %v1595_v57 = vld [vmem:[#allocation11 + $0x12c8] sm:$0xff] }
 0x2ee   : > { %5408 = vmatpush1.bf16.msra.mxu1 %v5407_v58  ;;  %5878 = vmatprep.subr.bf16.mxu0 %v5877_v59  ;;  %v1599_v58 = vld [vmem:[#allocation11 + $0x12e8] sm:$0xff]  ;;  %v5895_v59 = vpack.c.bf16 %v1504_v51, %v1500_v10  ;;  %v5445_v10 = vpack.c.bf16 %v1631_v44, %v1627_v43  ;;  %v1630_v51 = vld [vmem:[#allocation11 + $0x13e0] sm:$0xff]  ;;  %v1581_v43 = vld [vmem:[#allocation11 + $0x1258] sm:$0xff] }
 0x2ef   : > { %5410 = vmatprep.subr.bf16.mxu1 %v5409_v23  ;;  %v1508_v23 = vld [vmem:[#allocation11 + $0x1010] sm:$0xff]  ;;  %v5429_v63 = vpack.c.bf16 %v1599_v58, %v1595_v57  ;;  %v1647_v3 = vld [vmem:[#allocation11 + $0x1468] sm:$0xff]  ;;  %v1585_v44 = vld [vmem:[#allocation11 + $0x1278] sm:$0xff] }
 0x2f0   : > { %v1651_v15 = vld [vmem:[#allocation11 + $0x1488] sm:$0xff] }
 0x2f1   : > { %5880 = vmatpush1.bf16.msra.mxu0 %v5879_v46  ;;  %v1603_v46 = vld [vmem:[#allocation11 + $0x1308] sm:$0xff] }
 0x2f2   : > { %5412 = vmatpush1.bf16.msra.mxu1 %v5411_v42  ;;  %5882 = vmatprep.subr.bf16.mxu0 %v5881_v4  ;;  %v1607_v42 = vld [vmem:[#allocation11 + $0x1328] sm:$0xff]  ;;  %v5899_v4 = vpack.c.bf16 %v1512_v62, %v1508_v23  ;;  %v5449_v23 = vpack.c.bf16 %v1639_v56, %v1635_v55  ;;  %v1638_v62 = vld [vmem:[#allocation11 + $0x1420] sm:$0xff]  ;;  %v1589_v55 = vld [vmem:[#allocation11 + $0x1298] sm:$0xff] }
 0x2f3   : > { %5414 = vmatprep.subr.bf16.mxu1 %v5413_v8  ;;  %v1516_v8 = vld [vmem:[#allocation11 + $0x1050] sm:$0xff]  ;;  %v5433_v11 = vpack.c.bf16 %v1607_v42, %v1603_v46  ;;  %v1593_v56 = vld [vmem:[#allocation11 + $0x12b8] sm:$0xff] }
 0x2f4   : > { %v7967_v46 = vld [vmem:[%s7830_s26 + $0x40] sm:$0xff] }
 0x2f5   : > { %5884 = vmatpush1.bf16.msra.mxu0 %v5883_v16  ;;  %v1611_v16 = vld [vmem:[#allocation11 + $0x1348] sm:$0xff] }
 0x2f6   : > { %5416 = vmatpush1.bf16.msra.mxu1 %v5415_v21  ;;  %5886 = vmatprep.subr.bf16.mxu0 %v5885_v17  ;;  %v1615_v21 = vld [vmem:[#allocation11 + $0x1368] sm:$0xff]  ;;  %v5903_v17 = vpack.c.bf16 %v1520_v9, %v1516_v8  ;;  %v1560_v8 = vld [vmem:[#allocation11 + $0x11b0] sm:$0xff]  ;;  %v5453_v9 = vpack.c.bf16 %v1647_v3, %v1643_v31  ;;  %v1597_v31 = vld [vmem:[#allocation11 + $0x12d8] sm:$0xff] }
 0x2f7   : > { %5418 = vmatprep.subr.bf16.mxu1 %v5417_v24  ;;  %v1524_v24 = vld [vmem:[#allocation11 + $0x1090] sm:$0xff]  ;;  %v5437_v26 = vpack.c.bf16 %v1615_v21, %v1611_v16  ;;  %v1655_v16 = vld [vmem:[#allocation11 + $0x14a8] sm:$0xff]  ;;  %v1601_v3 = vld [vmem:[#allocation11 + $0x12f8] sm:$0xff] }
 0x2f8   : > { %v7970_v21 = vld [vmem:[%s7830_s26 + $0xc8] sm:$0xff] }
 0x2f9   : > { %5888 = vmatpush1.bf16.msra.mxu0 %v5887_v30  ;;  %v1619_v30 = vld [vmem:[#allocation11 + $0x1388] sm:$0xff] }
 0x2fa   : > { %5420 = vmatpush1.bf16.msra.mxu1 %v5419_v32  ;;  %5890 = vmatprep.subr.bf16.mxu0 %v5889_v33  ;;  %v5907_v32 = vpack.c.bf16 %v1528_v25, %v1524_v24  ;;  %v5909_v33 = vpack.c.bf16 %v1537_v29, %v1533_v28  ;;  %v1564_v24 = vld [vmem:[#allocation11 + $0x11d0] sm:$0xff]  ;;  %v1654_v28 = vld [vmem:[#allocation11 + $0x14a0] sm:$0xff]  ;;  %v1573_v29 = vld [vmem:[#allocation11 + $0x1218] sm:$0xff] }
 0x2fb   : > { %5422 = vmatprep.subr.bf16.mxu1 %v5421_v38  ;;  %v1568_v25 = vld [vmem:[#allocation11 + $0x11f0] sm:$0xff] }
 0x2fd   : > { %5892 = vmatpush1.bf16.msra.mxu0 %v5891_v45  ;;  %v5443_v45 = vpack.c.bf16 %v1622_v39, %v1618_v34  ;;  %v1576_v39 = vld [vmem:[#allocation11 + $0x1230] sm:$0xff] }
 0x2fe   : > { %5424 = vmatpush1.bf16.msra.mxu1 %v5423_v47  ;;  %5894 = vmatprep.subr.bf16.mxu0 %v5893_v48  ;;  %v1626_v47 = vld [vmem:[#allocation11 + $0x13c0] sm:$0xff]  ;;  %v1540_v48 = vld [vmem:[#allocation11 + $0x1110] sm:$0xff] }
 0x2ff   : > { %5426 = vmatprep.subr.bf16.mxu1 %v5425_v53  ;;  %v1549_v53 = vld [vmem:[#allocation11 + $0x1158] sm:$0xff]  ;;  %v5915_v57 = vpack.c.bf16 %v1544_v49, %v1540_v48  ;;  %v5447_v58 = vpack.c.bf16 %v1630_v51, %v1626_v47  ;;  %v5933_v48 = vpack.c.bf16 %v1585_v44, %v1581_v43  ;;  %v1666_v49 = vld [vmem:[#allocation11 + $0x1500] sm:$0xff]  ;;  %v1584_v51 = vld [vmem:[#allocation11 + $0x1270] sm:$0xff] }
 0x300   : > { %v1702_v44 = vld [vmem:[#allocation11 + $0x1620] sm:$0xff] }
 0x301   : > { %5896 = vmatpush1.bf16.msra.mxu0 %v5895_v59  ;;  %v5917_v59 = vpack.c.bf16 %v1553_v54, %v1549_v53  ;;  %v1670_v54 = vld [vmem:[#allocation11 + $0x1520] sm:$0xff] }
 0x302   : > { %5428 = vmatpush1.bf16.msra.mxu1 %v5427_v35  ;;  %5898 = vmatprep.subr.bf16.mxu0 %v5897_v19  ;;  %v1634_v35 = vld [vmem:[#allocation11 + $0x1400] sm:$0xff]  ;;  %v1548_v19 = vld [vmem:[#allocation11 + $0x1150] sm:$0xff] }
 0x303   : > { %5430 = vmatprep.subr.bf16.mxu1 %v5429_v63  ;;  %v1557_v63 = vld [vmem:[#allocation11 + $0x1198] sm:$0xff]  ;;  %v5919_v42 = vpack.c.bf16 %v1552_v60, %v1548_v19  ;;  %v5937_v19 = vpack.c.bf16 %v1593_v56, %v1589_v55  ;;  %v1674_v60 = vld [vmem:[#allocation11 + $0x1540] sm:$0xff] }
 0x304   : > { %2952 = vmatmul.mubr.f32.vlgmr.msra.gmra.mrb[6].mxu0 %v7943_v50  ;;  %v1623_v50 = vld [vmem:[#allocation11 + $0x13a8] sm:$0xff]  ;;  %v1710_v56 = vld [vmem:[#allocation11 + $0x1660] sm:$0xff] }
 0x305   : > { %5900 = vmatpush1.bf16.msra.mxu0 %v5899_v4  ;;  %2957 = vmatprep.mubr.f32.mxu0 %v7948_v1  ;;  %v5439_v1 = vpack.c.bf16 %v1614_v27, %v1610_v22  ;;  %v5441_v38 = vpack.c.bf16 %v1623_v50, %v1619_v30  ;;  %v5451_v4 = vpack.c.bf16 %v1638_v62, %v1634_v35  ;;  %v1577_v30 = vld [vmem:[#allocation11 + $0x1238] sm:$0xff]  ;;  %v1659_v50 = vld [vmem:[#allocation11 + $0x14c8] sm:$0xff]  ;;  %v1592_v62 = vld [vmem:[#allocation11 + $0x12b0] sm:$0xff] }
 0x306   : > { %5432 = vmatpush1.bf16.msra.mxu1 %v5431_v13  ;;  %5902 = vmatprep.subr.bf16.mxu0 %v5901_v6  ;;  %v5921_v13 = vpack.c.bf16 %v1561_v0, %v1557_v63  ;;  %v1642_v6 = vld [vmem:[#allocation11 + $0x1440] sm:$0xff]  ;;  %v5925_v22 = vpack.c.bf16 %v1569_v52, %v1565_v12  ;;  %v5457_v27 = vpack.c.bf16 %v1655_v16, %v1651_v15  ;;  %v1605_v15 = vld [vmem:[#allocation11 + $0x1318] sm:$0xff] }
 0x307   : > { %5434 = vmatprep.subr.bf16.mxu1 %v5433_v11  ;;  %v1646_v11 = vld [vmem:[#allocation11 + $0x1460] sm:$0xff]  ;;  %v5467_v35 = vpack.c.bf16 %v1670_v54, %v1666_v49  ;;  %v1609_v16 = vld [vmem:[#allocation11 + $0x1338] sm:$0xff]  ;;  %v1624_v54 = vld [vmem:[#allocation11 + $0x13b0] sm:$0xff] }
 0x308   : > { %2958 = vmatmul.mubr.f32.gmra.mrb[8].mxu0 %v7954_v5  ;;  %v5911_v5 = vpack.c.bf16 %v1536_v37, %v1532_v36  ;;  %v5929_v36 = vpack.c.bf16 %v1577_v30, %v1573_v29  ;;  %v1658_v37 = vld [vmem:[#allocation11 + $0x14c0] sm:$0xff] }
 0x309   : > { %5904 = vmatpush1.bf16.msra.mxu0 %v5903_v17  ;;  %3028 = vmatprep.mubr.f32.mxu0 %v7958_v14  ;;  %v5913_v14 = vpack.c.bf16 %v1545_v41, %v1541_v40  ;;  %v5923_v17 = vpack.c.bf16 %v1560_v8, %v1556_v7  ;;  %v1662_v41 = vld [vmem:[#allocation11 + $0x14e0] sm:$0xff]  ;;  %v5941_v7 = vpack.c.bf16 %v1601_v3, %v1597_v31 }
 0x30a   : > { %5436 = vmatpush1.bf16.msra.mxu1 %v5435_v18  ;;  %5906 = vmatprep.subr.bf16.mxu0 %v5905_v20  ;;  %v1650_v18 = vld [vmem:[#allocation11 + $0x1480] sm:$0xff]  ;;  %v5455_v20 = vpack.c.bf16 %v1646_v11, %v1642_v6  ;;  %v5463_v47 = vpack.c.bf16 %v1662_v41, %v1658_v37  ;;  %v1600_v11 = vld [vmem:[#allocation11 + $0x12f0] sm:$0xff] }
 0x30b   : > { %5438 = vmatprep.subr.bf16.mxu1 %v5437_v26  ;;  %v7974_v26 = vld [vmem:[%s7830_s26 + $0xc0] sm:$0xff]  ;;  %v5459_v34 = vpack.c.bf16 %v1654_v28, %v1650_v18  ;;  %v1678_v0 = vld [vmem:[#allocation11 + $0x1560] sm:$0xff] }
 0x30c   : > { %v5471_v6 = vpack.c.bf16 %v1678_v0, %v1674_v60  ;;  %v1682_v8 = vld [vmem:[#allocation11 + $0x1580] sm:$0xff]  ;;  %v1695_v18 = vld [vmem:[#allocation11 + $0x15e8] sm:$0xff]  ;;  %v1608_v28 = vld [vmem:[#allocation11 + $0x1330] sm:$0xff] }
 0x30d   : > { %5908 = vmatpush1.bf16.msra.mxu0 %v5907_v32  ;;  %v1663_v32 = vld [vmem:[#allocation11 + $0x14e8] sm:$0xff]  ;;  %v1686_v52 = vld [vmem:[#allocation11 + $0x15a0] sm:$0xff]  ;;  %v1616_v41 = vld [vmem:[#allocation11 + $0x1370] sm:$0xff] }
 0x30e   : > { %5440 = vmatpush1.bf16.msra.mxu1 %v5439_v1  ;;  %5910 = vmatprep.subr.bf16.mxu0 %v5909_v33  ;;  %v7978_v1 = vld [vmem:[%s7830_s26 + $0x58] sm:$0xff]  ;;  %v5927_v33 = vpack.c.bf16 %v1568_v25, %v1564_v24  ;;  %v5461_v40 = vpack.c.bf16 %v1663_v32, %v1659_v50  ;;  %v5945_v24 = vpack.c.bf16 %v1609_v16, %v1605_v15  ;;  %v1613_v50 = vld [vmem:[#allocation11 + $0x1358] sm:$0xff]  ;;  %v1632_v0 = vld [vmem:[#allocation11 + $0x13f0] sm:$0xff] }
 0x30f   : > { %5442 = vmatprep.subr.bf16.mxu1 %v5441_v38  ;;  %v1572_v38 = vld [vmem:[#allocation11 + $0x1210] sm:$0xff]  ;;  %v1690_v25 = vld [vmem:[#allocation11 + $0x15c0] sm:$0xff]  ;;  %v1617_v32 = vld [vmem:[#allocation11 + $0x1378] sm:$0xff] }
 0x310   : > { %v1694_v30 = vld [vmem:[#allocation11 + $0x15e0] sm:$0xff] }
 0x311   : > { %5912 = vmatpush1.bf16.msra.mxu0 %v5911_v5  ;;  %v1667_v5 = vld [vmem:[#allocation11 + $0x1508] sm:$0xff]  ;;  %v5479_v37 = vpack.c.bf16 %v1694_v30, %v1690_v25  ;;  %v1718_v3 = vld [vmem:[#allocation11 + $0x16a0] sm:$0xff]  ;;  %v1648_v30 = vld [vmem:[#allocation11 + $0x1470] sm:$0xff] }
 0x312   : > { %5444 = vmatpush1.bf16.msra.mxu1 %v5443_v45  ;;  %5914 = vmatprep.subr.bf16.mxu0 %v5913_v14  ;;  %v1671_v45 = vld [vmem:[#allocation11 + $0x1528] sm:$0xff]  ;;  %v5931_v14 = vpack.c.bf16 %v1576_v39, %v1572_v38  ;;  %v5949_v38 = vpack.c.bf16 %v1617_v32, %v1613_v50  ;;  %v1698_v39 = vld [vmem:[#allocation11 + $0x1600] sm:$0xff] }
 0x313   : > { %5446 = vmatprep.subr.bf16.mxu1 %v5445_v10  ;;  %v1580_v10 = vld [vmem:[#allocation11 + $0x1250] sm:$0xff]  ;;  %v5465_v53 = vpack.c.bf16 %v1671_v45, %v1667_v5  ;;  %v1621_v5 = vld [vmem:[#allocation11 + $0x1398] sm:$0xff]  ;;  %v5483_v49 = vpack.c.bf16 %v1702_v44, %v1698_v39  ;;  %v1726_v16 = vld [vmem:[#allocation11 + $0x16e0] sm:$0xff] }
 0x314   : > { %v1625_v45 = vld [vmem:[#allocation11 + $0x13b8] sm:$0xff]  ;;  %v1734_v32 = vld [vmem:[#allocation11 + $0x1720] sm:$0xff]  ;;  %v1656_v44 = vld [vmem:[#allocation11 + $0x14b0] sm:$0xff] }
 0x315   : > { %5916 = vmatpush1.bf16.msra.mxu0 %v5915_v57  ;;  %v1675_v57 = vld [vmem:[#allocation11 + $0x1548] sm:$0xff] }
 0x316   : > { %5448 = vmatpush1.bf16.msra.mxu1 %v5447_v58  ;;  %5918 = vmatprep.subr.bf16.mxu0 %v5917_v59  ;;  %v1679_v58 = vld [vmem:[#allocation11 + $0x1568] sm:$0xff]  ;;  %v5935_v59 = vpack.c.bf16 %v1584_v51, %v1580_v10  ;;  %v5953_v10 = vpack.c.bf16 %v1625_v45, %v1621_v5  ;;  %v1706_v51 = vld [vmem:[#allocation11 + $0x1640] sm:$0xff] }
 0x317   : > { %5450 = vmatprep.subr.bf16.mxu1 %v5449_v23  ;;  %v1588_v23 = vld [vmem:[#allocation11 + $0x1290] sm:$0xff]  ;;  %v5469_v63 = vpack.c.bf16 %v1679_v58, %v1675_v57  ;;  %v1629_v57 = vld [vmem:[#allocation11 + $0x13d8] sm:$0xff]  ;;  %v5487_v60 = vpack.c.bf16 %v1710_v56, %v1706_v51  ;;  %v1742_v45 = vld [vmem:[#allocation11 + $0x1760] sm:$0xff] }
 0x318   : > { %v1633_v58 = vld [vmem:[#allocation11 + $0x13f8] sm:$0xff]  ;;  %v1746_v51 = vld [vmem:[#allocation11 + $0x1780] sm:$0xff] }
 0x319   : > { %2413 = vmatmul.mubr.f32.vlgmr.msra.gmra.mrb[0].mxu1 %v7967_v46  ;;  %5920 = vmatpush1.bf16.msra.mxu0 %v5919_v42  ;;  %v1683_v42 = vld [vmem:[#allocation11 + $0x1588] sm:$0xff]  ;;  %v1750_v56 = vld [vmem:[#allocation11 + $0x17a0] sm:$0xff] }
 0x31a   : > { %5452 = vmatpush1.bf16.msra.mxu1 %v5451_v4  ;;  %5922 = vmatprep.subr.bf16.mxu0 %v5921_v13  ;;  %v1687_v4 = vld [vmem:[#allocation11 + $0x15a8] sm:$0xff]  ;;  %v5939_v13 = vpack.c.bf16 %v1592_v62, %v1588_v23  ;;  %v5957_v23 = vpack.c.bf16 %v1633_v58, %v1629_v57  ;;  %v1714_v62 = vld [vmem:[#allocation11 + $0x1680] sm:$0xff]  ;;  %v1669_v57 = vld [vmem:[#allocation11 + $0x1518] sm:$0xff] }
 0x31b   : > { %5454 = vmatprep.subr.bf16.mxu1 %v5453_v9  ;;  %2418 = vmatprep.mubr.f32.mxu1 %v7970_v21  ;;  %v1596_v9 = vld [vmem:[#allocation11 + $0x12d0] sm:$0xff]  ;;  %v5473_v12 = vpack.c.bf16 %v1687_v4, %v1683_v42  ;;  %v1637_v42 = vld [vmem:[#allocation11 + $0x1418] sm:$0xff] }
 0x31c   : > { %v1641_v4 = vld [vmem:[#allocation11 + $0x1438] sm:$0xff] }
 0x31d   : > { %5924 = vmatpush1.bf16.msra.mxu0 %v5923_v17  ;;  %2419 = vmatmul.mubr.f32.gmra.mrb[2].mxu1 %v7974_v26  ;;  %v1691_v17 = vld [vmem:[#allocation11 + $0x15c8] sm:$0xff]  ;;  %v1673_v58 = vld [vmem:[#allocation11 + $0x1538] sm:$0xff] }
 0x31e   : > { %5456 = vmatpush1.bf16.msra.mxu1 %v5455_v20  ;;  %5926 = vmatprep.subr.bf16.mxu0 %v5925_v22  ;;  %v5943_v20 = vpack.c.bf16 %v1600_v11, %v1596_v9  ;;  %v5475_v22 = vpack.c.bf16 %v1686_v52, %v1682_v8  ;;  %v5477_v29 = vpack.c.bf16 %v1695_v18, %v1691_v17  ;;  %v1722_v11 = vld [vmem:[#allocation11 + $0x16c0] sm:$0xff]  ;;  %v1640_v52 = vld [vmem:[#allocation11 + $0x1430] sm:$0xff]  ;;  %v1645_v17 = vld [vmem:[#allocation11 + $0x1458] sm:$0xff] }
 0x31f   : > { %5458 = vmatprep.subr.bf16.mxu1 %v5457_v27  ;;  %2489 = vmatprep.mubr.f32.mxu1 %v7978_v1  ;;  %v1604_v27 = vld [vmem:[#allocation11 + $0x1310] sm:$0xff]  ;;  %v5491_v8 = vpack.c.bf16 %v1718_v3, %v1714_v62  ;;  %v5961_v9 = vpack.c.bf16 %v1641_v4, %v1637_v42  ;;  %v1649_v18 = vld [vmem:[#allocation11 + $0x1478] sm:$0xff]  ;;  %v5495_v25 = vpack.c.bf16 %v1726_v16, %v1722_v11  ;;  %v1763_v42 = vld [vmem:[#allocation11 + $0x1808] sm:$0xff] }
 0x320   : > { %v1672_v62 = vld [vmem:[#allocation11 + $0x1530] sm:$0xff]  ;;  %v1681_v3 = vld [vmem:[#allocation11 + $0x1578] sm:$0xff]  ;;  %v1767_v4 = vld [vmem:[#allocation11 + $0x1828] sm:$0xff] }
 0x321   : > { %5928 = vmatpush1.bf16.msra.mxu0 %v5927_v33  ;;  %v1699_v33 = vld [vmem:[#allocation11 + $0x1608] sm:$0xff]  ;;  %v1680_v11 = vld [vmem:[#allocation11 + $0x1570] sm:$0xff]  ;;  %v1689_v16 = vld [vmem:[#allocation11 + $0x15b8] sm:$0xff] }
 0x322   : > { %5460 = vmatpush1.bf16.msra.mxu1 %v5459_v34  ;;  %5930 = vmatprep.subr.bf16.mxu0 %v5929_v36  ;;  %v1703_v34 = vld [vmem:[#allocation11 + $0x1628] sm:$0xff]  ;;  %v5947_v36 = vpack.c.bf16 %v1608_v28, %v1604_v27  ;;  %v5965_v27 = vpack.c.bf16 %v1649_v18, %v1645_v17  ;;  %v1730_v28 = vld [vmem:[#allocation11 + $0x1700] sm:$0xff] }
 0x323   : > { %5462 = vmatprep.subr.bf16.mxu1 %v5461_v40  ;;  %v1612_v40 = vld [vmem:[#allocation11 + $0x1350] sm:$0xff]  ;;  %v5481_v43 = vpack.c.bf16 %v1703_v34, %v1699_v33  ;;  %v1653_v33 = vld [vmem:[#allocation11 + $0x1498] sm:$0xff]  ;;  %v5499_v39 = vpack.c.bf16 %v1734_v32, %v1730_v28  ;;  %v1771_v17 = vld [vmem:[#allocation11 + $0x1848] sm:$0xff] }
 0x324   : > { %v1657_v34 = vld [vmem:[#allocation11 + $0x14b8] sm:$0xff]  ;;  %v1775_v18 = vld [vmem:[#allocation11 + $0x1868] sm:$0xff]  ;;  %v1684_v28 = vld [vmem:[#allocation11 + $0x1590] sm:$0xff] }
 0x325   : > { %5932 = vmatpush1.bf16.msra.mxu0 %v5931_v14  ;;  %v1707_v14 = vld [vmem:[#allocation11 + $0x1648] sm:$0xff]  ;;  %v1693_v32 = vld [vmem:[#allocation11 + $0x15d8] sm:$0xff] }
 0x326   : > { %5464 = vmatpush1.bf16.msra.mxu1 %v5463_v47  ;;  %5934 = vmatprep.subr.bf16.mxu0 %v5933_v48  ;;  %v1711_v47 = vld [vmem:[#allocation11 + $0x1668] sm:$0xff]  ;;  %v5951_v48 = vpack.c.bf16 %v1616_v41, %v1612_v40  ;;  %v5969_v40 = vpack.c.bf16 %v1657_v34, %v1653_v33  ;;  %v1738_v41 = vld [vmem:[#allocation11 + $0x1740] sm:$0xff]  ;;  %v1697_v33 = vld [vmem:[#allocation11 + $0x15f8] sm:$0xff] }
 0x327   : > { %5466 = vmatprep.subr.bf16.mxu1 %v5465_v53  ;;  %v1620_v53 = vld [vmem:[#allocation11 + $0x1390] sm:$0xff]  ;;  %v5485_v55 = vpack.c.bf16 %v1711_v47, %v1707_v14  ;;  %v1661_v14 = vld [vmem:[#allocation11 + $0x14d8] sm:$0xff]  ;;  %v1779_v34 = vld [vmem:[#allocation11 + $0x1888] sm:$0xff] }
 0x328   : > { %v1665_v47 = vld [vmem:[#allocation11 + $0x14f8] sm:$0xff] }
 0x329   : > { %5936 = vmatpush1.bf16.msra.mxu0 %v5935_v59  ;;  %v1715_v59 = vld [vmem:[#allocation11 + $0x1688] sm:$0xff] }
 0x32a   : > { %5468 = vmatpush1.bf16.msra.mxu1 %v5467_v35  ;;  %5938 = vmatprep.subr.bf16.mxu0 %v5937_v19  ;;  %v1719_v35 = vld [vmem:[#allocation11 + $0x16a8] sm:$0xff]  ;;  %v5955_v19 = vpack.c.bf16 %v1624_v54, %v1620_v53  ;;  %v1660_v53 = vld [vmem:[#allocation11 + $0x14d0] sm:$0xff] }
 0x32b   : > { %5470 = vmatprep.subr.bf16.mxu1 %v5469_v63  ;;  %v1628_v63 = vld [vmem:[#allocation11 + $0x13d0] sm:$0xff]  ;;  %v5489_v31 = vpack.c.bf16 %v1719_v35, %v1715_v59  ;;  %v1755_v59 = vld [vmem:[#allocation11 + $0x17c8] sm:$0xff] }
 0x32c   : > { %v1664_v54 = vld [vmem:[#allocation11 + $0x14f0] sm:$0xff]  ;;  %v1759_v35 = vld [vmem:[#allocation11 + $0x17e8] sm:$0xff] }
 0x32d   : > { %5940 = vmatpush1.bf16.msra.mxu0 %v5939_v13  ;;  %v1723_v13 = vld [vmem:[#allocation11 + $0x16c8] sm:$0xff] }
 0x32e   : > { %5472 = vmatpush1.bf16.msra.mxu1 %v5471_v6  ;;  %5942 = vmatprep.subr.bf16.mxu0 %v5941_v7  ;;  %v1727_v6 = vld [vmem:[#allocation11 + $0x16e8] sm:$0xff]  ;;  %v5959_v7 = vpack.c.bf16 %v1632_v0, %v1628_v63  ;;  %v5509_v63 = vpack.c.bf16 %v1759_v35, %v1755_v59  ;;  %v1758_v0 = vld [vmem:[#allocation11 + $0x17e0] sm:$0xff]  ;;  %v1709_v59 = vld [vmem:[#allocation11 + $0x1658] sm:$0xff] }
 0x32f   : > { %5474 = vmatprep.subr.bf16.mxu1 %v5473_v12  ;;  %v1636_v12 = vld [vmem:[#allocation11 + $0x1410] sm:$0xff]  ;;  %v5493_v15 = vpack.c.bf16 %v1727_v6, %v1723_v13  ;;  %v1713_v35 = vld [vmem:[#allocation11 + $0x1678] sm:$0xff] }
 0x331   : > { %5944 = vmatpush1.bf16.msra.mxu0 %v5943_v20  ;;  %v1731_v20 = vld [vmem:[#allocation11 + $0x1708] sm:$0xff] }
 0x332   : > { %5476 = vmatpush1.bf16.msra.mxu1 %v5475_v22  ;;  %5946 = vmatprep.subr.bf16.mxu0 %v5945_v24  ;;  %v1735_v22 = vld [vmem:[#allocation11 + $0x1728] sm:$0xff]  ;;  %v5963_v24 = vpack.c.bf16 %v1640_v52, %v1636_v12  ;;  %v5513_v12 = vpack.c.bf16 %v1767_v4, %v1763_v42  ;;  %v1766_v52 = vld [vmem:[#allocation11 + $0x1820] sm:$0xff]  ;;  %v1717_v42 = vld [vmem:[#allocation11 + $0x1698] sm:$0xff] }
 0x333   : > { %5478 = vmatprep.subr.bf16.mxu1 %v5477_v29  ;;  %v1644_v29 = vld [vmem:[#allocation11 + $0x1450] sm:$0xff]  ;;  %v5497_v50 = vpack.c.bf16 %v1735_v22, %v1731_v20  ;;  %v7987_v20 = vld [vmem:[%s7830_s26 + $0x50] sm:$0xff] }
 0x334   : > { %v1721_v4 = vld [vmem:[#allocation11 + $0x16b8] sm:$0xff] }
 0x335   : > { %5948 = vmatpush1.bf16.msra.mxu0 %v5947_v36  ;;  %v1739_v36 = vld [vmem:[#allocation11 + $0x1748] sm:$0xff] }
 0x336   : > { %5480 = vmatpush1.bf16.msra.mxu1 %v5479_v37  ;;  %5950 = vmatprep.subr.bf16.mxu0 %v5949_v38  ;;  %v1743_v37 = vld [vmem:[#allocation11 + $0x1768] sm:$0xff]  ;;  %v5967_v38 = vpack.c.bf16 %v1648_v30, %v1644_v29  ;;  %v1688_v29 = vld [vmem:[#allocation11 + $0x15b0] sm:$0xff]  ;;  %v5517_v30 = vpack.c.bf16 %v1775_v18, %v1771_v17  ;;  %v1725_v17 = vld [vmem:[#allocation11 + $0x16d8] sm:$0xff] }
 0x337   : > { %5482 = vmatprep.subr.bf16.mxu1 %v5481_v43  ;;  %v1652_v43 = vld [vmem:[#allocation11 + $0x1490] sm:$0xff]  ;;  %v5501_v5 = vpack.c.bf16 %v1743_v37, %v1739_v36  ;;  %v1783_v36 = vld [vmem:[#allocation11 + $0x18a8] sm:$0xff]  ;;  %v1729_v18 = vld [vmem:[#allocation11 + $0x16f8] sm:$0xff] }
 0x338   : > { %v7990_v37 = vld [vmem:[%s7830_s26 + $0xd8] sm:$0xff] }
 0x339   : > { %5952 = vmatpush1.bf16.msra.mxu0 %v5951_v48  ;;  %v1747_v48 = vld [vmem:[#allocation11 + $0x1788] sm:$0xff] }
 0x33a   : > { %5484 = vmatpush1.bf16.msra.mxu1 %v5483_v49  ;;  %5954 = vmatprep.subr.bf16.mxu0 %v5953_v10  ;;  %v5971_v49 = vpack.c.bf16 %v1656_v44, %v1652_v43  ;;  %v5973_v10 = vpack.c.bf16 %v1665_v47, %v1661_v14  ;;  %v1692_v43 = vld [vmem:[#allocation11 + $0x15d0] sm:$0xff]  ;;  %v1782_v14 = vld [vmem:[#allocation11 + $0x18a0] sm:$0xff]  ;;  %v1701_v47 = vld [vmem:[#allocation11 + $0x1618] sm:$0xff] }
 0x33b   : > { %5486 = vmatprep.subr.bf16.mxu1 %v5485_v55  ;;  %v1696_v44 = vld [vmem:[#allocation11 + $0x15f0] sm:$0xff] }
 0x33d   : > { %5956 = vmatpush1.bf16.msra.mxu0 %v5955_v19  ;;  %v5507_v19 = vpack.c.bf16 %v1750_v56, %v1746_v51  ;;  %v1704_v56 = vld [vmem:[#allocation11 + $0x1630] sm:$0xff] }
 0x33e   : > { %5488 = vmatpush1.bf16.msra.mxu1 %v5487_v60  ;;  %5958 = vmatprep.subr.bf16.mxu0 %v5957_v23  ;;  %v1754_v60 = vld [vmem:[#allocation11 + $0x17c0] sm:$0xff]  ;;  %v1668_v23 = vld [vmem:[#allocation11 + $0x1510] sm:$0xff] }
 0x33f   : > { %5490 = vmatprep.subr.bf16.mxu1 %v5489_v31  ;;  %v1677_v31 = vld [vmem:[#allocation11 + $0x1558] sm:$0xff]  ;;  %v5979_v13 = vpack.c.bf16 %v1672_v62, %v1668_v23  ;;  %v5511_v6 = vpack.c.bf16 %v1758_v0, %v1754_v60  ;;  %v5997_v23 = vpack.c.bf16 %v1713_v35, %v1709_v59  ;;  %v1794_v62 = vld [vmem:[#allocation11 + $0x1900] sm:$0xff]  ;;  %v1712_v0 = vld [vmem:[#allocation11 + $0x1670] sm:$0xff] }
 0x340   : > { %v1830_v35 = vld [vmem:[#allocation11 + $0x1a20] sm:$0xff] }
 0x341   : > { %5960 = vmatpush1.bf16.msra.mxu0 %v5959_v7  ;;  %v5981_v7 = vpack.c.bf16 %v1681_v3, %v1677_v31  ;;  %v1798_v3 = vld [vmem:[#allocation11 + $0x1920] sm:$0xff] }
 0x342   : > { %5492 = vmatpush1.bf16.msra.mxu1 %v5491_v8  ;;  %5962 = vmatprep.subr.bf16.mxu0 %v5961_v9  ;;  %v1762_v8 = vld [vmem:[#allocation11 + $0x1800] sm:$0xff]  ;;  %v1676_v9 = vld [vmem:[#allocation11 + $0x1550] sm:$0xff] }
 0x343   : > { %5494 = vmatprep.subr.bf16.mxu1 %v5493_v15  ;;  %v1685_v15 = vld [vmem:[#allocation11 + $0x1598] sm:$0xff]  ;;  %v5983_v22 = vpack.c.bf16 %v1680_v11, %v1676_v9  ;;  %v6001_v9 = vpack.c.bf16 %v1721_v4, %v1717_v42  ;;  %v1802_v11 = vld [vmem:[#allocation11 + $0x1940] sm:$0xff] }
 0x344   : > { %3029 = vmatmul.mubr.f32.vlgmr.msra.gmra.mrb[6].mxu0 %v7967_v46  ;;  %v1751_v46 = vld [vmem:[#allocation11 + $0x17a8] sm:$0xff]  ;;  %v1838_v4 = vld [vmem:[#allocation11 + $0x1a60] sm:$0xff] }
 0x345   : > { %5964 = vmatpush1.bf16.msra.mxu0 %v5963_v24  ;;  %3034 = vmatprep.mubr.f32.mxu0 %v7970_v21  ;;  %v5503_v21 = vpack.c.bf16 %v1742_v45, %v1738_v41  ;;  %v5505_v55 = vpack.c.bf16 %v1751_v46, %v1747_v48  ;;  %v5515_v24 = vpack.c.bf16 %v1766_v52, %v1762_v8  ;;  %v1705_v48 = vld [vmem:[#allocation11 + $0x1638] sm:$0xff]  ;;  %v1787_v46 = vld [vmem:[#allocation11 + $0x18c8] sm:$0xff]  ;;  %v1720_v52 = vld [vmem:[#allocation11 + $0x16b0] sm:$0xff] }
 0x346   : > { %5496 = vmatpush1.bf16.msra.mxu1 %v5495_v25  ;;  %5966 = vmatprep.subr.bf16.mxu0 %v5965_v27  ;;  %v5985_v25 = vpack.c.bf16 %v1689_v16, %v1685_v15  ;;  %v1770_v27 = vld [vmem:[#allocation11 + $0x1840] sm:$0xff]  ;;  %v5989_v41 = vpack.c.bf16 %v1697_v33, %v1693_v32  ;;  %v5521_v45 = vpack.c.bf16 %v1783_v36, %v1779_v34  ;;  %v1733_v34 = vld [vmem:[#allocation11 + $0x1718] sm:$0xff] }
 0x347   : > { %5498 = vmatprep.subr.bf16.mxu1 %v5497_v50  ;;  %v1774_v50 = vld [vmem:[#allocation11 + $0x1860] sm:$0xff]  ;;  %v5531_v8 = vpack.c.bf16 %v1798_v3, %v1794_v62  ;;  %v1737_v36 = vld [vmem:[#allocation11 + $0x1738] sm:$0xff]  ;;  %v1752_v3 = vld [vmem:[#allocation11 + $0x17b0] sm:$0xff] }
 0x348   : > { %3035 = vmatmul.mubr.f32.gmra.mrb[8].mxu0 %v7974_v26  ;;  %v5975_v26 = vpack.c.bf16 %v1664_v54, %v1660_v53  ;;  %v5993_v53 = vpack.c.bf16 %v1705_v48, %v1701_v47  ;;  %v1786_v54 = vld [vmem:[#allocation11 + $0x18c0] sm:$0xff] }
 0x349   : > { %5968 = vmatpush1.bf16.msra.mxu0 %v5967_v38  ;;  %3105 = vmatprep.mubr.f32.mxu0 %v7978_v1  ;;  %v5977_v1 = vpack.c.bf16 %v1673_v58, %v1669_v57  ;;  %v5987_v38 = vpack.c.bf16 %v1688_v29, %v1684_v28  ;;  %v1790_v58 = vld [vmem:[#allocation11 + $0x18e0] sm:$0xff]  ;;  %v6005_v28 = vpack.c.bf16 %v1729_v18, %v1725_v17 }
 0x34a   : > { %5500 = vmatpush1.bf16.msra.mxu1 %v5499_v39  ;;  %5970 = vmatprep.subr.bf16.mxu0 %v5969_v40  ;;  %v1778_v39 = vld [vmem:[#allocation11 + $0x1880] sm:$0xff]  ;;  %v5519_v40 = vpack.c.bf16 %v1774_v50, %v1770_v27  ;;  %v5527_v60 = vpack.c.bf16 %v1790_v58, %v1786_v54  ;;  %v1728_v50 = vld [vmem:[#allocation11 + $0x16f0] sm:$0xff] }
 0x34b   : > { %5502 = vmatprep.subr.bf16.mxu1 %v5501_v5  ;;  %v7994_v5 = vld [vmem:[%s7830_s26 + $0xd0] sm:$0xff]  ;;  %v5523_v51 = vpack.c.bf16 %v1782_v14, %v1778_v39  ;;  %v1823_v39 = vld [vmem:[#allocation11 + $0x19e8] sm:$0xff]  ;;  %v1736_v14 = vld [vmem:[#allocation11 + $0x1730] sm:$0xff] }
 0x34c   : > { %v1806_v16 = vld [vmem:[#allocation11 + $0x1960] sm:$0xff]  ;;  %v1744_v58 = vld [vmem:[#allocation11 + $0x1770] sm:$0xff] }
 0x34d   : > { %5972 = vmatpush1.bf16.msra.mxu0 %v5971_v49  ;;  %v1791_v49 = vld [vmem:[#allocation11 + $0x18e8] sm:$0xff]  ;;  %v5535_v27 = vpack.c.bf16 %v1806_v16, %v1802_v11  ;;  %v1810_v29 = vld [vmem:[#allocation11 + $0x1980] sm:$0xff]  ;;  %v1760_v16 = vld [vmem:[#allocation11 + $0x17f0] sm:$0xff] }
 0x34e   : > { %5504 = vmatpush1.bf16.msra.mxu1 %v5503_v21  ;;  %5974 = vmatprep.subr.bf16.mxu0 %v5973_v10  ;;  %v7998_v21 = vld [vmem:[%s7830_s26 + $0x68] sm:$0xff]  ;;  %v5991_v10 = vpack.c.bf16 %v1696_v44, %v1692_v43  ;;  %v5525_v57 = vpack.c.bf16 %v1791_v49, %v1787_v46  ;;  %v1814_v33 = vld [vmem:[#allocation11 + $0x19a0] sm:$0xff]  ;;  %v6009_v43 = vpack.c.bf16 %v1737_v36, %v1733_v34 }
 0x34f   : > { %5506 = vmatprep.subr.bf16.mxu1 %v5505_v55  ;;  %v1700_v55 = vld [vmem:[#allocation11 + $0x1610] sm:$0xff]  ;;  %v1818_v44 = vld [vmem:[#allocation11 + $0x19c0] sm:$0xff]  ;;  %v1741_v46 = vld [vmem:[#allocation11 + $0x1758] sm:$0xff] }
 0x350   : > { %v1822_v48 = vld [vmem:[#allocation11 + $0x19e0] sm:$0xff]  ;;  %v1745_v49 = vld [vmem:[#allocation11 + $0x1778] sm:$0xff] }
 0x351   : > { %5976 = vmatpush1.bf16.msra.mxu0 %v5975_v26  ;;  %v1795_v26 = vld [vmem:[#allocation11 + $0x1908] sm:$0xff]  ;;  %v5543_v54 = vpack.c.bf16 %v1822_v48, %v1818_v44  ;;  %v1846_v18 = vld [vmem:[#allocation11 + $0x1aa0] sm:$0xff]  ;;  %v1776_v48 = vld [vmem:[#allocation11 + $0x1870] sm:$0xff] }
 0x352   : > { %5508 = vmatpush1.bf16.msra.mxu1 %v5507_v19  ;;  %5978 = vmatprep.subr.bf16.mxu0 %v5977_v1  ;;  %v1799_v19 = vld [vmem:[#allocation11 + $0x1928] sm:$0xff]  ;;  %v5995_v1 = vpack.c.bf16 %v1704_v56, %v1700_v55  ;;  %v6013_v55 = vpack.c.bf16 %v1745_v49, %v1741_v46  ;;  %v1826_v56 = vld [vmem:[#allocation11 + $0x1a00] sm:$0xff] }
 0x353   : > { %5510 = vmatprep.subr.bf16.mxu1 %v5509_v63  ;;  %v1708_v63 = vld [vmem:[#allocation11 + $0x1650] sm:$0xff]  ;;  %v5529_v31 = vpack.c.bf16 %v1799_v19, %v1795_v26  ;;  %v1749_v26 = vld [vmem:[#allocation11 + $0x1798] sm:$0xff]  ;;  %v5547_v62 = vpack.c.bf16 %v1830_v35, %v1826_v56  ;;  %v1854_v36 = vld [vmem:[#allocation11 + $0x1ae0] sm:$0xff] }
 0x354   : > { %v1753_v19 = vld [vmem:[#allocation11 + $0x17b8] sm:$0xff]  ;;  %v1862_v49 = vld [vmem:[#allocation11 + $0x1b20] sm:$0xff]  ;;  %v1784_v35 = vld [vmem:[#allocation11 + $0x18b0] sm:$0xff] }
 0x355   : > { %5980 = vmatpush1.bf16.msra.mxu0 %v5979_v13  ;;  %v1803_v13 = vld [vmem:[#allocation11 + $0x1948] sm:$0xff] }
 0x356   : > { %5512 = vmatpush1.bf16.msra.mxu1 %v5511_v6  ;;  %5982 = vmatprep.subr.bf16.mxu0 %v5981_v7  ;;  %v1807_v6 = vld [vmem:[#allocation11 + $0x1968] sm:$0xff]  ;;  %v5999_v7 = vpack.c.bf16 %v1712_v0, %v1708_v63  ;;  %v6017_v63 = vpack.c.bf16 %v1753_v19, %v1749_v26  ;;  %v1834_v0 = vld [vmem:[#allocation11 + $0x1a40] sm:$0xff] }
 0x357   : > { %5514 = vmatprep.subr.bf16.mxu1 %v5513_v12  ;;  %v1716_v12 = vld [vmem:[#allocation11 + $0x1690] sm:$0xff]  ;;  %v5533_v15 = vpack.c.bf16 %v1807_v6, %v1803_v13  ;;  %v1757_v13 = vld [vmem:[#allocation11 + $0x17d8] sm:$0xff]  ;;  %v5551_v11 = vpack.c.bf16 %v1838_v4, %v1834_v0  ;;  %v1870_v19 = vld [vmem:[#allocation11 + $0x1b60] sm:$0xff] }
 0x358   : > { %v1761_v6 = vld [vmem:[#allocation11 + $0x17f8] sm:$0xff]  ;;  %v1874_v0 = vld [vmem:[#allocation11 + $0x1b80] sm:$0xff] }
 0x359   : > { %2490 = vmatmul.mubr.f32.vlgmr.msra.gmra.mrb[0].mxu1 %v7987_v20  ;;  %5984 = vmatpush1.bf16.msra.mxu0 %v5983_v22  ;;  %v1811_v22 = vld [vmem:[#allocation11 + $0x1988] sm:$0xff]  ;;  %v1878_v4 = vld [vmem:[#allocation11 + $0x1ba0] sm:$0xff] }
 0x35a   : > { %5516 = vmatpush1.bf16.msra.mxu1 %v5515_v24  ;;  %5986 = vmatprep.subr.bf16.mxu0 %v5985_v25  ;;  %v1815_v24 = vld [vmem:[#allocation11 + $0x19a8] sm:$0xff]  ;;  %v6003_v25 = vpack.c.bf16 %v1720_v52, %v1716_v12  ;;  %v6021_v12 = vpack.c.bf16 %v1761_v6, %v1757_v13  ;;  %v1842_v52 = vld [vmem:[#allocation11 + $0x1a80] sm:$0xff]  ;;  %v1797_v13 = vld [vmem:[#allocation11 + $0x1918] sm:$0xff] }
 0x35b   : > { %5518 = vmatprep.subr.bf16.mxu1 %v5517_v30  ;;  %2495 = vmatprep.mubr.f32.mxu1 %v7990_v37  ;;  %v1724_v30 = vld [vmem:[#allocation11 + $0x16d0] sm:$0xff]  ;;  %v5537_v32 = vpack.c.bf16 %v1815_v24, %v1811_v22  ;;  %v1765_v22 = vld [vmem:[#allocation11 + $0x1818] sm:$0xff] }
 0x35c   : > { %v1769_v24 = vld [vmem:[#allocation11 + $0x1838] sm:$0xff] }
 0x35d   : > { %5988 = vmatpush1.bf16.msra.mxu0 %v5987_v38  ;;  %2496 = vmatmul.mubr.f32.gmra.mrb[2].mxu1 %v7994_v5  ;;  %v1819_v38 = vld [vmem:[#allocation11 + $0x19c8] sm:$0xff]  ;;  %v1801_v6 = vld [vmem:[#allocation11 + $0x1938] sm:$0xff] }
 0x35e   : > { %5520 = vmatpush1.bf16.msra.mxu1 %v5519_v40  ;;  %5990 = vmatprep.subr.bf16.mxu0 %v5989_v41  ;;  %v6007_v40 = vpack.c.bf16 %v1728_v50, %v1724_v30  ;;  %v5539_v41 = vpack.c.bf16 %v1814_v33, %v1810_v29  ;;  %v5541_v47 = vpack.c.bf16 %v1823_v39, %v1819_v38  ;;  %v1850_v50 = vld [vmem:[#allocation11 + $0x1ac0] sm:$0xff]  ;;  %v1768_v33 = vld [vmem:[#allocation11 + $0x1830] sm:$0xff]  ;;  %v1773_v38 = vld [vmem:[#allocation11 + $0x1858] sm:$0xff] }
 0x35f   : > { %5522 = vmatprep.subr.bf16.mxu1 %v5521_v45  ;;  %2566 = vmatprep.mubr.f32.mxu1 %v7998_v21  ;;  %v1732_v45 = vld [vmem:[#allocation11 + $0x1710] sm:$0xff]  ;;  %v5555_v29 = vpack.c.bf16 %v1846_v18, %v1842_v52  ;;  %v6025_v30 = vpack.c.bf16 %v1769_v24, %v1765_v22  ;;  %v1777_v39 = vld [vmem:[#allocation11 + $0x1878] sm:$0xff]  ;;  %v5559_v44 = vpack.c.bf16 %v1854_v36, %v1850_v50  ;;  %v1891_v22 = vld [vmem:[#allocation11 + $0x1c08] sm:$0xff] }
 0x360   : > { %v1800_v52 = vld [vmem:[#allocation11 + $0x1930] sm:$0xff]  ;;  %v1809_v18 = vld [vmem:[#allocation11 + $0x1978] sm:$0xff]  ;;  %v1895_v24 = vld [vmem:[#allocation11 + $0x1c28] sm:$0xff] }
 0x361   : > { %5992 = vmatpush1.bf16.msra.mxu0 %v5991_v10  ;;  %v1827_v10 = vld [vmem:[#allocation11 + $0x1a08] sm:$0xff]  ;;  %v1808_v50 = vld [vmem:[#allocation11 + $0x1970] sm:$0xff]  ;;  %v1817_v36 = vld [vmem:[#allocation11 + $0x19b8] sm:$0xff] }
 0x362   : > { %5524 = vmatpush1.bf16.msra.mxu1 %v5523_v51  ;;  %5994 = vmatprep.subr.bf16.mxu0 %v5993_v53  ;;  %v1831_v51 = vld [vmem:[#allocation11 + $0x1a28] sm:$0xff]  ;;  %v6011_v53 = vpack.c.bf16 %v1736_v14, %v1732_v45  ;;  %v6029_v45 = vpack.c.bf16 %v1777_v39, %v1773_v38  ;;  %v1858_v14 = vld [vmem:[#allocation11 + $0x1b00] sm:$0xff] }
 0x363   : > { %5526 = vmatprep.subr.bf16.mxu1 %v5525_v57  ;;  %v1740_v57 = vld [vmem:[#allocation11 + $0x1750] sm:$0xff]  ;;  %v5545_v59 = vpack.c.bf16 %v1831_v51, %v1827_v10  ;;  %v1781_v10 = vld [vmem:[#allocation11 + $0x1898] sm:$0xff]  ;;  %v5563_v56 = vpack.c.bf16 %v1862_v49, %v1858_v14  ;;  %v1899_v38 = vld [vmem:[#allocation11 + $0x1c48] sm:$0xff] }
 0x364   : > { %v1785_v51 = vld [vmem:[#allocation11 + $0x18b8] sm:$0xff]  ;;  %v1903_v39 = vld [vmem:[#allocation11 + $0x1c68] sm:$0xff]  ;;  %v1812_v14 = vld [vmem:[#allocation11 + $0x1990] sm:$0xff] }
 0x365   : > { %5996 = vmatpush1.bf16.msra.mxu0 %v5995_v1  ;;  %v1835_v1 = vld [vmem:[#allocation11 + $0x1a48] sm:$0xff]  ;;  %v1821_v49 = vld [vmem:[#allocation11 + $0x19d8] sm:$0xff] }
 0x366   : > { %5528 = vmatpush1.bf16.msra.mxu1 %v5527_v60  ;;  %5998 = vmatprep.subr.bf16.mxu0 %v5997_v23  ;;  %v1839_v60 = vld [vmem:[#allocation11 + $0x1a68] sm:$0xff]  ;;  %v6015_v23 = vpack.c.bf16 %v1744_v58, %v1740_v57  ;;  %v6033_v57 = vpack.c.bf16 %v1785_v51, %v1781_v10  ;;  %v1866_v58 = vld [vmem:[#allocation11 + $0x1b40] sm:$0xff]  ;;  %v1825_v10 = vld [vmem:[#allocation11 + $0x19f8] sm:$0xff] }
 0x367   : > { %5530 = vmatprep.subr.bf16.mxu1 %v5529_v31  ;;  %v1748_v31 = vld [vmem:[#allocation11 + $0x1790] sm:$0xff]  ;;  %v5549_v42 = vpack.c.bf16 %v1839_v60, %v1835_v1  ;;  %v1789_v1 = vld [vmem:[#allocation11 + $0x18d8] sm:$0xff]  ;;  %v1907_v51 = vld [vmem:[#allocation11 + $0x1c88] sm:$0xff] }
 0x368   : > { %v1793_v60 = vld [vmem:[#allocation11 + $0x18f8] sm:$0xff] }
 0x369   : > { %6000 = vmatpush1.bf16.msra.mxu0 %v5999_v7  ;;  %v1843_v7 = vld [vmem:[#allocation11 + $0x1a88] sm:$0xff] }
 0x36a   : > { %5532 = vmatpush1.bf16.msra.mxu1 %v5531_v8  ;;  %6002 = vmatprep.subr.bf16.mxu0 %v6001_v9  ;;  %v1847_v8 = vld [vmem:[#allocation11 + $0x1aa8] sm:$0xff]  ;;  %v6019_v9 = vpack.c.bf16 %v1752_v3, %v1748_v31  ;;  %v1788_v31 = vld [vmem:[#allocation11 + $0x18d0] sm:$0xff] }
 0x36b   : > { %5534 = vmatprep.subr.bf16.mxu1 %v5533_v15  ;;  %v1756_v15 = vld [vmem:[#allocation11 + $0x17d0] sm:$0xff]  ;;  %v5553_v17 = vpack.c.bf16 %v1847_v8, %v1843_v7  ;;  %v1883_v7 = vld [vmem:[#allocation11 + $0x1bc8] sm:$0xff] }
 0x36c   : > { %v1792_v3 = vld [vmem:[#allocation11 + $0x18f0] sm:$0xff]  ;;  %v1887_v8 = vld [vmem:[#allocation11 + $0x1be8] sm:$0xff] }
 0x36d   : > { %6004 = vmatpush1.bf16.msra.mxu0 %v6003_v25  ;;  %v1851_v25 = vld [vmem:[#allocation11 + $0x1ac8] sm:$0xff] }
 0x36e   : > { %5536 = vmatpush1.bf16.msra.mxu1 %v5535_v27  ;;  %6006 = vmatprep.subr.bf16.mxu0 %v6005_v28  ;;  %v1855_v27 = vld [vmem:[#allocation11 + $0x1ae8] sm:$0xff]  ;;  %v6023_v28 = vpack.c.bf16 %v1760_v16, %v1756_v15  ;;  %v5573_v15 = vpack.c.bf16 %v1887_v8, %v1883_v7  ;;  %v1886_v16 = vld [vmem:[#allocation11 + $0x1be0] sm:$0xff]  ;;  %v1837_v7 = vld [vmem:[#allocation11 + $0x1a58] sm:$0xff] }
 0x36f   : > { %5538 = vmatprep.subr.bf16.mxu1 %v5537_v32  ;;  %v1764_v32 = vld [vmem:[#allocation11 + $0x1810] sm:$0xff]  ;;  %v5557_v34 = vpack.c.bf16 %v1855_v27, %v1851_v25  ;;  %v1841_v8 = vld [vmem:[#allocation11 + $0x1a78] sm:$0xff] }
 0x371   : > { %6008 = vmatpush1.bf16.msra.mxu0 %v6007_v40  ;;  %v1859_v40 = vld [vmem:[#allocation11 + $0x1b08] sm:$0xff] }
 0x372   : > { %5540 = vmatpush1.bf16.msra.mxu1 %v5539_v41  ;;  %6010 = vmatprep.subr.bf16.mxu0 %v6009_v43  ;;  %v1863_v41 = vld [vmem:[#allocation11 + $0x1b28] sm:$0xff]  ;;  %v6027_v43 = vpack.c.bf16 %v1768_v33, %v1764_v32  ;;  %v5577_v32 = vpack.c.bf16 %v1895_v24, %v1891_v22  ;;  %v1894_v33 = vld [vmem:[#allocation11 + $0x1c20] sm:$0xff]  ;;  %v1845_v22 = vld [vmem:[#allocation11 + $0x1a98] sm:$0xff] }
 0x373   : > { %5542 = vmatprep.subr.bf16.mxu1 %v5541_v47  ;;  %v1772_v47 = vld [vmem:[#allocation11 + $0x1850] sm:$0xff]  ;;  %v5561_v46 = vpack.c.bf16 %v1863_v41, %v1859_v40  ;;  %v1849_v24 = vld [vmem:[#allocation11 + $0x1ab8] sm:$0xff] }
 0x374   : > { %v8007_v40 = vld [vmem:[%s7830_s26 + $0x60] sm:$0xff] }
 0x375   : > { %6012 = vmatpush1.bf16.msra.mxu0 %v6011_v53  ;;  %v1867_v53 = vld [vmem:[#allocation11 + $0x1b48] sm:$0xff] }
 0x376   : > { %5544 = vmatpush1.bf16.msra.mxu1 %v5543_v54  ;;  %6014 = vmatprep.subr.bf16.mxu0 %v6013_v55  ;;  %v1871_v54 = vld [vmem:[#allocation11 + $0x1b68] sm:$0xff]  ;;  %v6031_v55 = vpack.c.bf16 %v1776_v48, %v1772_v47  ;;  %v1816_v47 = vld [vmem:[#allocation11 + $0x19b0] sm:$0xff]  ;;  %v5581_v48 = vpack.c.bf16 %v1903_v39, %v1899_v38  ;;  %v1853_v38 = vld [vmem:[#allocation11 + $0x1ad8] sm:$0xff] }
 0x377   : > { %5546 = vmatprep.subr.bf16.mxu1 %v5545_v59  ;;  %v1780_v59 = vld [vmem:[#allocation11 + $0x1890] sm:$0xff]  ;;  %v5565_v26 = vpack.c.bf16 %v1871_v54, %v1867_v53  ;;  %v1911_v53 = vld [vmem:[#allocation11 + $0x1ca8] sm:$0xff]  ;;  %v1857_v39 = vld [vmem:[#allocation11 + $0x1af8] sm:$0xff] }
 0x378   : > { %v8010_v54 = vld [vmem:[%s7830_s26 + $0xe8] sm:$0xff] }
 0x379   : > { %6016 = vmatpush1.bf16.msra.mxu0 %v6015_v23  ;;  %v1875_v23 = vld [vmem:[#allocation11 + $0x1b88] sm:$0xff] }
 0x37a   : > { %5548 = vmatpush1.bf16.msra.mxu1 %v5547_v62  ;;  %6018 = vmatprep.subr.bf16.mxu0 %v6017_v63  ;;  %v6035_v62 = vpack.c.bf16 %v1784_v35, %v1780_v59  ;;  %v6037_v63 = vpack.c.bf16 %v1793_v60, %v1789_v1  ;;  %v1820_v59 = vld [vmem:[#allocation11 + $0x19d0] sm:$0xff]  ;;  %v1910_v1 = vld [vmem:[#allocation11 + $0x1ca0] sm:$0xff]  ;;  %v1829_v60 = vld [vmem:[#allocation11 + $0x1a18] sm:$0xff] }
 0x37b   : > { %5550 = vmatprep.subr.bf16.mxu1 %v5549_v42  ;;  %v1824_v35 = vld [vmem:[#allocation11 + $0x19f0] sm:$0xff] }
 0x37d   : > { %6020 = vmatpush1.bf16.msra.mxu0 %v6019_v9  ;;  %v5571_v9 = vpack.c.bf16 %v1878_v4, %v1874_v0  ;;  %v1832_v4 = vld [vmem:[#allocation11 + $0x1a30] sm:$0xff] }
 0x37e   : > { %5552 = vmatpush1.bf16.msra.mxu1 %v5551_v11  ;;  %6022 = vmatprep.subr.bf16.mxu0 %v6021_v12  ;;  %v1882_v11 = vld [vmem:[#allocation11 + $0x1bc0] sm:$0xff]  ;;  %v1796_v12 = vld [vmem:[#allocation11 + $0x1910] sm:$0xff] }
 0x37f   : > { %5554 = vmatprep.subr.bf16.mxu1 %v5553_v17  ;;  %v1805_v17 = vld [vmem:[#allocation11 + $0x1958] sm:$0xff]  ;;  %v6043_v25 = vpack.c.bf16 %v1800_v52, %v1796_v12  ;;  %v5575_v27 = vpack.c.bf16 %v1886_v16, %v1882_v11  ;;  %v6061_v12 = vpack.c.bf16 %v1841_v8, %v1837_v7  ;;  %v1922_v52 = vld [vmem:[#allocation11 + $0x1d00] sm:$0xff]  ;;  %v1840_v16 = vld [vmem:[#allocation11 + $0x1a70] sm:$0xff] }
 0x380   : > { %v1958_v8 = vld [vmem:[#allocation11 + $0x1e20] sm:$0xff] }
 0x381   : > { %6024 = vmatpush1.bf16.msra.mxu0 %v6023_v28  ;;  %v6045_v28 = vpack.c.bf16 %v1809_v18, %v1805_v17  ;;  %v1926_v18 = vld [vmem:[#allocation11 + $0x1d20] sm:$0xff] }
 0x382   : > { %5556 = vmatpush1.bf16.msra.mxu1 %v5555_v29  ;;  %6026 = vmatprep.subr.bf16.mxu0 %v6025_v30  ;;  %v1890_v29 = vld [vmem:[#allocation11 + $0x1c00] sm:$0xff]  ;;  %v1804_v30 = vld [vmem:[#allocation11 + $0x1950] sm:$0xff] }
 0x383   : > { %5558 = vmatprep.subr.bf16.mxu1 %v5557_v34  ;;  %v1813_v34 = vld [vmem:[#allocation11 + $0x1998] sm:$0xff]  ;;  %v6047_v41 = vpack.c.bf16 %v1808_v50, %v1804_v30  ;;  %v6065_v30 = vpack.c.bf16 %v1849_v24, %v1845_v22  ;;  %v1930_v50 = vld [vmem:[#allocation11 + $0x1d40] sm:$0xff] }
 0x384   : > { %3106 = vmatmul.mubr.f32.vlgmr.msra.gmra.mrb[6].mxu0 %v7987_v20  ;;  %v1879_v20 = vld [vmem:[#allocation11 + $0x1ba8] sm:$0xff]  ;;  %v1966_v24 = vld [vmem:[#allocation11 + $0x1e60] sm:$0xff] }
 0x385   : > { %6028 = vmatpush1.bf16.msra.mxu0 %v6027_v43  ;;  %3111 = vmatprep.mubr.f32.mxu0 %v7990_v37  ;;  %v5567_v37 = vpack.c.bf16 %v1870_v19, %v1866_v58  ;;  %v5569_v42 = vpack.c.bf16 %v1879_v20, %v1875_v23  ;;  %v5579_v43 = vpack.c.bf16 %v1894_v33, %v1890_v29  ;;  %v1833_v23 = vld [vmem:[#allocation11 + $0x1a38] sm:$0xff]  ;;  %v1915_v20 = vld [vmem:[#allocation11 + $0x1cc8] sm:$0xff]  ;;  %v1848_v33 = vld [vmem:[#allocation11 + $0x1ab0] sm:$0xff] }
 0x386   : > { %5560 = vmatpush1.bf16.msra.mxu1 %v5559_v44  ;;  %6030 = vmatprep.subr.bf16.mxu0 %v6029_v45  ;;  %v6049_v44 = vpack.c.bf16 %v1817_v36, %v1813_v34  ;;  %v1898_v45 = vld [vmem:[#allocation11 + $0x1c40] sm:$0xff]  ;;  %v6053_v58 = vpack.c.bf16 %v1825_v10, %v1821_v49  ;;  %v5585_v19 = vpack.c.bf16 %v1911_v53, %v1907_v51  ;;  %v1861_v51 = vld [vmem:[#allocation11 + $0x1b18] sm:$0xff] }
 0x387   : > { %5562 = vmatprep.subr.bf16.mxu1 %v5561_v46  ;;  %v1902_v46 = vld [vmem:[#allocation11 + $0x1c60] sm:$0xff]  ;;  %v5595_v29 = vpack.c.bf16 %v1926_v18, %v1922_v52  ;;  %v1865_v53 = vld [vmem:[#allocation11 + $0x1b38] sm:$0xff]  ;;  %v1880_v18 = vld [vmem:[#allocation11 + $0x1bb0] sm:$0xff] }
 0x388   : > { %3112 = vmatmul.mubr.f32.gmra.mrb[8].mxu0 %v7994_v5  ;;  %v6039_v5 = vpack.c.bf16 %v1792_v3, %v1788_v31  ;;  %v6057_v31 = vpack.c.bf16 %v1833_v23, %v1829_v60  ;;  %v1914_v3 = vld [vmem:[#allocation11 + $0x1cc0] sm:$0xff] }
 0x389   : > { %6032 = vmatpush1.bf16.msra.mxu0 %v6031_v55  ;;  %3182 = vmatprep.mubr.f32.mxu0 %v7998_v21  ;;  %v6041_v21 = vpack.c.bf16 %v1801_v6, %v1797_v13  ;;  %v6051_v55 = vpack.c.bf16 %v1816_v47, %v1812_v14  ;;  %v1918_v6 = vld [vmem:[#allocation11 + $0x1ce0] sm:$0xff]  ;;  %v6069_v14 = vpack.c.bf16 %v1857_v39, %v1853_v38 }
 0x38a   : > { %5564 = vmatpush1.bf16.msra.mxu1 %v5563_v56  ;;  %6034 = vmatprep.subr.bf16.mxu0 %v6033_v57  ;;  %v1906_v56 = vld [vmem:[#allocation11 + $0x1c80] sm:$0xff]  ;;  %v5583_v57 = vpack.c.bf16 %v1902_v46, %v1898_v45  ;;  %v5591_v11 = vpack.c.bf16 %v1918_v6, %v1914_v3  ;;  %v1856_v46 = vld [vmem:[#allocation11 + $0x1af0] sm:$0xff] }
 0x38b   : > { %5566 = vmatprep.subr.bf16.mxu1 %v5565_v26  ;;  %v8014_v26 = vld [vmem:[%s7830_s26 + $0xe0] sm:$0xff]  ;;  %v5587_v0 = vpack.c.bf16 %v1910_v1, %v1906_v56  ;;  %v1934_v36 = vld [vmem:[#allocation11 + $0x1d60] sm:$0xff] }
 0x38c   : > { %v5599_v45 = vpack.c.bf16 %v1934_v36, %v1930_v50  ;;  %v1938_v47 = vld [vmem:[#allocation11 + $0x1d80] sm:$0xff]  ;;  %v1951_v56 = vld [vmem:[#allocation11 + $0x1de8] sm:$0xff]  ;;  %v1864_v1 = vld [vmem:[#allocation11 + $0x1b30] sm:$0xff] }
 0x38d   : > { %6036 = vmatpush1.bf16.msra.mxu0 %v6035_v62  ;;  %v1919_v62 = vld [vmem:[#allocation11 + $0x1ce8] sm:$0xff]  ;;  %v1942_v10 = vld [vmem:[#allocation11 + $0x1da0] sm:$0xff]  ;;  %v1872_v6 = vld [vmem:[#allocation11 + $0x1b70] sm:$0xff] }
 0x38e   : > { %5568 = vmatpush1.bf16.msra.mxu1 %v5567_v37  ;;  %6038 = vmatprep.subr.bf16.mxu0 %v6037_v63  ;;  %v8018_v37 = vld [vmem:[%s7830_s26 + $0x78] sm:$0xff]  ;;  %v6055_v63 = vpack.c.bf16 %v1824_v35, %v1820_v59  ;;  %v5589_v13 = vpack.c.bf16 %v1919_v62, %v1915_v20  ;;  %v6073_v59 = vpack.c.bf16 %v1865_v53, %v1861_v51  ;;  %v1869_v20 = vld [vmem:[#allocation11 + $0x1b58] sm:$0xff]  ;;  %v1888_v36 = vld [vmem:[#allocation11 + $0x1bf0] sm:$0xff] }
 0x38f   : > { %5570 = vmatprep.subr.bf16.mxu1 %v5569_v42  ;;  %v1828_v42 = vld [vmem:[#allocation11 + $0x1a10] sm:$0xff]  ;;  %v1946_v35 = vld [vmem:[#allocation11 + $0x1dc0] sm:$0xff]  ;;  %v1873_v62 = vld [vmem:[#allocation11 + $0x1b78] sm:$0xff] }
 0x390   : > { %v1950_v23 = vld [vmem:[#allocation11 + $0x1de0] sm:$0xff] }
 0x391   : > { %6040 = vmatpush1.bf16.msra.mxu0 %v6039_v5  ;;  %v1923_v5 = vld [vmem:[#allocation11 + $0x1d08] sm:$0xff]  ;;  %v5607_v3 = vpack.c.bf16 %v1950_v23, %v1946_v35  ;;  %v1974_v39 = vld [vmem:[#allocation11 + $0x1ea0] sm:$0xff]  ;;  %v1904_v23 = vld [vmem:[#allocation11 + $0x1c70] sm:$0xff] }
 0x392   : > { %5572 = vmatpush1.bf16.msra.mxu1 %v5571_v9  ;;  %6042 = vmatprep.subr.bf16.mxu0 %v6041_v21  ;;  %v1927_v9 = vld [vmem:[#allocation11 + $0x1d28] sm:$0xff]  ;;  %v6059_v21 = vpack.c.bf16 %v1832_v4, %v1828_v42  ;;  %v6077_v42 = vpack.c.bf16 %v1873_v62, %v1869_v20  ;;  %v1954_v4 = vld [vmem:[#allocation11 + $0x1e00] sm:$0xff] }
 0x393   : > { %5574 = vmatprep.subr.bf16.mxu1 %v5573_v15  ;;  %v1836_v15 = vld [vmem:[#allocation11 + $0x1a50] sm:$0xff]  ;;  %v5593_v17 = vpack.c.bf16 %v1927_v9, %v1923_v5  ;;  %v1877_v5 = vld [vmem:[#allocation11 + $0x1b98] sm:$0xff]  ;;  %v5611_v52 = vpack.c.bf16 %v1958_v8, %v1954_v4  ;;  %v1982_v53 = vld [vmem:[#allocation11 + $0x1ee0] sm:$0xff] }
 0x394   : > { %v1881_v9 = vld [vmem:[#allocation11 + $0x1bb8] sm:$0xff]  ;;  %v1990_v62 = vld [vmem:[#allocation11 + $0x1f20] sm:$0xff]  ;;  %v1912_v8 = vld [vmem:[#allocation11 + $0x1cb0] sm:$0xff] }
 0x395   : > { %6044 = vmatpush1.bf16.msra.mxu0 %v6043_v25  ;;  %v1931_v25 = vld [vmem:[#allocation11 + $0x1d48] sm:$0xff] }
 0x396   : > { %5576 = vmatpush1.bf16.msra.mxu1 %v5575_v27  ;;  %6046 = vmatprep.subr.bf16.mxu0 %v6045_v28  ;;  %v1935_v27 = vld [vmem:[#allocation11 + $0x1d68] sm:$0xff]  ;;  %v6063_v28 = vpack.c.bf16 %v1840_v16, %v1836_v15  ;;  %v6081_v15 = vpack.c.bf16 %v1881_v9, %v1877_v5  ;;  %v1962_v16 = vld [vmem:[#allocation11 + $0x1e40] sm:$0xff] }
 0x397   : > { %5578 = vmatprep.subr.bf16.mxu1 %v5577_v32  ;;  %v1844_v32 = vld [vmem:[#allocation11 + $0x1a90] sm:$0xff]  ;;  %v5597_v34 = vpack.c.bf16 %v1935_v27, %v1931_v25  ;;  %v1885_v25 = vld [vmem:[#allocation11 + $0x1bd8] sm:$0xff]  ;;  %v5615_v50 = vpack.c.bf16 %v1966_v24, %v1962_v16  ;;  %v1998_v9 = vld [vmem:[#allocation11 + $0x1f60] sm:$0xff] }
 0x398   : > { %v1889_v27 = vld [vmem:[#allocation11 + $0x1bf8] sm:$0xff]  ;;  %v2002_v16 = vld [vmem:[#allocation11 + $0x1f80] sm:$0xff] }
 0x399   : > { %2567 = vmatmul.mubr.f32.vlgmr.msra.gmra.mrb[0].mxu1 %v8007_v40  ;;  %6048 = vmatpush1.bf16.msra.mxu0 %v6047_v41  ;;  %v1939_v41 = vld [vmem:[#allocation11 + $0x1d88] sm:$0xff]  ;;  %v2006_v24 = vld [vmem:[#allocation11 + $0x1fa0] sm:$0xff] }
 0x39a   : > { %5580 = vmatpush1.bf16.msra.mxu1 %v5579_v43  ;;  %6050 = vmatprep.subr.bf16.mxu0 %v6049_v44  ;;  %v1943_v43 = vld [vmem:[#allocation11 + $0x1da8] sm:$0xff]  ;;  %v6067_v44 = vpack.c.bf16 %v1848_v33, %v1844_v32  ;;  %v6085_v32 = vpack.c.bf16 %v1889_v27, %v1885_v25  ;;  %v1970_v33 = vld [vmem:[#allocation11 + $0x1e80] sm:$0xff]  ;;  %v1925_v25 = vld [vmem:[#allocation11 + $0x1d18] sm:$0xff] }
 0x39b   : > { %5582 = vmatprep.subr.bf16.mxu1 %v5581_v48  ;;  %2572 = vmatprep.mubr.f32.mxu1 %v8010_v54  ;;  %v1852_v48 = vld [vmem:[#allocation11 + $0x1ad0] sm:$0xff]  ;;  %v5601_v49 = vpack.c.bf16 %v1943_v43, %v1939_v41  ;;  %v1893_v41 = vld [vmem:[#allocation11 + $0x1c18] sm:$0xff] }
 0x39c   : > { %v1897_v43 = vld [vmem:[#allocation11 + $0x1c38] sm:$0xff] }
 0x39d   : > { %6052 = vmatpush1.bf16.msra.mxu0 %v6051_v55  ;;  %2573 = vmatmul.mubr.f32.gmra.mrb[2].mxu1 %v8014_v26  ;;  %v1947_v55 = vld [vmem:[#allocation11 + $0x1dc8] sm:$0xff]  ;;  %v1929_v27 = vld [vmem:[#allocation11 + $0x1d38] sm:$0xff] }
 0x39e   : > { %5584 = vmatpush1.bf16.msra.mxu1 %v5583_v57  ;;  %6054 = vmatprep.subr.bf16.mxu0 %v6053_v58  ;;  %v6071_v57 = vpack.c.bf16 %v1856_v46, %v1852_v48  ;;  %v5603_v58 = vpack.c.bf16 %v1942_v10, %v1938_v47  ;;  %v5605_v60 = vpack.c.bf16 %v1951_v56, %v1947_v55  ;;  %v1978_v46 = vld [vmem:[#allocation11 + $0x1ec0] sm:$0xff]  ;;  %v1896_v10 = vld [vmem:[#allocation11 + $0x1c30] sm:$0xff]  ;;  %v1901_v55 = vld [vmem:[#allocation11 + $0x1c58] sm:$0xff] }
 0x39f   : > { %5586 = vmatprep.subr.bf16.mxu1 %v5585_v19  ;;  %2643 = vmatprep.mubr.f32.mxu1 %v8018_v37  ;;  %v1860_v19 = vld [vmem:[#allocation11 + $0x1b10] sm:$0xff]  ;;  %v5619_v47 = vpack.c.bf16 %v1974_v39, %v1970_v33  ;;  %v6089_v48 = vpack.c.bf16 %v1897_v43, %v1893_v41  ;;  %v1905_v56 = vld [vmem:[#allocation11 + $0x1c78] sm:$0xff]  ;;  %v5623_v35 = vpack.c.bf16 %v1982_v53, %v1978_v46  ;;  %v3296_v41 = vld [vmem:[#allocation14 + $0x80] sm:$0xff] }
 0x3a0   : > { %v1928_v33 = vld [vmem:[#allocation11 + $0x1d30] sm:$0xff]  ;;  %v1937_v39 = vld [vmem:[#allocation11 + $0x1d78] sm:$0xff] }
 0x3a1   : > { %6056 = vmatpush1.bf16.msra.mxu0 %v6055_v63  ;;  %v1955_v63 = vld [vmem:[#allocation11 + $0x1e08] sm:$0xff]  ;;  %v1941_v46 = vld [vmem:[#allocation11 + $0x1d98] sm:$0xff] }
 0x3a2   : > { %5588 = vmatpush1.bf16.msra.mxu1 %v5587_v0  ;;  %6058 = vmatprep.subr.bf16.mxu0 %v6057_v31  ;;  %v1959_v0 = vld [vmem:[#allocation11 + $0x1e28] sm:$0xff]  ;;  %v6075_v31 = vpack.c.bf16 %v1864_v1, %v1860_v19  ;;  %v6093_v19 = vpack.c.bf16 %v1905_v56, %v1901_v55  ;;  %v1986_v1 = vld [vmem:[#allocation11 + $0x1f00] sm:$0xff]  ;;  %v3298_v56 = vld [vmem:[#allocation14 + $0x90] sm:$0xff] }
 0x3a3   : > { %5590 = vmatprep.subr.bf16.mxu1 %v5589_v13  ;;  %v1868_v13 = vld [vmem:[#allocation11 + $0x1b50] sm:$0xff]  ;;  %v5609_v7 = vpack.c.bf16 %v1959_v0, %v1955_v63  ;;  %v1909_v63 = vld [vmem:[#allocation11 + $0x1c98] sm:$0xff]  ;;  %v5627_v4 = vpack.c.bf16 %v1990_v62, %v1986_v1  ;;  %v8030_v1 = vld [vmem:[%s7830_s26 + $0xf8] sm:$0xff] }
 0x3a4   : > { %v1913_v0 = vld [vmem:[#allocation11 + $0x1cb8] sm:$0xff]  ;;  %v3297_v43 = vld [vmem:[#allocation14 + $0x88] sm:$0xff] }
 0x3a5   : > { %6060 = vmatpush1.bf16.msra.mxu0 %v6059_v21  ;;  %v1963_v21 = vld [vmem:[#allocation11 + $0x1e48] sm:$0xff] }
 0x3a6   : > { %5592 = vmatpush1.bf16.msra.mxu1 %v5591_v11  ;;  %6062 = vmatprep.subr.bf16.mxu0 %v6061_v12  ;;  %v1967_v11 = vld [vmem:[#allocation11 + $0x1e68] sm:$0xff]  ;;  %v6079_v12 = vpack.c.bf16 %v1872_v6, %v1868_v13  ;;  %v6097_v13 = vpack.c.bf16 %v1913_v0, %v1909_v63  ;;  %v1994_v6 = vld [vmem:[#allocation11 + $0x1f40] sm:$0xff]  ;;  %v3282_v63 = vld [vmem:[#allocation14 + $0x10] sm:$0xff] }
 0x3a7   : > { %5594 = vmatprep.subr.bf16.mxu1 %v5593_v17  ;;  %v1876_v17 = vld [vmem:[#allocation11 + $0x1b90] sm:$0xff]  ;;  %v5613_v22 = vpack.c.bf16 %v1967_v11, %v1963_v21  ;;  %v1917_v21 = vld [vmem:[#allocation11 + $0x1cd8] sm:$0xff] }
 0x3a8   : > { %v1921_v11 = vld [vmem:[#allocation11 + $0x1cf8] sm:$0xff]  ;;  %v3281_v53 = vld [vmem:[#allocation14 + $0x8] sm:$0xff] }
 0x3a9   : > { %6064 = vmatpush1.bf16.msra.mxu0 %v6063_v28  ;;  %v1971_v28 = vld [vmem:[#allocation11 + $0x1e88] sm:$0xff]  ;;  %v3283_v0 = vld [vmem:[#allocation14 + $0x18] sm:$0xff] }
 0x3aa   : > { %5596 = vmatpush1.bf16.msra.mxu1 %v5595_v29  ;;  %6066 = vmatprep.subr.bf16.mxu0 %v6065_v30  ;;  %v1975_v29 = vld [vmem:[#allocation11 + $0x1ea8] sm:$0xff]  ;;  %v6083_v30 = vpack.c.bf16 %v1880_v18, %v1876_v17  ;;  %v1916_v17 = vld [vmem:[#allocation11 + $0x1cd0] sm:$0xff] }
 0x3ab   : > { %5598 = vmatprep.subr.bf16.mxu1 %v5597_v34  ;;  %v1884_v34 = vld [vmem:[#allocation11 + $0x1bd0] sm:$0xff]  ;;  %v5617_v38 = vpack.c.bf16 %v1975_v29, %v1971_v28  ;;  %v2011_v28 = vld [vmem:[#allocation11 + $0x1fc8] sm:$0xff] }
 0x3ac   : > { %v1920_v18 = vld [vmem:[#allocation11 + $0x1cf0] sm:$0xff]  ;;  %v2015_v29 = vld [vmem:[#allocation11 + $0x1fe8] sm:$0xff] }
 0x3ad   : > { %6068 = vmatpush1.bf16.msra.mxu0 %v6067_v44  ;;  %v1979_v44 = vld [vmem:[#allocation11 + $0x1ec8] sm:$0xff] }
 0x3ae   : > { %5600 = vmatpush1.bf16.msra.mxu1 %v5599_v45  ;;  %6070 = vmatprep.subr.bf16.mxu0 %v6069_v14  ;;  %v1983_v45 = vld [vmem:[#allocation11 + $0x1ee8] sm:$0xff]  ;;  %v6087_v14 = vpack.c.bf16 %v1888_v36, %v1884_v34  ;;  %v5637_v34 = vpack.c.bf16 %v2015_v29, %v2011_v28  ;;  %v2014_v36 = vld [vmem:[#allocation11 + $0x1fe0] sm:$0xff] }
 0x3af   : > { %5602 = vmatprep.subr.bf16.mxu1 %v5601_v49  ;;  %v1892_v49 = vld [vmem:[#allocation11 + $0x1c10] sm:$0xff]  ;;  %v5621_v51 = vpack.c.bf16 %v1983_v45, %v1979_v44  ;;  %v3287_v28 = vld [vmem:[#allocation14 + $0x38] sm:$0xff] }
 0x3b1   : > { %6072 = vmatpush1.bf16.msra.mxu0 %v6071_v57  ;;  %v1987_v57 = vld [vmem:[#allocation11 + $0x1f08] sm:$0xff] }
 0x3b2   : > { %5604 = vmatpush1.bf16.msra.mxu1 %v5603_v58  ;;  %6074 = vmatprep.subr.bf16.mxu0 %v6073_v59  ;;  %v1991_v58 = vld [vmem:[#allocation11 + $0x1f28] sm:$0xff]  ;;  %v6091_v59 = vpack.c.bf16 %v1896_v10, %v1892_v49  ;;  %v1945_v49 = vld [vmem:[#allocation11 + $0x1db8] sm:$0xff]  ;;  %v6153_v10 = vpack.c.bf16 %v3297_v43, %v3296_v41 }
 0x3b3   : > { %5606 = vmatprep.subr.bf16.mxu1 %v5605_v60  ;;  %v1900_v60 = vld [vmem:[#allocation11 + $0x1c50] sm:$0xff]  ;;  %v5625_v20 = vpack.c.bf16 %v1991_v58, %v1987_v57  ;;  %v3299_v57 = vld [vmem:[#allocation14 + $0x98] sm:$0xff] }
 0x3b4   : > { %v8027_v58 = vld [vmem:[%s7830_s26 + $0x70] sm:$0xff]  ;;  %v6157_v62 = vpack.c.bf16 %v3299_v57, %v3298_v56  ;;  %v3289_v41 = vld [vmem:[#allocation14 + $0x48] sm:$0xff] }
 0x3b5   : > { %6076 = vmatpush1.bf16.msra.mxu0 %v6075_v31  ;;  %v1995_v31 = vld [vmem:[#allocation11 + $0x1f48] sm:$0xff] }
 0x3b6   : > { %5608 = vmatpush1.bf16.msra.mxu1 %v5607_v3  ;;  %6078 = vmatprep.subr.bf16.mxu0 %v6077_v42  ;;  %v1999_v3 = vld [vmem:[#allocation11 + $0x1f68] sm:$0xff]  ;;  %v6095_v42 = vpack.c.bf16 %v1904_v23, %v1900_v60  ;;  %v1949_v60 = vld [vmem:[#allocation11 + $0x1dd8] sm:$0xff] }
 0x3b7   : > { %5610 = vmatprep.subr.bf16.mxu1 %v5609_v7  ;;  %v1908_v7 = vld [vmem:[#allocation11 + $0x1c90] sm:$0xff]  ;;  %v5629_v5 = vpack.c.bf16 %v1999_v3, %v1995_v31  ;;  %v1953_v23 = vld [vmem:[#allocation11 + $0x1df8] sm:$0xff]  ;;  %v3300_v3 = vld [vmem:[#allocation14 + $0xa0] sm:$0xff] }
 0x3b8   : > { %v3308_v57 = vld [vmem:[#allocation14 + $0xe0] sm:$0xff] }
 0x3b9   : > { %6080 = vmatpush1.bf16.msra.mxu0 %v6079_v12  ;;  %v2003_v12 = vld [vmem:[#allocation11 + $0x1f88] sm:$0xff] }
 0x3ba   : > { %5612 = vmatpush1.bf16.msra.mxu1 %v5611_v52  ;;  %6082 = vmatprep.subr.bf16.mxu0 %v6081_v15  ;;  %v6099_v52 = vpack.c.bf16 %v1912_v8, %v1908_v7  ;;  %v6101_v15 = vpack.c.bf16 %v1921_v11, %v1917_v21  ;;  %v1952_v7 = vld [vmem:[#allocation11 + $0x1df0] sm:$0xff]  ;;  %v1957_v8 = vld [vmem:[#allocation11 + $0x1e18] sm:$0xff]  ;;  %v3284_v11 = vld [vmem:[#allocation14 + $0x20] sm:$0xff] }
 0x3bb   : > { %5614 = vmatprep.subr.bf16.mxu1 %v5613_v22 }
 0x3bd   : > { %6084 = vmatpush1.bf16.msra.mxu0 %v6083_v30  ;;  %v5635_v30 = vpack.c.bf16 %v2006_v24, %v2002_v16  ;;  %v1956_v16 = vld [vmem:[#allocation11 + $0x1e10] sm:$0xff] }
 0x3be   : > { %5616 = vmatpush1.bf16.msra.mxu1 %v5615_v50  ;;  %6086 = vmatprep.subr.bf16.mxu0 %v6085_v32  ;;  %v2010_v50 = vld [vmem:[#allocation11 + $0x1fc0] sm:$0xff]  ;;  %v1924_v32 = vld [vmem:[#allocation11 + $0x1d10] sm:$0xff] }
 0x3bf   : > { %5618 = vmatprep.subr.bf16.mxu1 %v5617_v38  ;;  %v1933_v38 = vld [vmem:[#allocation11 + $0x1d58] sm:$0xff]  ;;  %v6107_v44 = vpack.c.bf16 %v1928_v33, %v1924_v32  ;;  %v5639_v45 = vpack.c.bf16 %v2014_v36, %v2010_v50  ;;  %v1964_v50 = vld [vmem:[#allocation11 + $0x1e50] sm:$0xff] }
 0x3c0   : > { %v1968_v32 = vld [vmem:[#allocation11 + $0x1e70] sm:$0xff]  ;;  %v1973_v33 = vld [vmem:[#allocation11 + $0x1e98] sm:$0xff] }
 0x3c1   : > { %6088 = vmatpush1.bf16.msra.mxu0 %v6087_v14  ;;  %v6109_v14 = vpack.c.bf16 %v1937_v39, %v1933_v38  ;;  %v3288_v39 = vld [vmem:[#allocation14 + $0x40] sm:$0xff]  ;;  %v6127_v43 = vpack.c.bf16 %v1968_v32, %v1964_v50  ;;  %v3294_v50 = vld [vmem:[#allocation14 + $0x70] sm:$0xff]  ;;  %v3295_v32 = vld [vmem:[#allocation14 + $0x78] sm:$0xff] }
 0x3c2   : > { %5620 = vmatpush1.bf16.msra.mxu1 %v5619_v47  ;;  %6090 = vmatprep.subr.bf16.mxu0 %v6089_v48  ;;  %v1932_v47 = vld [vmem:[#allocation11 + $0x1d50] sm:$0xff] }
 0x3c3   : > { %5622 = vmatprep.subr.bf16.mxu1 %v5621_v51  ;;  %v1936_v48 = vld [vmem:[#allocation11 + $0x1d70] sm:$0xff]  ;;  %v3280_v51 = vld [vmem:[#allocation14] sm:$0xff] }
 0x3c4   : > { %3183 = vmatmul.mubr.f32.vlgmr.msra.gmra.mrb[6].mxu0 %v8007_v40  ;;  %v2007_v40 = vld [vmem:[#allocation11 + $0x1fa8] sm:$0xff]  ;;  %v6111_v55 = vpack.c.bf16 %v1936_v48, %v1932_v47  ;;  %v1972_v47 = vld [vmem:[#allocation11 + $0x1e90] sm:$0xff] }
 0x3c5   : > { %6092 = vmatpush1.bf16.msra.mxu0 %v6091_v59  ;;  %3188 = vmatprep.mubr.f32.mxu0 %v8010_v54  ;;  %v5631_v54 = vpack.c.bf16 %v1998_v9, %v1994_v6  ;;  %v5633_v22 = vpack.c.bf16 %v2007_v40, %v2003_v12  ;;  %v6113_v59 = vpack.c.bf16 %v1945_v49, %v1941_v46  ;;  %v1948_v6 = vld [vmem:[#allocation11 + $0x1dd0] sm:$0xff]  ;;  %v1981_v46 = vld [vmem:[#allocation11 + $0x1ed8] sm:$0xff] }
 0x3c6   : > { %5624 = vmatpush1.bf16.msra.mxu1 %v5623_v35  ;;  %6094 = vmatprep.subr.bf16.mxu0 %v6093_v19  ;;  %v1940_v35 = vld [vmem:[#allocation11 + $0x1d90] sm:$0xff]  ;;  %v6159_v9 = vpack.c.bf16 %v3283_v0, %v3282_v63  ;;  %v6119_v40 = vpack.c.bf16 %v1952_v7, %v1948_v6  ;;  %v1985_v49 = vld [vmem:[#allocation11 + $0x1ef8] sm:$0xff] }
 0x3c7   : > { %5626 = vmatprep.subr.bf16.mxu1 %v5625_v20  ;;  %v1944_v19 = vld [vmem:[#allocation11 + $0x1db0] sm:$0xff]  ;;  %v6155_v20 = vpack.c.bf16 %v3281_v53, %v3280_v51  ;;  %v2001_v6 = vld [vmem:[#allocation11 + $0x1f78] sm:$0xff] }
 0x3c8   : > { %3189 = vmatmul.mubr.f32.gmra.mrb[8].mxu0 %v8014_v26  ;;  %v6103_v26 = vpack.c.bf16 %v1920_v18, %v1916_v17  ;;  %v6115_v31 = vpack.c.bf16 %v1944_v19, %v1940_v35  ;;  %v3285_v12 = vld [vmem:[#allocation14 + $0x28] sm:$0xff]  ;;  %v1965_v18 = vld [vmem:[#allocation11 + $0x1e58] sm:$0xff]  ;;  %v6133_v35 = vpack.c.bf16 %v1985_v49, %v1981_v46  ;;  %v3316_v49 = vld [vmem:[#allocation14 + $0x120] sm:$0xff] }
 0x3c9   : > { %6096 = vmatpush1.bf16.msra.mxu0 %v6095_v42  ;;  %3259 = vmatprep.mubr.f32.mxu0 %v8018_v37  ;;  %v6105_v37 = vpack.c.bf16 %v1929_v27, %v1925_v25  ;;  %v3301_v42 = vld [vmem:[#allocation14 + $0xa8] sm:$0xff]  ;;  %v6163_v24 = vpack.c.bf16 %v3285_v12, %v3284_v11  ;;  %v3286_v27 = vld [vmem:[#allocation14 + $0x30] sm:$0xff] }
 0x3ca   : > { %5628 = vmatpush1.bf16.msra.mxu1 %v5627_v4  ;;  %6098 = vmatprep.subr.bf16.mxu0 %v6097_v13  ;;  %v8035_v4 = vld [vmem:[%s7830_s26 + $0xf0] sm:$0xff]  ;;  %v6117_v13 = vpack.c.bf16 %v1953_v23, %v1949_v60  ;;  %v6161_v21 = vpack.c.bf16 %v3301_v42, %v3300_v3  ;;  %v1960_v17 = vld [vmem:[#allocation11 + $0x1e30] sm:$0xff]  ;;  %v6167_v36 = vpack.c.bf16 %v3287_v28, %v3286_v27 }
 0x3cb   : > { %5630 = vmatprep.subr.bf16.mxu1 %v5629_v5  ;;  %v1961_v5 = vld [vmem:[#allocation11 + $0x1e38] sm:$0xff]  ;;  %v6123_v29 = vpack.c.bf16 %v1960_v17, %v1956_v16  ;;  %v1976_v48 = vld [vmem:[#allocation11 + $0x1eb0] sm:$0xff]  ;;  %v3292_v27 = vld [vmem:[#allocation14 + $0x60] sm:$0xff] }
 0x3cc   : > { %v3290_v53 = vld [vmem:[#allocation14 + $0x50] sm:$0xff]  ;;  %v6131_v56 = vpack.c.bf16 %v1976_v48, %v1972_v47  ;;  %v3293_v28 = vld [vmem:[#allocation14 + $0x68] sm:$0xff] }
 0x3cd   : > { %6100 = vmatpush1.bf16.msra.mxu0 %v6099_v52  ;;  %v3302_v52 = vld [vmem:[#allocation14 + $0xb0] sm:$0xff]  ;;  %v3333_v47 = vld [vmem:[#allocation14 + $0x1a8] sm:$0xff] }
 0x3ce   : > { %5632 = vmatpush1.bf16.msra.mxu1 %v5631_v54  ;;  %6102 = vmatprep.subr.bf16.mxu0 %v6101_v15  ;;  %v3303_v54 = vld [vmem:[#allocation14 + $0xb8] sm:$0xff]  ;;  %v6121_v15 = vpack.c.bf16 %v1961_v5, %v1957_v8  ;;  %v1980_v19 = vld [vmem:[#allocation11 + $0x1ed0] sm:$0xff] }
 0x3cf   : > { %5634 = vmatprep.subr.bf16.mxu1 %v5633_v22  ;;  %v1969_v22 = vld [vmem:[#allocation11 + $0x1e78] sm:$0xff]  ;;  %v6165_v25 = vpack.c.bf16 %v3303_v54, %v3302_v52  ;;  %v1984_v60 = vld [vmem:[#allocation11 + $0x1ef0] sm:$0xff] }
 0x3d0   : > { %v1989_v23 = vld [vmem:[#allocation11 + $0x1f18] sm:$0xff]  ;;  %v6135_v0 = vpack.c.bf16 %v1984_v60, %v1980_v19  ;;  %v1988_v3 = vld [vmem:[#allocation11 + $0x1f10] sm:$0xff] }
 0x3d1   : > { %6104 = vmatpush1.bf16.msra.mxu0 %v6103_v26  ;;  %v3304_v26 = vld [vmem:[#allocation14 + $0xc0] sm:$0xff]  ;;  %v1992_v42 = vld [vmem:[#allocation11 + $0x1f30] sm:$0xff]  ;;  %v2009_v11 = vld [vmem:[#allocation11 + $0x1fb8] sm:$0xff] }
 0x3d2   : > { %5636 = vmatpush1.bf16.msra.mxu1 %v5635_v30  ;;  %6106 = vmatprep.subr.bf16.mxu0 %v6105_v37  ;;  %v3305_v30 = vld [vmem:[#allocation14 + $0xc8] sm:$0xff]  ;;  %v6125_v37 = vpack.c.bf16 %v1969_v22, %v1965_v18  ;;  %v6139_v7 = vpack.c.bf16 %v1992_v42, %v1988_v3  ;;  %v2017_v16 = vld [vmem:[#allocation11 + $0x1ff8] sm:$0xff] }
 0x3d3   : > { %5638 = vmatprep.subr.bf16.mxu1 %v5637_v34  ;;  %v1977_v34 = vld [vmem:[#allocation11 + $0x1eb8] sm:$0xff]  ;;  %v6169_v38 = vpack.c.bf16 %v3305_v30, %v3304_v26  ;;  %v1996_v5 = vld [vmem:[#allocation11 + $0x1f50] sm:$0xff] }
 0x3d4   : > { %v2004_v52 = vld [vmem:[#allocation11 + $0x1f90] sm:$0xff]  ;;  %v3311_v30 = vld [vmem:[#allocation14 + $0xf8] sm:$0xff] }
 0x3d5   : > { %6108 = vmatpush1.bf16.msra.mxu0 %v6107_v44  ;;  %v3306_v44 = vld [vmem:[#allocation14 + $0xd0] sm:$0xff]  ;;  %v3337_v19 = vld [vmem:[#allocation14 + $0x1c8] sm:$0xff] }
 0x3d6   : > { %5640 = vmatpush1.bf16.msra.mxu1 %v5639_v45  ;;  %6110 = vmatprep.subr.bf16.mxu0 %v6109_v14  ;;  %v3307_v45 = vld [vmem:[#allocation14 + $0xd8] sm:$0xff]  ;;  %v6129_v14 = vpack.c.bf16 %v1977_v34, %v1973_v33  ;;  %v2008_v54 = vld [vmem:[#allocation11 + $0x1fb0] sm:$0xff]  ;;  %v6183_v33 = vpack.c.bf16 %v3295_v32, %v3294_v50  ;;  %v3328_v34 = vld [vmem:[#allocation14 + $0x180] sm:$0xff] }
 0x3d7   : > { %6154 = vmatprep.subr.bf16.mxu1 %v6153_v10  ;;  %v6171_v10 = vpack.c.bf16 %v3289_v41, %v3288_v39  ;;  %v6173_v51 = vpack.c.bf16 %v3307_v45, %v3306_v44  ;;  %v6147_v17 = vpack.c.bf16 %v2008_v54, %v2004_v52  ;;  %v2012_v22 = vld [vmem:[#allocation11 + $0x1fd0] sm:$0xff]  ;;  %v3331_v41 = vld [vmem:[#allocation14 + $0x198] sm:$0xff] }
 0x3d8   : > { %v3310_v26 = vld [vmem:[#allocation14 + $0xf0] sm:$0xff]  ;;  %v3313_v39 = vld [vmem:[#allocation14 + $0x108] sm:$0xff]  ;;  %v3315_v45 = vld [vmem:[#allocation14 + $0x118] sm:$0xff] }
 0x3d9   : > { %2644 = vmatmul.mubr.f32.vlgmr.msra.gmra.mrb[0].mxu1 %v8027_v58  ;;  %6112 = vmatpush1.bf16.msra.mxu0 %v6111_v55  ;;  %v3291_v55 = vld [vmem:[#allocation14 + $0x58] sm:$0xff]  ;;  %v3314_v44 = vld [vmem:[#allocation14 + $0x110] sm:$0xff] }
 0x3da   : > { %2649 = vmatprep.mubr.f32.mxu1 %v8030_v1  ;;  %6114 = vmatprep.subr.bf16.mxu0 %v6113_v59  ;;  %v3309_v59 = vld [vmem:[#allocation14 + $0xe8] sm:$0xff]  ;;  %v6191_v48 = vpack.c.bf16 %v3315_v45, %v3314_v44  ;;  %v3322_v42 = vld [vmem:[#allocation14 + $0x150] sm:$0xff] }
 0x3db   : > { %6156 = vmatpush3.bf16.msra.mxu1 %v6155_v20  ;;  %v1993_v20 = vld [vmem:[#allocation11 + $0x1f38] sm:$0xff]  ;;  %v6177_v63 = vpack.c.bf16 %v3309_v59, %v3308_v57 }
 0x3dc   : > { %6158 = vmatprep.subr.bf16.mxu1 %v6157_v62  ;;  %v6175_v62 = vpack.c.bf16 %v3291_v55, %v3290_v53  ;;  %v3335_v53 = vld [vmem:[#allocation14 + $0x1b8] sm:$0xff]  ;;  %v3318_v57 = vld [vmem:[#allocation14 + $0x130] sm:$0xff] }
 0x3dd   : > { %2650 = vmatmul.mubr.f32.gmra.mrb[2].mxu1 %v8035_v4  ;;  %6116 = vmatpush1.bf16.msra.mxu0 %v6115_v31  ;;  %v6137_v31 = vpack.c.bf16 %v1993_v20, %v1989_v23  ;;  %v3319_v59 = vld [vmem:[#allocation14 + $0x138] sm:$0xff]  ;;  %v3320_v20 = vld [vmem:[#allocation14 + $0x140] sm:$0xff]  ;;  %v3326_v54 = vld [vmem:[#allocation14 + $0x170] sm:$0xff] }
 0x3de   : > { %6118 = vmatprep.subr.bf16.mxu0 %v6117_v13  ;;  %v1997_v13 = vld [vmem:[#allocation11 + $0x1f58] sm:$0xff]  ;;  %v6199_v60 = vpack.c.bf16 %v3319_v59, %v3318_v57  ;;  %v3536_v57 = vld [vmem:[#allocation19 + $0x8] sm:$0xff] }
 0x3df   : > { %6160 = vmatpush3.bf16.msra.mxu1 %v6159_v9  ;;  %v6141_v8 = vpack.c.bf16 %v2001_v6, %v1997_v13  ;;  %v2000_v9 = vld [vmem:[#allocation11 + $0x1f70] sm:$0xff]  ;;  %v3323_v13 = vld [vmem:[#allocation14 + $0x158] sm:$0xff]  ;;  %v3340_v6 = vld [vmem:[#allocation14 + $0x1e0] sm:$0xff] }
 0x3e0   : > { %6162 = vmatprep.subr.bf16.mxu1 %v6161_v21  ;;  %v2005_v21 = vld [vmem:[#allocation11 + $0x1f98] sm:$0xff]  ;;  %v6143_v12 = vpack.c.bf16 %v2000_v9, %v1996_v5  ;;  %v3324_v9 = vld [vmem:[#allocation14 + $0x160] sm:$0xff] }
 0x3e1   : > { %6120 = vmatpush1.bf16.msra.mxu0 %v6119_v40  ;;  %v6145_v40 = vpack.c.bf16 %v2009_v11, %v2005_v21  ;;  %v3325_v21 = vld [vmem:[#allocation14 + $0x168] sm:$0xff]  ;;  %v3538_v59 = vld [vmem:[#allocation19 + $0x18] sm:$0xff] }
 0x3e2   : > { %6122 = vmatprep.subr.bf16.mxu0 %v6121_v15  ;;  %v2013_v15 = vld [vmem:[#allocation11 + $0x1fd8] sm:$0xff]  ;;  %v6211_v11 = vpack.c.bf16 %v3325_v21, %v3324_v9 }
 0x3e3   : > { %6164 = vmatpush3.bf16.msra.mxu1 %v6163_v24  ;;  %v6149_v18 = vpack.c.bf16 %v2017_v16, %v2013_v15  ;;  %v2016_v24 = vld [vmem:[#allocation11 + $0x1ff0] sm:$0xff]  ;;  %v3327_v15 = vld [vmem:[#allocation14 + $0x178] sm:$0xff] }
 0x3e4   : > { %6166 = vmatprep.subr.bf16.mxu1 %v6165_v25  ;;  %v6151_v25 = vpack.c.bf16 %v2016_v24, %v2012_v22  ;;  %v6215_v16 = vpack.c.bf16 %v3327_v15, %v3326_v54  ;;  %v2018_v24 = vld [vmem:[#allocation13] sm:$0xf] }
 0x3e5   : > { %6124 = vmatpush1.bf16.msra.mxu0 %v6123_v29  ;;  %v6179_v29 = vpack.c.bf16 %v3293_v28, %v3292_v27  ;;  %v3550_v9 = vld [vmem:[#allocation19 + $0x78] sm:$0xff] }
 0x3e6   : > { %6126 = vmatprep.subr.bf16.mxu0 %v6125_v37  ;;  %v6181_v37 = vpack.c.bf16 %v3311_v30, %v3310_v26  ;;  %v3554_v54 = vld [vmem:[#allocation19 + $0x98] sm:$0xff] }
 0x3e7   : > { %6168 = vmatpush3.bf16.msra.mxu1 %v6167_v36  ;;  %v3329_v36 = vld [vmem:[#allocation14 + $0x188] sm:$0xff] }
 0x3e8   : > { %6170 = vmatprep.subr.bf16.mxu1 %v6169_v38  ;;  %v3312_v38 = vld [vmem:[#allocation14 + $0x100] sm:$0xff] }
 0x3e9   : > { %6128 = vmatpush1.bf16.msra.mxu0 %v6127_v43 }
 0x3ea   : > { %6130 = vmatprep.subr.bf16.mxu0 %v6129_v14  ;;  %v3332_v14 = vld [vmem:[#allocation14 + $0x1a0] sm:$0xff] }
 0x3eb   : > { %6172 = vmatpush3.bf16.msra.mxu1 %v6171_v10  ;;  %v6193_v46 = vpack.c.bf16 %v3333_v47, %v3332_v14  ;;  %v3317_v10 = vld [vmem:[#allocation14 + $0x128] sm:$0xff] }
 0x3ec   : > { %6174 = vmatprep.subr.bf16.mxu1 %v6173_v51  ;;  %v3334_v51 = vld [vmem:[#allocation14 + $0x1b0] sm:$0xff]  ;;  %v6195_v55 = vpack.c.bf16 %v3317_v10, %v3316_v49 }
 0x3ed   : > { %6132 = vmatpush1.bf16.msra.mxu0 %v6131_v56  ;;  %v6197_v56 = vpack.c.bf16 %v3335_v53, %v3334_v51 }
 0x3ee   : > { %6134 = vmatprep.subr.bf16.mxu0 %v6133_v35  ;;  %v3336_v35 = vld [vmem:[#allocation14 + $0x1c0] sm:$0xff] }
 0x3ef   : > { %6176 = vmatpush3.bf16.msra.mxu1 %v6175_v62  ;;  %v6201_v23 = vpack.c.bf16 %v3337_v19, %v3336_v35  ;;  %v3321_v62 = vld [vmem:[#allocation14 + $0x148] sm:$0xff]  ;;  %v6217_v19 = vpack.c.bf16 %v3538_v59, %v3536_v57 }
 0x3f0   : > { %6178 = vmatprep.subr.bf16.mxu1 %v6177_v63  ;;  %v3338_v63 = vld [vmem:[#allocation14 + $0x1d0] sm:$0xff]  ;;  %v3535_v35 = vld [vmem:[#allocation19] sm:$0xff] }
 0x3f1   : > { %6136 = vmatpush1.bf16.msra.mxu0 %v6135_v0  ;;  %v3339_v0 = vld [vmem:[#allocation14 + $0x1d8] sm:$0xff] }
 0x3f2   : > { %6138 = vmatprep.subr.bf16.mxu0 %v6137_v31  ;;  %v6203_v31 = vpack.c.bf16 %v3321_v62, %v3320_v20  ;;  %v6205_v3 = vpack.c.bf16 %v3339_v0, %v3338_v63  ;;  %v3542_v20 = vld [vmem:[#allocation19 + $0x38] sm:$0xff]  ;;  %v3539_v0 = vld [vmem:[#allocation19 + $0x20] sm:$0xff] }
 0x3f3   : > { %6180 = vmatpush3.bf16.msra.mxu1 %v6179_v29 }
 0x3f4   : > { %6182 = vmatprep.subr.bf16.mxu1 %v6181_v37 }
 0x3f5   : > { %6140 = vmatpush1.bf16.msra.mxu0 %v6139_v7  ;;  %v3341_v7 = vld [vmem:[#allocation14 + $0x1e8] sm:$0xff] }
 0x3f6   : > { %6142 = vmatprep.subr.bf16.mxu0 %v6141_v8  ;;  %v6207_v8 = vpack.c.bf16 %v3323_v13, %v3322_v42  ;;  %v6209_v5 = vpack.c.bf16 %v3341_v7, %v3340_v6  ;;  %v3546_v42 = vld [vmem:[#allocation19 + $0x58] sm:$0xff]  ;;  %v3543_v7 = vld [vmem:[#allocation19 + $0x40] sm:$0xff] }
 0x3f7   : > { %6184 = vmatpush3.bf16.msra.mxu1 %v6183_v33 }
 0x3f8   : > { %6218 = vmatprep.subr.bf16.mxu1 %v6217_v19  ;;  %v3857_v19 = vld [vmem:[%s8402_s0 + $0x18] sm:$0xff] }
 0x3f9   : > { %6144 = vmatpush1.bf16.msra.mxu0 %v6143_v12  ;;  %v3342_v12 = vld [vmem:[#allocation14 + $0x1f0] sm:$0xff] }
 0x3fa   : > { %6146 = vmatprep.subr.bf16.mxu0 %v6145_v40  ;;  %v3343_v40 = vld [vmem:[#allocation14 + $0x1f8] sm:$0xff] }
 0x3fb   : > { %v6213_v52 = vpack.c.bf16 %v3343_v40, %v3342_v12  ;;  %v3547_v12 = vld [vmem:[#allocation19 + $0x60] sm:$0xff]  ;;  %v3549_v40 = vld [vmem:[#allocation19 + $0x70] sm:$0xff] }
 0x3fc   : > { %v6231_v15 = vpack.c.bf16 %v3549_v40, %v3547_v12 }
 0x3fd   : > { %6148 = vmatpush1.bf16.msra.mxu0 %v6147_v17  ;;  %v2020_v17 = vlaneseq }
 0x3fe   : > { %6150 = vmatprep.subr.bf16.mxu0 %v6149_v18 }
 0x3ff   : > { %v8041_v18 = vshrl.u32 %v2020_v17, 7  ;;  %v3551_v17 = vld [vmem:[#allocation19 + $0x80] sm:$0xff] }
 0x401   : > { %6152 = vmatpush1.bf16.msra.mxu0 %v6151_v25  ;;  %v2022_v22 = vsub.s32 0, %v8041_v18  ;;  %v2026_v25 = vsub.s32 1, %v8041_v18 }
 0x403   : > { %v2023_v27 = vrot.slane %v2018_v24, %v2022_v22  ;;  %v2027_v28 = vrot.slane %v2018_v24, %v2026_v25 }
 0x404   : > { %3260 = vmatmul.mubr.f32.vlgmr.msra.gmra.mrb[6].mxu0 %v8027_v58  ;;  %v6185_v58 = vpack.c.bf16 %v3329_v36, %v3328_v34 }
 0x405   : > { %3265 = vmatprep.mubr.f32.mxu0 %v8030_v1  ;;  %v3330_v1 = vld [vmem:[#allocation14 + $0x190] sm:$0xff] }
 0x406   : > { %v6189_v43 = vpack.c.bf16 %v3331_v41, %v3330_v1  ;;  %6186 = vmatprep.subr.bf16.mxu0 %v6185_v58  ;;  %v2030_v1 = vsub.s32 2, %v8041_v18  ;;  %v2034_v41 = vsub.s32 3, %v8041_v18 }
 0x408   : > { %3266 = vmatmul.mubr.f32.gmra.mrb[8].mxu0 %v8035_v4  ;;  %v6187_v4 = vpack.c.bf16 %v3313_v39, %v3312_v38 }
 0x40a   : > { %6188 = vmatpush3.bf16.msra.mxu0 %v6187_v4  ;;  %v2031_v4 = vrot.slane %v2018_v24, %v2030_v1  ;;  %v3566_v1 = vld [vmem:[#allocation19 + $0xf8] sm:$0xff] }
 0x40b   : > { %6190 = vmatprep.subr.bf16.mxu0 %v6189_v43  ;;  %v2035_v43 = vrot.slane %v2018_v24, %v2034_v41  ;;  %v3553_v24 = vld [vmem:[#allocation19 + $0x90] sm:$0xff] }
 0x40e   : > { %6192 = vmatpush3.bf16.msra.mxu0 %v6191_v48 }
 0x40f   : > { %6194 = vmatprep.subr.bf16.mxu0 %v6193_v46 }
 0x412   : > { %6196 = vmatpush3.bf16.msra.mxu0 %v6195_v55 }
 0x413   : > { %6198 = vmatprep.subr.bf16.mxu0 %v6197_v56 }
 0x416   : > { %6200 = vmatpush3.bf16.msra.mxu0 %v6199_v60  ;;  %v3537_v60 = vld [vmem:[#allocation19 + $0x10] sm:$0xff] }
 0x417   : > { %6202 = vmatprep.subr.bf16.mxu0 %v6201_v23  ;;  %v3540_v23 = vld [vmem:[#allocation19 + $0x28] sm:$0xff]  ;;  %v6219_v62 = vpack.c.bf16 %v3537_v60, %v3535_v35  ;;  %v3856_v35 = vld [vmem:[%s8402_s0 + $0x10] sm:$0xff] }
 0x418   : > { %v6221_v63 = vpack.c.bf16 %v3542_v20, %v3540_v23  ;;  %v3874_v60 = vld [vmem:[%s8402_s0 + $0xa0] sm:$0xff]  ;;  %v3875_v23 = vld [vmem:[%s8402_s0 + $0xa8] sm:$0xff]  ;;  %v6319_v20 = vpack.c.bf16 %v3857_v19, %v3856_v35 }
 0x41a   : > { %6204 = vmatpush3.bf16.msra.mxu0 %v6203_v31  ;;  %v3541_v31 = vld [vmem:[#allocation19 + $0x30] sm:$0xff] }
 0x41b   : > { %6206 = vmatprep.subr.bf16.mxu0 %v6205_v3  ;;  %v3544_v3 = vld [vmem:[#allocation19 + $0x48] sm:$0xff]  ;;  %v6223_v13 = vpack.c.bf16 %v3541_v31, %v3539_v0  ;;  %v3859_v0 = vld [vmem:[%s8402_s0 + $0x28] sm:$0xff]  ;;  %v3876_v31 = vld [vmem:[%s8402_s0 + $0xb0] sm:$0xff] }
 0x41c   : > { %v6225_v6 = vpack.c.bf16 %v3546_v42, %v3544_v3  ;;  %v3877_v3 = vld [vmem:[%s8402_s0 + $0xb8] sm:$0xff] }
 0x41e   : > { %6208 = vmatpush3.bf16.msra.mxu0 %v6207_v8  ;;  %v3545_v8 = vld [vmem:[#allocation19 + $0x50] sm:$0xff] }
 0x41f   : > { %6210 = vmatprep.subr.bf16.mxu0 %v6209_v5  ;;  %v3548_v5 = vld [vmem:[#allocation19 + $0x68] sm:$0xff]  ;;  %v6227_v21 = vpack.c.bf16 %v3545_v8, %v3543_v7  ;;  %v3860_v7 = vld [vmem:[%s8402_s0 + $0x30] sm:$0xff]  ;;  %v3861_v8 = vld [vmem:[%s8402_s0 + $0x38] sm:$0xff] }
 0x420   : > { %v6327_v12 = vpack.c.bf16 %v3861_v8, %v3860_v7 }
 0x422   : > { %6212 = vmatpush3.bf16.msra.mxu0 %v6211_v11  ;;  %v6229_v11 = vpack.c.bf16 %v3550_v9, %v3548_v5  ;;  %v3878_v9 = vld [vmem:[%s8402_s0 + $0xc0] sm:$0xff] }
 0x423   : > { %6214 = vmatprep.subr.bf16.mxu0 %v6213_v52  ;;  %v3552_v52 = vld [vmem:[#allocation19 + $0x88] sm:$0xff] }
 0x426   : > { %6216 = vmatpush3.bf16.msra.mxu0 %v6215_v16  ;;  %v6233_v16 = vpack.c.bf16 %v3554_v54, %v3552_v52  ;;  %v3862_v54 = vld [vmem:[%s8402_s0 + $0x40] sm:$0xff] }
 0x4ac   : > { %v2645_v29 = vpop.f32.mrb[0].mxu1 }
 0x4ad   : > { %v6345_v26 = vadd.f32 %v2645_v29, %v2023_v27  ;;  %v2647_v30 = vpop.f32.mrb[1].mxu1  ;;  %v6235_v29 = vpack.c.bf16 %v3553_v24, %v3551_v17  ;;  %v3880_v17 = vld [vmem:[%s8402_s0 + $0xd0] sm:$0xff]  ;;  %v3881_v24 = vld [vmem:[%s8402_s0 + $0xd8] sm:$0xff] }
 0x4ae   : > { %v6346_v37 = vadd.f32 %v2647_v30, %v2027_v28  ;;  %v3555_v30 = vld [vmem:[#allocation19 + $0xa0] sm:$0xff] }
 0x4af   : > { %v3272_v33 = vmax.f32 %v6345_v26, 0.0 }
 0x4b0   : > { %v3273_v50 = vmax.f32 %v6346_v37, 0.0  ;;  %v2651_v32 = vpop.f32.mrb[2].mxu1  ;;  %v3557_v37 = vld [vmem:[#allocation19 + $0xb0] sm:$0xff] }
 0x4b1   : > { %v6347_v34 = vadd.f32 %v2651_v32, %v2023_v27  ;;  %v2653_v36 = vpop.f32.mrb[3].mxu1  ;;  %v3556_v27 = vld [vmem:[#allocation19 + $0xa8] sm:$0xff]  ;;  %v3562_v32 = vld [vmem:[#allocation19 + $0xd8] sm:$0xff] }
 0x4b2   : > { %v6348_v38 = vadd.f32 %v2653_v36, %v2027_v28  ;;  %3415 = vmatprep.mubr.f32.mxu1 %v3273_v50  ;;  %v3558_v28 = vld [vmem:[#allocation19 + $0xb8] sm:$0xff]  ;;  %v3560_v50 = vld [vmem:[#allocation19 + $0xc8] sm:$0xff]  ;;  %v3559_v36 = vld [vmem:[#allocation19 + $0xc0] sm:$0xff] }
 0x4b3   : > { %3416 = vmatmul.mubr.f32.vlgmr.msra.gmra.mrb[4].mxu1 %v3272_v33  ;;  %v3276_v39 = vmax.f32 %v6347_v34, 0.0  ;;  %v6237_v26 = vpack.c.bf16 %v3558_v28, %v3556_v27  ;;  %v6239_v33 = vpack.c.bf16 %v3557_v37, %v3555_v30  ;;  %v6241_v34 = vpack.c.bf16 %v3562_v32, %v3560_v50  ;;  %v3865_v30 = vld [vmem:[%s8402_s0 + $0x58] sm:$0xff]  ;;  %v3882_v37 = vld [vmem:[%s8402_s0 + $0xe0] sm:$0xff]  ;;  %v3883_v50 = vld [vmem:[%s8402_s0 + $0xe8] sm:$0xff] }
 0x4b4   : > { %v3277_v58 = vmax.f32 %v6348_v38, 0.0  ;;  %6220 = vmatpush1.bf16.msra.mxu1 %v6219_v62  ;;  %v3561_v38 = vld [vmem:[#allocation19 + $0xd0] sm:$0xff]  ;;  %v6321_v62 = vpack.c.bf16 %v3875_v23, %v3874_v60  ;;  %v3511_v23 = vld [vmem:[#allocation17 + $0x40] sm:$0xff] }
 0x4b5   : > { %6222 = vmatprep.subr.bf16.mxu1 %v6221_v63  ;;  %v3858_v63 = vld [vmem:[%s8402_s0 + $0x20] sm:$0xff] }
 0x4b6   : > { %3420 = vmatprep.mubr.f32.mxu1 %v3277_v58  ;;  %v6243_v58 = vpack.c.bf16 %v3561_v38, %v3559_v36  ;;  %v6323_v42 = vpack.c.bf16 %v3859_v0, %v3858_v63  ;;  %v3518_v63 = vld [vmem:[#allocation17 + $0x78] sm:$0xff] }
 0x4b7   : > { %3421 = vmatmul.mubr.f32.gmra.mrb[6].mxu1 %v3276_v39  ;;  %v3564_v39 = vld [vmem:[#allocation19 + $0xe8] sm:$0xff] }
 0x4b8   : > { %6224 = vmatpush1.bf16.msra.mxu1 %v6223_v13  ;;  %v6245_v41 = vpack.c.bf16 %v3566_v1, %v3564_v39  ;;  %v3503_v1 = vld [vmem:[#allocation17] sm:$0xff] }
 0x4b9   : > { %6226 = vmatprep.subr.bf16.mxu1 %v6225_v6  ;;  %v6325_v6 = vpack.c.bf16 %v3877_v3, %v3876_v31  ;;  %v3515_v3 = vld [vmem:[#allocation17 + $0x60] sm:$0xff] }
 0x4bc   : > { %6228 = vmatpush1.bf16.msra.mxu1 %v6227_v21  ;;  %v3879_v21 = vld [vmem:[%s8402_s0 + $0xc8] sm:$0xff] }
 0x4bd   : > { %6230 = vmatprep.subr.bf16.mxu1 %v6229_v11  ;;  %v6329_v52 = vpack.c.bf16 %v3879_v21, %v3878_v9  ;;  %v3521_v9 = vld [vmem:[#allocation17 + $0x90] sm:$0xff]  ;;  %v3524_v21 = vld [vmem:[#allocation17 + $0xa8] sm:$0xff] }
 0x4c0   : > { %6232 = vmatpush1.bf16.msra.mxu1 %v6231_v15  ;;  %v3863_v15 = vld [vmem:[%s8402_s0 + $0x48] sm:$0xff] }
 0x4c1   : > { %6234 = vmatprep.subr.bf16.mxu1 %v6233_v16  ;;  %v6331_v28 = vpack.c.bf16 %v3863_v15, %v3862_v54  ;;  %v3525_v54 = vld [vmem:[#allocation17 + $0xb0] sm:$0xff]  ;;  %v3528_v15 = vld [vmem:[#allocation17 + $0xc8] sm:$0xff] }
 0x4c4   : > { %6236 = vmatpush1.bf16.msra.mxu1 %v6235_v29  ;;  %v6333_v29 = vpack.c.bf16 %v3881_v24, %v3880_v17 }
 0x4c5   : > { %6238 = vmatprep.subr.bf16.mxu1 %v6237_v26  ;;  %v3864_v26 = vld [vmem:[%s8402_s0 + $0x50] sm:$0xff] }
 0x4c6   : > { %v6335_v32 = vpack.c.bf16 %v3865_v30, %v3864_v26  ;;  %v3534_v26 = vld [vmem:[#allocation17 + $0xf8] sm:$0xff] }
 0x4c8   : > { %6240 = vmatpush1.bf16.msra.mxu1 %v6239_v33  ;;  %v6337_v33 = vpack.c.bf16 %v3883_v50, %v3882_v37  ;;  %v3531_v50 = vld [vmem:[#allocation17 + $0xe0] sm:$0xff] }
 0x4c9   : > { %6242 = vmatprep.subr.bf16.mxu1 %v6241_v34  ;;  %v4897_v34 = vld [vmem:[#allocation16] ss:$0 sm:$0xff] }
 0x4cc   : > { %6244 = vmatpush1.bf16.msra.mxu1 %v6243_v58 }
 0x4cd   : > { %6246 = vmatprep.subr.bf16.mxu1 %v6245_v41  ;;  %v3505_v41 = vld [vmem:[#allocation17 + $0x10] sm:$0xff] }
 0x4d7   : > { %v3261_v44 = vpop.f32.mrb[6].mxu0 }
 0x4d8   : > { %v6349_v45 = vadd.f32 %v3261_v44, %v2031_v4  ;;  %v3263_v14 = vpop.f32.mrb[7].mxu0 }
 0x4d9   : > { %v6350_v47 = vadd.f32 %v3263_v14, %v2035_v43  ;;  %v3506_v14 = vld [vmem:[#allocation17 + $0x18] sm:$0xff] }
 0x4da   : > { %v3274_v49 = vmax.f32 %v6349_v45, 0.0  ;;  %v3504_v45 = vld [vmem:[#allocation17 + $0x8] sm:$0xff] }
 0x4db   : > { %v3275_v48 = vmax.f32 %v6350_v47, 0.0  ;;  %v3267_v46 = vpop.f32.mrb[8].mxu0  ;;  %v6249_v47 = vpack.c.bf16 %v3506_v14, %v3504_v45 }
 0x4dc   : > { %v6351_v10 = vadd.f32 %v3267_v46, %v2031_v4  ;;  %v3269_v51 = vpop.f32.mrb[9].mxu0  ;;  %v3563_v4 = vld [vmem:[#allocation19 + $0xe0] sm:$0xff]  ;;  %v3870_v46 = vld [vmem:[%s8402_s0 + $0x80] sm:$0xff] }
 0x4dd   : > { %v6352_v53 = vadd.f32 %v3269_v51, %v2035_v43  ;;  %3490 = vmatprep.mubr.f32.mxu0 %v3275_v48  ;;  %v3565_v43 = vld [vmem:[#allocation19 + $0xf0] sm:$0xff]  ;;  %v7286_v48 = vmov 0.0  }
 0x4de   : > { %3491 = vmatmul.mubr.f32.vlgmr.msra.gmra.mrb[10].mxu0 %v3274_v49  ;;  %v3278_v56 = vmax.f32 %v6351_v10, 0.0  ;;  %v6247_v44 = vpack.c.bf16 %v3565_v43, %v3563_v4  ;;  %3631 = vmatprep.mubr.f32.mxu1 %v7286_v48  ;;  %v3871_v49 = vld [vmem:[%s8402_s0 + $0x88] sm:$0xff]  ;;  %v3854_v10 = vld [vmem:[%s8402_s0] sm:$0xff]  ;;  %v3510_v43 = vld [vmem:[#allocation17 + $0x38] sm:$0xff] }
 0x4df   : > { %v3279_v55 = vmax.f32 %v6352_v53, 0.0  ;;  %v6313_v51 = vpack.c.bf16 %v3871_v49, %v3870_v46  ;;  %v3855_v53 = vld [vmem:[%s8402_s0 + $0x8] sm:$0xff]  ;;  %v3508_v4 = vld [vmem:[#allocation17 + $0x28] sm:$0xff] }
 0x4e0   : > { %6248 = vmatpush1.bf16.msra.mxu1 %v6247_v44  ;;  %v6315_v57 = vpack.c.bf16 %v3855_v53, %v3854_v10  ;;  %v3507_v53 = vld [vmem:[#allocation17 + $0x20] sm:$0xff] }
 0x4e1   : > { %3495 = vmatprep.mubr.f32.mxu0 %v3279_v55  ;;  %6250 = vmatprep.subr.bf16.mxu1 %v6249_v47  ;;  %v3872_v55 = vld [vmem:[%s8402_s0 + $0x90] sm:$0xff]  ;;  %v6251_v47 = vpack.c.bf16 %v3505_v41, %v3503_v1  ;;  %v3726_v1 = vld [vmem:[#allocation20 + $0x28] sm:$0xff] }
 0x4e2   : > { %3496 = vmatmul.mubr.f32.gmra.mrb[12].mxu0 %v3278_v56  ;;  %v3873_v56 = vld [vmem:[%s8402_s0 + $0x98] sm:$0xff]  ;;  %6314 = vmatprep.subr.bf16.mxu0 %v6313_v51  ;;  %v6253_v51 = vpack.c.bf16 %v3510_v43, %v3508_v4  ;;  %v3728_v41 = vld [vmem:[#allocation20 + $0x38] sm:$0xff]  ;;  %v992_v43 = vmax.f32 %v7950_v2, 0.0 }
 0x4e3   : > { %v6317_v59 = vpack.c.bf16 %v3873_v56, %v3872_v55  ;;  %6316 = vmatpush3.bf16.msra.mxu0 %v6315_v57  ;;  %v3509_v55 = vld [vmem:[#allocation17 + $0x30] sm:$0xff]  ;;  %v3512_v56 = vld [vmem:[#allocation17 + $0x48] sm:$0xff]  ;;  %v3514_v57 = vld [vmem:[#allocation17 + $0x58] sm:$0xff] }
 0x4e4   : > { %v6255_v35 = vpack.c.bf16 %v3509_v55, %v3507_v53  ;;  %v6257_v60 = vpack.c.bf16 %v3514_v57, %v3512_v56  ;;  %v3729_v53 = vld [vmem:[#allocation20 + $0x40] sm:$0xff]  ;;  %v3731_v55 = vld [vmem:[#allocation20 + $0x50] sm:$0xff]  ;;  %v3734_v56 = vld [vmem:[#allocation20 + $0x68] sm:$0xff] }
 0x4e5   : > { %6318 = vmatprep.subr.bf16.mxu0 %v6317_v59  ;;  %v3736_v57 = vld [vmem:[#allocation20 + $0x78] sm:$0xff]  ;;  %v6291_v2 = vpack.c.bf16 %v3731_v55, %v3729_v53 }
 0x4e7   : > { %6320 = vmatpush3.bf16.msra.mxu0 %v6319_v20  ;;  %v3513_v20 = vld [vmem:[#allocation17 + $0x50] sm:$0xff] }
 0x4e8   : > { %6322 = vmatprep.subr.bf16.mxu0 %v6321_v62  ;;  %v3516_v62 = vld [vmem:[#allocation17 + $0x68] sm:$0xff]  ;;  %v6259_v0 = vpack.c.bf16 %v3513_v20, %v3511_v23  ;;  %v3740_v23 = vld [vmem:[#allocation20 + $0x98] sm:$0xff] }
 0x4e9   : > { %v6261_v31 = vpack.c.bf16 %v3518_v63, %v3516_v62  ;;  %v3737_v62 = vld [vmem:[#allocation20 + $0x80] sm:$0xff]  ;;  %v3739_v63 = vld [vmem:[#allocation20 + $0x90] sm:$0xff] }
 0x4eb   : > { %6324 = vmatpush3.bf16.msra.mxu0 %v6323_v42  ;;  %v3517_v42 = vld [vmem:[#allocation17 + $0x70] sm:$0xff] }
 0x4ec   : > { %6326 = vmatprep.subr.bf16.mxu0 %v6325_v6  ;;  %v3522_v6 = vld [vmem:[#allocation17 + $0x98] sm:$0xff]  ;;  %v6263_v7 = vpack.c.bf16 %v3517_v42, %v3515_v3  ;;  %v6299_v3 = vpack.c.bf16 %v3739_v63, %v3737_v62 }
 0x4ef   : > { %6328 = vmatpush3.bf16.msra.mxu0 %v6327_v12 }
 0x4f0   : > { %6330 = vmatprep.subr.bf16.mxu0 %v6329_v52  ;;  %v3523_v52 = vld [vmem:[#allocation17 + $0xa0] sm:$0xff] }
 0x4f1   : > { %v6271_v17 = vpack.c.bf16 %v3525_v54, %v3523_v52 }
 0x4f3   : > { %6332 = vmatpush3.bf16.msra.mxu0 %v6331_v28  ;;  %v3529_v28 = vld [vmem:[#allocation17 + $0xd0] sm:$0xff] }
 0x4f4   : > { %6334 = vmatprep.subr.bf16.mxu0 %v6333_v29  ;;  %v3532_v29 = vld [vmem:[#allocation17 + $0xe8] sm:$0xff] }
 0x4f5   : > { %v6277_v37 = vpack.c.bf16 %v3534_v26, %v3532_v29  ;;  %v3867_v29 = vld [vmem:[%s8402_s0 + $0x68] sm:$0xff] }
 0x4f7   : > { %6336 = vmatpush3.bf16.msra.mxu0 %v6335_v32  ;;  %v3533_v32 = vld [vmem:[#allocation17 + $0xf0] sm:$0xff] }
 0x4f8   : > { %6338 = vmatprep.subr.bf16.mxu0 %v6337_v33  ;;  %v3722_v33 = vld [vmem:[#allocation20 + $0x8] sm:$0xff] }
 0x586   : > { %v4986_v13 = vpop.f32.mrb[4].mxu1 }
 0x587   : > { %v4987_v5 = vpop.f32.mrb[5].mxu1 }
 0x588   : > { %v4988_v11 = vadd.f32 %v4987_v5, %v4986_v13  ;;  %v3520_v13 = vld [vmem:[#allocation17 + $0x88] sm:$0xff]  ;;  %v3519_v5 = vld [vmem:[#allocation17 + $0x80] sm:$0xff] }
 0x589   : > { %v6265_v8 = vpack.c.bf16 %v3522_v6, %v3520_v13  ;;  %v6267_v12 = vpack.c.bf16 %v3521_v9, %v3519_v5  ;;  %v3741_v13 = vld [vmem:[#allocation20 + $0xa0] sm:$0xff]  ;;  %v3743_v6 = vld [vmem:[#allocation20 + $0xb0] sm:$0xff] }
 0x58a   : > { %v4989_v40 = vpop.f32.mrb[6].mxu1  ;;  %v3418_v58 = vadd.f32 %v4988_v11, %v4897_v34  ;;  %v3526_v11 = vld [vmem:[#allocation17 + $0xb8] sm:$0xff]  ;;  %v6303_v5 = vpack.c.bf16 %v3743_v6, %v3741_v13 }
 0x58b   : > { %v4990_v16 = vpop.f32.mrb[7].mxu1 }
 0x58c   : > { %v4991_v27 = vadd.f32 %v4990_v16, %v4989_v40  ;;  %v6269_v40 = vpack.c.bf16 %v3526_v11, %v3524_v21  ;;  %v3530_v16 = vld [vmem:[#allocation17 + $0xd8] sm:$0xff]  ;;  %v3745_v21 = vld [vmem:[#allocation20 + $0xc0] sm:$0xff]  ;;  %v3747_v11 = vld [vmem:[#allocation20 + $0xd0] sm:$0xff] }
 0x58d   : > { %v6273_v24 = vpack.c.bf16 %v3530_v16, %v3528_v15  ;;  %v6307_v52 = vpack.c.bf16 %v3747_v11, %v3745_v21  ;;  %v3749_v15 = vld [vmem:[#allocation20 + $0xe0] sm:$0xff]  ;;  %v3751_v16 = vld [vmem:[#allocation20 + $0xf0] sm:$0xff] }
 0x58e   : > { %v3423_v46 = vadd.f32 %v4991_v27, %v4897_v34  ;;  %v3527_v27 = vld [vmem:[#allocation17 + $0xc0] sm:$0xff]  ;;  %v3724_v34 = vld [vmem:[#allocation20 + $0x18] sm:$0xff] }
 0x58f   : > { %v6275_v30 = vpack.c.bf16 %v3529_v28, %v3527_v27  ;;  %v785_v27 = vld [vmem:[%s7839_s20 + $0x8] sm:$0xff]  ;;  %v3866_v28 = vld [vmem:[%s8402_s0 + $0x60] sm:$0xff] }
 0x590   : > { %v6339_v26 = vpack.c.bf16 %v3867_v29, %v3866_v28 }
 0x592   : > { %6340 = vmatpush3.bf16.msra.mxu0 %v6339_v26 }
 0x5b1   : > { %v5024_v36 = vpop.f32.mrb[10].mxu0 }
 0x5b2   : > { %v5025_v38 = vpop.f32.mrb[11].mxu0 }
 0x5b3   : > { %v5026_v39 = vadd.f32 %v5025_v38, %v5024_v36  ;;  %v6279_v36 = vpack.c.bf16 %v3533_v32, %v3531_v50  ;;  %v6281_v38 = vpack.c.bf16 %v3724_v34, %v3722_v33  ;;  %v3868_v50 = vld [vmem:[%s8402_s0 + $0x70] sm:$0xff]  ;;  %v3869_v32 = vld [vmem:[%s8402_s0 + $0x78] sm:$0xff] }
 0x5b4   : > { %v6343_v33 = vpack.c.bf16 %v3869_v32, %v3868_v50  ;;  %v3834_v34 = vld [vmem:[#allocation22] sm:$0x3] }
 0x5b5   : > { %v3493_v44 = vadd.f32 %v5026_v39, %v3418_v58  ;;  %v5027_v45 = vpop.f32.mrb[12].mxu0  ;;  %v3721_v58 = vld [vmem:[#allocation20] sm:$0xff]  ;;  %v3723_v39 = vld [vmem:[#allocation20 + $0x10] sm:$0xff] }
 0x5b6   : > { %v5028_v14 = vpop.f32.mrb[13].mxu0  ;;  %v6283_v4 = vpack.c.bf16 %v3723_v39, %v3721_v58 }
 0x5b7   : > { %v3501_v49 = vmax.f32 %v3493_v44, 0.0  ;;  %v5029_v10 = vadd.f32 %v5028_v14, %v5027_v45  ;;  %v6285_v44 = vpack.c.bf16 %v3728_v41, %v3726_v1  ;;  %v3725_v45 = vld [vmem:[#allocation20 + $0x20] sm:$0xff]  ;;  %v3727_v14 = vld [vmem:[#allocation20 + $0x30] sm:$0xff] }
 0x5b9   : > { %v3498_v59 = vadd.f32 %v5029_v10, %v3423_v46  ;;  %3632 = vmatmul.mubr.f32.vlgmr.msra.gmra.mrb[8].mxu1 %v3501_v49  ;;  %v3732_v46 = vld [vmem:[#allocation20 + $0x58] sm:$0xff]  ;;  %v6287_v49 = vpack.c.bf16 %v3727_v14, %v3725_v45  ;;  %v993_v10 = vmax.f32 %v7945_v61, 0.0 }
 0x5ba   : > { %6252 = vmatpush1.bf16.msra.mxu1 %v6251_v47  ;;  %3637 = vmatprep.mubr.f32.mxu1 %v7286_v48  ;;  %v3730_v47 = vld [vmem:[#allocation20 + $0x48] sm:$0xff] }
 0x5bb   : > { %v3502_v19 = vmax.f32 %v3498_v59, 0.0  ;;  %6254 = vmatprep.subr.bf16.mxu1 %v6253_v51  ;;  %v6289_v51 = vpack.c.bf16 %v3732_v46, %v3730_v47  ;;  %v6293_v59 = vpack.c.bf16 %v3736_v57, %v3734_v56 }
 0x5bd   : > { %3638 = vmatmul.mubr.f32.gmra.mrb[10].mxu1 %v3502_v19  ;;  %v3735_v19 = vld [vmem:[#allocation20 + $0x70] sm:$0xff] }
 0x5be   : > { %6256 = vmatpush1.bf16.msra.mxu1 %v6255_v35  ;;  %3708 = vmatprep.mubr.f32.mxu1 %v7286_v48  ;;  %v3733_v35 = vld [vmem:[#allocation20 + $0x60] sm:$0xff] }
 0x5bf   : > { %6258 = vmatprep.subr.bf16.mxu1 %v6257_v60  ;;  %v3738_v60 = vld [vmem:[#allocation20 + $0x88] sm:$0xff]  ;;  %v6295_v20 = vpack.c.bf16 %v3735_v19, %v3733_v35 }
 0x5c0   : > { %v6297_v61 = vpack.c.bf16 %v3740_v23, %v3738_v60 }
 0x5c2   : > { %6260 = vmatpush1.bf16.msra.mxu1 %v6259_v0  ;;  %v3742_v0 = vld [vmem:[#allocation20 + $0xa8] sm:$0xff] }
 0x5c3   : > { %6262 = vmatprep.subr.bf16.mxu1 %v6261_v31  ;;  %v3744_v31 = vld [vmem:[#allocation20 + $0xb8] sm:$0xff] }
 0x5c4   : > { %v6301_v42 = vpack.c.bf16 %v3744_v31, %v3742_v0 }
 0x5c6   : > { %6264 = vmatpush1.bf16.msra.mxu1 %v6263_v7  ;;  %v3746_v7 = vld [vmem:[#allocation20 + $0xc8] sm:$0xff] }
 0x5c7   : > { %6266 = vmatprep.subr.bf16.mxu1 %v6265_v8  ;;  %v3748_v8 = vld [vmem:[#allocation20 + $0xd8] sm:$0xff] }
 0x5c8   : > { %v6305_v9 = vpack.c.bf16 %v3748_v8, %v3746_v7 }
 0x5ca   : > { %6268 = vmatpush1.bf16.msra.mxu1 %v6267_v12  ;;  %v3750_v12 = vld [vmem:[#allocation20 + $0xe8] sm:$0xff] }
 0x5cb   : > { %6270 = vmatprep.subr.bf16.mxu1 %v6269_v40  ;;  %v3752_v40 = vld [vmem:[#allocation20 + $0xf8] sm:$0xff] }
 0x5cc   : > { %v6309_v54 = vpack.c.bf16 %v3752_v40, %v3750_v12 }
 0x5ce   : > { %6272 = vmatpush1.bf16.msra.mxu1 %v6271_v17  ;;  %v6311_v17 = vpack.c.bf16 %v3751_v16, %v3749_v15 }
 0x5cf   : > { %6274 = vmatprep.subr.bf16.mxu1 %v6273_v24  ;;  %v784_v24 = vld [vmem:[%s7839_s20] sm:$0xff] }
 0x5d2   : > { %6276 = vmatpush1.bf16.msra.mxu1 %v6275_v30  ;;  %v3884_v30 = vld [vmem:[%s8402_s0 + $0xf0] sm:$0xff] }
 0x5d3   : > { %6278 = vmatprep.subr.bf16.mxu1 %v6277_v37 }
 0x5d6   : > { %6280 = vmatpush1.bf16.msra.mxu1 %v6279_v36  ;;  %v3839_v36 = vrot.slane %v3834_v34, %v2022_v22 }
 0x5d7   : > { %6282 = vmatprep.subr.bf16.mxu1 %v6281_v38  ;;  %v3843_v38 = vrot.slane %v3834_v34, %v2026_v25 }
 0x5d9   : > { %3709 = vmatmul.mubr.f32.vlgmr.msra.gmra.mrb[8].mxu1 %v992_v43 }
 0x5da   : > { %6284 = vmatpush1.bf16.msra.mxu1 %v6283_v4  ;;  %3714 = vmatprep.mubr.f32.mxu1 %v7286_v48 }
 0x5db   : > { %6286 = vmatprep.subr.bf16.mxu1 %v6285_v44 }
 0x5dd   : > { %3715 = vmatmul.mubr.f32.gmra.mrb[10].mxu1 %v993_v10  ;;  %v4898_v10 = vld [vmem:[#allocation23] ss:$0 sm:$0xff] }
 0x5de   : > { %6288 = vmatpush1.bf16.msra.mxu1 %v6287_v49  ;;  %3817 = vmatprep.mubr.f32.mxu1 %v7286_v48 }
 0x5df   : > { %6290 = vmatprep.subr.bf16.mxu1 %v6289_v51 }
 0x5e2   : > { %6292 = vmatpush1.bf16.msra.mxu1 %v6291_v2 }
 0x5e3   : > { %6294 = vmatprep.subr.bf16.mxu1 %v6293_v59 }
 0x5e6   : > { %6296 = vmatpush1.bf16.msra.mxu1 %v6295_v20 }
 0x5e7   : > { %6298 = vmatprep.subr.bf16.mxu1 %v6297_v61 }
 0x5ea   : > { %6300 = vmatpush1.bf16.msra.mxu1 %v6299_v3 }
 0x5eb   : > { %6302 = vmatprep.subr.bf16.mxu1 %v6301_v42 }
 0x5ee   : > { %6304 = vmatpush1.bf16.msra.mxu1 %v6303_v5 }
 0x5ef   : > { %6306 = vmatprep.subr.bf16.mxu1 %v6305_v9 }
 0x5f2   : > { %6308 = vmatpush1.bf16.msra.mxu1 %v6307_v52 }
 0x5f3   : > { %6310 = vmatprep.subr.bf16.mxu1 %v6309_v54 }
 0x5f6   : > { %6312 = vmatpush1.bf16.msra.mxu1 %v6311_v17 }
 0x5f9   : > { %3818 = vmatmul.mubr.f32.vlgmr.msra.gmra.mrb[8].mxu1 %v784_v24 }
 0x5fa   : > { %3823 = vmatprep.mubr.f32.mxu1 %v7286_v48  ;;  %v3885_v48 = vld [vmem:[%s8402_s0 + $0xf8] sm:$0xff] }
 0x5fb   : > { %v6341_v37 = vpack.c.bf16 %v3885_v48, %v3884_v30 }
 0x5fd   : > { %3824 = vmatmul.mubr.f32.gmra.mrb[10].mxu1 %v785_v27  ;;  %6342 = vmatprep.subr.bf16.mxu0 %v6341_v37 }
 0x5fe   : > { %6344 = vmatpush3.bf16.msra.mxu0 %v6343_v33 }
 0x6cc   : > { %v3819_v58 = vpop.f32.mrb[8].mxu1 }
 0x6cd   : > { %v3846_v39 = vadd.f32 %v3839_v36, %v3819_v58  ;;  %v3821_v1 = vpop.f32.mrb[9].mxu1 }
 0x6ce   : > { %v3847_v41 = vadd.f32 %v3843_v38, %v3821_v1 }
 0x6cf   : > { %v3850_v44 = vmax.f32 %v3846_v39, 0.0 }
 0x6d0   : > { %v3851_v4 = vmax.f32 %v3847_v41, 0.0  ;;  %v3825_v43 = vpop.f32.mrb[10].mxu1 }
 0x6d1   : > { %v3848_v45 = vadd.f32 %v3839_v36, %v3825_v43  ;;  %v3827_v14 = vpop.f32.mrb[11].mxu1 }
 0x6d2   : > { %v3849_v47 = vadd.f32 %v3843_v38, %v3827_v14  ;;  %3957 = vmatprep.mubr.f32.mxu0 %v3851_v4 }
 0x6d3   : > { %3958 = vmatmul.mubr.f32.vlgmr.msra.gmra.mrb[14].mxu0 %v3850_v44  ;;  %v3852_v49 = vmax.f32 %v3848_v45, 0.0 }
 0x6d4   : > { %v3853_v46 = vmax.f32 %v3849_v47, 0.0 }
 0x6d6   : > { %3962 = vmatprep.mubr.f32.mxu0 %v3853_v46 }
 0x6d7   : > { %3963 = vmatmul.mubr.f32.gmra.mrb[16].mxu0 %v3852_v49 }
 0x7a6   : > { %v5062_v22 = vpop.f32.mrb[14].mxu0 }
 0x7a7   : > { %v5063_v18 = vpop.f32.mrb[15].mxu0 }
 0x7a8   : > { %v5064_v25 = vadd.f32 %v5063_v18, %v5062_v22 }
 0x7aa   : > { %v3960_v51 = vadd.f32 %v5064_v25, %v4898_v10  ;;  %v5065_v53 = vpop.f32.mrb[16].mxu0 }
 0x7ab   : > { %v5066_v55 = vpop.f32.mrb[17].mxu0 }
 0x7ac   : > { %6600 = vtanh.f32 %v3960_v51  ;;  %v5067_v56 = vadd.f32 %v5066_v55, %v5065_v53 }
 0x7ae   : > { %v3965_v57 = vadd.f32 %v5067_v56, %v4898_v10 }
 0x7b0   : > { %6602 = vtanh.f32 %v3965_v57 }
 0x7b6   : > { %v6601_v2 = vpop.eup %6600 }
 0x7b7   : > { %v3970_v59 = vmul.f32 10.0, %v6601_v2 }
 0x7b9   : > { %v3972_v35 = vmul.f32 1.442695, %v3970_v59 }
 0x7ba   : > { %v6603_v19 = vpop.eup %6602 }
 0x7bb   : > { %6604 = vpow2.f32 %v3972_v35  ;;  %v3971_v60 = vmul.f32 10.0, %v6603_v19 }
 0x7bd   : > { %v3974_v23 = vmul.f32 1.442695, %v3971_v60 }
 0x7bf   : > { %6606 = vpow2.f32 %v3974_v23 }
 0x7c5   : > { %v6605_v20 = vpop.eup %6604 }
 0x7c6   : > { %v3977_v61 = vsel %vm3976_vm4, %v6605_v20, 0.0 }
 0x7c7   : > { %v3978_v62 = vrot.slane %v3977_v61, 4 }
 0x7c9   : > { %v6607_v63 = vpop.eup %6606  ;;  %v3979_v0 = vadd.f32 %v3978_v62, %v3977_v61 }
 0x7ca   : > { %v3984_v31 = vsel %vm3976_vm4, %v6607_v63, 0.0 }
 0x7cb   : > { %v3985_v3 = vrot.slane %v3984_v31, 4  ;;  %v3980_v42 = vrot.slane %v3979_v0, 2 }
 0x7cd   : > { %v3981_v13 = vadd.f32 %v3980_v42, %v3979_v0  ;;  %v3986_v6 = vadd.f32 %v3985_v3, %v3984_v31 }
 0x7cf   : > { %v3982_v7 = vrot.slane %v3981_v13, 1  ;;  %v3987_v8 = vrot.slane %v3986_v6, 2 }
 0x7d1   : > { %v3983_v5 = vadd.f32 %v3982_v7, %v3981_v13  ;;  %v3988_v9 = vadd.f32 %v3987_v8, %v3986_v6 }
 0x7d3   : > { %v3991_v21 = vadd.f32 1e-07, %v3983_v5  ;;  %v3989_v11 = vrot.slane %v3988_v9, 1 }
 0x7d5   : > { %6608 = vrcp.f32 %v3991_v21  ;;  %v3990_v12 = vadd.f32 %v3989_v11, %v3988_v9 }
 0x7d7   : > { %v3992_v40 = vadd.f32 1e-07, %v3990_v12 }
 0x7d9   : > { %6610 = vrcp.f32 %v3992_v40 }
 0x7df   : > { %v6609_v52 = vpop.eup %6608 }
 0x7e0   : > { %v3994_v54 = vmul.f32 %v6609_v52, %v6605_v20 }
 0x7e2   : > { %v3997_v15 = vsel %vm3976_vm4, %v3994_v54, 0.0 }
 0x7e3   : > { %v6611_v16 = vpop.eup %6610  ;;  %3998 = vadd.xlane.f32.xlu0 %v3997_v15 }
 0x7e4   : > { %v3996_v17 = vmul.f32 %v6611_v16, %v6607_v63 }
 0x7e6   : > { %v4000_v24 = vsel %vm3976_vm4, %v3996_v17, 0.0 }
 0x7e7   : > { %4001 = vadd.xlane.f32.xlu0 %v4000_v24 }
 0x870   : > { %v3999_v27 = vpop.xlane.xlu0 %3998 }
 0x871   : > { %v4003_v28 = vadd.f32 1e-07, %v3999_v27 }
 0x873   : > { %6612 = vrcp.f32 %v4003_v28 }
 0x874   : > { %v4002_v29 = vpop.xlane.xlu0 %4001 }
 0x875   : > { %v4004_v26 = vadd.f32 1e-07, %v4002_v29 }
 0x877   : > { %6614 = vrcp.f32 %v4004_v26 }
 0x87d   : > { %v6613_v30 = vpop.eup %6612 }
 0x87e   : > { %v4006_v48 = vmul.f32 %v6613_v30, %v3994_v54 }
 0x880   : > { %v4009_v37 = vsel %vm3976_vm4, %v4006_v48, 0.0 }
 0x881   : > { %v6615_v50 = vpop.eup %6614  ;;  %v4010_v32 = vrot.slane %v4009_v37, 4 }
 0x882   : > { %v4008_v33 = vmul.f32 %v6615_v50, %v3996_v17 }
 0x883   : > { %v4011_v34 = vadd.f32 %v4010_v32, %v4009_v37 }
 0x884   : > { %v4016_v36 = vsel %vm3976_vm4, %v4008_v33, 0.0 }
 0x885   : > { %v4012_v38 = vrot.slane %v4011_v34, 2  ;;  %v4017_v58 = vrot.slane %v4016_v36, 4 }
 0x887   : > { %v4013_v39 = vadd.f32 %v4012_v38, %v4011_v34  ;;  %v4018_v1 = vadd.f32 %v4017_v58, %v4016_v36 }
 0x889   : > { %v4014_v41 = vrot.slane %v4013_v39, 1  ;;  %v4019_v4 = vrot.slane %v4018_v1, 2 }
 0x88b   : > { %v4015_v43 = vadd.f32 %v4014_v41, %v4013_v39  ;;  %v4020_v44 = vadd.f32 %v4019_v4, %v4018_v1 }
 0x88d   : > { %v4023_v45 = vadd.f32 1e-07, %v4015_v43  ;;  %v4021_v14 = vrot.slane %v4020_v44, 1 }
 0x88f   : > { %6616 = vrcp.f32 %v4023_v45  ;;  %v4022_v47 = vadd.f32 %v4021_v14, %v4020_v44 }
 0x891   : > { %v4024_v46 = vadd.f32 1e-07, %v4022_v47 }
 0x893   : > { %6618 = vrcp.f32 %v4024_v46 }
 0x899   : > { %v6617_v49 = vpop.eup %6616 }
 0x89a   : > { %v4026_v22 = vmul.f32 %v6617_v49, %v4006_v48 }
 0x89c   : > { %v4029_v10 = vsel %vm3976_vm4, %v4026_v22, 0.0 }
 0x89d   : > { %v6619_v18 = vpop.eup %6618  ;;  %4030 = vadd.xlane.f32.xlu1 %v4029_v10 }
 0x89e   : > { %v4028_v25 = vmul.f32 %v6619_v18, %v4008_v33 }
 0x8a0   : > { %v4032_v51 = vsel %vm3976_vm4, %v4028_v25, 0.0 }
 0x8a1   : > { %4033 = vadd.xlane.f32.xlu1 %v4032_v51 }
 0x92a   : > { %v4031_v53 = vpop.xlane.xlu1 %4030 }
 0x92b   : > { %v4035_v55 = vadd.f32 1e-07, %v4031_v53 }
 0x92d   : > { %6620 = vrcp.f32 %v4035_v55 }
 0x92e   : > { %v4034_v56 = vpop.xlane.xlu1 %4033 }
 0x92f   : > { %v4036_v57 = vadd.f32 1e-07, %v4034_v56 }
 0x931   : > { %6622 = vrcp.f32 %v4036_v57 }
 0x937   : > { %v6621_v2 = vpop.eup %6620 }
 0x938   : > { %v4038_v59 = vmul.f32 %v6621_v2, %v4026_v22 }
 0x93a   : > { %v4041_v35 = vsel %vm3976_vm4, %v4038_v59, 0.0 }
 0x93b   : > { %v6623_v19 = vpop.eup %6622  ;;  %v4042_v60 = vrot.slane %v4041_v35, 4 }
 0x93c   : > { %v4040_v23 = vmul.f32 %v6623_v19, %v4028_v25 }
 0x93d   : > { %v4043_v20 = vadd.f32 %v4042_v60, %v4041_v35 }
 0x93e   : > { %v4048_v61 = vsel %vm3976_vm4, %v4040_v23, 0.0 }
 0x93f   : > { %v4044_v62 = vrot.slane %v4043_v20, 2  ;;  %v4049_v63 = vrot.slane %v4048_v61, 4 }
 0x941   : > { %v4045_v0 = vadd.f32 %v4044_v62, %v4043_v20  ;;  %v4050_v31 = vadd.f32 %v4049_v63, %v4048_v61 }
 0x943   : > { %v4046_v3 = vrot.slane %v4045_v0, 1  ;;  %v4051_v42 = vrot.slane %v4050_v31, 2 }
 0x945   : > { %v4047_v13 = vadd.f32 %v4046_v3, %v4045_v0  ;;  %v4052_v6 = vadd.f32 %v4051_v42, %v4050_v31 }
 0x947   : > { %v4055_v7 = vadd.f32 1e-07, %v4047_v13  ;;  %v4053_v8 = vrot.slane %v4052_v6, 1 }
 0x949   : > { %6624 = vrcp.f32 %v4055_v7  ;;  %v4054_v5 = vadd.f32 %v4053_v8, %v4052_v6 }
 0x94b   : > { %v4056_v9 = vadd.f32 1e-07, %v4054_v5 }
 0x94d   : > { %6626 = vrcp.f32 %v4056_v9 }
 0x953   : > { %v6625_v21 = vpop.eup %6624 }
 0x954   : > { %v4058_v11 = vmul.f32 %v6625_v21, %v4038_v59 }
 0x956   : > { %v4061_v12 = vsel %vm3976_vm4, %v4058_v11, 0.0 }
 0x957   : > { %v6627_v40 = vpop.eup %6626  ;;  %4062 = vadd.xlane.f32.xlu0 %v4061_v12 }
 0x958   : > { %v4060_v52 = vmul.f32 %v6627_v40, %v4040_v23 }
 0x95a   : > { %v4064_v54 = vsel %vm3976_vm4, %v4060_v52, 0.0 }
 0x95b   : > { %4065 = vadd.xlane.f32.xlu1 %v4064_v54 }
 0x9e4   : > { %v4063_v15 = vpop.xlane.xlu0 %4062 }
 0x9e5   : > { %v4067_v16 = vadd.f32 1e-07, %v4063_v15 }
 0x9e7   : > { %6628 = vrcp.f32 %v4067_v16 }
 0x9e8   : > { %v4066_v17 = vpop.xlane.xlu1 %4065 }
 0x9e9   : > { %v4068_v24 = vadd.f32 1e-07, %v4066_v17 }
 0x9eb   : > { %6630 = vrcp.f32 %v4068_v24 }
 0x9f1   : > { %v6629_v27 = vpop.eup %6628 }
 0x9f2   : > { %v4070_v28 = vmul.f32 %v6629_v27, %v4058_v11 }
 0x9f4   : > { %v4073_v29 = vsel %vm3976_vm4, %v4070_v28, 0.0 }
 0x9f5   : > { %v6631_v26 = vpop.eup %6630  ;;  %v4074_v30 = vrot.slane %v4073_v29, 4 }
 0x9f6   : > { %v4072_v48 = vmul.f32 %v6631_v26, %v4060_v52 }
 0x9f7   : > { %v4075_v37 = vadd.f32 %v4074_v30, %v4073_v29 }
 0x9f8   : > { %v4080_v50 = vsel %vm3976_vm4, %v4072_v48, 0.0 }
 0x9f9   : > { %v4076_v32 = vrot.slane %v4075_v37, 2  ;;  %v4081_v33 = vrot.slane %v4080_v50, 4 }
 0x9fb   : > { %v4077_v34 = vadd.f32 %v4076_v32, %v4075_v37  ;;  %v4082_v36 = vadd.f32 %v4081_v33, %v4080_v50 }
 0x9fd   : > { %v4078_v38 = vrot.slane %v4077_v34, 1  ;;  %v4083_v58 = vrot.slane %v4082_v36, 2 }
 0x9ff   : > { %v4079_v39 = vadd.f32 %v4078_v38, %v4077_v34  ;;  %v4084_v1 = vadd.f32 %v4083_v58, %v4082_v36 }
 0xa01   : > { %v4087_v41 = vadd.f32 1e-07, %v4079_v39  ;;  %v4085_v4 = vrot.slane %v4084_v1, 1 }
 0xa03   : > { %6632 = vrcp.f32 %v4087_v41  ;;  %v4086_v43 = vadd.f32 %v4085_v4, %v4084_v1 }
 0xa05   : > { %v4088_v44 = vadd.f32 1e-07, %v4086_v43 }
 0xa07   : > { %6634 = vrcp.f32 %v4088_v44 }
 0xa0d   : > { %v6633_v45 = vpop.eup %6632 }
 0xa0e   : > { %v4090_v14 = vmul.f32 %v6633_v45, %v4070_v28 }
 0xa10   : > { %v4093_v47 = vsel %vm3976_vm4, %v4090_v14, 0.0 }
 0xa11   : > { %v6635_v46 = vpop.eup %6634  ;;  %4094 = vadd.xlane.f32.xlu0 %v4093_v47 }
 0xa12   : > { %v4092_v49 = vmul.f32 %v6635_v46, %v4072_v48 }
 0xa14   : > { %v4096_v22 = vsel %vm3976_vm4, %v4092_v49, 0.0 }
 0xa15   : > { %4097 = vadd.xlane.f32.xlu1 %v4096_v22 }
 0xa9e   : > { %v4095_v10 = vpop.xlane.xlu0 %4094 }
 0xa9f   : > { %v4099_v18 = vadd.f32 1e-07, %v4095_v10 }
 0xaa1   : > { %6636 = vrcp.f32 %v4099_v18 }
 0xaa2   : > { %v4098_v25 = vpop.xlane.xlu1 %4097 }
 0xaa3   : > { %v4100_v51 = vadd.f32 1e-07, %v4098_v25 }
 0xaa5   : > { %6638 = vrcp.f32 %v4100_v51 }
 0xaab   : > { %v6637_v53 = vpop.eup %6636 }
 0xaac   : > { %v4102_v55 = vmul.f32 %v6637_v53, %v4090_v14 }
 0xaae   : > { %v4105_v56 = vsel %vm3976_vm4, %v4102_v55, 0.0 }
 0xaaf   : > { %v6639_v57 = vpop.eup %6638  ;;  %v4106_v2 = vrot.slane %v4105_v56, 4 }
 0xab0   : > { %v4104_v59 = vmul.f32 %v6639_v57, %v4092_v49 }
 0xab1   : > { %v4107_v35 = vadd.f32 %v4106_v2, %v4105_v56 }
 0xab2   : > { %v4112_v19 = vsel %vm3976_vm4, %v4104_v59, 0.0 }
 0xab3   : > { %v4108_v60 = vrot.slane %v4107_v35, 2  ;;  %v4113_v23 = vrot.slane %v4112_v19, 4 }
 0xab5   : > { %v4109_v20 = vadd.f32 %v4108_v60, %v4107_v35  ;;  %v4114_v61 = vadd.f32 %v4113_v23, %v4112_v19 }
 0xab7   : > { %v4110_v62 = vrot.slane %v4109_v20, 1  ;;  %v4115_v63 = vrot.slane %v4114_v61, 2 }
 0xab9   : > { %v4111_v0 = vadd.f32 %v4110_v62, %v4109_v20  ;;  %v4116_v31 = vadd.f32 %v4115_v63, %v4114_v61 }
 0xabb   : > { %v4119_v3 = vadd.f32 1e-07, %v4111_v0  ;;  %v4117_v42 = vrot.slane %v4116_v31, 1 }
 0xabd   : > { %6640 = vrcp.f32 %v4119_v3  ;;  %v4118_v13 = vadd.f32 %v4117_v42, %v4116_v31 }
 0xabf   : > { %v4120_v6 = vadd.f32 1e-07, %v4118_v13 }
 0xac1   : > { %6642 = vrcp.f32 %v4120_v6 }
 0xac7   : > { %v6641_v7 = vpop.eup %6640 }
 0xac8   : > { %v4122_v8 = vmul.f32 %v6641_v7, %v4102_v55 }
 0xaca   : > { %v4125_v5 = vsel %vm3976_vm4, %v4122_v8, 0.0 }
 0xacb   : > { %v6643_v9 = vpop.eup %6642  ;;  %4126 = vadd.xlane.f32.xlu0 %v4125_v5 }
 0xacc   : > { %v4124_v21 = vmul.f32 %v6643_v9, %v4104_v59 }
 0xace   : > { %v4128_v11 = vsel %vm3976_vm4, %v4124_v21, 0.0 }
 0xacf   : > { %4129 = vadd.xlane.f32.xlu1 %v4128_v11 }
 0xb58   : > { %v4127_v12 = vpop.xlane.xlu0 %4126 }
 0xb59   : > { %v4131_v40 = vadd.f32 1e-07, %v4127_v12 }
 0xb5b   : > { %6644 = vrcp.f32 %v4131_v40 }
 0xb5c   : > { %v4130_v52 = vpop.xlane.xlu1 %4129 }
 0xb5d   : > { %v4132_v54 = vadd.f32 1e-07, %v4130_v52 }
 0xb5f   : > { %6646 = vrcp.f32 %v4132_v54 }
 0xb65   : > { %v6645_v15 = vpop.eup %6644 }
 0xb66   : > { %v4134_v16 = vmul.f32 %v6645_v15, %v4122_v8 }
 0xb68   : > { %v4137_v17 = vsel %vm3976_vm4, %v4134_v16, 0.0 }
 0xb69   : > { %v6647_v24 = vpop.eup %6646  ;;  %v4138_v27 = vrot.slane %v4137_v17, 4 }
 0xb6a   : > { %v4136_v28 = vmul.f32 %v6647_v24, %v4124_v21 }
 0xb6b   : > { %v4139_v29 = vadd.f32 %v4138_v27, %v4137_v17 }
 0xb6c   : > { %v4144_v26 = vsel %vm3976_vm4, %v4136_v28, 0.0 }
 0xb6d   : > { %v4140_v30 = vrot.slane %v4139_v29, 2  ;;  %v4145_v48 = vrot.slane %v4144_v26, 4 }
 0xb6f   : > { %v4141_v37 = vadd.f32 %v4140_v30, %v4139_v29  ;;  %v4146_v50 = vadd.f32 %v4145_v48, %v4144_v26 }
 0xb71   : > { %v4142_v32 = vrot.slane %v4141_v37, 1  ;;  %v4147_v33 = vrot.slane %v4146_v50, 2 }
 0xb73   : > { %v4143_v34 = vadd.f32 %v4142_v32, %v4141_v37  ;;  %v4148_v36 = vadd.f32 %v4147_v33, %v4146_v50 }
 0xb75   : > { %v4151_v38 = vadd.f32 1e-07, %v4143_v34  ;;  %v4149_v58 = vrot.slane %v4148_v36, 1 }
 0xb77   : > { %6648 = vrcp.f32 %v4151_v38  ;;  %v4150_v39 = vadd.f32 %v4149_v58, %v4148_v36 }
 0xb79   : > { %v4152_v1 = vadd.f32 1e-07, %v4150_v39 }
 0xb7b   : > { %6650 = vrcp.f32 %v4152_v1 }
 0xb81   : > { %v6649_v41 = vpop.eup %6648 }
 0xb82   : > { %v4154_v4 = vmul.f32 %v6649_v41, %v4134_v16 }
 0xb84   : > { %v4157_v43 = vsel %vm3976_vm4, %v4154_v4, 0.0 }
 0xb85   : > { %v6651_v44 = vpop.eup %6650  ;;  %4158 = vadd.xlane.f32.xlu0 %v4157_v43 }
 0xb86   : > { %v4156_v45 = vmul.f32 %v6651_v44, %v4136_v28 }
 0xb88   : > { %v4160_v14 = vsel %vm3976_vm4, %v4156_v45, 0.0 }
 0xb89   : > { %4161 = vadd.xlane.f32.xlu1 %v4160_v14 }
 0xc12   : > { %v4159_v47 = vpop.xlane.xlu0 %4158 }
 0xc13   : > { %v4163_v46 = vadd.f32 1e-07, %v4159_v47 }
 0xc15   : > { %6652 = vrcp.f32 %v4163_v46 }
 0xc16   : > { %v4162_v49 = vpop.xlane.xlu1 %4161 }
 0xc17   : > { %v4164_v22 = vadd.f32 1e-07, %v4162_v49 }
 0xc19   : > { %6654 = vrcp.f32 %v4164_v22 }
 0xc1f   : > { %v6653_v10 = vpop.eup %6652 }
 0xc20   : > { %v4166_v18 = vmul.f32 %v6653_v10, %v4154_v4 }
 0xc22   : > { %v4169_v25 = vsel %vm3976_vm4, %v4166_v18, 0.0 }
 0xc23   : > { %v6655_v51 = vpop.eup %6654  ;;  %v4170_v53 = vrot.slane %v4169_v25, 4 }
 0xc24   : > { %v4168_v55 = vmul.f32 %v6655_v51, %v4156_v45 }
 0xc25   : > { %v4171_v56 = vadd.f32 %v4170_v53, %v4169_v25 }
 0xc26   : > { %v4176_v57 = vsel %vm3976_vm4, %v4168_v55, 0.0 }
 0xc27   : > { %v4172_v2 = vrot.slane %v4171_v56, 2  ;;  %v4177_v59 = vrot.slane %v4176_v57, 4 }
 0xc29   : > { %v4173_v35 = vadd.f32 %v4172_v2, %v4171_v56  ;;  %v4178_v19 = vadd.f32 %v4177_v59, %v4176_v57 }
 0xc2b   : > { %v4174_v60 = vrot.slane %v4173_v35, 1  ;;  %v4179_v23 = vrot.slane %v4178_v19, 2 }
 0xc2d   : > { %v4175_v20 = vadd.f32 %v4174_v60, %v4173_v35  ;;  %v4180_v61 = vadd.f32 %v4179_v23, %v4178_v19 }
 0xc2f   : > { %v4183_v62 = vadd.f32 1e-07, %v4175_v20  ;;  %v4181_v63 = vrot.slane %v4180_v61, 1 }
 0xc31   : > { %6656 = vrcp.f32 %v4183_v62  ;;  %v4182_v0 = vadd.f32 %v4181_v63, %v4180_v61 }
 0xc33   : > { %v4184_v31 = vadd.f32 1e-07, %v4182_v0 }
 0xc35   : > { %6658 = vrcp.f32 %v4184_v31 }
 0xc3b   : > { %v6657_v3 = vpop.eup %6656 }
 0xc3c   : > { %v4186_v42 = vmul.f32 %v6657_v3, %v4166_v18 }
 0xc3e   : > { %v4189_v13 = vsel %vm3976_vm4, %v4186_v42, 0.0 }
 0xc3f   : > { %v6659_v6 = vpop.eup %6658  ;;  %4190 = vadd.xlane.f32.xlu0 %v4189_v13 }
 0xc40   : > { %v4188_v7 = vmul.f32 %v6659_v6, %v4168_v55 }
 0xc42   : > { %v4192_v8 = vsel %vm3976_vm4, %v4188_v7, 0.0 }
 0xc43   : > { %4193 = vadd.xlane.f32.xlu1 %v4192_v8 }
 0xccc   : > { %v4191_v5 = vpop.xlane.xlu0 %4190 }
 0xccd   : > { %v4195_v9 = vadd.f32 1e-07, %v4191_v5 }
 0xccf   : > { %6660 = vrcp.f32 %v4195_v9 }
 0xcd0   : > { %v4194_v21 = vpop.xlane.xlu1 %4193 }
 0xcd1   : > { %v4196_v11 = vadd.f32 1e-07, %v4194_v21 }
 0xcd3   : > { %6662 = vrcp.f32 %v4196_v11 }
 0xcd9   : > { %v6661_v12 = vpop.eup %6660 }
 0xcda   : > { %v4198_v40 = vmul.f32 %v6661_v12, %v4186_v42 }
 0xcdc   : > { %v4201_v52 = vsel %vm3976_vm4, %v4198_v40, 0.0 }
 0xcdd   : > { %v6663_v54 = vpop.eup %6662  ;;  %v4202_v15 = vrot.slane %v4201_v52, 4 }
 0xcde   : > { %v4200_v16 = vmul.f32 %v6663_v54, %v4188_v7 }
 0xcdf   : > { %v4203_v17 = vadd.f32 %v4202_v15, %v4201_v52 }
 0xce0   : > { %v4208_v24 = vsel %vm3976_vm4, %v4200_v16, 0.0 }
 0xce1   : > { %v4204_v27 = vrot.slane %v4203_v17, 2  ;;  %v4209_v28 = vrot.slane %v4208_v24, 4 }
 0xce3   : > { %v4205_v29 = vadd.f32 %v4204_v27, %v4203_v17  ;;  %v4210_v26 = vadd.f32 %v4209_v28, %v4208_v24 }
 0xce5   : > { %v4206_v30 = vrot.slane %v4205_v29, 1  ;;  %v4211_v48 = vrot.slane %v4210_v26, 2 }
 0xce7   : > { %v4207_v37 = vadd.f32 %v4206_v30, %v4205_v29  ;;  %v4212_v50 = vadd.f32 %v4211_v48, %v4210_v26 }
 0xce9   : > { %v4215_v32 = vadd.f32 1e-07, %v4207_v37  ;;  %v4213_v33 = vrot.slane %v4212_v50, 1 }
 0xceb   : > { %6664 = vrcp.f32 %v4215_v32  ;;  %v4214_v34 = vadd.f32 %v4213_v33, %v4212_v50 }
 0xced   : > { %v4216_v36 = vadd.f32 1e-07, %v4214_v34 }
 0xcef   : > { %6666 = vrcp.f32 %v4216_v36 }
 0xcf5   : > { %v6665_v38 = vpop.eup %6664 }
 0xcf6   : > { %v4218_v58 = vmul.f32 %v6665_v38, %v4198_v40 }
 0xcf8   : > { %v4221_v39 = vsel %vm3976_vm4, %v4218_v58, 0.0 }
 0xcf9   : > { %v6667_v1 = vpop.eup %6666  ;;  %4222 = vadd.xlane.f32.xlu0 %v4221_v39 }
 0xcfa   : > { %v4220_v41 = vmul.f32 %v6667_v1, %v4200_v16 }
 0xcfc   : > { %v4224_v4 = vsel %vm3976_vm4, %v4220_v41, 0.0 }
 0xcfd   : > { %4225 = vadd.xlane.f32.xlu1 %v4224_v4 }
 0xd86   : > { %v4223_v43 = vpop.xlane.xlu0 %4222 }
 0xd87   : > { %v4227_v44 = vadd.f32 1e-07, %v4223_v43 }
 0xd89   : > { %6668 = vrcp.f32 %v4227_v44 }
 0xd8a   : > { %v4226_v45 = vpop.xlane.xlu1 %4225 }
 0xd8b   : > { %v4228_v14 = vadd.f32 1e-07, %v4226_v45 }
 0xd8d   : > { %6670 = vrcp.f32 %v4228_v14 }
 0xd93   : > { %v6669_v47 = vpop.eup %6668 }
 0xd94   : > { %v4230_v46 = vmul.f32 %v6669_v47, %v4218_v58 }
 0xd96   : > { %v4233_v49 = vsel %vm3976_vm4, %v4230_v46, 0.0 }
 0xd97   : > { %v6671_v22 = vpop.eup %6670  ;;  %v4234_v10 = vrot.slane %v4233_v49, 4 }
 0xd98   : > { %v4232_v18 = vmul.f32 %v6671_v22, %v4220_v41 }
 0xd99   : > { %v4235_v25 = vadd.f32 %v4234_v10, %v4233_v49 }
 0xd9a   : > { %v4240_v51 = vsel %vm3976_vm4, %v4232_v18, 0.0 }
 0xd9b   : > { %v4236_v53 = vrot.slane %v4235_v25, 2  ;;  %v4241_v55 = vrot.slane %v4240_v51, 4 }
 0xd9d   : > { %v4237_v56 = vadd.f32 %v4236_v53, %v4235_v25  ;;  %v4242_v57 = vadd.f32 %v4241_v55, %v4240_v51 }
 0xd9f   : > { %v4238_v2 = vrot.slane %v4237_v56, 1  ;;  %v4243_v59 = vrot.slane %v4242_v57, 2 }
 0xda1   : > { %v4239_v35 = vadd.f32 %v4238_v2, %v4237_v56  ;;  %v4244_v19 = vadd.f32 %v4243_v59, %v4242_v57 }
 0xda3   : > { %v4247_v60 = vadd.f32 1e-07, %v4239_v35  ;;  %v4245_v23 = vrot.slane %v4244_v19, 1 }
 0xda5   : > { %6672 = vrcp.f32 %v4247_v60  ;;  %v4246_v20 = vadd.f32 %v4245_v23, %v4244_v19 }
 0xda7   : > { %v4248_v61 = vadd.f32 1e-07, %v4246_v20 }
 0xda9   : > { %6674 = vrcp.f32 %v4248_v61 }
 0xdaf   : > { %v6673_v62 = vpop.eup %6672 }
 0xdb0   : > { %v4250_v63 = vmul.f32 %v6673_v62, %v4230_v46 }
 0xdb2   : > { %v4253_v0 = vsel %vm3976_vm4, %v4250_v63, 0.0 }
 0xdb3   : > { %v6675_v31 = vpop.eup %6674  ;;  %4254 = vadd.xlane.f32.xlu0 %v4253_v0 }
 0xdb4   : > { %v4252_v3 = vmul.f32 %v6675_v31, %v4232_v18 }
 0xdb6   : > { %v4256_v42 = vsel %vm3976_vm4, %v4252_v3, 0.0 }
 0xdb7   : > { %4257 = vadd.xlane.f32.xlu1 %v4256_v42 }
 0xe40   : > { %v4255_v13 = vpop.xlane.xlu0 %4254 }
 0xe41   : > { %v4259_v6 = vadd.f32 1e-07, %v4255_v13 }
 0xe43   : > { %6676 = vrcp.f32 %v4259_v6 }
 0xe44   : > { %v4258_v7 = vpop.xlane.xlu1 %4257 }
 0xe45   : > { %v4260_v8 = vadd.f32 1e-07, %v4258_v7 }
 0xe47   : > { %6678 = vrcp.f32 %v4260_v8 }
 0xe4d   : > { %v6677_v5 = vpop.eup %6676 }
 0xe4e   : > { %v4262_v9 = vmul.f32 %v6677_v5, %v4250_v63 }
 0xe50   : > { %v4265_v21 = vsel %vm3976_vm4, %v4262_v9, 0.0 }
 0xe51   : > { %v6679_v11 = vpop.eup %6678  ;;  %v4266_v12 = vrot.slane %v4265_v21, 4 }
 0xe52   : > { %v4264_v40 = vmul.f32 %v6679_v11, %v4252_v3 }
 0xe53   : > { %v4267_v52 = vadd.f32 %v4266_v12, %v4265_v21 }
 0xe54   : > { %v4272_v54 = vsel %vm3976_vm4, %v4264_v40, 0.0 }
 0xe55   : > { %v4268_v15 = vrot.slane %v4267_v52, 2  ;;  %v4273_v16 = vrot.slane %v4272_v54, 4 }
 0xe57   : > { %v4269_v17 = vadd.f32 %v4268_v15, %v4267_v52  ;;  %v4274_v24 = vadd.f32 %v4273_v16, %v4272_v54 }
 0xe59   : > { %v4270_v27 = vrot.slane %v4269_v17, 1  ;;  %v4275_v28 = vrot.slane %v4274_v24, 2 }
 0xe5b   : > { %v4271_v29 = vadd.f32 %v4270_v27, %v4269_v17  ;;  %v4276_v26 = vadd.f32 %v4275_v28, %v4274_v24 }
 0xe5d   : > { %v4279_v30 = vadd.f32 1e-07, %v4271_v29  ;;  %v4277_v48 = vrot.slane %v4276_v26, 1 }
 0xe5f   : > { %6680 = vrcp.f32 %v4279_v30  ;;  %v4278_v37 = vadd.f32 %v4277_v48, %v4276_v26 }
 0xe61   : > { %v4280_v50 = vadd.f32 1e-07, %v4278_v37 }
 0xe63   : > { %6682 = vrcp.f32 %v4280_v50 }
 0xe69   : > { %v6681_v32 = vpop.eup %6680 }
 0xe6a   : > { %v4282_v33 = vmul.f32 %v6681_v32, %v4262_v9 }
 0xe6c   : > { %v4285_v34 = vsel %vm3976_vm4, %v4282_v33, 0.0 }
 0xe6d   : > { %v6683_v36 = vpop.eup %6682  ;;  %4286 = vadd.xlane.f32.xlu0 %v4285_v34 }
 0xe6e   : > { %v4284_v38 = vmul.f32 %v6683_v36, %v4264_v40 }
 0xe70   : > { %v4288_v58 = vsel %vm3976_vm4, %v4284_v38, 0.0 }
 0xe71   : > { %4289 = vadd.xlane.f32.xlu1 %v4288_v58 }
 0xefa   : > { %v4287_v39 = vpop.xlane.xlu0 %4286 }
 0xefb   : > { %v4291_v1 = vadd.f32 1e-07, %v4287_v39 }
 0xefd   : > { %6684 = vrcp.f32 %v4291_v1 }
 0xefe   : > { %v4290_v41 = vpop.xlane.xlu1 %4289 }
 0xeff   : > { %v4292_v4 = vadd.f32 1e-07, %v4290_v41 }
 0xf01   : > { %6686 = vrcp.f32 %v4292_v4 }
 0xf07   : > { %v6685_v43 = vpop.eup %6684 }
 0xf08   : > { %v4294_v44 = vmul.f32 %v6685_v43, %v4282_v33 }
 0xf0a   : > { %v4297_v45 = vsel %vm3976_vm4, %v4294_v44, 0.0 }
 0xf0b   : > { %v6687_v14 = vpop.eup %6686  ;;  %v4298_v47 = vrot.slane %v4297_v45, 4 }
 0xf0c   : > { %v4296_v46 = vmul.f32 %v6687_v14, %v4284_v38 }
 0xf0d   : > { %v4299_v49 = vadd.f32 %v4298_v47, %v4297_v45 }
 0xf0e   : > { %v4304_v22 = vsel %vm3976_vm4, %v4296_v46, 0.0 }
 0xf0f   : > { %v4300_v10 = vrot.slane %v4299_v49, 2  ;;  %v4305_v18 = vrot.slane %v4304_v22, 4 }
 0xf11   : > { %v4301_v25 = vadd.f32 %v4300_v10, %v4299_v49  ;;  %v4306_v51 = vadd.f32 %v4305_v18, %v4304_v22 }
 0xf13   : > { %v4302_v53 = vrot.slane %v4301_v25, 1  ;;  %v4307_v55 = vrot.slane %v4306_v51, 2 }
 0xf15   : > { %v4303_v56 = vadd.f32 %v4302_v53, %v4301_v25  ;;  %v4308_v57 = vadd.f32 %v4307_v55, %v4306_v51 }
 0xf17   : > { %v4311_v2 = vadd.f32 1e-07, %v4303_v56  ;;  %v4309_v59 = vrot.slane %v4308_v57, 1 }
 0xf19   : > { %6688 = vrcp.f32 %v4311_v2  ;;  %v4310_v35 = vadd.f32 %v4309_v59, %v4308_v57 }
 0xf1b   : > { %v4312_v19 = vadd.f32 1e-07, %v4310_v35 }
 0xf1d   : > { %6690 = vrcp.f32 %v4312_v19 }
 0xf23   : > { %v6689_v60 = vpop.eup %6688 }
 0xf24   : > { %v4314_v23 = vmul.f32 %v6689_v60, %v4294_v44 }
 0xf26   : > { %v4317_v20 = vsel %vm3976_vm4, %v4314_v23, 0.0 }
 0xf27   : > { %v6691_v61 = vpop.eup %6690  ;;  %4318 = vadd.xlane.f32.xlu0 %v4317_v20 }
 0xf28   : > { %v4316_v62 = vmul.f32 %v6691_v61, %v4296_v46 }
 0xf2a   : > { %v4320_v63 = vsel %vm3976_vm4, %v4316_v62, 0.0 }
 0xf2b   : > { %4321 = vadd.xlane.f32.xlu1 %v4320_v63 }
 0xfb4   : > { %v4319_v0 = vpop.xlane.xlu0 %4318 }
 0xfb5   : > { %v4323_v31 = vadd.f32 1e-07, %v4319_v0 }
 0xfb7   : > { %6692 = vrcp.f32 %v4323_v31 }
 0xfb8   : > { %v4322_v3 = vpop.xlane.xlu1 %4321 }
 0xfb9   : > { %v4324_v42 = vadd.f32 1e-07, %v4322_v3 }
 0xfbb   : > { %6694 = vrcp.f32 %v4324_v42 }
 0xfc1   : > { %v6693_v13 = vpop.eup %6692 }
 0xfc2   : > { %v4326_v6 = vmul.f32 %v6693_v13, %v4314_v23 }
 0xfc4   : > { %v4329_v7 = vsel %vm3976_vm4, %v4326_v6, 0.0 }
 0xfc5   : > { %v6695_v8 = vpop.eup %6694  ;;  %v4330_v5 = vrot.slane %v4329_v7, 4 }
 0xfc6   : > { %v4328_v9 = vmul.f32 %v6695_v8, %v4316_v62 }
 0xfc7   : > { %v4331_v21 = vadd.f32 %v4330_v5, %v4329_v7 }
 0xfc8   : > { %v4336_v11 = vsel %vm3976_vm4, %v4328_v9, 0.0 }
 0xfc9   : > { %v4332_v12 = vrot.slane %v4331_v21, 2  ;;  %v4337_v40 = vrot.slane %v4336_v11, 4 }
 0xfcb   : > { %v4333_v52 = vadd.f32 %v4332_v12, %v4331_v21  ;;  %v4338_v54 = vadd.f32 %v4337_v40, %v4336_v11 }
 0xfcd   : > { %v4334_v15 = vrot.slane %v4333_v52, 1  ;;  %v4339_v16 = vrot.slane %v4338_v54, 2 }
 0xfcf   : > { %v4335_v17 = vadd.f32 %v4334_v15, %v4333_v52  ;;  %v4340_v24 = vadd.f32 %v4339_v16, %v4338_v54 }
 0xfd1   : > { %v4343_v27 = vadd.f32 1e-07, %v4335_v17  ;;  %v4341_v28 = vrot.slane %v4340_v24, 1 }
 0xfd3   : > { %6696 = vrcp.f32 %v4343_v27  ;;  %v4342_v29 = vadd.f32 %v4341_v28, %v4340_v24 }
 0xfd5   : > { %v4344_v26 = vadd.f32 1e-07, %v4342_v29 }
 0xfd7   : > { %6698 = vrcp.f32 %v4344_v26 }
 0xfdd   : > { %v6697_v30 = vpop.eup %6696 }
 0xfde   : > { %v4346_v48 = vmul.f32 %v6697_v30, %v4326_v6 }
 0xfe0   : > { %v4349_v37 = vsel %vm3976_vm4, %v4346_v48, 0.0 }
 0xfe1   : > { %v6699_v50 = vpop.eup %6698  ;;  %4350 = vadd.xlane.f32.xlu0 %v4349_v37 }
 0xfe2   : > { %v4348_v32 = vmul.f32 %v6699_v50, %v4328_v9 }
 0xfe4   : > { %v4352_v33 = vsel %vm3976_vm4, %v4348_v32, 0.0 }
 0xfe5   : > { %4353 = vadd.xlane.f32.xlu1 %v4352_v33 }
0x106e   : > { %v4351_v34 = vpop.xlane.xlu0 %4350 }
0x106f   : > { %v4355_v36 = vadd.f32 1e-07, %v4351_v34 }
0x1071   : > { %6700 = vrcp.f32 %v4355_v36 }
0x1072   : > { %v4354_v38 = vpop.xlane.xlu1 %4353 }
0x1073   : > { %v4356_v58 = vadd.f32 1e-07, %v4354_v38 }
0x1075   : > { %6702 = vrcp.f32 %v4356_v58 }
0x107b   : > { %v6701_v39 = vpop.eup %6700 }
0x107c   : > { %v4358_v1 = vmul.f32 %v6701_v39, %v4346_v48 }
0x107e   : > { %v4361_v41 = vsel %vm3976_vm4, %v4358_v1, 0.0 }
0x107f   : > { %v6703_v4 = vpop.eup %6702  ;;  %v4362_v43 = vrot.slane %v4361_v41, 4 }
0x1080   : > { %v4360_v44 = vmul.f32 %v6703_v4, %v4348_v32 }
0x1081   : > { %v4363_v45 = vadd.f32 %v4362_v43, %v4361_v41 }
0x1082   : > { %v4368_v14 = vsel %vm3976_vm4, %v4360_v44, 0.0 }
0x1083   : > { %v4364_v47 = vrot.slane %v4363_v45, 2  ;;  %v4369_v46 = vrot.slane %v4368_v14, 4 }
0x1085   : > { %v4365_v49 = vadd.f32 %v4364_v47, %v4363_v45  ;;  %v4370_v22 = vadd.f32 %v4369_v46, %v4368_v14 }
0x1087   : > { %v4366_v10 = vrot.slane %v4365_v49, 1  ;;  %v4371_v18 = vrot.slane %v4370_v22, 2 }
0x1089   : > { %v4367_v25 = vadd.f32 %v4366_v10, %v4365_v49  ;;  %v4372_v51 = vadd.f32 %v4371_v18, %v4370_v22 }
0x108b   : > { %v4375_v53 = vadd.f32 1e-07, %v4367_v25  ;;  %v4373_v55 = vrot.slane %v4372_v51, 1 }
0x108d   : > { %6704 = vrcp.f32 %v4375_v53  ;;  %v4374_v56 = vadd.f32 %v4373_v55, %v4372_v51 }
0x108f   : > { %v4376_v57 = vadd.f32 1e-07, %v4374_v56 }
0x1091   : > { %6706 = vrcp.f32 %v4376_v57 }
0x1097   : > { %v6705_v2 = vpop.eup %6704 }
0x1098   : > { %v4378_v59 = vmul.f32 %v6705_v2, %v4358_v1 }
0x109a   : > { %v4381_v35 = vsel %vm3976_vm4, %v4378_v59, 0.0 }
0x109b   : > { %v6707_v19 = vpop.eup %6706  ;;  %4382 = vadd.xlane.f32.xlu0 %v4381_v35 }
0x109c   : > { %v4380_v60 = vmul.f32 %v6707_v19, %v4360_v44 }
0x109e   : > { %v4384_v23 = vsel %vm3976_vm4, %v4380_v60, 0.0 }
0x109f   : > { %4385 = vadd.xlane.f32.xlu1 %v4384_v23 }
0x1128   : > { %v4383_v20 = vpop.xlane.xlu0 %4382 }
0x1129   : > { %v4387_v61 = vadd.f32 1e-07, %v4383_v20 }
0x112b   : > { %6708 = vrcp.f32 %v4387_v61 }
0x112c   : > { %v4386_v62 = vpop.xlane.xlu1 %4385 }
0x112d   : > { %v4388_v63 = vadd.f32 1e-07, %v4386_v62 }
0x112f   : > { %6710 = vrcp.f32 %v4388_v63 }
0x1135   : > { %v6709_v0 = vpop.eup %6708 }
0x1136   : > { %v4390_v31 = vmul.f32 %v6709_v0, %v4378_v59 }
0x1138   : > { %v4393_v3 = vsel %vm3976_vm4, %v4390_v31, 0.0 }
0x1139   : > { %v6711_v42 = vpop.eup %6710  ;;  %v4394_v13 = vrot.slane %v4393_v3, 4 }
0x113a   : > { %v4392_v6 = vmul.f32 %v6711_v42, %v4380_v60 }
0x113b   : > { %v4395_v7 = vadd.f32 %v4394_v13, %v4393_v3 }
0x113c   : > { %v4400_v8 = vsel %vm3976_vm4, %v4392_v6, 0.0 }
0x113d   : > { %v4396_v5 = vrot.slane %v4395_v7, 2  ;;  %v4401_v9 = vrot.slane %v4400_v8, 4 }
0x113f   : > { %v4397_v21 = vadd.f32 %v4396_v5, %v4395_v7  ;;  %v4402_v11 = vadd.f32 %v4401_v9, %v4400_v8 }
0x1141   : > { %v4398_v12 = vrot.slane %v4397_v21, 1  ;;  %v4403_v40 = vrot.slane %v4402_v11, 2 }
0x1143   : > { %v4399_v52 = vadd.f32 %v4398_v12, %v4397_v21  ;;  %v4404_v54 = vadd.f32 %v4403_v40, %v4402_v11 }
0x1145   : > { %v4407_v15 = vadd.f32 1e-07, %v4399_v52  ;;  %v4405_v16 = vrot.slane %v4404_v54, 1 }
0x1147   : > { %6712 = vrcp.f32 %v4407_v15  ;;  %v4406_v17 = vadd.f32 %v4405_v16, %v4404_v54 }
0x1149   : > { %v4408_v24 = vadd.f32 1e-07, %v4406_v17 }
0x114b   : > { %6714 = vrcp.f32 %v4408_v24 }
0x1151   : > { %v6713_v27 = vpop.eup %6712 }
0x1152   : > { %v4410_v28 = vmul.f32 %v6713_v27, %v4390_v31 }
0x1154   : > { %v4413_v29 = vsel %vm3976_vm4, %v4410_v28, 0.0 }
0x1155   : > { %v6715_v26 = vpop.eup %6714  ;;  %4414 = vadd.xlane.f32.xlu0 %v4413_v29 }
0x1156   : > { %v4412_v30 = vmul.f32 %v6715_v26, %v4392_v6 }
0x1158   : > { %v4416_v48 = vsel %vm3976_vm4, %v4412_v30, 0.0 }
0x1159   : > { %4417 = vadd.xlane.f32.xlu1 %v4416_v48 }
0x11e2   : > { %v4415_v37 = vpop.xlane.xlu0 %4414 }
0x11e3   : > { %v4419_v50 = vadd.f32 1e-07, %v4415_v37 }
0x11e5   : > { %6716 = vrcp.f32 %v4419_v50 }
0x11e6   : > { %v4418_v32 = vpop.xlane.xlu1 %4417 }
0x11e7   : > { %v4420_v33 = vadd.f32 1e-07, %v4418_v32 }
0x11e9   : > { %6718 = vrcp.f32 %v4420_v33 }
0x11ef   : > { %v6717_v34 = vpop.eup %6716 }
0x11f0   : > { %v4422_v36 = vmul.f32 %v6717_v34, %v4410_v28 }
0x11f2   : > { %v4425_v38 = vsel %vm3976_vm4, %v4422_v36, 0.0 }
0x11f3   : > { %v6719_v58 = vpop.eup %6718  ;;  %v4426_v39 = vrot.slane %v4425_v38, 4 }
0x11f4   : > { %v4424_v1 = vmul.f32 %v6719_v58, %v4412_v30 }
0x11f5   : > { %v4427_v41 = vadd.f32 %v4426_v39, %v4425_v38 }
0x11f6   : > { %v4432_v4 = vsel %vm3976_vm4, %v4424_v1, 0.0 }
0x11f7   : > { %v4428_v43 = vrot.slane %v4427_v41, 2  ;;  %v4433_v44 = vrot.slane %v4432_v4, 4 }
0x11f9   : > { %v4429_v45 = vadd.f32 %v4428_v43, %v4427_v41  ;;  %v4434_v14 = vadd.f32 %v4433_v44, %v4432_v4 }
0x11fb   : > { %v4430_v47 = vrot.slane %v4429_v45, 1  ;;  %v4435_v46 = vrot.slane %v4434_v14, 2 }
0x11fd   : > { %v4431_v49 = vadd.f32 %v4430_v47, %v4429_v45  ;;  %v4436_v22 = vadd.f32 %v4435_v46, %v4434_v14 }
0x11ff   : > { %v4439_v10 = vadd.f32 1e-07, %v4431_v49  ;;  %v4437_v18 = vrot.slane %v4436_v22, 1 }
0x1201   : > { %6720 = vrcp.f32 %v4439_v10  ;;  %v4438_v25 = vadd.f32 %v4437_v18, %v4436_v22 }
0x1203   : > { %v4440_v51 = vadd.f32 1e-07, %v4438_v25 }
0x1205   : > { %6722 = vrcp.f32 %v4440_v51 }
0x120b   : > { %v6721_v53 = vpop.eup %6720 }
0x120c   : > { %v4442_v55 = vmul.f32 %v6721_v53, %v4422_v36 }
0x120e   : > { %v4445_v56 = vsel %vm3976_vm4, %v4442_v55, 0.0 }
0x120f   : > { %v6723_v57 = vpop.eup %6722  ;;  %4446 = vadd.xlane.f32.xlu0 %v4445_v56 }
0x1210   : > { %v4444_v2 = vmul.f32 %v6723_v57, %v4424_v1 }
0x1212   : > { %v4448_v59 = vsel %vm3976_vm4, %v4444_v2, 0.0 }
0x1213   : > { %4449 = vadd.xlane.f32.xlu1 %v4448_v59 }
0x129c   : > { %v4447_v35 = vpop.xlane.xlu0 %4446 }
0x129d   : > { %v4451_v19 = vadd.f32 1e-07, %v4447_v35 }
0x129f   : > { %6724 = vrcp.f32 %v4451_v19 }
0x12a0   : > { %v4450_v60 = vpop.xlane.xlu1 %4449 }
0x12a1   : > { %v4452_v23 = vadd.f32 1e-07, %v4450_v60 }
0x12a3   : > { %6726 = vrcp.f32 %v4452_v23 }
0x12a9   : > { %v6725_v20 = vpop.eup %6724 }
0x12aa   : > { %v4454_v61 = vmul.f32 %v6725_v20, %v4442_v55 }
0x12ac   : > { %v4457_v62 = vsel %vm3976_vm4, %v4454_v61, 0.0 }
0x12ad   : > { %v6727_v63 = vpop.eup %6726  ;;  %v4458_v0 = vrot.slane %v4457_v62, 4 }
0x12ae   : > { %v4456_v31 = vmul.f32 %v6727_v63, %v4444_v2 }
0x12af   : > { %v4459_v3 = vadd.f32 %v4458_v0, %v4457_v62 }
0x12b0   : > { %v4464_v42 = vsel %vm3976_vm4, %v4456_v31, 0.0 }
0x12b1   : > { %v4460_v13 = vrot.slane %v4459_v3, 2  ;;  %v4465_v6 = vrot.slane %v4464_v42, 4 }
0x12b3   : > { %v4461_v7 = vadd.f32 %v4460_v13, %v4459_v3  ;;  %v4466_v8 = vadd.f32 %v4465_v6, %v4464_v42 }
0x12b5   : > { %v4462_v5 = vrot.slane %v4461_v7, 1  ;;  %v4467_v9 = vrot.slane %v4466_v8, 2 }
0x12b7   : > { %v4463_v21 = vadd.f32 %v4462_v5, %v4461_v7  ;;  %v4468_v11 = vadd.f32 %v4467_v9, %v4466_v8 }
0x12b9   : > { %v4471_v12 = vadd.f32 1e-07, %v4463_v21  ;;  %v4469_v40 = vrot.slane %v4468_v11, 1 }
0x12bb   : > { %6728 = vrcp.f32 %v4471_v12  ;;  %v4470_v52 = vadd.f32 %v4469_v40, %v4468_v11 }
0x12bd   : > { %v4472_v54 = vadd.f32 1e-07, %v4470_v52 }
0x12bf   : > { %6730 = vrcp.f32 %v4472_v54 }
0x12c5   : > { %v6729_v15 = vpop.eup %6728 }
0x12c6   : > { %v4474_v16 = vmul.f32 %v6729_v15, %v4454_v61 }
0x12c8   : > { %v4477_v17 = vsel %vm3976_vm4, %v4474_v16, 0.0 }
0x12c9   : > { %v6731_v24 = vpop.eup %6730  ;;  %4478 = vadd.xlane.f32.xlu0 %v4477_v17 }
0x12ca   : > { %v4476_v27 = vmul.f32 %v6731_v24, %v4456_v31 }
0x12cc   : > { %v4480_v28 = vsel %vm3976_vm4, %v4476_v27, 0.0 }
0x12cd   : > { %4481 = vadd.xlane.f32.xlu1 %v4480_v28 }
0x1356   : > { %v4479_v29 = vpop.xlane.xlu0 %4478 }
0x1357   : > { %v4483_v26 = vadd.f32 1e-07, %v4479_v29 }
0x1359   : > { %6732 = vrcp.f32 %v4483_v26 }
0x135a   : > { %v4482_v30 = vpop.xlane.xlu1 %4481 }
0x135b   : > { %v4484_v48 = vadd.f32 1e-07, %v4482_v30 }
0x135d   : > { %6734 = vrcp.f32 %v4484_v48 }
0x1363   : > { %v6733_v37 = vpop.eup %6732 }
0x1364   : > { %v4486_v50 = vmul.f32 %v6733_v37, %v4474_v16 }
0x1366   : > { %v4489_v32 = vsel %vm3976_vm4, %v4486_v50, 0.0 }
0x1367   : > { %v6735_v33 = vpop.eup %6734  ;;  %v4490_v34 = vrot.slane %v4489_v32, 4 }
0x1368   : > { %v4488_v36 = vmul.f32 %v6735_v33, %v4476_v27 }
0x1369   : > { %v4491_v38 = vadd.f32 %v4490_v34, %v4489_v32 }
0x136a   : > { %v4496_v58 = vsel %vm3976_vm4, %v4488_v36, 0.0 }
0x136b   : > { %v4492_v39 = vrot.slane %v4491_v38, 2  ;;  %v4497_v1 = vrot.slane %v4496_v58, 4 }
0x136d   : > { %v4493_v41 = vadd.f32 %v4492_v39, %v4491_v38  ;;  %v4498_v4 = vadd.f32 %v4497_v1, %v4496_v58 }
0x136f   : > { %v4494_v43 = vrot.slane %v4493_v41, 1  ;;  %v4499_v44 = vrot.slane %v4498_v4, 2 }
0x1371   : > { %v4495_v45 = vadd.f32 %v4494_v43, %v4493_v41  ;;  %v4500_v14 = vadd.f32 %v4499_v44, %v4498_v4 }
0x1373   : > { %v4503_v47 = vadd.f32 1e-07, %v4495_v45  ;;  %v4501_v46 = vrot.slane %v4500_v14, 1 }
0x1375   : > { %6736 = vrcp.f32 %v4503_v47  ;;  %v4502_v49 = vadd.f32 %v4501_v46, %v4500_v14 }
0x1377   : > { %v4504_v22 = vadd.f32 1e-07, %v4502_v49 }
0x1379   : > { %6738 = vrcp.f32 %v4504_v22 }
0x137f   : > { %v6737_v10 = vpop.eup %6736 }
0x1380   : > { %v4506_v18 = vmul.f32 %v6737_v10, %v4486_v50 }
0x1382   : > { %v4509_v25 = vsel %vm3976_vm4, %v4506_v18, 0.0 }
0x1383   : > { %v6739_v51 = vpop.eup %6738  ;;  %4510 = vadd.xlane.f32.xlu0 %v4509_v25 }
0x1384   : > { %v4508_v53 = vmul.f32 %v6739_v51, %v4488_v36 }
0x1386   : > { %v4512_v55 = vsel %vm3976_vm4, %v4508_v53, 0.0 }
0x1387   : > { %4513 = vadd.xlane.f32.xlu1 %v4512_v55 }
0x1410   : > { %v4511_v56 = vpop.xlane.xlu0 %4510 }
0x1411   : > { %v4515_v57 = vadd.f32 1e-07, %v4511_v56 }
0x1413   : > { %6740 = vrcp.f32 %v4515_v57 }
0x1414   : > { %v4514_v2 = vpop.xlane.xlu1 %4513 }
0x1415   : > { %v4516_v59 = vadd.f32 1e-07, %v4514_v2 }
0x1417   : > { %6742 = vrcp.f32 %v4516_v59 }
0x141d   : > { %v6741_v35 = vpop.eup %6740 }
0x141e   : > { %v4518_v19 = vmul.f32 %v6741_v35, %v4506_v18 }
0x1420   : > { %v4521_v60 = vsel %vm3976_vm4, %v4518_v19, 0.0 }
0x1421   : > { %v6743_v23 = vpop.eup %6742  ;;  %v4522_v20 = vrot.slane %v4521_v60, 4 }
0x1422   : > { %v4520_v61 = vmul.f32 %v6743_v23, %v4508_v53 }
0x1423   : > { %v4523_v62 = vadd.f32 %v4522_v20, %v4521_v60 }
0x1424   : > { %v4528_v63 = vsel %vm3976_vm4, %v4520_v61, 0.0 }
0x1425   : > { %v4524_v0 = vrot.slane %v4523_v62, 2  ;;  %v4529_v31 = vrot.slane %v4528_v63, 4 }
0x1427   : > { %v4525_v3 = vadd.f32 %v4524_v0, %v4523_v62  ;;  %v4530_v42 = vadd.f32 %v4529_v31, %v4528_v63 }
0x1429   : > { %v4526_v13 = vrot.slane %v4525_v3, 1  ;;  %v4531_v6 = vrot.slane %v4530_v42, 2 }
0x142b   : > { %v4527_v7 = vadd.f32 %v4526_v13, %v4525_v3  ;;  %v4532_v8 = vadd.f32 %v4531_v6, %v4530_v42 }
0x142d   : > { %v4535_v5 = vadd.f32 1e-07, %v4527_v7  ;;  %v4533_v9 = vrot.slane %v4532_v8, 1 }
0x142f   : > { %6744 = vrcp.f32 %v4535_v5  ;;  %v4534_v21 = vadd.f32 %v4533_v9, %v4532_v8 }
0x1431   : > { %v4536_v11 = vadd.f32 1e-07, %v4534_v21 }
0x1433   : > { %6746 = vrcp.f32 %v4536_v11 }
0x1439   : > { %v6745_v12 = vpop.eup %6744 }
0x143a   : > { %v4538_v40 = vmul.f32 %v6745_v12, %v4518_v19 }
0x143c   : > { %v4541_v52 = vsel %vm3976_vm4, %v4538_v40, 0.0 }
0x143d   : > { %v6747_v54 = vpop.eup %6746  ;;  %4542 = vadd.xlane.f32.xlu0 %v4541_v52 }
0x143e   : > { %v4540_v15 = vmul.f32 %v6747_v54, %v4520_v61 }
0x1440   : > { %v4544_v16 = vsel %vm3976_vm4, %v4540_v15, 0.0 }
0x1441   : > { %4545 = vadd.xlane.f32.xlu1 %v4544_v16 }
0x14ca   : > { %v4543_v17 = vpop.xlane.xlu0 %4542 }
0x14cb   : > { %v4547_v24 = vadd.f32 1e-07, %v4543_v17 }
0x14cd   : > { %6748 = vrcp.f32 %v4547_v24 }
0x14ce   : > { %v4546_v27 = vpop.xlane.xlu1 %4545 }
0x14cf   : > { %v4548_v28 = vadd.f32 1e-07, %v4546_v27 }
0x14d1   : > { %6750 = vrcp.f32 %v4548_v28 }
0x14d7   : > { %v6749_v29 = vpop.eup %6748 }
0x14d8   : > { %v4550_v26 = vmul.f32 %v6749_v29, %v4538_v40 }
0x14da   : > { %v4553_v30 = vsel %vm3976_vm4, %v4550_v26, 0.0 }
0x14db   : > { %v6751_v48 = vpop.eup %6750  ;;  %v4554_v37 = vrot.slane %v4553_v30, 4 }
0x14dc   : > { %v4552_v50 = vmul.f32 %v6751_v48, %v4540_v15 }
0x14dd   : > { %v4555_v32 = vadd.f32 %v4554_v37, %v4553_v30 }
0x14de   : > { %v4560_v33 = vsel %vm3976_vm4, %v4552_v50, 0.0 }
0x14df   : > { %v4556_v34 = vrot.slane %v4555_v32, 2  ;;  %v4561_v36 = vrot.slane %v4560_v33, 4 }
0x14e1   : > { %v4557_v38 = vadd.f32 %v4556_v34, %v4555_v32  ;;  %v4562_v58 = vadd.f32 %v4561_v36, %v4560_v33 }
0x14e3   : > { %v4558_v39 = vrot.slane %v4557_v38, 1  ;;  %v4563_v1 = vrot.slane %v4562_v58, 2 }
0x14e5   : > { %v4559_v41 = vadd.f32 %v4558_v39, %v4557_v38  ;;  %v4564_v4 = vadd.f32 %v4563_v1, %v4562_v58 }
0x14e7   : > { %v4567_v43 = vadd.f32 1e-07, %v4559_v41  ;;  %v4565_v44 = vrot.slane %v4564_v4, 1 }
0x14e9   : > { %6752 = vrcp.f32 %v4567_v43  ;;  %v4566_v45 = vadd.f32 %v4565_v44, %v4564_v4 }
0x14eb   : > { %v4568_v14 = vadd.f32 1e-07, %v4566_v45 }
0x14ed   : > { %6754 = vrcp.f32 %v4568_v14 }
0x14f3   : > { %v6753_v47 = vpop.eup %6752 }
0x14f4   : > { %v4570_v46 = vmul.f32 %v6753_v47, %v4550_v26 }
0x14f6   : > { %v4573_v49 = vsel %vm3976_vm4, %v4570_v46, 0.0 }
0x14f7   : > { %v6755_v22 = vpop.eup %6754  ;;  %4574 = vadd.xlane.f32.xlu0 %v4573_v49 }
0x14f8   : > { %v4572_v10 = vmul.f32 %v6755_v22, %v4552_v50 }
0x14fa   : > { %v4576_v18 = vsel %vm3976_vm4, %v4572_v10, 0.0 }
0x14fb   : > { %4577 = vadd.xlane.f32.xlu1 %v4576_v18 }
0x1584   : > { %v4575_v25 = vpop.xlane.xlu0 %4574 }
0x1585   : > { %v4579_v51 = vadd.f32 1e-07, %v4575_v25 }
0x1587   : > { %6756 = vrcp.f32 %v4579_v51 }
0x1588   : > { %v4578_v53 = vpop.xlane.xlu1 %4577 }
0x1589   : > { %v4580_v55 = vadd.f32 1e-07, %v4578_v53 }
0x158b   : > { %6758 = vrcp.f32 %v4580_v55 }
0x1591   : > { %v6757_v56 = vpop.eup %6756 }
0x1592   : > { %v4582_v57 = vmul.f32 %v6757_v56, %v4570_v46 }
0x1594   : > { %v4585_v2 = vsel %vm3976_vm4, %v4582_v57, 0.0 }
0x1595   : > { %v6759_v59 = vpop.eup %6758  ;;  %v4586_v35 = vrot.slane %v4585_v2, 4 }
0x1596   : > { %v4584_v19 = vmul.f32 %v6759_v59, %v4572_v10 }
0x1597   : > { %v4587_v60 = vadd.f32 %v4586_v35, %v4585_v2 }
0x1598   : > { %v4592_v23 = vsel %vm3976_vm4, %v4584_v19, 0.0 }
0x1599   : > { %v4588_v20 = vrot.slane %v4587_v60, 2  ;;  %v4593_v61 = vrot.slane %v4592_v23, 4 }
0x159b   : > { %v4589_v62 = vadd.f32 %v4588_v20, %v4587_v60  ;;  %v4594_v63 = vadd.f32 %v4593_v61, %v4592_v23 }
0x159d   : > { %v4590_v0 = vrot.slane %v4589_v62, 1  ;;  %v4595_v31 = vrot.slane %v4594_v63, 2 }
0x159f   : > { %v4591_v3 = vadd.f32 %v4590_v0, %v4589_v62  ;;  %v4596_v42 = vadd.f32 %v4595_v31, %v4594_v63 }
0x15a1   : > { %v4599_v13 = vadd.f32 1e-07, %v4591_v3  ;;  %v4597_v6 = vrot.slane %v4596_v42, 1 }
0x15a3   : > { %6760 = vrcp.f32 %v4599_v13  ;;  %v4598_v7 = vadd.f32 %v4597_v6, %v4596_v42 }
0x15a5   : > { %v4600_v8 = vadd.f32 1e-07, %v4598_v7 }
0x15a7   : > { %6762 = vrcp.f32 %v4600_v8 }
0x15ad   : > { %v6761_v5 = vpop.eup %6760 }
0x15ae   : > { %v4602_v9 = vmul.f32 %v6761_v5, %v4582_v57 }
0x15b0   : > { %v4605_v21 = vsel %vm3976_vm4, %v4602_v9, 0.0 }
0x15b1   : > { %v6763_v11 = vpop.eup %6762  ;;  %4606 = vadd.xlane.f32.xlu0 %v4605_v21 }
0x15b2   : > { %v4604_v12 = vmul.f32 %v6763_v11, %v4584_v19 }
0x15b4   : > { %v4608_v40 = vsel %vm3976_vm4, %v4604_v12, 0.0 }
0x15b5   : > { %4609 = vadd.xlane.f32.xlu1 %v4608_v40 }
0x163e   : > { %v4607_v52 = vpop.xlane.xlu0 %4606 }
0x163f   : > { %v4611_v54 = vadd.f32 1e-07, %v4607_v52 }
0x1641   : > { %6764 = vrcp.f32 %v4611_v54 }
0x1642   : > { %v4610_v15 = vpop.xlane.xlu1 %4609 }
0x1643   : > { %v4612_v16 = vadd.f32 1e-07, %v4610_v15 }
0x1645   : > { %6766 = vrcp.f32 %v4612_v16 }
0x164b   : > { %v6765_v17 = vpop.eup %6764 }
0x164c   : > { %v4614_v24 = vmul.f32 %v6765_v17, %v4602_v9 }
0x164e   : > { %4617 = vst.msk [vmem:[%s741_s9] sm:$0xff] %vm3976_vm4, %v4614_v24 }
0x164f   : > { %v6767_v27 = vpop.eup %6766 }
0x1650   : > { %v4616_v28 = vmul.f32 %v6767_v27, %v4604_v12 }
0x1652   : > { %4618 = vst.msk [vmem:[%s741_s9 + $0x8] sm:$0xff] %vm3976_vm4, %v4616_v28 }
0x1653   : > { %7179 = shalt.err (!%p7176_p8)
}
0x1654   : > { %s7180_s3 = scalar_lea.hbm %s8248_s5, 256  ;;  %s7184_s22 = scalar_lea.hbm %s8403_s28, 512 }
0x1655   : > { %p7181_p7 = scmp.ne.s32.totalorder %s8248_s5, %s7180_s3  ;;  %p7185_p13 = scmp.lt.u32.totalorder %s8248_s5, %s8403_s28 }
0x1656   : > { %p7186_p4 = scmp.lt.u32.totalorder %s7184_s22, %s7180_s3  ;;  %p7188_p6 = scmp.lt.u32.totalorder %s7180_s3, %s8248_s5 }
0x1657   : > { %p7182_p3 = pnand %p7181_p7, %p8404_p9 }
0x1658   : > { %p7187_p1 = por %p7186_p4, %p7185_p13 }
0x1659   : > { %p7183_p11 = pneg %p7182_p3 }
0x165a   : > { %p7189_p10 = por %p7188_p6, %p7187_p1 }
0x165c   : > { %p7190_p12 = pnand %p7189_p10, %p7183_p11 }
0x165e   : > { %7193 = shalt.err (!%p7190_p12)
}
0x165f   : > { %s7288_s13 = smov 128   ;;  %s7289_s9 = smov 8  }
0x1660   : > { %6470 = dma.vmem_to_hbm [thread:$0]  (%p8404_p9), %s8250_s1, 256, %s8248_s5, %s4620_s24, %s7288_s13, %s7288_s13, %s7289_s9  }
0x1661 PF: > { %s4648_s4 = sand.u32 1, %s7248_s18   ;;  %p8405_p0 = scmp.ne.s32.totalorder %s8368_s30, 0 }
0x1662   : > { %p8406_p2 = scmp.ge.s32.totalorder %s7260_s21, 2  ;;  %s4649_s11 = scalar_lea.sflag [#allocation4], %s4648_s4 }
0x1664   : > { %p6517_p5 = pnand %p8406_p2, %p8405_p0 }
0x1666   : > { %7243 = dma.done.wait (!%p6517_p5), %s4649_s11, 256  }
0x1667   : > { %7245 = vsyncadd (!%p6517_p5), %s4649_s11, 4294967040  ;;  %s8407_s21 = sld [smem:[#allocation37_spill]]  ;;  %s8408_s29 = sld [smem:[#allocation35_spill]] }
0x1668   : > { %s8409_s20 = sld [smem:[#allocation38_spill]]  ;;  %s8410_s18 = smov %s7252_s19 }
0x166d   : > { %p37_p8 = scmp.ge.s32.totalorder %s8407_s21, 4   ;;  %s8411_s19 = smov %s8408_s29 }
0x166f   :  { %39 = sbr.rel (!%p37_p8) target bundleno = 28 (0x1c), region = 193 }
0x1676   :  { %4654 = vsyncpa [#allocation3], 1 }
0x1677   :  { %4656 = vsyncpa [#allocation3 + $0x1], 1 }
0x1678   :  { %4657 = vsyncpa [#allocation6], 1 }
0x1679   :  { %4659 = vsyncpa [#allocation6 + $0x1], 1 }
0x167a   :  { %4660 = vsyncpa [#allocation9], 1 }
0x167b   :  { %4661 = vsyncpa [#allocation12], 1 }
0x167c   :  { %4662 = vsyncpa [#allocation15], 1 }
0x167d   :  { %4663 = vsyncpa [#allocation18], 1 }
0x167e   :  { %4664 = vsyncpa [#allocation21], 1 }
0x167f   :  { %4665 = vsyncpa [#allocation24], 1 }
0x1680   :  { %4666 = vsyncpa [#allocation4], 1 }
0x1681   :  { %4668 = vsyncpa [#allocation4 + $0x1], 1 }

</bundles_post_ra>
